<compile_context>
chip_gen: v7x
topology: tpu7x:2x2x1
jax: 0.10.0
libtpu: 0.0.40
codegen_flags: <defaults>
</compile_context>

<pallas_src>
import functools
import math

import jax
import jax.numpy as jnp
from jax import lax
from jax.experimental import pallas as pl
from jax.experimental.pallas import tpu as pltpu

EMBED_DIM = 128
FEAT_DIM = 2048
HIDDEN = 512
LANE = 128


def _round_up(x, m):
    return (x + m - 1) // m * m


def _padded_bytes(shape, itemsize):
    """VMEM bytes of a buffer after (sublane, lane) tile padding."""
    s = tuple(shape)
    if len(s) < 2:
        s = (1,) * (2 - len(s)) + s
    lead = 1
    for d in s[:-2]:
        lead *= d
    sublane = 8 * max(1, 4 // itemsize)          # f32: 8, bf16: 16
    return lead * _round_up(s[-2], sublane) * _round_up(s[-1], LANE) * itemsize


def _pair_diff_kernel(img1_ref, img2_ref,
                      wstem_ref, bstem_ref,
                      w1a_ref, w1b_ref, b1_ref,
                      w2_ref, b2_ref,
                      out_ref,
                      s1_ref, s2_ref,
                      *, inv_hw, hw, tile, n_channels, needs_mask):
    st = pl.program_id(1)

    @pl.when(st == 0)
    def _init():
        s1_ref[...] = jnp.zeros_like(s1_ref)
        s2_ref[...] = jnp.zeros_like(s2_ref)

    # ---- streaming phase: VPU adds of 128-lane slabs into (C, TB, 128) -----
    # (per-channel inner loops keep the live vreg set small; the out-of-range
    # tail of a partial last chunk is masked to zero so the sum is exact)
    num_slabs = tile // LANE
    for c in range(n_channels):
        for img_ref, acc_ref in ((img1_ref, s1_ref), (img2_ref, s2_ref)):
            total = acc_ref[c, :, :]
            for k in range(num_slabs):
                slab = img_ref[c, :, k * LANE:(k + 1) * LANE].astype(jnp.float32)
                if needs_mask:
                    pos = (st * tile + k * LANE
                           + lax.broadcasted_iota(jnp.int32, slab.shape, 1))
                    slab = jnp.where(pos < hw, slab, 0.0)
                total = total + slab
            acc_ref[c, :, :] = total

    # ---- finalize: single cross-lane reduce, stem matmul, MLP head ---------
    @pl.when(st == pl.num_programs(1) - 1)
    def _finalize():
        def pooled(acc_ref):                     # (C, TB, 128) -> (TB, C) mean
            cols = [jnp.sum(acc_ref[c, :, :], axis=-1, keepdims=True)
                    for c in range(n_channels)]
            return jnp.concatenate(cols, axis=-1) * inv_hw

        p1, p2 = pooled(s1_ref), pooled(s2_ref)

        # Stem projection: one small (M=TB, K=C, N=2048) MXU matmul per image.
        f1 = (jnp.dot(p1, wstem_ref[...], preferred_element_type=jnp.float32)
              + bstem_ref[...])
        f2 = (jnp.dot(p2, wstem_ref[...], preferred_element_type=jnp.float32)
              + bstem_ref[...])

        # Head: cat([f1, f2]) @ W1 + b1 == f1 @ W1[:2048] + f2 @ W1[2048:]
        h = (jnp.dot(f1, w1a_ref[...], preferred_element_type=jnp.float32)
             + jnp.dot(f2, w1b_ref[...], preferred_element_type=jnp.float32)
             + b1_ref[...])
        h = jnp.maximum(h, 0.0)                                    # ReLU
        out_ref[...] = (jnp.dot(h, w2_ref[...],
                                preferred_element_type=jnp.float32)
                        + b2_ref[...])                             # (TB, 128)


def pair_difference_encoder(img1, img2, params, labels=None, *,
                            batch_tile=128, spatial_tile=2048,
                            stream_dtype=jnp.bfloat16):
    """img1, img2: (B, C, H, W) NCHW.  Returns {'feats': (B, 128), 'labels': labels}.

    spatial_tile: 2048-4096 recommended on v6e/v7x, 512-1024 on v5e.
    """
    B, C, H, W = img1.shape
    assert img2.shape == img1.shape
    HW = H * W

    # ---- batch tiling (no padding; Pallas handles partial edge blocks) -----
    if B <= 8:
        TB = B                                   # block dim == full dim: legal
    else:
        TB = min(batch_tile, B)
        if B <= batch_tile:                      # give megacore >= 2 batch tiles
            TB = min(B, _round_up(pl.cdiv(B, 2), 8))
    n_bt = pl.cdiv(B, TB)

    # ---- spatial tiling: TILE always a multiple of 128 (lane granule); the
    #      partial last chunk is masked in-kernel, never padded on the host. --
    TILE = min(_round_up(spatial_tile, LANE), _round_up(HW, LANE))
    n_st = pl.cdiv(HW, TILE)
    needs_mask = (HW % TILE) != 0

    # One fused pass per image: NCHW f32 -> (C, B, H*W) bf16 streaming layout.
    # (In a real pipeline the upstream producer would emit this directly.)
    def prep(img):
        return jnp.transpose(img.astype(stream_dtype).reshape(B, C, HW), (1, 0, 2))

    img1_f, img2_f = prep(img1), prep(img2)
    stream_isize = jnp.dtype(stream_dtype).itemsize

    kernel = functools.partial(
        _pair_diff_kernel, inv_hw=1.0 / HW, hw=HW, tile=TILE,
        n_channels=C, needs_mask=needs_mask)

    weight_keys = ("wstem", "bstem", "w1a", "w1b", "b1", "w2", "b2")

    # ---- VMEM budget: double-buffered image blocks + resident weights
    #      (weights counted x2 defensively) + scratch + temps + headroom -----
    vmem = 0
    vmem += 2 * 2 * _padded_bytes((C, TB, TILE), stream_isize)      # image blocks
    vmem += 2 * sum(_padded_bytes(params[k].shape, 4) for k in weight_keys)
    vmem += 2 * _padded_bytes((TB, EMBED_DIM), 4)                   # output block
    vmem += 2 * _padded_bytes((C, TB, LANE), 4)                     # pooling scratch
    vmem += 2 * _padded_bytes((TB, FEAT_DIM), 4) + _padded_bytes((TB, HIDDEN), 4)
    vmem += 8 << 20                                                 # headroom
    vmem_limit = int(min(vmem, 128 << 20))

    flops = (2 * 2 * B * C * HW                      # streamed pooling adds
             + 2 * 2 * B * C * FEAT_DIM              # stem matmuls
             + 2 * B * (2 * FEAT_DIM) * HIDDEN       # fc.0 (split W1)
             + 2 * B * HIDDEN * EMBED_DIM)           # fc.2
    bytes_accessed = (2 * B * C * HW * stream_isize
                      + 4 * sum(math.prod(params[k].shape) for k in weight_keys)
                      + 4 * B * EMBED_DIM)

    # Whole-array VMEM residents: single copy, loaded once, never re-DMAed.
    resident = pl.BlockSpec(memory_space=pltpu.MemorySpace.VMEM)

    feats = pl.pallas_call(
        kernel,
        out_shape=jax.ShapeDtypeStruct((B, EMBED_DIM), jnp.float32),
        grid_spec=pltpu.PrefetchScalarGridSpec(
            num_scalar_prefetch=0,
            grid=(n_bt, n_st),
            in_specs=[
                # streamed, double-buffered image chunks (lane/sublane dense)
                pl.BlockSpec((C, TB, TILE), lambda bt, st: (0, bt, st)),
                pl.BlockSpec((C, TB, TILE), lambda bt, st: (0, bt, st)),
                # resident weights
                resident, resident, resident, resident, resident, resident, resident,
            ],
            out_specs=pl.BlockSpec((TB, EMBED_DIM), lambda bt, st: (bt, 0)),
            scratch_shapes=[pltpu.VMEM((C, TB, LANE), jnp.float32),
                            pltpu.VMEM((C, TB, LANE), jnp.float32)],
        ),
        compiler_params=pltpu.CompilerParams(
            dimension_semantics=("parallel", "arbitrary"),
            vmem_limit_bytes=vmem_limit),
        cost_estimate=pl.CostEstimate(flops=int(flops), transcendentals=0,
                                      bytes_accessed=int(bytes_accessed)),
    )(img1_f, img2_f,
      params["wstem"], params["bstem"],
      params["w1a"], params["w1b"], params["b1"],
      params["w2"], params["b2"])

    return {"feats": feats, "labels": labels}


def init_params(key, in_channels=3):
    ks = jax.random.split(key, 6)
    scale = 0.02
    wstem = scale * jax.random.normal(ks[0], (in_channels, FEAT_DIM), jnp.float32)
    bstem = scale * jax.random.normal(ks[1], (1, FEAT_DIM), jnp.float32)
    # fc.0: Linear(4096, 512) -- stored as two (2048, 512) halves (concat split)
    w1 = scale * jax.random.normal(ks[2], (2 * FEAT_DIM, HIDDEN), jnp.float32)
    b1 = scale * jax.random.normal(ks[3], (1, HIDDEN), jnp.float32)
    # fc.2: Linear(512, 128)
    w2 = scale * jax.random.normal(ks[4], (HIDDEN, EMBED_DIM), jnp.float32)
    b2 = scale * jax.random.normal(ks[5], (1, EMBED_DIM), jnp.float32)
    return {
        "wstem": wstem, "bstem": bstem,
        "w1a": w1[:FEAT_DIM], "w1b": w1[FEAT_DIM:], "b1": b1,
        "w2": w2, "b2": b2,
    }


def _reference(img1, img2, p):
    B, C, H, W = img1.shape

    def backbone(x):
        pooled = jnp.mean(x.reshape(B, C, H * W), axis=-1)
        return pooled @ p["wstem"] + p["bstem"]

    f1, f2 = backbone(img1), backbone(img2)
    w1 = jnp.concatenate([p["w1a"], p["w1b"]], axis=0)
    h = jnp.maximum(jnp.concatenate([f1, f2], axis=1) @ w1 + p["b1"], 0.0)
    return h @ p["w2"] + p["b2"]


if __name__ == "__main__":
    key = jax.random.PRNGKey(0)
    k_img1, k_img2, k_param = jax.random.split(key, 3)

    B, C, H, W = 2, 3, 16, 16
    img1 = jax.random.normal(k_img1, (B, C, H, W), jnp.float32)
    img2 = jax.random.normal(k_img2, (B, C, H, W), jnp.float32)
    labels = jnp.arange(B, dtype=jnp.int32)

    params = init_params(k_param, in_channels=C)

    out = pair_difference_encoder(img1, img2, params, labels=labels)
    feats = jax.block_until_ready(out["feats"])
    assert feats.shape == (B, EMBED_DIM), feats.shape

    # Tight check vs a reference fed the same bf16-quantized image stream.
    q = lambda x: x.astype(jnp.bfloat16).astype(jnp.float32)
    ref_stream = _reference(q(img1), q(img2), params)
    assert jnp.allclose(feats, ref_stream, atol=1e-4, rtol=1e-4), "mismatch (stream ref)"

    # Looser check vs the pure-f32 reference (only the bf16 input stream differs).
    ref_f32 = _reference(img1, img2, params)
    assert jnp.allclose(feats, ref_f32, atol=5e-3, rtol=5e-3), "mismatch (f32 ref)"

    print("KERNEL_OK")
</pallas_src>

<mosaic_0001>
module attributes {stable_mosaic.version = 11 : i64} {
  func.func @_pair_diff_kernel(%arg0: i32, %arg1: i32, %arg2: memref<3x2x256xbf16, #tpu.memory_space<vmem>>, %arg3: memref<3x2x256xbf16, #tpu.memory_space<vmem>>, %arg4: memref<3x2048xf32, #tpu.memory_space<vmem>>, %arg5: memref<1x2048xf32, #tpu.memory_space<vmem>>, %arg6: memref<2048x512xf32, #tpu.memory_space<vmem>>, %arg7: memref<2048x512xf32, #tpu.memory_space<vmem>>, %arg8: memref<1x512xf32, #tpu.memory_space<vmem>>, %arg9: memref<512x128xf32, #tpu.memory_space<vmem>>, %arg10: memref<1x128xf32, #tpu.memory_space<vmem>>, %arg11: memref<2x128xf32, #tpu.memory_space<vmem>>, %arg12: memref<3x2x128xf32, #tpu.memory_space<vmem>>, %arg13: memref<3x2x128xf32, #tpu.memory_space<vmem>>) attributes {dimension_semantics = [#tpu.dimension_semantics<parallel>, #tpu.dimension_semantics<arbitrary>], iteration_bounds = array<i64: 1, 1>, scalar_prefetch = 0 : i64, scratch_operands = 2 : i64, tpu.core_type = #tpu.core_type<tc>, window_params = [{transform_indices = @transform_0, window_bounds = array<i64: 3, 2, 256>}, {transform_indices = @transform_1, window_bounds = array<i64: 3, 2, 256>}, {pipeline_mode = #tpu.pipeline_mode<synchronous>, transform_indices = @transform_2, window_bounds = array<i64: 3, 2048>}, {pipeline_mode = #tpu.pipeline_mode<synchronous>, transform_indices = @transform_3, window_bounds = array<i64: 1, 2048>}, {pipeline_mode = #tpu.pipeline_mode<synchronous>, transform_indices = @transform_4, window_bounds = array<i64: 2048, 512>}, {pipeline_mode = #tpu.pipeline_mode<synchronous>, transform_indices = @transform_5, window_bounds = array<i64: 2048, 512>}, {pipeline_mode = #tpu.pipeline_mode<synchronous>, transform_indices = @transform_6, window_bounds = array<i64: 1, 512>}, {pipeline_mode = #tpu.pipeline_mode<synchronous>, transform_indices = @transform_7, window_bounds = array<i64: 512, 128>}, {pipeline_mode = #tpu.pipeline_mode<synchronous>, transform_indices = @transform_8, window_bounds = array<i64: 1, 128>}, {transform_indices = @transform_9, window_bounds = array<i64: 2, 128>}]} {
    %c0_i32 = arith.constant 0 : i32
    %0 = arith.cmpi eq, %arg1, %c0_i32 : i32
    %1 = arith.extui %0 : i1 to i32
    %c0_i32_0 = arith.constant 0 : i32
    %2 = arith.cmpi ne, %1, %c0_i32_0 : i32
    scf.if %2 {
      %cst = arith.constant 0.000000e+00 : f32
      %84 = vector.broadcast %cst : f32 to vector<3x2x128xf32>
      %c0_71 = arith.constant 0 : index
      %c0_72 = arith.constant 0 : index
      %c0_73 = arith.constant 0 : index
      %85 = vector.load %arg12[%c0_71, %c0_72, %c0_73] : memref<3x2x128xf32, #tpu.memory_space<vmem>>, vector<3x2x128xf32>
      tpu.vector_store %arg12[%c0_71, %c0_72, %c0_73], %84 {strides = array<i32>} : memref<3x2x128xf32, #tpu.memory_space<vmem>>, vector<3x2x128xf32>,
      %cst_74 = arith.constant 0.000000e+00 : f32
      %86 = vector.broadcast %cst_74 : f32 to vector<3x2x128xf32>
      %c0_75 = arith.constant 0 : index
      %c0_76 = arith.constant 0 : index
      %c0_77 = arith.constant 0 : index
      %87 = vector.load %arg13[%c0_75, %c0_76, %c0_77] : memref<3x2x128xf32, #tpu.memory_space<vmem>>, vector<3x2x128xf32>
      tpu.vector_store %arg13[%c0_75, %c0_76, %c0_77], %86 {strides = array<i32>} : memref<3x2x128xf32, #tpu.memory_space<vmem>>, vector<3x2x128xf32>,
    } else {
    }
    %c0 = arith.constant 0 : index
    %c0_1 = arith.constant 0 : index
    %c0_2 = arith.constant 0 : index
    %3 = vector.load %arg12[%c0, %c0_1, %c0_2] : memref<3x2x128xf32, #tpu.memory_space<vmem>>, vector<1x2x128xf32>
    %4 = vector.shape_cast %3 : vector<1x2x128xf32> to vector<2x128xf32>
    %c0_3 = arith.constant 0 : index
    %c0_4 = arith.constant 0 : index
    %c0_5 = arith.constant 0 : index
    %5 = vector.load %arg2[%c0_3, %c0_4, %c0_5] : memref<3x2x256xbf16, #tpu.memory_space<vmem>>, vector<1x2x128xbf16>
    %6 = vector.shape_cast %5 : vector<1x2x128xbf16> to vector<2x128xbf16>
    %7 = arith.extf %6 : vector<2x128xbf16> to vector<2x128xf32>
    %8 = arith.addf %4, %7 : vector<2x128xf32>
    %c0_6 = arith.constant 0 : index
    %c0_7 = arith.constant 0 : index
    %c128 = arith.constant 128 : index
    %9 = vector.load %arg2[%c0_6, %c0_7, %c128] : memref<3x2x256xbf16, #tpu.memory_space<vmem>>, vector<1x2x128xbf16>
    %10 = vector.shape_cast %9 : vector<1x2x128xbf16> to vector<2x128xbf16>
    %11 = arith.extf %10 : vector<2x128xbf16> to vector<2x128xf32>
    %12 = arith.addf %8, %11 : vector<2x128xf32>
    %c0_8 = arith.constant 0 : index
    %c0_9 = arith.constant 0 : index
    %c0_10 = arith.constant 0 : index
    %13 = vector.load %arg12[%c0_8, %c0_9, %c0_10] : memref<3x2x128xf32, #tpu.memory_space<vmem>>, vector<1x2x128xf32>
    %14 = vector.shape_cast %13 : vector<1x2x128xf32> to vector<2x128xf32>
    %15 = vector.shape_cast %12 : vector<2x128xf32> to vector<1x2x128xf32>
    tpu.vector_store %arg12[%c0_8, %c0_9, %c0_10], %15 {strides = array<i32>} : memref<3x2x128xf32, #tpu.memory_space<vmem>>, vector<1x2x128xf32>,
    %c0_11 = arith.constant 0 : index
    %c0_12 = arith.constant 0 : index
    %c0_13 = arith.constant 0 : index
    %16 = vector.load %arg13[%c0_11, %c0_12, %c0_13] : memref<3x2x128xf32, #tpu.memory_space<vmem>>, vector<1x2x128xf32>
    %17 = vector.shape_cast %16 : vector<1x2x128xf32> to vector<2x128xf32>
    %c0_14 = arith.constant 0 : index
    %c0_15 = arith.constant 0 : index
    %c0_16 = arith.constant 0 : index
    %18 = vector.load %arg3[%c0_14, %c0_15, %c0_16] : memref<3x2x256xbf16, #tpu.memory_space<vmem>>, vector<1x2x128xbf16>
    %19 = vector.shape_cast %18 : vector<1x2x128xbf16> to vector<2x128xbf16>
    %20 = arith.extf %19 : vector<2x128xbf16> to vector<2x128xf32>
    %21 = arith.addf %17, %20 : vector<2x128xf32>
    %c0_17 = arith.constant 0 : index
    %c0_18 = arith.constant 0 : index
    %c128_19 = arith.constant 128 : index
    %22 = vector.load %arg3[%c0_17, %c0_18, %c128_19] : memref<3x2x256xbf16, #tpu.memory_space<vmem>>, vector<1x2x128xbf16>
    %23 = vector.shape_cast %22 : vector<1x2x128xbf16> to vector<2x128xbf16>
    %24 = arith.extf %23 : vector<2x128xbf16> to vector<2x128xf32>
    %25 = arith.addf %21, %24 : vector<2x128xf32>
    %c0_20 = arith.constant 0 : index
    %c0_21 = arith.constant 0 : index
    %c0_22 = arith.constant 0 : index
    %26 = vector.load %arg13[%c0_20, %c0_21, %c0_22] : memref<3x2x128xf32, #tpu.memory_space<vmem>>, vector<1x2x128xf32>
    %27 = vector.shape_cast %26 : vector<1x2x128xf32> to vector<2x128xf32>
    %28 = vector.shape_cast %25 : vector<2x128xf32> to vector<1x2x128xf32>
    tpu.vector_store %arg13[%c0_20, %c0_21, %c0_22], %28 {strides = array<i32>} : memref<3x2x128xf32, #tpu.memory_space<vmem>>, vector<1x2x128xf32>,
    %c1 = arith.constant 1 : index
    %c0_23 = arith.constant 0 : index
    %c0_24 = arith.constant 0 : index
    %29 = vector.load %arg12[%c1, %c0_23, %c0_24] : memref<3x2x128xf32, #tpu.memory_space<vmem>>, vector<1x2x128xf32>
    %30 = vector.shape_cast %29 : vector<1x2x128xf32> to vector<2x128xf32>
    %c1_25 = arith.constant 1 : index
    %c0_26 = arith.constant 0 : index
    %c0_27 = arith.constant 0 : index
    %31 = vector.load %arg2[%c1_25, %c0_26, %c0_27] : memref<3x2x256xbf16, #tpu.memory_space<vmem>>, vector<1x2x128xbf16>
    %32 = vector.shape_cast %31 : vector<1x2x128xbf16> to vector<2x128xbf16>
    %33 = arith.extf %32 : vector<2x128xbf16> to vector<2x128xf32>
    %34 = arith.addf %30, %33 : vector<2x128xf32>
    %c1_28 = arith.constant 1 : index
    %c0_29 = arith.constant 0 : index
    %c128_30 = arith.constant 128 : index
    %35 = vector.load %arg2[%c1_28, %c0_29, %c128_30] : memref<3x2x256xbf16, #tpu.memory_space<vmem>>, vector<1x2x128xbf16>
    %36 = vector.shape_cast %35 : vector<1x2x128xbf16> to vector<2x128xbf16>
    %37 = arith.extf %36 : vector<2x128xbf16> to vector<2x128xf32>
    %38 = arith.addf %34, %37 : vector<2x128xf32>
    %c1_31 = arith.constant 1 : index
    %c0_32 = arith.constant 0 : index
    %c0_33 = arith.constant 0 : index
    %39 = vector.load %arg12[%c1_31, %c0_32, %c0_33] : memref<3x2x128xf32, #tpu.memory_space<vmem>>, vector<1x2x128xf32>
    %40 = vector.shape_cast %39 : vector<1x2x128xf32> to vector<2x128xf32>
    %41 = vector.shape_cast %38 : vector<2x128xf32> to vector<1x2x128xf32>
    tpu.vector_store %arg12[%c1_31, %c0_32, %c0_33], %41 {strides = array<i32>} : memref<3x2x128xf32, #tpu.memory_space<vmem>>, vector<1x2x128xf32>,
    %c1_34 = arith.constant 1 : index
    %c0_35 = arith.constant 0 : index
    %c0_36 = arith.constant 0 : index
    %42 = vector.load %arg13[%c1_34, %c0_35, %c0_36] : memref<3x2x128xf32, #tpu.memory_space<vmem>>, vector<1x2x128xf32>
    %43 = vector.shape_cast %42 : vector<1x2x128xf32> to vector<2x128xf32>
    %c1_37 = arith.constant 1 : index
    %c0_38 = arith.constant 0 : index
    %c0_39 = arith.constant 0 : index
    %44 = vector.load %arg3[%c1_37, %c0_38, %c0_39] : memref<3x2x256xbf16, #tpu.memory_space<vmem>>, vector<1x2x128xbf16>
    %45 = vector.shape_cast %44 : vector<1x2x128xbf16> to vector<2x128xbf16>
    %46 = arith.extf %45 : vector<2x128xbf16> to vector<2x128xf32>
    %47 = arith.addf %43, %46 : vector<2x128xf32>
    %c1_40 = arith.constant 1 : index
    %c0_41 = arith.constant 0 : index
    %c128_42 = arith.constant 128 : index
    %48 = vector.load %arg3[%c1_40, %c0_41, %c128_42] : memref<3x2x256xbf16, #tpu.memory_space<vmem>>, vector<1x2x128xbf16>
    %49 = vector.shape_cast %48 : vector<1x2x128xbf16> to vector<2x128xbf16>
    %50 = arith.extf %49 : vector<2x128xbf16> to vector<2x128xf32>
    %51 = arith.addf %47, %50 : vector<2x128xf32>
    %c1_43 = arith.constant 1 : index
    %c0_44 = arith.constant 0 : index
    %c0_45 = arith.constant 0 : index
    %52 = vector.load %arg13[%c1_43, %c0_44, %c0_45] : memref<3x2x128xf32, #tpu.memory_space<vmem>>, vector<1x2x128xf32>
    %53 = vector.shape_cast %52 : vector<1x2x128xf32> to vector<2x128xf32>
    %54 = vector.shape_cast %51 : vector<2x128xf32> to vector<1x2x128xf32>
    tpu.vector_store %arg13[%c1_43, %c0_44, %c0_45], %54 {strides = array<i32>} : memref<3x2x128xf32, #tpu.memory_space<vmem>>, vector<1x2x128xf32>,
    %c2 = arith.constant 2 : index
    %c0_46 = arith.constant 0 : index
    %c0_47 = arith.constant 0 : index
    %55 = vector.load %arg12[%c2, %c0_46, %c0_47] : memref<3x2x128xf32, #tpu.memory_space<vmem>>, vector<1x2x128xf32>
    %56 = vector.shape_cast %55 : vector<1x2x128xf32> to vector<2x128xf32>
    %c2_48 = arith.constant 2 : index
    %c0_49 = arith.constant 0 : index
    %c0_50 = arith.constant 0 : index
    %57 = vector.load %arg2[%c2_48, %c0_49, %c0_50] : memref<3x2x256xbf16, #tpu.memory_space<vmem>>, vector<1x2x128xbf16>
    %58 = vector.shape_cast %57 : vector<1x2x128xbf16> to vector<2x128xbf16>
    %59 = arith.extf %58 : vector<2x128xbf16> to vector<2x128xf32>
    %60 = arith.addf %56, %59 : vector<2x128xf32>
    %c2_51 = arith.constant 2 : index
    %c0_52 = arith.constant 0 : index
    %c128_53 = arith.constant 128 : index
    %61 = vector.load %arg2[%c2_51, %c0_52, %c128_53] : memref<3x2x256xbf16, #tpu.memory_space<vmem>>, vector<1x2x128xbf16>
    %62 = vector.shape_cast %61 : vector<1x2x128xbf16> to vector<2x128xbf16>
    %63 = arith.extf %62 : vector<2x128xbf16> to vector<2x128xf32>
    %64 = arith.addf %60, %63 : vector<2x128xf32>
    %c2_54 = arith.constant 2 : index
    %c0_55 = arith.constant 0 : index
    %c0_56 = arith.constant 0 : index
    %65 = vector.load %arg12[%c2_54, %c0_55, %c0_56] : memref<3x2x128xf32, #tpu.memory_space<vmem>>, vector<1x2x128xf32>
    %66 = vector.shape_cast %65 : vector<1x2x128xf32> to vector<2x128xf32>
    %67 = vector.shape_cast %64 : vector<2x128xf32> to vector<1x2x128xf32>
    tpu.vector_store %arg12[%c2_54, %c0_55, %c0_56], %67 {strides = array<i32>} : memref<3x2x128xf32, #tpu.memory_space<vmem>>, vector<1x2x128xf32>,
    %c2_57 = arith.constant 2 : index
    %c0_58 = arith.constant 0 : index
    %c0_59 = arith.constant 0 : index
    %68 = vector.load %arg13[%c2_57, %c0_58, %c0_59] : memref<3x2x128xf32, #tpu.memory_space<vmem>>, vector<1x2x128xf32>
    %69 = vector.shape_cast %68 : vector<1x2x128xf32> to vector<2x128xf32>
    %c2_60 = arith.constant 2 : index
    %c0_61 = arith.constant 0 : index
    %c0_62 = arith.constant 0 : index
    %70 = vector.load %arg3[%c2_60, %c0_61, %c0_62] : memref<3x2x256xbf16, #tpu.memory_space<vmem>>, vector<1x2x128xbf16>
    %71 = vector.shape_cast %70 : vector<1x2x128xbf16> to vector<2x128xbf16>
    %72 = arith.extf %71 : vector<2x128xbf16> to vector<2x128xf32>
    %73 = arith.addf %69, %72 : vector<2x128xf32>
    %c2_63 = arith.constant 2 : index
    %c0_64 = arith.constant 0 : index
    %c128_65 = arith.constant 128 : index
    %74 = vector.load %arg3[%c2_63, %c0_64, %c128_65] : memref<3x2x256xbf16, #tpu.memory_space<vmem>>, vector<1x2x128xbf16>
    %75 = vector.shape_cast %74 : vector<1x2x128xbf16> to vector<2x128xbf16>
    %76 = arith.extf %75 : vector<2x128xbf16> to vector<2x128xf32>
    %77 = arith.addf %73, %76 : vector<2x128xf32>
    %c2_66 = arith.constant 2 : index
    %c0_67 = arith.constant 0 : index
    %c0_68 = arith.constant 0 : index
    %78 = vector.load %arg13[%c2_66, %c0_67, %c0_68] : memref<3x2x128xf32, #tpu.memory_space<vmem>>, vector<1x2x128xf32>
    %79 = vector.shape_cast %78 : vector<1x2x128xf32> to vector<2x128xf32>
    %80 = vector.shape_cast %77 : vector<2x128xf32> to vector<1x2x128xf32>
    tpu.vector_store %arg13[%c2_66, %c0_67, %c0_68], %80 {strides = array<i32>} : memref<3x2x128xf32, #tpu.memory_space<vmem>>, vector<1x2x128xf32>,
    %c0_i32_69 = arith.constant 0 : i32
    %81 = arith.cmpi eq, %arg1, %c0_i32_69 : i32
    %82 = arith.extui %81 : i1 to i32
    %c0_i32_70 = arith.constant 0 : i32
    %83 = arith.cmpi ne, %82, %c0_i32_70 : i32
    scf.if %83 {
      %c0_71 = arith.constant 0 : index
      %c0_72 = arith.constant 0 : index
      %c0_73 = arith.constant 0 : index
      %84 = vector.load %arg12[%c0_71, %c0_72, %c0_73] : memref<3x2x128xf32, #tpu.memory_space<vmem>>, vector<1x2x128xf32>
      %85 = vector.shape_cast %84 : vector<1x2x128xf32> to vector<2x128xf32>
      %cst = arith.constant dense<0.000000e+00> : vector<2xf32>
      %86 = vector.multi_reduction <add>, %85, %cst [1] : vector<2x128xf32> to vector<2xf32>
      %87 = vector.shape_cast %86 : vector<2xf32> to vector<2x1xf32>
      %c1_74 = arith.constant 1 : index
      %c0_75 = arith.constant 0 : index
      %c0_76 = arith.constant 0 : index
      %88 = vector.load %arg12[%c1_74, %c0_75, %c0_76] : memref<3x2x128xf32, #tpu.memory_space<vmem>>, vector<1x2x128xf32>
      %89 = vector.shape_cast %88 : vector<1x2x128xf32> to vector<2x128xf32>
      %cst_77 = arith.constant dense<0.000000e+00> : vector<2xf32>
      %90 = vector.multi_reduction <add>, %89, %cst_77 [1] : vector<2x128xf32> to vector<2xf32>
      %91 = vector.shape_cast %90 : vector<2xf32> to vector<2x1xf32>
      %c2_78 = arith.constant 2 : index
      %c0_79 = arith.constant 0 : index
      %c0_80 = arith.constant 0 : index
      %92 = vector.load %arg12[%c2_78, %c0_79, %c0_80] : memref<3x2x128xf32, #tpu.memory_space<vmem>>, vector<1x2x128xf32>
      %93 = vector.shape_cast %92 : vector<1x2x128xf32> to vector<2x128xf32>
      %cst_81 = arith.constant dense<0.000000e+00> : vector<2xf32>
      %94 = vector.multi_reduction <add>, %93, %cst_81 [1] : vector<2x128xf32> to vector<2xf32>
      %95 = vector.shape_cast %94 : vector<2xf32> to vector<2x1xf32>
      %96 = tpu.concatenate %87, %91, %95 in 1 : vector<2x1xf32>, vector<2x1xf32>, vector<2x1xf32> -> vector<2x3xf32>
      %cst_82 = arith.constant 3.906250e-03 : f32
      %97 = vector.broadcast %cst_82 : f32 to vector<2x3xf32>
      %98 = arith.mulf %96, %97 : vector<2x3xf32>
      %c0_83 = arith.constant 0 : index
      %c0_84 = arith.constant 0 : index
      %c0_85 = arith.constant 0 : index
      %99 = vector.load %arg13[%c0_83, %c0_84, %c0_85] : memref<3x2x128xf32, #tpu.memory_space<vmem>>, vector<1x2x128xf32>
      %100 = vector.shape_cast %99 : vector<1x2x128xf32> to vector<2x128xf32>
      %cst_86 = arith.constant dense<0.000000e+00> : vector<2xf32>
      %101 = vector.multi_reduction <add>, %100, %cst_86 [1] : vector<2x128xf32> to vector<2xf32>
      %102 = vector.shape_cast %101 : vector<2xf32> to vector<2x1xf32>
      %c1_87 = arith.constant 1 : index
      %c0_88 = arith.constant 0 : index
      %c0_89 = arith.constant 0 : index
      %103 = vector.load %arg13[%c1_87, %c0_88, %c0_89] : memref<3x2x128xf32, #tpu.memory_space<vmem>>, vector<1x2x128xf32>
      %104 = vector.shape_cast %103 : vector<1x2x128xf32> to vector<2x128xf32>
      %cst_90 = arith.constant dense<0.000000e+00> : vector<2xf32>
      %105 = vector.multi_reduction <add>, %104, %cst_90 [1] : vector<2x128xf32> to vector<2xf32>
      %106 = vector.shape_cast %105 : vector<2xf32> to vector<2x1xf32>
      %c2_91 = arith.constant 2 : index
      %c0_92 = arith.constant 0 : index
      %c0_93 = arith.constant 0 : index
      %107 = vector.load %arg13[%c2_91, %c0_92, %c0_93] : memref<3x2x128xf32, #tpu.memory_space<vmem>>, vector<1x2x128xf32>
      %108 = vector.shape_cast %107 : vector<1x2x128xf32> to vector<2x128xf32>
      %cst_94 = arith.constant dense<0.000000e+00> : vector<2xf32>
      %109 = vector.multi_reduction <add>, %108, %cst_94 [1] : vector<2x128xf32> to vector<2xf32>
      %110 = vector.shape_cast %109 : vector<2xf32> to vector<2x1xf32>
      %111 = tpu.concatenate %102, %106, %110 in 1 : vector<2x1xf32>, vector<2x1xf32>, vector<2x1xf32> -> vector<2x3xf32>
      %cst_95 = arith.constant 3.906250e-03 : f32
      %112 = vector.broadcast %cst_95 : f32 to vector<2x3xf32>
      %113 = arith.mulf %111, %112 : vector<2x3xf32>
      %c0_96 = arith.constant 0 : index
      %c0_97 = arith.constant 0 : index
      %114 = vector.load %arg4[%c0_96, %c0_97] : memref<3x2048xf32, #tpu.memory_space<vmem>>, vector<3x2048xf32>
      %cst_98 = arith.constant dense<0.000000e+00> : vector<2x2048xf32>
      %115 = tpu.matmul %98, %114, %cst_98 {dimension_numbers = #tpu.dot_dimension_numbers<[1], [0], [0], [1], [0, 0, 1, 1], [], []>} : vector<2x3xf32>, vector<3x2048xf32>, vector<2x2048xf32> -> vector<2x2048xf32>
      %c0_99 = arith.constant 0 : index
      %c0_100 = arith.constant 0 : index
      %116 = vector.load %arg5[%c0_99, %c0_100] : memref<1x2048xf32, #tpu.memory_space<vmem>>, vector<1x2048xf32>
      %117 = vector.broadcast %116 : vector<1x2048xf32> to vector<2x2048xf32>
      %118 = arith.addf %115, %117 : vector<2x2048xf32>
      %c0_101 = arith.constant 0 : index
      %c0_102 = arith.constant 0 : index
      %119 = vector.load %arg4[%c0_101, %c0_102] : memref<3x2048xf32, #tpu.memory_space<vmem>>, vector<3x2048xf32>
      %cst_103 = arith.constant dense<0.000000e+00> : vector<2x2048xf32>
      %120 = tpu.matmul %113, %119, %cst_103 {dimension_numbers = #tpu.dot_dimension_numbers<[1], [0], [0], [1], [0, 0, 1, 1], [], []>} : vector<2x3xf32>, vector<3x2048xf32>, vector<2x2048xf32> -> vector<2x2048xf32>
      %c0_104 = arith.constant 0 : index
      %c0_105 = arith.constant 0 : index
      %121 = vector.load %arg5[%c0_104, %c0_105] : memref<1x2048xf32, #tpu.memory_space<vmem>>, vector<1x2048xf32>
      %122 = vector.broadcast %121 : vector<1x2048xf32> to vector<2x2048xf32>
      %123 = arith.addf %120, %122 : vector<2x2048xf32>
      %c0_106 = arith.constant 0 : index
      %c0_107 = arith.constant 0 : index
      %124 = vector.load %arg6[%c0_106, %c0_107] : memref<2048x512xf32, #tpu.memory_space<vmem>>, vector<2048x512xf32>
      %cst_108 = arith.constant dense<0.000000e+00> : vector<2x512xf32>
      %125 = tpu.matmul %118, %124, %cst_108 {dimension_numbers = #tpu.dot_dimension_numbers<[1], [0], [0], [1], [0, 0, 1, 1], [], []>} : vector<2x2048xf32>, vector<2048x512xf32>, vector<2x512xf32> -> vector<2x512xf32>
      %c0_109 = arith.constant 0 : index
      %c0_110 = arith.constant 0 : index
      %126 = vector.load %arg7[%c0_109, %c0_110] : memref<2048x512xf32, #tpu.memory_space<vmem>>, vector<2048x512xf32>
      %cst_111 = arith.constant dense<0.000000e+00> : vector<2x512xf32>
      %127 = tpu.matmul %123, %126, %cst_111 {dimension_numbers = #tpu.dot_dimension_numbers<[1], [0], [0], [1], [0, 0, 1, 1], [], []>} : vector<2x2048xf32>, vector<2048x512xf32>, vector<2x512xf32> -> vector<2x512xf32>
      %128 = arith.addf %125, %127 : vector<2x512xf32>
      %c0_112 = arith.constant 0 : index
      %c0_113 = arith.constant 0 : index
      %129 = vector.load %arg8[%c0_112, %c0_113] : memref<1x512xf32, #tpu.memory_space<vmem>>, vector<1x512xf32>
      %130 = vector.broadcast %129 : vector<1x512xf32> to vector<2x512xf32>
      %131 = arith.addf %128, %130 : vector<2x512xf32>
      %cst_114 = arith.constant 0.000000e+00 : f32
      %132 = vector.broadcast %cst_114 : f32 to vector<2x512xf32>
      %133 = arith.maximumf %131, %132 : vector<2x512xf32>
      %c0_115 = arith.constant 0 : index
      %c0_116 = arith.constant 0 : index
      %134 = vector.load %arg9[%c0_115, %c0_116] : memref<512x128xf32, #tpu.memory_space<vmem>>, vector<512x128xf32>
      %cst_117 = arith.constant dense<0.000000e+00> : vector<2x128xf32>
      %135 = tpu.matmul %133, %134, %cst_117 {dimension_numbers = #tpu.dot_dimension_numbers<[1], [0], [0], [1], [0, 0, 1, 1], [], []>} : vector<2x512xf32>, vector<512x128xf32>, vector<2x128xf32> -> vector<2x128xf32>
      %c0_118 = arith.constant 0 : index
      %c0_119 = arith.constant 0 : index
      %136 = vector.load %arg10[%c0_118, %c0_119] : memref<1x128xf32, #tpu.memory_space<vmem>>, vector<1x128xf32>
      %137 = vector.broadcast %136 : vector<1x128xf32> to vector<2x128xf32>
      %138 = arith.addf %135, %137 : vector<2x128xf32>
      %c0_120 = arith.constant 0 : index
      %c0_121 = arith.constant 0 : index
      %139 = vector.load %arg11[%c0_120, %c0_121] : memref<2x128xf32, #tpu.memory_space<vmem>>, vector<2x128xf32>
      tpu.vector_store %arg11[%c0_120, %c0_121], %138 {strides = array<i32>} : memref<2x128xf32, #tpu.memory_space<vmem>>, vector<2x128xf32>,
    } else {
    }
    return
  }
  func.func @transform_0(%arg0: i32, %arg1: i32) -> (i32, i32, i32) {
    %c0_i32 = arith.constant 0 : i32
    %c0_i32_0 = arith.constant 0 : i32
    return %c0_i32, %arg0, %arg1 : i32, i32, i32
  }
  func.func @transform_1(%arg0: i32, %arg1: i32) -> (i32, i32, i32) {
    %c0_i32 = arith.constant 0 : i32
    %c0_i32_0 = arith.constant 0 : i32
    return %c0_i32, %arg0, %arg1 : i32, i32, i32
  }
  func.func @transform_2(%arg0: i32, %arg1: i32) -> (i32, i32) {
    %c0_i32 = arith.constant 0 : i32
    %c0_i32_0 = arith.constant 0 : i32
    %c0_i32_1 = arith.constant 0 : i32
    return %c0_i32, %c0_i32_0 : i32, i32
  }
  func.func @transform_3(%arg0: i32, %arg1: i32) -> (i32, i32) {
    %c0_i32 = arith.constant 0 : i32
    %c0_i32_0 = arith.constant 0 : i32
    %c0_i32_1 = arith.constant 0 : i32
    return %c0_i32, %c0_i32_0 : i32, i32
  }
  func.func @transform_4(%arg0: i32, %arg1: i32) -> (i32, i32) {
    %c0_i32 = arith.constant 0 : i32
    %c0_i32_0 = arith.constant 0 : i32
    %c0_i32_1 = arith.constant 0 : i32
    return %c0_i32, %c0_i32_0 : i32, i32
  }
  func.func @transform_5(%arg0: i32, %arg1: i32) -> (i32, i32) {
    %c0_i32 = arith.constant 0 : i32
    %c0_i32_0 = arith.constant 0 : i32
    %c0_i32_1 = arith.constant 0 : i32
    return %c0_i32, %c0_i32_0 : i32, i32
  }
  func.func @transform_6(%arg0: i32, %arg1: i32) -> (i32, i32) {
    %c0_i32 = arith.constant 0 : i32
    %c0_i32_0 = arith.constant 0 : i32
    %c0_i32_1 = arith.constant 0 : i32
    return %c0_i32, %c0_i32_0 : i32, i32
  }
  func.func @transform_7(%arg0: i32, %arg1: i32) -> (i32, i32) {
    %c0_i32 = arith.constant 0 : i32
    %c0_i32_0 = arith.constant 0 : i32
    %c0_i32_1 = arith.constant 0 : i32
    return %c0_i32, %c0_i32_0 : i32, i32
  }
  func.func @transform_8(%arg0: i32, %arg1: i32) -> (i32, i32) {
    %c0_i32 = arith.constant 0 : i32
    %c0_i32_0 = arith.constant 0 : i32
    %c0_i32_1 = arith.constant 0 : i32
    return %c0_i32, %c0_i32_0 : i32, i32
  }
  func.func @transform_9(%arg0: i32, %arg1: i32) -> (i32, i32) {
    %c0_i32 = arith.constant 0 : i32
    %c0_i32_0 = arith.constant 0 : i32
    return %arg0, %c0_i32 : i32, i32
  }
}

</mosaic_0001>

<bundles_post_ra>
// kernel: tpu_custom_call.1
= control target key start
LH: loop header
LB: loop body
LE: loop exit
PB: predicated region body
PF: predicated region fallthrough
CT: control target
= control target key end

     0   :  { %14 = vsyncpa [#allocation5], 0  ;;  %s9208_s0 = inlined_call_operand.hbm [shape: bf16[3,2,256], index: 0, kind: input, shape index: {}]   ;;  %s9209_s1 = inlined_call_operand.hbm [shape: bf16[3,2,256], index: 1, kind: input, shape index: {}]   ;;  %s9210_s2 = inlined_call_operand.hbm [shape: f32[3,2048], index: 2, kind: input, shape index: {}]   ;;  %s9211_s3 = inlined_call_operand.hbm [shape: f32[1,2048], index: 3, kind: input, shape index: {}]   ;;  %s9212_s4 = inlined_call_operand.hbm [shape: f32[2048,512], index: 4, kind: input, shape index: {}]   ;;  %s9213_s5 = inlined_call_operand.hbm [shape: f32[2048,512], index: 5, kind: input, shape index: {}]   ;;  %s9214_s6 = inlined_call_operand.hbm [shape: f32[1,512], index: 6, kind: input, shape index: {}]   ;;  %s9215_s7 = inlined_call_operand.hbm [shape: f32[512,128], index: 7, kind: input, shape index: {}]   ;;  %s9216_s8 = inlined_call_operand.hbm [shape: f32[1,128], index: 8, kind: input, shape index: {}]   ;;  %s9217_s9 = inlined_call_operand.hbm [shape: f32[2,128], index: 9, kind: output, shape index: {}]  }
   0x1   :  { %15 = vsyncpa [#allocation8], 0 }
   0x2   :  { %16 = vsyncpa [#allocation11], 0 }
   0x3   :  { %17 = vsyncpa [#allocation14], 0 }
   0x4   :  { %18 = vsyncpa [#allocation17], 0 }
   0x5   :  { %19 = vsyncpa [#allocation6], 0  ;;  %s8661_s30 = smov [#allocation7]   ;;  %s8662_s11 = smov [#allocation10]  }
   0x6   :  { %s37_s10 = sshll.u32 %s8661_s30, 4  ;;  %s60_s12 = sshll.u32 %s8662_s11, 4  ;;  %s38_s10 = int_to_ptr.vmem [resolvable:$true] %s37_s10  ;;  %s61_s12 = int_to_ptr.vmem [resolvable:$true] %s60_s12 }
   0x7   :  { %s8429_s15 = scalar_lea.hbm %s9209_s1, 96 }
   0x8   :  { %p8430_p0 = scmp.ne.s32.totalorder %s9209_s1, %s8429_s15  ;;  %p8433_p1 = scmp.lt.u32.totalorder %s8429_s15, %s9209_s1 }
   0xa   :  { %p8435_p2 = pnand %p8433_p1, %p8430_p0 }
   0xc   :  { %8438 = shalt.err (!%p8435_p2)
}
   0xd   :  { %s8439_s20 = scalar_lea.vmem %s38_s10, 96  ;;  %p8444_p4 = scmp.lt.s32.totalorder %s38_s10, %s38_s10 }
   0xe   :  { %p8440_p3 = scmp.ne.s32.totalorder %s38_s10, %s8439_s20  ;;  %p8445_p5 = scmp.lt.s32.totalorder %s8439_s20, %s8439_s20 }
  0x10   :  { %p8446_p6 = por %p8445_p5, %p8444_p4 }
  0x12   :  { %p8447_p7 = pnand %p8446_p6, %p8440_p3 }
  0x14   :  { %8450 = shalt.err (!%p8447_p7)
}
  0x15   :  { %s8663_s21 = smov 32   ;;  %s8664_s22 = smov 2  }
  0x16   :  { %43 = dma.hbm_to_vmem [thread:$0]  %s9209_s1, 96, %s38_s10, [#allocation8], %s8663_s21, %s8663_s21, %s8664_s22  }
  0x17   :  { %s8451_s27 = scalar_lea.hbm %s9211_s3, 256 }
  0x18   :  { %p8452_p8 = scmp.ne.s32.totalorder %s9211_s3, %s8451_s27  ;;  %p8455_p9 = scmp.lt.u32.totalorder %s8451_s27, %s9211_s3 }
  0x1a   :  { %p8457_p10 = pnand %p8455_p9, %p8452_p8 }
  0x1c   :  { %8460 = shalt.err (!%p8457_p10)
}
  0x1d   :  { %s8461_s13 = scalar_lea.vmem %s61_s12, 256  ;;  %p8466_p12 = scmp.lt.s32.totalorder %s61_s12, %s61_s12 }
  0x1e   :  { %p8462_p11 = scmp.ne.s32.totalorder %s61_s12, %s8461_s13  ;;  %p8467_p13 = scmp.lt.s32.totalorder %s8461_s13, %s8461_s13 }
  0x20   :  { %p8468_p0 = por %p8467_p13, %p8466_p12 }
  0x22   :  { %p8469_p1 = pnand %p8468_p0, %p8462_p11 }
  0x24   :  { %8472 = shalt.err (!%p8469_p1)
}
  0x25   :  { %63 = dma.hbm_to_vmem [thread:$0]  %s9211_s3, 256, %s61_s12, [#allocation11]  }
  0x26   :  { %s8665_s14 = smov [#allocation13]   ;;  %s8666_s16 = smov [#allocation16]  }
  0x27   :  { %s81_s15 = sshll.u32 %s8665_s14, 4  ;;  %s103_s17 = sshll.u32 %s8666_s16, 4  ;;  %s82_s15 = int_to_ptr.vmem [resolvable:$true] %s81_s15  ;;  %s104_s17 = int_to_ptr.vmem [resolvable:$true] %s103_s17 }
  0x28   :  { %s8473_s20 = scalar_lea.hbm %s9213_s5, 131072 }
  0x29   :  { %p8474_p2 = scmp.ne.s32.totalorder %s9213_s5, %s8473_s20  ;;  %p8477_p3 = scmp.lt.u32.totalorder %s8473_s20, %s9213_s5 }
  0x2b   :  { %p8479_p4 = pnand %p8477_p3, %p8474_p2 }
  0x2d   :  { %8482 = shalt.err (!%p8479_p4)
}
  0x2e   :  { %s8483_s3 = scalar_lea.vmem %s82_s15, 131072  ;;  %p8488_p6 = scmp.lt.s32.totalorder %s82_s15, %s82_s15 }
  0x2f   :  { %p8484_p5 = scmp.ne.s32.totalorder %s82_s15, %s8483_s3  ;;  %p8489_p7 = scmp.lt.s32.totalorder %s8483_s3, %s8483_s3 }
  0x31   :  { %p8490_p8 = por %p8489_p7, %p8488_p6 }
  0x33   :  { %p8491_p9 = pnand %p8490_p8, %p8484_p5 }
  0x35   :  { %8494 = shalt.err (!%p8491_p9)
}
  0x36   :  { %s8667_s12 = smov 512   ;;  %s8495_s11 = scalar_lea.hbm %s9215_s7, 8192 }
  0x37   :  { %87 = dma.hbm_to_vmem [thread:$0]  %s9213_s5, 131072, %s82_s15, [#allocation14], %s8667_s12, %s8667_s12, %s8663_s21  }
  0x38   :  { %p8496_p10 = scmp.ne.s32.totalorder %s9215_s7, %s8495_s11  ;;  %p8499_p11 = scmp.lt.u32.totalorder %s8495_s11, %s9215_s7 }
  0x3a   :  { %p8501_p12 = pnand %p8499_p11, %p8496_p10 }
  0x3c   :  { %8504 = shalt.err (!%p8501_p12)
}
  0x3d   :  { %s8505_s16 = scalar_lea.vmem %s104_s17, 8192  ;;  %p8510_p0 = scmp.lt.s32.totalorder %s104_s17, %s104_s17 }
  0x3e   :  { %p8506_p13 = scmp.ne.s32.totalorder %s104_s17, %s8505_s16  ;;  %p8511_p1 = scmp.lt.s32.totalorder %s8505_s16, %s8505_s16 }
  0x40   :  { %p8512_p2 = por %p8511_p1, %p8510_p0 }
  0x42   :  { %p8513_p3 = pnand %p8512_p2, %p8506_p13 }
  0x44   :  { %8516 = shalt.err (!%p8513_p3)
}
  0x45   :  { %s8668_s5 = smov 128   ;;  %s8669_s15 = smov 8  }
  0x46   :  { %109 = dma.hbm_to_vmem [thread:$0]  %s9215_s7, 8192, %s104_s17, [#allocation17], %s8668_s5, %s8668_s5, %s8669_s15  }
  0x47   :  { %s8670_s20 = smov [#allocation4]   ;;  %s8671_s24 = smov [#allocation9]  }
  0x48   :  { %s25_s23 = sshll.u32 %s8670_s20, 4  ;;  %s50_s25 = sshll.u32 %s8671_s24, 4  ;;  %s26_s23 = int_to_ptr.vmem [resolvable:$true] %s25_s23  ;;  %s51_s25 = int_to_ptr.vmem [resolvable:$true] %s50_s25 }
  0x49   :  { %s8517_s27 = scalar_lea.hbm %s9208_s0, 96 }
  0x4a   :  { %p8518_p4 = scmp.ne.s32.totalorder %s9208_s0, %s8517_s27  ;;  %p8521_p5 = scmp.lt.u32.totalorder %s8517_s27, %s9208_s0 }
  0x4c   :  { %p8523_p6 = pnand %p8521_p5, %p8518_p4 }
  0x4e   :  { %8526 = shalt.err (!%p8523_p6)
}
  0x4f   :  { %s8527_s7 = scalar_lea.vmem %s26_s23, 96  ;;  %p8532_p8 = scmp.lt.s32.totalorder %s26_s23, %s26_s23 }
  0x50   :  { %p8528_p7 = scmp.ne.s32.totalorder %s26_s23, %s8527_s7  ;;  %p8533_p9 = scmp.lt.s32.totalorder %s8527_s7, %s8527_s7 }
  0x52   :  { %p8534_p10 = por %p8533_p9, %p8532_p8 }
  0x54   :  { %p8535_p11 = pnand %p8534_p10, %p8528_p7 }
  0x56   :  { %8538 = shalt.err (!%p8535_p11)
}
  0x57   :  { %31 = dma.hbm_to_vmem [thread:$0]  %s9208_s0, 96, %s26_s23, [#allocation5], %s8663_s21, %s8663_s21, %s8664_s22  }
  0x58   :  { %s8539_s14 = scalar_lea.hbm %s9210_s2, 1024 }
  0x59   :  { %p8540_p12 = scmp.ne.s32.totalorder %s9210_s2, %s8539_s14  ;;  %p8543_p13 = scmp.lt.u32.totalorder %s8539_s14, %s9210_s2 }
  0x5b   :  { %p8545_p0 = pnand %p8543_p13, %p8540_p12 }
  0x5d   :  { %8548 = shalt.err (!%p8545_p0)
}
  0x5e   :  { %s8549_s19 = scalar_lea.vmem %s51_s25, 1024  ;;  %p8554_p2 = scmp.lt.s32.totalorder %s51_s25, %s51_s25 }
  0x5f   :  { %p8550_p1 = scmp.ne.s32.totalorder %s51_s25, %s8549_s19  ;;  %p8555_p3 = scmp.lt.s32.totalorder %s8549_s19, %s8549_s19 }
  0x61   :  { %p8556_p4 = por %p8555_p3, %p8554_p2 }
  0x63   :  { %p8557_p5 = pnand %p8556_p4, %p8550_p1 }
  0x65   :  { %8560 = shalt.err (!%p8557_p5)
}
  0x66   :  { %53 = dma.hbm_to_vmem [thread:$0]  %s9210_s2, 1024, %s51_s25, [#allocation8]  }
  0x67   :  { %s8672_s20 = smov [#allocation12]   ;;  %s8673_s24 = smov [#allocation15]  }
  0x68   :  { %s69_s23 = sshll.u32 %s8672_s20, 4  ;;  %s94_s26 = sshll.u32 %s8673_s24, 4  ;;  %s70_s23 = int_to_ptr.vmem [resolvable:$true] %s69_s23  ;;  %s95_s26 = int_to_ptr.vmem [resolvable:$true] %s94_s26 }
  0x69   :  { %s8561_s28 = scalar_lea.hbm %s9212_s4, 131072 }
  0x6a   :  { %p8562_p6 = scmp.ne.s32.totalorder %s9212_s4, %s8561_s28  ;;  %p8565_p7 = scmp.lt.u32.totalorder %s8561_s28, %s9212_s4 }
  0x6c   :  { %p8567_p8 = pnand %p8565_p7, %p8562_p6 }
  0x6e   :  { %8570 = shalt.err (!%p8567_p8)
}
  0x6f   :  { %s8571_s2 = scalar_lea.vmem %s70_s23, 131072  ;;  %p8576_p10 = scmp.lt.s32.totalorder %s70_s23, %s70_s23 }
  0x70   :  { %p8572_p9 = scmp.ne.s32.totalorder %s70_s23, %s8571_s2  ;;  %p8577_p11 = scmp.lt.s32.totalorder %s8571_s2, %s8571_s2 }
  0x72   :  { %p8578_p12 = por %p8577_p11, %p8576_p10 }
  0x74   :  { %p8579_p13 = pnand %p8578_p12, %p8572_p9 }
  0x76   :  { %8582 = shalt.err (!%p8579_p13)
}
  0x77   :  { %75 = dma.hbm_to_vmem [thread:$0]  %s9212_s4, 131072, %s70_s23, [#allocation11], %s8667_s12, %s8667_s12, %s8663_s21  }
  0x78   :  { %s8583_s10 = scalar_lea.hbm %s9214_s6, 64 }
  0x79   :  { %p8584_p0 = scmp.ne.s32.totalorder %s9214_s6, %s8583_s10  ;;  %p8587_p1 = scmp.lt.u32.totalorder %s8583_s10, %s9214_s6 }
  0x7b   :  { %p8589_p2 = pnand %p8587_p1, %p8584_p0 }
  0x7d   :  { %8592 = shalt.err (!%p8589_p2)
}
  0x7e   :  { %s8593_s18 = scalar_lea.vmem %s95_s26, 64  ;;  %p8598_p4 = scmp.lt.s32.totalorder %s95_s26, %s95_s26 }
  0x7f   :  { %p8594_p3 = scmp.ne.s32.totalorder %s95_s26, %s8593_s18  ;;  %p8599_p5 = scmp.lt.s32.totalorder %s8593_s18, %s8593_s18 }
  0x81   :  { %p8600_p6 = por %p8599_p5, %p8598_p4 }
  0x83   :  { %p8601_p7 = pnand %p8600_p6, %p8594_p3 }
  0x85   :  { %8604 = shalt.err (!%p8601_p7)
}
  0x86   :  { %97 = dma.hbm_to_vmem [thread:$0]  %s9214_s6, 64, %s95_s26, [#allocation14]  }
  0x87   :  { %s8674_s12 = smov [#allocation18]   ;;  %s8605_s20 = scalar_lea.hbm %s9216_s8, 16 }
  0x88   :  { %s116_s19 = sshll.u32 %s8674_s12, 4  ;;  %p8606_p8 = scmp.ne.s32.totalorder %s9216_s8, %s8605_s20  ;;  %s117_s19 = int_to_ptr.vmem [resolvable:$true] %s116_s19 }
  0x89   :  { %p8609_p9 = scmp.lt.u32.totalorder %s8605_s20, %s9216_s8 }
  0x8b   :  { %p8611_p10 = pnand %p8609_p9, %p8606_p8 }
  0x8d   :  { %8614 = shalt.err (!%p8611_p10)
}
  0x8e   :  { %s8615_s28 = scalar_lea.vmem %s117_s19, 16  ;;  %s8619_s6 = scalar_lea.vmem %s117_s19, 32 }
  0x8f   :  { %p8616_p11 = scmp.ne.s32.totalorder %s117_s19, %s8615_s28  ;;  %p8620_p12 = scmp.lt.s32.totalorder %s117_s19, %s117_s19 }
  0x90   :  { %p8621_p13 = scmp.lt.s32.totalorder %s8619_s6, %s8615_s28 }
  0x92   :  { %p8622_p0 = por %p8621_p13, %p8620_p12 }
  0x94   :  { %p8623_p1 = pnand %p8622_p0, %p8616_p11 }
  0x96   :  { %8626 = shalt.err (!%p8623_p1)
}
  0x97   :  { %119 = dma.hbm_to_vmem [thread:$0]  %s9216_s8, 16, %s117_s19, [#allocation17]  }
  0x98   :  { %8649 = dma.done.wait [#allocation5], 96  }
  0x99   :  { %8650 = vsyncadd [#allocation5], 4294967200 }
  0x9a   :  { %8651 = dma.done.wait [#allocation8], 1120  }
  0x9b   :  { %8652 = vsyncadd [#allocation8], 4294966176 }
  0x9c   :  { %8653 = dma.done.wait [#allocation11], 131328  }
  0x9d   :  { %8654 = vsyncadd [#allocation11], 4294835968 }
  0x9e   :  { %8655 = dma.done.wait [#allocation14], 131136  }
  0x9f   :  { %8656 = vsyncadd [#allocation14], 4294836160 }
  0xa0   :  { %8657 = dma.done.wait [#allocation17], 8208  }
  0xa1   :  { %8658 = vsyncadd [#allocation17], 4294959088  ;;  %v8675_v0 = vmov 0.0   ;;  %v158_v1 = vld [vmem:[#allocation4] sm:$0x1]  ;;  %vm217_vm0 = vcmask 1041408  }
  0xa2   :  { %151 = vst [vmem:[#allocation2] sm:$0x3] %v8675_v0  ;;  %152 = vst [vmem:[#allocation2 + $0x2] sm:$0x3] %v8675_v0  ;;  %458 = vmatprep.mubr.f32.mxu0 %v8675_v0  ;;  %529 = vmatprep.mubr.f32.mxu1 %v8675_v0  ;;  %v161_v2 = vld [vmem:[#allocation4 + $0x1] sm:$0x1]  ;;  %v159_v5 = vunpack.c.l.bf16 %v158_v1 }
  0xa3   :  { %153 = vst [vmem:[#allocation2 + $0x4] sm:$0x3] %v8675_v0  ;;  %154 = vst [vmem:[#allocation3] sm:$0x3] %v8675_v0  ;;  %v176_v3 = vld [vmem:[#allocation4 + $0x2] sm:$0x1]  ;;  %v162_v6 = vunpack.c.l.bf16 %v161_v2 }
  0xa4   :  { %155 = vst [vmem:[#allocation3 + $0x2] sm:$0x3] %v8675_v0  ;;  %156 = vst [vmem:[#allocation3 + $0x4] sm:$0x3] %v8675_v0  ;;  %v177_v8 = vunpack.c.l.bf16 %v176_v3  ;;  %v179_v9 = vld [vmem:[#allocation4 + $0x3] sm:$0x1] }
  0xa5   :  { %v180_v10 = vunpack.c.l.bf16 %v179_v9  ;;  %v196_v12 = vld [vmem:[#allocation4 + $0x4] sm:$0x1]  ;;  %v199_v13 = vld [vmem:[#allocation4 + $0x5] sm:$0x1]  ;;  %v166_v19 = vld [vmem:[#allocation7] sm:$0x1] }
  0xa6   :  { %v197_v16 = vunpack.c.l.bf16 %v196_v12  ;;  %v200_v17 = vunpack.c.l.bf16 %v199_v13  ;;  %v169_v20 = vld [vmem:[#allocation7 + $0x1] sm:$0x1]  ;;  %v167_v21 = vunpack.c.l.bf16 %v166_v19  ;;  %v186_v24 = vld [vmem:[#allocation7 + $0x2] sm:$0x1]  ;;  %v189_v25 = vld [vmem:[#allocation7 + $0x3] sm:$0x1] }
  0xa7   :  { %v170_v22 = vunpack.c.l.bf16 %v169_v20  ;;  %v187_v29 = vunpack.c.l.bf16 %v186_v24  ;;  %v206_v31 = vld [vmem:[#allocation7 + $0x4] sm:$0x1]  ;;  %v209_v32 = vld [vmem:[#allocation7 + $0x5] sm:$0x1]  ;;  %v190_v34 = vunpack.c.l.bf16 %v189_v25  ;;  %v8861_v55 = vld [vmem:[#allocation9] sm:$0x77] }
  0xa8   :  { %v207_v35 = vunpack.c.l.bf16 %v206_v31  ;;  %v210_v36 = vunpack.c.l.bf16 %v209_v32  ;;  %v8863_v56 = vld [vmem:[#allocation9 + $0x8] sm:$0x77]  ;;  %v349_v57 = vcombine.high %v8861_v55, %v8861_v55  ;;  %vm361_vm1 = vcmask 1042432   ;;  %v8871_v59 = vld [vmem:[#allocation9 + $0x10] sm:$0x77]  ;;  %v2558_v20 = vld [vmem:[#allocation13 + $0x8] sm:$0xff] }
  0xa9   :  { %v157_v4 = vld [vmem:[#allocation2] sm:$0x3]  ;;  %v174_v7 = vld [vmem:[#allocation2 + $0x2] sm:$0x3]  ;;  %v350_v58 = vcombine.high %v8863_v56, %v8863_v56  ;;  %v351_v60 = vcombine.high %v8871_v59, %v8871_v59  ;;  %v8879_v61 = vld [vmem:[#allocation9 + $0x18] sm:$0x77] }
  0xaa   :  { %v194_v11 = vld [vmem:[#allocation2 + $0x4] sm:$0x3]  ;;  %v160_v14 = vadd.f32 %v159_v5, %v157_v4  ;;  %v178_v15 = vadd.f32 %v177_v8, %v174_v7  ;;  %v165_v18 = vld [vmem:[#allocation3] sm:$0x3]  ;;  %6114 = vmatprep.subr.msk.mxu0 %vm361_vm1, %v349_v57  ;;  %v352_v62 = vcombine.high %v8879_v61, %v8879_v61  ;;  %vm229_vm2 = vcmask 7168   ;;  %v2557_v24 = vld [vmem:[#allocation13] sm:$0xff] }
  0xab   :  { %v184_v23 = vld [vmem:[#allocation3 + $0x2] sm:$0x3]  ;;  %v198_v28 = vadd.f32 %v197_v16, %v194_v11  ;;  %v204_v30 = vld [vmem:[#allocation3 + $0x4] sm:$0x3]  ;;  %v168_v33 = vadd.f32 %v167_v21, %v165_v18  ;;  %6117 = vmatprep.subr.msk.mxu1 %vm361_vm1, %v350_v58  ;;  %6115 = vmatpush1.msk.msra.mxu0 %vm361_vm1, %v8861_v55  ;;  %vm231_vm3 = vcmask 15360   ;;  %vm357_vm4 = vcmask 23552  }
  0xac   :  { %v163_v26 = vadd.f32 %v162_v6, %v160_v14  ;;  %v181_v27 = vadd.f32 %v180_v10, %v178_v15  ;;  %v188_v38 = vadd.f32 %v187_v29, %v184_v23  ;;  %v208_v40 = vadd.f32 %v207_v35, %v204_v30  ;;  %6118 = vmatpush1.msk.msra.mxu1 %vm361_vm1, %v8863_v56  ;;  %v8886_v4 = vld [vmem:[#allocation9 + $0x20] sm:$0x77]  ;;  %v8888_v5 = vld [vmem:[#allocation9 + $0x28] sm:$0x77]  ;;  %v8897_v10 = vld [vmem:[#allocation9 + $0x30] sm:$0x77] }
  0xad   :  { %v201_v37 = vadd.f32 %v200_v17, %v198_v28  ;;  %v171_v39 = vadd.f32 %v170_v22, %v168_v33  ;;  %6120 = vmatprep.subr.msk.mxu0 %vm361_vm1, %v351_v60  ;;  %6123 = vmatprep.subr.msk.mxu1 %vm361_vm1, %v352_v62  ;;  %v353_v8 = vcombine.high %v8886_v4, %v8886_v4  ;;  %v8899_v11 = vld [vmem:[#allocation9 + $0x38] sm:$0x77]  ;;  %v2560_v22 = vld [vmem:[#allocation13 + $0x18] sm:$0xff]  ;;  %v2561_v25 = vld [vmem:[#allocation13 + $0x20] sm:$0xff]  ;;  %s8676_s8 = smov [#allocation19]  }
  0xae   :  { %164 = vst [vmem:[#allocation2] sm:$0x3] %v163_v26  ;;  %182 = vst [vmem:[#allocation2 + $0x2] sm:$0x3] %v181_v27  ;;  %v191_v41 = vadd.f32 %v190_v34, %v188_v38  ;;  %v211_v42 = vadd.f32 %v210_v36, %v208_v40  ;;  %v354_v9 = vcombine.high %v8888_v5, %v8888_v5  ;;  %v2562_v21 = vld [vmem:[#allocation13 + $0x28] sm:$0xff]  ;;  %v2564_v23 = vld [vmem:[#allocation13 + $0x38] sm:$0xff] }
  0xaf   :  { %202 = vst [vmem:[#allocation2 + $0x4] sm:$0x3] %v201_v37  ;;  %172 = vst [vmem:[#allocation3] sm:$0x3] %v171_v39  ;;  %v355_v13 = vcombine.high %v8897_v10, %v8897_v10  ;;  %v356_v14 = vcombine.high %v8899_v11, %v8899_v11  ;;  %v2559_v26 = vld [vmem:[#allocation13 + $0x10] sm:$0xff]  ;;  %v2566_v28 = vld [vmem:[#allocation13 + $0x48] sm:$0xff]  ;;  %v6233_v29 = vpack.c.bf16 %v2562_v21, %v2558_v20 }
  0xb0   :  { %192 = vst [vmem:[#allocation3 + $0x2] sm:$0x3] %v191_v41  ;;  %212 = vst [vmem:[#allocation3 + $0x4] sm:$0x3] %v211_v42  ;;  %v2563_v27 = vld [vmem:[#allocation13 + $0x30] sm:$0xff]  ;;  %v6745_v30 = vpack.c.bf16 %v2564_v23, %v2560_v22  ;;  %v2570_v31 = vld [vmem:[#allocation13 + $0x68] sm:$0xff]  ;;  %v6235_v34 = vpack.c.bf16 %v2561_v25, %v2557_v24 }
  0xb1   :  { %v2568_v32 = vld [vmem:[#allocation13 + $0x58] sm:$0xff]  ;;  %v6747_v35 = vpack.c.bf16 %v2563_v27, %v2559_v26  ;;  %v2565_v36 = vld [vmem:[#allocation13 + $0x40] sm:$0xff]  ;;  %v6237_v38 = vpack.c.bf16 %v2570_v31, %v2566_v28  ;;  %v2567_v40 = vld [vmem:[#allocation13 + $0x50] sm:$0xff]  ;;  %s6101_s30 = sshll.u32 %s8676_s8, 4  ;;  %s6102_s30 = int_to_ptr.vmem [resolvable:$true] %s6101_s30 }
  0xb2   :  { %v2572_v33 = vld [vmem:[#allocation13 + $0x78] sm:$0xff]  ;;  %v2569_v37 = vld [vmem:[#allocation13 + $0x60] sm:$0xff]  ;;  %v2571_v41 = vld [vmem:[#allocation13 + $0x70] sm:$0xff]  ;;  %s8627_s11 = scalar_lea.vmem %s6102_s30, 32  ;;  %p8632_p3 = scmp.lt.s32.totalorder %s6102_s30, %s6102_s30 }
  0xb3   :  { %v6749_v39 = vpack.c.bf16 %v2572_v33, %v2568_v32  ;;  %v2574_v42 = vld [vmem:[#allocation13 + $0x88] sm:$0xff]  ;;  %v2597_v20 = vld [vmem:[#allocation13 + $0x140] sm:$0xff]  ;;  %v2599_v24 = vld [vmem:[#allocation13 + $0x150] sm:$0xff]  ;;  %p8628_p2 = scmp.ne.s32.totalorder %s6102_s30, %s8627_s11  ;;  %p8633_p4 = scmp.lt.s32.totalorder %s8627_s11, %s8627_s11 }
  0xb4   :  { %v2601_v21 = vld [vmem:[#allocation13 + $0x160] sm:$0xff]  ;;  %v2603_v25 = vld [vmem:[#allocation13 + $0x170] sm:$0xff]  ;;  %v2606_v26 = vld [vmem:[#allocation13 + $0x188] sm:$0xff] }
  0xb5   :  { %v216_v43 = vld [vmem:[#allocation2] sm:$0x3]  ;;  %v221_v44 = vld [vmem:[#allocation2 + $0x2] sm:$0x3]  ;;  %v2610_v27 = vld [vmem:[#allocation13 + $0x1a8] sm:$0xff]  ;;  %v6767_v31 = vpack.c.bf16 %v2603_v25, %v2599_v24  ;;  %p8634_p5 = por %p8633_p4, %p8632_p3 }
  0xb6   :  { %v218_v45 = vsel %vm217_vm0, %v216_v43, 0.0  ;;  %v225_v46 = vld [vmem:[#allocation2 + $0x4] sm:$0x3]  ;;  %v222_v47 = vsel %vm217_vm0, %v221_v44, 0.0  ;;  %v234_v49 = vld [vmem:[#allocation3] sm:$0x3] }
  0xb7   :  { %219 = vadd.xlane.f32.xlu0 %v218_v45  ;;  %v226_v48 = vsel %vm217_vm0, %v225_v46, 0.0  ;;  %v238_v50 = vld [vmem:[#allocation3 + $0x2] sm:$0x3]  ;;  %v235_v51 = vsel %vm217_vm0, %v234_v49, 0.0  ;;  %v242_v52 = vld [vmem:[#allocation3 + $0x4] sm:$0x3]  ;;  %v6239_v46 = vpack.c.bf16 %v2569_v37, %v2565_v36  ;;  %p8635_p6 = pnand %p8634_p5, %p8628_p2 }
  0xb8   :  { %227 = vadd.xlane.f32.xlu1 %v226_v48  ;;  %v239_v53 = vsel %vm217_vm0, %v238_v50, 0.0  ;;  %v243_v54 = vsel %vm217_vm0, %v242_v52, 0.0  ;;  %v2578_v43 = vld [vmem:[#allocation13 + $0xa8] sm:$0xff]  ;;  %v2576_v44 = vld [vmem:[#allocation13 + $0x98] sm:$0xff]  ;;  %v2573_v48 = vld [vmem:[#allocation13 + $0x80] sm:$0xff] }
  0xb9   :  { %v2580_v45 = vld [vmem:[#allocation13 + $0xb8] sm:$0xff]  ;;  %v6241_v49 = vpack.c.bf16 %v2578_v43, %v2574_v42  ;;  %v2579_v52 = vld [vmem:[#allocation13 + $0xb0] sm:$0xff]  ;;  %v2605_v32 = vld [vmem:[#allocation13 + $0x180] sm:$0xff] }
  0xba   :  { %v6753_v50 = vpack.c.bf16 %v2580_v45, %v2576_v44  ;;  %v2608_v28 = vld [vmem:[#allocation13 + $0x198] sm:$0xff]  ;;  %v2609_v33 = vld [vmem:[#allocation13 + $0x1a0] sm:$0xff]  ;;  %v2607_v36 = vld [vmem:[#allocation13 + $0x190] sm:$0xff] }
  0xbb   :  { %223 = vadd.xlane.f32.xlu0 %v222_v47  ;;  %v6751_v47 = vpack.c.bf16 %v2571_v41, %v2567_v40  ;;  %v2611_v37 = vld [vmem:[#allocation13 + $0x1b0] sm:$0xff]  ;;  %v2616_v40 = vld [vmem:[#allocation13 + $0x1d8] sm:$0xff]  ;;  %v6259_v42 = vpack.c.bf16 %v2609_v33, %v2605_v32  ;;  %v2613_v44 = vld [vmem:[#allocation13 + $0x1c0] sm:$0xff] }
  0xbc   :  { %236 = vadd.xlane.f32.xlu1 %v235_v51  ;;  %v2575_v51 = vld [vmem:[#allocation13 + $0x90] sm:$0xff]  ;;  %v2620_v41 = vld [vmem:[#allocation13 + $0x1f8] sm:$0xff]  ;;  %v6771_v43 = vpack.c.bf16 %v2611_v37, %v2607_v36  ;;  %v2617_v45 = vld [vmem:[#allocation13 + $0x1e0] sm:$0xff] }
  0xbd   :  { %v2646_v24 = vld [vmem:[#allocation13 + $0x2c8] sm:$0xff]  ;;  %v2647_v33 = vld [vmem:[#allocation13 + $0x2d0] sm:$0xff] }
  0xbe   :  { %v2650_v25 = vld [vmem:[#allocation13 + $0x2e8] sm:$0xff] }
  0xbf   :  { %240 = vadd.xlane.f32.xlu0 %v239_v53  ;;  %v2582_v53 = vld [vmem:[#allocation13 + $0xc8] sm:$0xff] }
  0xc0   :  { %244 = vadd.xlane.f32.xlu1 %v243_v54  ;;  %v2586_v54 = vld [vmem:[#allocation13 + $0xe8] sm:$0xff] }
  0xc1   :  { %v2654_v36 = vld [vmem:[#allocation13 + $0x308] sm:$0xff] }
  0xc2   :  { %v2658_v37 = vld [vmem:[#allocation13 + $0x328] sm:$0xff] }
 0x144   :  { %v220_v63 = vpop.xlane.xlu0 %219 }
 0x145   :  { %v228_v1 = vpop.xlane.xlu1 %227 }
 0x148   :  { %v224_v2 = vpop.xlane.xlu0 %223 }
 0x149   :  { %v230_v3 = vsel %vm229_vm2, %v220_v63, %v224_v2  ;;  %v237_v12 = vpop.xlane.xlu1 %236  ;;  %v2583_v63 = vld [vmem:[#allocation13 + $0xd0] sm:$0xff]  ;;  %v2590_v2 = vld [vmem:[#allocation13 + $0x108] sm:$0xff] }
 0x14a   :  { %v232_v6 = vsel %vm231_vm3, %v230_v3, %v228_v1  ;;  %v2587_v1 = vld [vmem:[#allocation13 + $0xf0] sm:$0xff]  ;;  %v2594_v3 = vld [vmem:[#allocation13 + $0x128] sm:$0xff] }
 0x14b   :  { %v233_v7 = vmul.f32 0.00390625, %v232_v6 }
 0x14c   :  { %v241_v15 = vpop.xlane.xlu0 %240 }
 0x14d   :  { %6116 = vmatmul.mubr.msk.f32.vlgmr.msra.gmra.mrb[0].mxu0 %vm357_vm4, %v233_v7  ;;  %6119 = vmatmul.mubr.msk.f32.vlgmr.msra.gmra.mrb[0].mxu1 %vm357_vm4, %v233_v7  ;;  %v246_v16 = vsel %vm229_vm2, %v237_v12, %v241_v15  ;;  %v245_v17 = vpop.xlane.xlu1 %244  ;;  %v2591_v12 = vld [vmem:[#allocation13 + $0x110] sm:$0xff]  ;;  %v2602_v15 = vld [vmem:[#allocation13 + $0x168] sm:$0xff] }
 0x14e   :  { %6121 = vmatpush1.msk.msra.mxu0 %vm361_vm1, %v8871_v59  ;;  %600 = vmatprep.mubr.f32.mxu0 %v8675_v0  ;;  %v247_v18 = vsel %vm231_vm3, %v246_v16, %v245_v17  ;;  %v2600_v16 = vld [vmem:[#allocation13 + $0x158] sm:$0xff] }
 0x14f   :  { %6124 = vmatpush1.msk.msra.mxu1 %vm361_vm1, %v8879_v61  ;;  %671 = vmatprep.mubr.f32.mxu1 %v8675_v0  ;;  %v248_v19 = vmul.f32 0.00390625, %v247_v18  ;;  %v2604_v17 = vld [vmem:[#allocation13 + $0x178] sm:$0xff] }
 0x150   :  { %6126 = vmatprep.subr.msk.mxu0 %vm361_vm1, %v353_v8  ;;  %6129 = vmatprep.subr.msk.mxu1 %vm361_vm1, %v354_v9  ;;  %v6765_v23 = vpack.c.bf16 %v2604_v17, %v2600_v16  ;;  %v2637_v16 = vld [vmem:[#allocation13 + $0x280] sm:$0xff] }
 0x151   :  { %6122 = vmatmul.mubr.msk.f32.vlgmr.msra.gmra.mrb[2].mxu0 %vm357_vm4, %v233_v7  ;;  %6125 = vmatmul.mubr.msk.f32.vlgmr.msra.gmra.mrb[2].mxu1 %vm357_vm4, %v233_v7 }
 0x152   :  { %6127 = vmatpush1.msk.msra.mxu0 %vm361_vm1, %v8886_v4  ;;  %742 = vmatprep.mubr.f32.mxu0 %v8675_v0 }
 0x153   :  { %6130 = vmatpush1.msk.msra.mxu1 %vm361_vm1, %v8888_v5  ;;  %813 = vmatprep.mubr.f32.mxu1 %v8675_v0 }
 0x154   :  { %6132 = vmatprep.subr.msk.mxu0 %vm361_vm1, %v355_v13  ;;  %6135 = vmatprep.subr.msk.mxu1 %vm361_vm1, %v356_v14 }
 0x155   :  { %6128 = vmatmul.mubr.msk.f32.vlgmr.msra.gmra.mrb[4].mxu0 %vm357_vm4, %v233_v7  ;;  %6131 = vmatmul.mubr.msk.f32.vlgmr.msra.gmra.mrb[4].mxu1 %vm357_vm4, %v233_v7 }
 0x156   :  { %6133 = vmatpush1.msk.msra.mxu0 %vm361_vm1, %v8897_v10  ;;  %884 = vmatprep.mubr.f32.mxu0 %v8675_v0 }
 0x157   :  { %6136 = vmatpush1.msk.msra.mxu1 %vm361_vm1, %v8899_v11  ;;  %955 = vmatprep.mubr.f32.mxu1 %v8675_v0 }
 0x158   :  { %6138 = vmatprep.subr.msk.mxu0 %vm361_vm1, %v349_v57  ;;  %6141 = vmatprep.subr.msk.mxu1 %vm361_vm1, %v350_v58  ;;  %v6755_v58 = vpack.c.bf16 %v2579_v52, %v2575_v51  ;;  %v2624_v51 = vld [vmem:[#allocation13 + $0x218] sm:$0xff] }
 0x159   :  { %6134 = vmatmul.mubr.msk.f32.vlgmr.msra.gmra.mrb[6].mxu0 %vm357_vm4, %v233_v7  ;;  %6137 = vmatmul.mubr.msk.f32.vlgmr.msra.gmra.mrb[6].mxu1 %vm357_vm4, %v233_v7  ;;  %v6759_v7 = vpack.c.bf16 %v2587_v1, %v2583_v63  ;;  %v2628_v52 = vld [vmem:[#allocation13 + $0x238] sm:$0xff] }
 0x15a   :  { %6139 = vmatpush1.msk.msra.mxu0 %vm361_vm1, %v8861_v55  ;;  %1029 = vmatprep.mubr.f32.mxu0 %v8675_v0  ;;  %v2584_v55 = vld [vmem:[#allocation13 + $0xd8] sm:$0xff] }
 0x15b   :  { %6142 = vmatpush1.msk.msra.mxu1 %vm361_vm1, %v8863_v56  ;;  %1100 = vmatprep.mubr.f32.mxu1 %v8675_v0  ;;  %v2588_v56 = vld [vmem:[#allocation13 + $0xf8] sm:$0xff] }
 0x15c   :  { %6144 = vmatprep.subr.msk.mxu0 %vm361_vm1, %v351_v60  ;;  %6147 = vmatprep.subr.msk.mxu1 %vm361_vm1, %v352_v62  ;;  %v2585_v60 = vld [vmem:[#allocation13 + $0xe0] sm:$0xff]  ;;  %v6757_v62 = vpack.c.bf16 %v2588_v56, %v2584_v55  ;;  %v2632_v63 = vld [vmem:[#allocation13 + $0x258] sm:$0xff] }
 0x15d   :  { %6140 = vmatmul.mubr.msk.f32.vlgmr.msra.gmra.mrb[8].mxu0 %vm357_vm4, %v248_v19  ;;  %6143 = vmatmul.mubr.msk.f32.vlgmr.msra.gmra.mrb[8].mxu1 %vm357_vm4, %v248_v19  ;;  %v2621_v55 = vld [vmem:[#allocation13 + $0x200] sm:$0xff]  ;;  %v2636_v1 = vld [vmem:[#allocation13 + $0x278] sm:$0xff] }
 0x15e   :  { %6145 = vmatpush1.msk.msra.mxu0 %vm361_vm1, %v8871_v59  ;;  %1171 = vmatprep.mubr.f32.mxu0 %v8675_v0  ;;  %v2581_v59 = vld [vmem:[#allocation13 + $0xc0] sm:$0xff] }
 0x15f   :  { %6148 = vmatpush1.msk.msra.mxu1 %vm361_vm1, %v8879_v61  ;;  %1242 = vmatprep.mubr.f32.mxu1 %v8675_v0  ;;  %v6245_v61 = vpack.c.bf16 %v2586_v54, %v2582_v53  ;;  %v6247_v6 = vpack.c.bf16 %v2585_v60, %v2581_v59  ;;  %v6263_v53 = vpack.c.bf16 %v2617_v45, %v2613_v44  ;;  %v2625_v56 = vld [vmem:[#allocation13 + $0x220] sm:$0xff]  ;;  %v2623_v59 = vld [vmem:[#allocation13 + $0x210] sm:$0xff] }
 0x160   :  { %6150 = vmatprep.subr.msk.mxu0 %vm361_vm1, %v353_v8  ;;  %6153 = vmatprep.subr.msk.mxu1 %vm361_vm1, %v354_v9  ;;  %v2589_v8 = vld [vmem:[#allocation13 + $0x100] sm:$0xff]  ;;  %v2627_v60 = vld [vmem:[#allocation13 + $0x230] sm:$0xff] }
 0x161   :  { %6146 = vmatmul.mubr.msk.f32.vlgmr.msra.gmra.mrb[10].mxu0 %vm357_vm4, %v248_v19  ;;  %6149 = vmatmul.mubr.msk.f32.vlgmr.msra.gmra.mrb[10].mxu1 %vm357_vm4, %v248_v19  ;;  %v2593_v9 = vld [vmem:[#allocation13 + $0x120] sm:$0xff] }
 0x162   :  { %6151 = vmatpush1.msk.msra.mxu0 %vm361_vm1, %v8886_v4  ;;  %1313 = vmatprep.mubr.f32.mxu0 %v8675_v0  ;;  %v2592_v4 = vld [vmem:[#allocation13 + $0x118] sm:$0xff]  ;;  %v6251_v18 = vpack.c.bf16 %v2593_v9, %v2589_v8  ;;  %v2631_v8 = vld [vmem:[#allocation13 + $0x250] sm:$0xff] }
 0x163   :  { %6154 = vmatpush1.msk.msra.mxu1 %vm361_vm1, %v8888_v5  ;;  %1384 = vmatprep.mubr.f32.mxu1 %v8675_v0  ;;  %v2596_v5 = vld [vmem:[#allocation13 + $0x138] sm:$0xff]  ;;  %v2635_v9 = vld [vmem:[#allocation13 + $0x270] sm:$0xff] }
 0x164   :  { %6156 = vmatprep.subr.msk.mxu0 %vm361_vm1, %v355_v13  ;;  %6159 = vmatprep.subr.msk.mxu1 %vm361_vm1, %v356_v14  ;;  %v2595_v13 = vld [vmem:[#allocation13 + $0x130] sm:$0xff]  ;;  %v2598_v14 = vld [vmem:[#allocation13 + $0x148] sm:$0xff] }
 0x165   :  { %6152 = vmatmul.mubr.msk.f32.vlgmr.msra.gmra.mrb[12].mxu0 %vm357_vm4, %v248_v19  ;;  %6155 = vmatmul.mubr.msk.f32.vlgmr.msra.gmra.mrb[12].mxu1 %vm357_vm4, %v248_v19  ;;  %v6253_v22 = vpack.c.bf16 %v2602_v15, %v2598_v14  ;;  %v6783_v15 = vpack.c.bf16 %v2635_v9, %v2631_v8  ;;  %v2676_v8 = vld [vmem:[#allocation13 + $0x3b8] sm:$0xff]  ;;  %v2669_v9 = vld [vmem:[#allocation13 + $0x380] sm:$0xff] }
 0x166   :  { %6157 = vmatpush1.msk.msra.mxu0 %vm361_vm1, %v8897_v10  ;;  %1455 = vmatprep.mubr.f32.mxu0 %v8675_v0  ;;  %v6249_v10 = vpack.c.bf16 %v2594_v3, %v2590_v2  ;;  %v6267_v2 = vpack.c.bf16 %v2625_v56, %v2621_v55  ;;  %v6779_v3 = vpack.c.bf16 %v2627_v60, %v2623_v59  ;;  %v2665_v56 = vld [vmem:[#allocation13 + $0x360] sm:$0xff]  ;;  %v8978_v60 = vld [vmem:[#allocation10 + $0x8] sm:$0xff] }
 0x167   :  { %6160 = vmatpush1.msk.msra.mxu1 %vm361_vm1, %v8899_v11  ;;  %1526 = vmatprep.mubr.f32.mxu1 %v8675_v0  ;;  %v2577_v0 = vld [vmem:[#allocation13 + $0xa0] sm:$0xff]  ;;  %v6761_v11 = vpack.c.bf16 %v2596_v5, %v2592_v4 }
 0x168   :  { %6234 = vmatprep.subr.bf16.mxu0 %v6233_v29  ;;  %6746 = vmatprep.subr.bf16.mxu1 %v6745_v30  ;;  %v6243_v57 = vpack.c.bf16 %v2577_v0, %v2573_v48  ;;  %v2612_v29 = vld [vmem:[#allocation13 + $0x1b8] sm:$0xff]  ;;  %v6255_v30 = vpack.c.bf16 %v2601_v21, %v2597_v20  ;;  %v2615_v48 = vld [vmem:[#allocation13 + $0x1d0] sm:$0xff]  ;;  %v2629_v4 = vld [vmem:[#allocation13 + $0x240] sm:$0xff] }
 0x169   :  { %6158 = vmatmul.mubr.msk.f32.vlgmr.msra.gmra.mrb[14].mxu0 %vm357_vm4, %v248_v19  ;;  %6161 = vmatmul.mubr.msk.f32.vlgmr.msra.gmra.mrb[14].mxu1 %vm357_vm4, %v248_v19  ;;  %v6763_v19 = vpack.c.bf16 %v2595_v13, %v2591_v12  ;;  %v2619_v0 = vld [vmem:[#allocation13 + $0x1f0] sm:$0xff]  ;;  %v2633_v5 = vld [vmem:[#allocation13 + $0x260] sm:$0xff]  ;;  %v2640_v12 = vld [vmem:[#allocation13 + $0x298] sm:$0xff] }
 0x16a   :  { %6236 = vmatpush1.bf16.msra.mxu0 %v6235_v34  ;;  %6748 = vmatpush1.bf16.msra.mxu1 %v6747_v35  ;;  %v6257_v34 = vpack.c.bf16 %v2610_v27, %v2606_v26  ;;  %v6769_v35 = vpack.c.bf16 %v2612_v29, %v2608_v28  ;;  %v6775_v54 = vpack.c.bf16 %v2619_v0, %v2615_v48  ;;  %v2644_v13 = vld [vmem:[#allocation13 + $0x2b8] sm:$0xff]  ;;  %v2639_v20 = vld [vmem:[#allocation13 + $0x290] sm:$0xff]  ;;  %v2645_v29 = vld [vmem:[#allocation13 + $0x2c0] sm:$0xff] }
 0x16b   :  { %6238 = vmatprep.subr.bf16.mxu0 %v6237_v38  ;;  %6750 = vmatprep.subr.bf16.mxu1 %v6749_v39  ;;  %v2614_v38 = vld [vmem:[#allocation13 + $0x1c8] sm:$0xff]  ;;  %v6271_v14 = vpack.c.bf16 %v2633_v5, %v2629_v4  ;;  %v2643_v21 = vld [vmem:[#allocation13 + $0x2b0] sm:$0xff]  ;;  %v2648_v26 = vld [vmem:[#allocation13 + $0x2d8] sm:$0xff]  ;;  %v6277_v27 = vpack.c.bf16 %v2650_v25, %v2646_v24 }
 0x16c   :  { %v2618_v39 = vld [vmem:[#allocation13 + $0x1e8] sm:$0xff]  ;;  %v2652_v28 = vld [vmem:[#allocation13 + $0x2f8] sm:$0xff]  ;;  %v2677_v24 = vld [vmem:[#allocation13 + $0x3c0] sm:$0xff] }
 0x16d   :  { %v2662_v0 = vld [vmem:[#allocation13 + $0x348] sm:$0xff]  ;;  %v2681_v25 = vld [vmem:[#allocation13 + $0x3e0] sm:$0xff] }
 0x16e   :  { %6240 = vmatpush1.bf16.msra.mxu0 %v6239_v46  ;;  %6752 = vmatpush1.bf16.msra.mxu1 %v6751_v47  ;;  %v6261_v46 = vpack.c.bf16 %v2618_v39, %v2614_v38  ;;  %v6773_v47 = vpack.c.bf16 %v2620_v41, %v2616_v40  ;;  %v2656_v38 = vld [vmem:[#allocation13 + $0x318] sm:$0xff]  ;;  %v261_v39 = vlaneseq  ;;  %v6281_v40 = vpack.c.bf16 %v2658_v37, %v2654_v36 }
 0x16f   :  { %6242 = vmatprep.subr.bf16.mxu0 %v6241_v49  ;;  %6754 = vmatprep.subr.bf16.mxu1 %v6753_v50  ;;  %v2622_v49 = vld [vmem:[#allocation13 + $0x208] sm:$0xff]  ;;  %v2660_v41 = vld [vmem:[#allocation13 + $0x338] sm:$0xff] }
 0x170   :  { %v2626_v50 = vld [vmem:[#allocation13 + $0x228] sm:$0xff]  ;;  %v6793_v44 = vpack.c.bf16 %v2660_v41, %v2656_v38 }
 0x172   :  { %6244 = vmatpush1.bf16.msra.mxu0 %v6243_v57  ;;  %6756 = vmatpush1.bf16.msra.mxu1 %v6755_v58  ;;  %v6265_v57 = vpack.c.bf16 %v2626_v50, %v2622_v49  ;;  %v6777_v58 = vpack.c.bf16 %v2628_v52, %v2624_v51  ;;  %v2666_v49 = vld [vmem:[#allocation13 + $0x368] sm:$0xff]  ;;  %v2664_v50 = vld [vmem:[#allocation13 + $0x358] sm:$0xff]  ;;  %v8975_v51 = vshrl.u32 %v261_v39, 7  ;;  %v257_v39 = vld [vmem:[#allocation10] sm:$0xff] }
 0x173   :  { %6246 = vmatprep.subr.bf16.mxu0 %v6245_v61  ;;  %6758 = vmatprep.subr.bf16.mxu1 %v6757_v62  ;;  %v2630_v61 = vld [vmem:[#allocation13 + $0x248] sm:$0xff]  ;;  %v6285_v52 = vpack.c.bf16 %v2666_v49, %v2662_v0 }
 0x174   :  { %v2634_v62 = vld [vmem:[#allocation13 + $0x268] sm:$0xff]  ;;  %v279_v59 = vsub.s32 4, %v8975_v51  ;;  %v283_v4 = vsub.s32 5, %v8975_v51  ;;  %v291_v5 = vsub.s32 7, %v8975_v51  ;;  %v9004_v37 = vsub.s32 0, %v8975_v51 }
 0x175   :  { %v9007_v38 = vsub.s32 2, %v8975_v51  ;;  %v9013_v41 = vsub.s32 3, %v8975_v51 }
 0x176   :  { %6248 = vmatpush1.bf16.msra.mxu0 %v6247_v6  ;;  %6760 = vmatpush1.bf16.msra.mxu1 %v6759_v7  ;;  %v6269_v6 = vpack.c.bf16 %v2634_v62, %v2630_v61  ;;  %v6781_v7 = vpack.c.bf16 %v2636_v1, %v2632_v63  ;;  %v287_v63 = vsub.s32 6, %v8975_v51  ;;  %v2670_v1 = vld [vmem:[#allocation13 + $0x388] sm:$0xff]  ;;  %9222 = vst [vmem:[#allocation26_spill] sm:$0xff] %v9004_v37 }
 0x177   :  { %6250 = vmatprep.subr.bf16.mxu0 %v6249_v10  ;;  %6762 = vmatprep.subr.bf16.mxu1 %v6761_v11  ;;  %v2638_v10 = vld [vmem:[#allocation13 + $0x288] sm:$0xff]  ;;  %9223 = vst [vmem:[#allocation27_spill] sm:$0xff] %v9007_v38  ;;  %9225 = vst [vmem:[#allocation29_spill] sm:$0xff] %v9013_v41 }
 0x178   :  { %v2642_v11 = vld [vmem:[#allocation13 + $0x2a8] sm:$0xff] }
 0x179   :  { %v6273_v17 = vpack.c.bf16 %v2642_v11, %v2638_v10  ;;  %v2673_v10 = vld [vmem:[#allocation13 + $0x3a0] sm:$0xff]  ;;  %v8991_v11 = vrot.slane %v8978_v60, %v287_v63 }
 0x17a   :  { %6252 = vmatpush1.bf16.msra.mxu0 %v6251_v18  ;;  %6764 = vmatpush1.bf16.msra.mxu1 %v6763_v19  ;;  %v6785_v18 = vpack.c.bf16 %v2644_v13, %v2640_v12  ;;  %v2641_v19 = vld [vmem:[#allocation13 + $0x2a0] sm:$0xff]  ;;  %v6291_v13 = vpack.c.bf16 %v2673_v10, %v2669_v9 }
 0x17b   :  { %6254 = vmatprep.subr.bf16.mxu0 %v6253_v22  ;;  %6766 = vmatprep.subr.bf16.mxu1 %v6765_v23  ;;  %v6275_v22 = vpack.c.bf16 %v2641_v19, %v2637_v16  ;;  %v6787_v23 = vpack.c.bf16 %v2643_v21, %v2639_v20  ;;  %v8996_v16 = vrot.slane %v8978_v60, %v283_v4  ;;  %v2678_v19 = vld [vmem:[#allocation13 + $0x3c8] sm:$0xff]  ;;  %v2680_v21 = vld [vmem:[#allocation13 + $0x3d8] sm:$0xff] }
 0x17c   :  { %v2682_v20 = vld [vmem:[#allocation13 + $0x3e8] sm:$0xff] }
 0x17e   :  { %6256 = vmatpush1.bf16.msra.mxu0 %v6255_v30  ;;  %6768 = vmatpush1.bf16.msra.mxu1 %v6767_v31  ;;  %v2649_v30 = vld [vmem:[#allocation13 + $0x2e0] sm:$0xff]  ;;  %v6789_v31 = vpack.c.bf16 %v2652_v28, %v2648_v26  ;;  %v2679_v28 = vld [vmem:[#allocation13 + $0x3d0] sm:$0xff] }
 0x17f   :  { %6258 = vmatprep.subr.bf16.mxu0 %v6257_v34  ;;  %6770 = vmatprep.subr.bf16.mxu1 %v6769_v35  ;;  %v6279_v32 = vpack.c.bf16 %v2649_v30, %v2645_v29  ;;  %v2651_v34 = vld [vmem:[#allocation13 + $0x2f0] sm:$0xff] }
 0x180   :  { %v6791_v35 = vpack.c.bf16 %v2651_v34, %v2647_v33  ;;  %v2683_v29 = vld [vmem:[#allocation13 + $0x3f0] sm:$0xff]  ;;  %v2688_v33 = vld [vmem:[#allocation13 + $0x418] sm:$0xff] }
 0x181   :  { %v6807_v30 = vpack.c.bf16 %v2683_v29, %v2679_v28  ;;  %v2687_v28 = vld [vmem:[#allocation13 + $0x410] sm:$0xff] }
 0x182   :  { %6260 = vmatpush1.bf16.msra.mxu0 %v6259_v42  ;;  %6772 = vmatpush1.bf16.msra.mxu1 %v6771_v43  ;;  %v2653_v42 = vld [vmem:[#allocation13 + $0x300] sm:$0xff]  ;;  %v2691_v29 = vld [vmem:[#allocation13 + $0x430] sm:$0xff] }
 0x183   :  { %6262 = vmatprep.subr.bf16.mxu0 %v6261_v46  ;;  %6774 = vmatprep.subr.bf16.mxu1 %v6773_v47  ;;  %v2657_v43 = vld [vmem:[#allocation13 + $0x320] sm:$0xff]  ;;  %v2655_v46 = vld [vmem:[#allocation13 + $0x310] sm:$0xff] }
 0x184   :  { %v6283_v45 = vpack.c.bf16 %v2657_v43, %v2653_v42  ;;  %v2659_v47 = vld [vmem:[#allocation13 + $0x330] sm:$0xff]  ;;  %v264_v42 = vrot.slane %v257_v39, %v9004_v37  ;;  %v9017_v43 = vrot.slane %v257_v39, %v9007_v38 }
 0x185   :  { %v6795_v48 = vpack.c.bf16 %v2659_v47, %v2655_v46 }
 0x186   :  { %6264 = vmatpush1.bf16.msra.mxu0 %v6263_v53  ;;  %6776 = vmatpush1.bf16.msra.mxu1 %v6775_v54  ;;  %v2668_v53 = vld [vmem:[#allocation13 + $0x378] sm:$0xff]  ;;  %v2661_v54 = vld [vmem:[#allocation13 + $0x340] sm:$0xff] }
 0x187   :  { %6266 = vmatprep.subr.bf16.mxu0 %v6265_v57  ;;  %6778 = vmatprep.subr.bf16.mxu1 %v6777_v58  ;;  %v6797_v55 = vpack.c.bf16 %v2668_v53, %v2664_v50  ;;  %v2663_v57 = vld [vmem:[#allocation13 + $0x350] sm:$0xff]  ;;  %v6287_v61 = vpack.c.bf16 %v2665_v56, %v2661_v54  ;;  %v9034_v53 = vrot.slane %v257_v39, %v287_v63 }
 0x188   :  { %v2667_v58 = vld [vmem:[#allocation13 + $0x370] sm:$0xff]  ;;  %v9043_v56 = vrot.slane %v257_v39, %v283_v4 }
 0x189   :  { %v6799_v62 = vpack.c.bf16 %v2667_v58, %v2663_v57  ;;  %v9047_v57 = vrot.slane %v257_v39, %v291_v5 }
 0x18a   :  { %6268 = vmatpush1.bf16.msra.mxu0 %v6267_v2  ;;  %6780 = vmatpush1.bf16.msra.mxu1 %v6779_v3  ;;  %v2674_v2 = vld [vmem:[#allocation13 + $0x3a8] sm:$0xff]  ;;  %v2672_v3 = vld [vmem:[#allocation13 + $0x398] sm:$0xff] }
 0x18b   :  { %6270 = vmatprep.subr.bf16.mxu0 %v6269_v6  ;;  %6782 = vmatprep.subr.bf16.mxu1 %v6781_v7  ;;  %v8986_v6 = vrot.slane %v8978_v60, %v279_v59  ;;  %v6289_v7 = vpack.c.bf16 %v2674_v2, %v2670_v1  ;;  %v6801_v12 = vpack.c.bf16 %v2676_v8, %v2672_v3 }
 0x18c   :  { %v9057_v2 = vrot.slane %v8978_v60, %v9004_v37  ;;  %v9061_v3 = vrot.slane %v8978_v60, %v9007_v38  ;;  %v2720_v38 = vld [vmem:[#allocation13 + $0x518] sm:$0xff] }
 0x18d   :  { %v2724_v37 = vld [vmem:[#allocation13 + $0x538] sm:$0xff] }
 0x18e   :  { %6272 = vmatpush1.bf16.msra.mxu0 %v6271_v14  ;;  %6784 = vmatpush1.bf16.msra.mxu1 %v6783_v15  ;;  %v2671_v14 = vld [vmem:[#allocation13 + $0x390] sm:$0xff] }
 0x18f   :  { %6274 = vmatprep.subr.bf16.mxu0 %v6273_v17  ;;  %6786 = vmatprep.subr.bf16.mxu1 %v6785_v18  ;;  %v2675_v15 = vld [vmem:[#allocation13 + $0x3b0] sm:$0xff]  ;;  %v9001_v17 = vrot.slane %v8978_v60, %v291_v5 }
 0x190   :  { %v6803_v18 = vpack.c.bf16 %v2675_v15, %v2671_v14 }
 0x192   :  { %6276 = vmatpush1.bf16.msra.mxu0 %v6275_v22  ;;  %6788 = vmatpush1.bf16.msra.mxu1 %v6787_v23  ;;  %v6293_v22 = vpack.c.bf16 %v2682_v20, %v2678_v19  ;;  %v2684_v23 = vld [vmem:[#allocation13 + $0x3f8] sm:$0xff] }
 0x193   :  { %6278 = vmatprep.subr.bf16.mxu0 %v6277_v27  ;;  %6790 = vmatprep.subr.bf16.mxu1 %v6789_v31  ;;  %v6805_v26 = vpack.c.bf16 %v2684_v23, %v2680_v21  ;;  %v6295_v27 = vpack.c.bf16 %v2681_v25, %v2677_v24  ;;  %v2686_v31 = vld [vmem:[#allocation13 + $0x408] sm:$0xff] }
 0x196   :  { %6280 = vmatpush1.bf16.msra.mxu0 %v6279_v32  ;;  %6792 = vmatpush1.bf16.msra.mxu1 %v6791_v35  ;;  %v2690_v32 = vld [vmem:[#allocation13 + $0x428] sm:$0xff]  ;;  %v2692_v35 = vld [vmem:[#allocation13 + $0x438] sm:$0xff] }
 0x197   :  { %6282 = vmatprep.subr.bf16.mxu0 %v6281_v40  ;;  %6794 = vmatprep.subr.bf16.mxu1 %v6793_v44  ;;  %v6297_v34 = vpack.c.bf16 %v2690_v32, %v2686_v31  ;;  %v6809_v36 = vpack.c.bf16 %v2692_v35, %v2688_v33  ;;  %v9010_v40 = vsub.s32 1, %v8975_v51  ;;  %v2694_v32 = vld [vmem:[#allocation13 + $0x448] sm:$0xff] }
 0x198   :  { %v2698_v35 = vld [vmem:[#allocation13 + $0x468] sm:$0xff] }
 0x199   :  { %9224 = vst [vmem:[#allocation28_spill] sm:$0xff] %v9010_v40  ;;  %v268_v44 = vrot.slane %v257_v39, %v9010_v40  ;;  %v9071_v5 = vrot.slane %v8978_v60, %v9010_v40  ;;  %v2722_v40 = vld [vmem:[#allocation13 + $0x528] sm:$0xff] }
 0x19a   :  { %6284 = vmatpush1.bf16.msra.mxu0 %v6283_v45  ;;  %6796 = vmatpush1.bf16.msra.mxu1 %v6795_v48  ;;  %v9021_v45 = vrot.slane %v257_v39, %v9013_v41 }
 0x19b   :  { %6286 = vmatprep.subr.bf16.mxu0 %v6285_v52  ;;  %6798 = vmatprep.subr.bf16.mxu1 %v6797_v55  ;;  %v9030_v52 = vrot.slane %v257_v39, %v279_v59  ;;  %v2700_v39 = vld [vmem:[#allocation13 + $0x478] sm:$0xff] }
 0x19e   :  { %6288 = vmatpush1.bf16.msra.mxu0 %v6287_v61  ;;  %6800 = vmatpush1.bf16.msra.mxu1 %v6799_v62 }
 0x19f   :  { %6290 = vmatprep.subr.bf16.mxu0 %v6289_v7  ;;  %6802 = vmatprep.subr.bf16.mxu1 %v6801_v12  ;;  %v9075_v7 = vrot.slane %v8978_v60, %v9013_v41 }
 0x1a2   :  { %6292 = vmatpush1.bf16.msra.mxu0 %v6291_v13  ;;  %6804 = vmatpush1.bf16.msra.mxu1 %v6803_v18 }
 0x1a3   :  { %6294 = vmatprep.subr.bf16.mxu0 %v6293_v22  ;;  %6806 = vmatprep.subr.bf16.mxu1 %v6805_v26  ;;  %v2685_v26 = vld [vmem:[#allocation13 + $0x400] sm:$0xff] }
 0x1a6   :  { %6296 = vmatpush1.bf16.msra.mxu0 %v6295_v27  ;;  %6808 = vmatpush1.bf16.msra.mxu1 %v6807_v30  ;;  %v2689_v27 = vld [vmem:[#allocation13 + $0x420] sm:$0xff] }
 0x1a7   :  { %6298 = vmatprep.subr.bf16.mxu0 %v6297_v34  ;;  %6810 = vmatprep.subr.bf16.mxu1 %v6809_v36  ;;  %v2696_v36 = vld [vmem:[#allocation13 + $0x458] sm:$0xff] }
 0x220   :  { %v460_v46 = vpop.f32.mrb[0].mxu0  ;;  %v531_v47 = vpop.f32.mrb[0].mxu1 }
 0x221   :  { %v9023_v48 = vadd.f32 %v460_v46, %v264_v42  ;;  %v9026_v0 = vadd.f32 %v531_v47, %v9017_v43  ;;  %v462_v49 = vpop.f32.mrb[1].mxu0  ;;  %v533_v50 = vpop.f32.mrb[1].mxu1  ;;  %v6299_v47 = vpack.c.bf16 %v2689_v27, %v2685_v26 }
 0x222   :  { %v9036_v54 = vadd.f32 %v462_v49, %v268_v44  ;;  %v9039_v55 = vadd.f32 %v533_v50, %v9021_v45  ;;  %v6811_v49 = vpack.c.bf16 %v2691_v29, %v2687_v28  ;;  %v2693_v50 = vld [vmem:[#allocation13 + $0x440] sm:$0xff] }
 0x223   :  { %v2701_v29 = vld [vmem:[#allocation13 + $0x480] sm:$0xff] }
 0x224   :  { %v602_v58 = vpop.f32.mrb[2].mxu0  ;;  %v673_v59 = vpop.f32.mrb[2].mxu1 }
 0x225   :  { %v9050_v61 = vadd.f32 %v602_v58, %v9030_v52  ;;  %v9053_v62 = vadd.f32 %v673_v59, %v9034_v53  ;;  %v604_v63 = vpop.f32.mrb[3].mxu0  ;;  %v675_v1 = vpop.f32.mrb[3].mxu1  ;;  %v2697_v58 = vld [vmem:[#allocation13 + $0x460] sm:$0xff] }
 0x226   :  { %v9064_v51 = vadd.f32 %v604_v63, %v9043_v56  ;;  %v9067_v4 = vadd.f32 %v675_v1, %v9047_v57  ;;  %v2695_v63 = vld [vmem:[#allocation13 + $0x450] sm:$0xff] }
 0x227   :  { %v2699_v1 = vld [vmem:[#allocation13 + $0x470] sm:$0xff] }
 0x228   :  { %v744_v8 = vpop.f32.mrb[4].mxu0  ;;  %v815_v9 = vpop.f32.mrb[4].mxu1  ;;  %v6815_v28 = vpack.c.bf16 %v2699_v1, %v2695_v63 }
 0x229   :  { %v9078_v10 = vadd.f32 %v744_v8, %v9057_v2  ;;  %v9081_v12 = vadd.f32 %v815_v9, %v9061_v3  ;;  %v746_v13 = vpop.f32.mrb[5].mxu0  ;;  %v817_v14 = vpop.f32.mrb[5].mxu1  ;;  %v2702_v8 = vld [vmem:[#allocation13 + $0x488] sm:$0xff] }
 0x22a   :  { %v9084_v15 = vadd.f32 %v746_v13, %v9071_v5  ;;  %v9087_v18 = vadd.f32 %v817_v14, %v9075_v7  ;;  %v6301_v14 = vpack.c.bf16 %v2698_v35, %v2694_v32  ;;  %v2703_v35 = vld [vmem:[#allocation13 + $0x490] sm:$0xff] }
 0x22c   :  { %v886_v19 = vpop.f32.mrb[6].mxu0  ;;  %v957_v20 = vpop.f32.mrb[6].mxu1 }
 0x22d   :  { %v9090_v60 = vadd.f32 %v886_v19, %v8986_v6  ;;  %v9093_v21 = vadd.f32 %v957_v20, %v8991_v11  ;;  %v888_v22 = vpop.f32.mrb[7].mxu0  ;;  %v959_v23 = vpop.f32.mrb[7].mxu1  ;;  %v6813_v19 = vpack.c.bf16 %v2700_v39, %v2696_v36  ;;  %v2706_v20 = vld [vmem:[#allocation13 + $0x4a8] sm:$0xff]  ;;  %v2707_v36 = vld [vmem:[#allocation13 + $0x4b0] sm:$0xff] }
 0x22e   :  { %v9096_v24 = vadd.f32 %v888_v22, %v8996_v16  ;;  %v9099_v25 = vadd.f32 %v959_v23, %v9001_v17  ;;  %v2704_v22 = vld [vmem:[#allocation13 + $0x498] sm:$0xff]  ;;  %v6305_v32 = vpack.c.bf16 %v2706_v20, %v2702_v8  ;;  %v2710_v39 = vld [vmem:[#allocation13 + $0x4c8] sm:$0xff]  ;;  %v6819_v8 = vpack.c.bf16 %v2707_v36, %v2703_v35  ;;  %v2709_v20 = vld [vmem:[#allocation13 + $0x4c0] sm:$0xff] }
 0x22f   :  { %v2708_v23 = vld [vmem:[#allocation13 + $0x4b8] sm:$0xff]  ;;  %v2717_v36 = vld [vmem:[#allocation13 + $0x500] sm:$0xff] }
 0x230   :  { %v1031_v30 = vpop.f32.mrb[8].mxu0  ;;  %v9101_v31 = vpop.f32.mrb[8].mxu1 }
 0x231   :  { %v1033_v33 = vpop.f32.mrb[9].mxu0  ;;  %v1104_v34 = vpop.f32.mrb[9].mxu1  ;;  %v1032_v59 = vadd.f32 %v1031_v30, %v264_v42  ;;  %v6303_v42 = vpack.c.bf16 %v2697_v58, %v2693_v50  ;;  %v2705_v30 = vld [vmem:[#allocation13 + $0x4a0] sm:$0xff] }
 0x232   :  { %v1034_v46 = vadd.f32 %v1033_v33, %v268_v44  ;;  %v1105_v44 = vadd.f32 %v1104_v34, %v9021_v45  ;;  %v6817_v33 = vpack.c.bf16 %v2708_v23, %v2704_v22  ;;  %v6307_v1 = vpack.c.bf16 %v2705_v30, %v2701_v29  ;;  %v2713_v22 = vld [vmem:[#allocation13 + $0x4e0] sm:$0xff]  ;;  %v2711_v23 = vld [vmem:[#allocation13 + $0x4d0] sm:$0xff] }
 0x233   :  { %v6311_v30 = vpack.c.bf16 %v2713_v22, %v2709_v20  ;;  %v2732_v20 = vld [vmem:[#allocation13 + $0x578] sm:$0xff]  ;;  %v2725_v22 = vld [vmem:[#allocation13 + $0x540] sm:$0xff] }
 0x234   :  { %v9103_v9 = vpop.f32.mrb[10].mxu0  ;;  %v9105_v13 = vpop.f32.mrb[10].mxu1  ;;  %3645 = vmatprep.mubr.f32.mxu0 %v1034_v46  ;;  %4213 = vmatprep.mubr.f32.mxu1 %v1034_v46  ;;  %v2714_v46 = vld [vmem:[#allocation13 + $0x4e8] sm:$0xff] }
 0x235   :  { %v9108_v26 = vpop.f32.mrb[11].mxu0  ;;  %v9110_v27 = vpop.f32.mrb[11].mxu1  ;;  %3646 = vmatmul.mubr.f32.vlgmr.msra.gmra.mrb[16].mxu0 %v1032_v59  ;;  %4214 = vmatmul.mubr.f32.vlgmr.msra.gmra.mrb[16].mxu1 %v1032_v59  ;;  %v2712_v59 = vld [vmem:[#allocation13 + $0x4d8] sm:$0xff] }
 0x236   :  { %6300 = vmatpush1.bf16.msra.mxu0 %v6299_v47  ;;  %6812 = vmatpush1.bf16.msra.mxu1 %v6811_v49  ;;  %v2716_v47 = vld [vmem:[#allocation13 + $0x4f8] sm:$0xff] }
 0x237   :  { %3716 = vmatprep.mubr.f32.mxu0 %v1105_v44  ;;  %4284 = vmatprep.mubr.f32.mxu1 %v1105_v44  ;;  %v2715_v44 = vld [vmem:[#allocation13 + $0x4f0] sm:$0xff] }
 0x238   :  { %v9112_v45 = vpop.f32.mrb[12].mxu0  ;;  %v1386_v34 = vpop.f32.mrb[12].mxu1  ;;  %6302 = vmatprep.subr.bf16.mxu0 %v6301_v14  ;;  %6814 = vmatprep.subr.bf16.mxu1 %v6813_v19  ;;  %v6309_v14 = vpack.c.bf16 %v2714_v46, %v2710_v39  ;;  %v6821_v19 = vpack.c.bf16 %v2716_v47, %v2712_v59  ;;  %v6823_v35 = vpack.c.bf16 %v2715_v44, %v2711_v23  ;;  %v2721_v39 = vld [vmem:[#allocation13 + $0x520] sm:$0xff]  ;;  %v2726_v59 = vld [vmem:[#allocation13 + $0x548] sm:$0xff]  ;;  %v2740_v44 = vld [vmem:[#allocation13 + $0x5b8] sm:$0xff] }
 0x239   :  { %v9115_v49 = vadd.f32 %v1386_v34, %v9061_v3  ;;  %v9117_v50 = vpop.f32.mrb[13].mxu0  ;;  %v1388_v58 = vpop.f32.mrb[13].mxu1  ;;  %v2718_v3 = vld [vmem:[#allocation13 + $0x508] sm:$0xff]  ;;  %v6825_v46 = vpack.c.bf16 %v2724_v37, %v2720_v38  ;;  %v2736_v38 = vld [vmem:[#allocation13 + $0x598] sm:$0xff] }
 0x23a   :  { %v9120_v63 = vadd.f32 %v1388_v58, %v9075_v7  ;;  %6304 = vmatpush1.bf16.msra.mxu0 %v6303_v42  ;;  %6816 = vmatpush1.bf16.msra.mxu1 %v6815_v28  ;;  %v2730_v47 = vld [vmem:[#allocation13 + $0x568] sm:$0xff]  ;;  %v2728_v58 = vld [vmem:[#allocation13 + $0x558] sm:$0xff] }
 0x23b   :  { %6306 = vmatprep.subr.bf16.mxu0 %v6305_v32  ;;  %6818 = vmatprep.subr.bf16.mxu1 %v6817_v33  ;;  %v6829_v23 = vpack.c.bf16 %v2732_v20, %v2728_v58  ;;  %v2738_v37 = vld [vmem:[#allocation13 + $0x5a8] sm:$0xff]  ;;  %v2741_v58 = vld [vmem:[#allocation13 + $0x5c0] sm:$0xff] }
 0x23c   :  { %v1457_v34 = vpop.f32.mrb[14].mxu0  ;;  %v1528_v41 = vpop.f32.mrb[14].mxu1  ;;  %v2745_v20 = vld [vmem:[#allocation13 + $0x5e0] sm:$0xff] }
 0x23d   :  { %v9123_v7 = vadd.f32 %v1457_v34, %v8986_v6  ;;  %v9126_v42 = vadd.f32 %v1528_v41, %v8991_v11  ;;  %v1459_v28 = vpop.f32.mrb[15].mxu0  ;;  %v1530_v29 = vpop.f32.mrb[15].mxu1  ;;  %v6313_v6 = vpack.c.bf16 %v2722_v40, %v2718_v3  ;;  %v2719_v11 = vld [vmem:[#allocation13 + $0x510] sm:$0xff]  ;;  %v2734_v40 = vld [vmem:[#allocation13 + $0x588] sm:$0xff] }
 0x23e   :  { %v9129_v32 = vadd.f32 %v1459_v28, %v8996_v16  ;;  %v9132_v33 = vadd.f32 %v1530_v29, %v9001_v17  ;;  %6308 = vmatpush1.bf16.msra.mxu0 %v6307_v1  ;;  %6820 = vmatpush1.bf16.msra.mxu1 %v6819_v8  ;;  %v2723_v41 = vld [vmem:[#allocation13 + $0x530] sm:$0xff]  ;;  %v6315_v16 = vpack.c.bf16 %v2721_v39, %v2717_v36  ;;  %v2729_v1 = vld [vmem:[#allocation13 + $0x560] sm:$0xff] }
 0x23f   :  { %6310 = vmatprep.subr.bf16.mxu0 %v6309_v14  ;;  %6822 = vmatprep.subr.bf16.mxu1 %v6821_v19  ;;  %v6827_v17 = vpack.c.bf16 %v2723_v41, %v2719_v11  ;;  %v6317_v8 = vpack.c.bf16 %v2730_v47, %v2726_v59  ;;  %v2727_v14 = vld [vmem:[#allocation13 + $0x550] sm:$0xff]  ;;  %v6319_v3 = vpack.c.bf16 %v2729_v1, %v2725_v22  ;;  %v2733_v28 = vld [vmem:[#allocation13 + $0x580] sm:$0xff]  ;;  %v2744_v11 = vld [vmem:[#allocation13 + $0x5d8] sm:$0xff] }
 0x240   :  { %v2731_v19 = vld [vmem:[#allocation13 + $0x570] sm:$0xff]  ;;  %v2737_v29 = vld [vmem:[#allocation13 + $0x5a0] sm:$0xff]  ;;  %v2748_v41 = vld [vmem:[#allocation13 + $0x5f8] sm:$0xff] }
 0x241   :  { %v6831_v34 = vpack.c.bf16 %v2731_v19, %v2727_v14  ;;  %v2735_v36 = vld [vmem:[#allocation13 + $0x590] sm:$0xff]  ;;  %v6323_v59 = vpack.c.bf16 %v2737_v29, %v2733_v28  ;;  %v2752_v14 = vld [vmem:[#allocation13 + $0x618] sm:$0xff] }
 0x242   :  { %6312 = vmatpush1.bf16.msra.mxu0 %v6311_v30  ;;  %6824 = vmatpush1.bf16.msra.mxu1 %v6823_v35  ;;  %v6321_v30 = vpack.c.bf16 %v2738_v37, %v2734_v40  ;;  %v6833_v35 = vpack.c.bf16 %v2740_v44, %v2736_v38  ;;  %v2739_v39 = vld [vmem:[#allocation13 + $0x5b0] sm:$0xff]  ;;  %v2756_v19 = vld [vmem:[#allocation13 + $0x638] sm:$0xff]  ;;  %v6327_v40 = vpack.c.bf16 %v2745_v20, %v2741_v58  ;;  %v2749_v38 = vld [vmem:[#allocation13 + $0x600] sm:$0xff] }
 0x243   :  { %6314 = vmatprep.subr.bf16.mxu0 %v6313_v6  ;;  %6826 = vmatprep.subr.bf16.mxu1 %v6825_v46  ;;  %v2742_v6 = vld [vmem:[#allocation13 + $0x5c8] sm:$0xff]  ;;  %v6835_v47 = vpack.c.bf16 %v2739_v39, %v2735_v36  ;;  %v2743_v22 = vld [vmem:[#allocation13 + $0x5d0] sm:$0xff]  ;;  %v2753_v44 = vld [vmem:[#allocation13 + $0x620] sm:$0xff] }
 0x244   :  { %v2746_v46 = vld [vmem:[#allocation13 + $0x5e8] sm:$0xff]  ;;  %v2747_v1 = vld [vmem:[#allocation13 + $0x5f0] sm:$0xff]  ;;  %v2760_v36 = vld [vmem:[#allocation13 + $0x658] sm:$0xff] }
 0x245   :  { %v6839_v37 = vpack.c.bf16 %v2747_v1, %v2743_v22  ;;  %v2751_v28 = vld [vmem:[#allocation13 + $0x610] sm:$0xff]  ;;  %v2764_v39 = vld [vmem:[#allocation13 + $0x678] sm:$0xff] }
 0x246   :  { %6316 = vmatpush1.bf16.msra.mxu0 %v6315_v16  ;;  %6828 = vmatpush1.bf16.msra.mxu1 %v6827_v17  ;;  %v6325_v16 = vpack.c.bf16 %v2746_v46, %v2742_v6  ;;  %v6837_v17 = vpack.c.bf16 %v2748_v41, %v2744_v11  ;;  %v2755_v29 = vld [vmem:[#allocation13 + $0x630] sm:$0xff]  ;;  %v6331_v6 = vpack.c.bf16 %v2753_v44, %v2749_v38  ;;  %v2757_v11 = vld [vmem:[#allocation13 + $0x640] sm:$0xff]  ;;  %v2768_v22 = vld [vmem:[#allocation13 + $0x698] sm:$0xff] }
 0x247   :  { %6318 = vmatprep.subr.bf16.mxu0 %v6317_v8  ;;  %6830 = vmatprep.subr.bf16.mxu1 %v6829_v23  ;;  %v2750_v8 = vld [vmem:[#allocation13 + $0x608] sm:$0xff]  ;;  %v6843_v46 = vpack.c.bf16 %v2755_v29, %v2751_v28  ;;  %v2761_v41 = vld [vmem:[#allocation13 + $0x660] sm:$0xff]  ;;  %v2759_v58 = vld [vmem:[#allocation13 + $0x650] sm:$0xff] }
 0x248   :  { %v2754_v23 = vld [vmem:[#allocation13 + $0x628] sm:$0xff]  ;;  %v2763_v20 = vld [vmem:[#allocation13 + $0x670] sm:$0xff]  ;;  %v2772_v1 = vld [vmem:[#allocation13 + $0x6b8] sm:$0xff] }
 0x249   :  { %v2767_v38 = vld [vmem:[#allocation13 + $0x690] sm:$0xff]  ;;  %v2776_v28 = vld [vmem:[#allocation13 + $0x6d8] sm:$0xff] }
 0x24a   :  { %6320 = vmatpush1.bf16.msra.mxu0 %v6319_v3  ;;  %6832 = vmatpush1.bf16.msra.mxu1 %v6831_v34  ;;  %v6329_v3 = vpack.c.bf16 %v2754_v23, %v2750_v8  ;;  %v6841_v34 = vpack.c.bf16 %v2756_v19, %v2752_v14  ;;  %v6335_v8 = vpack.c.bf16 %v2761_v41, %v2757_v11  ;;  %v2765_v14 = vld [vmem:[#allocation13 + $0x680] sm:$0xff]  ;;  %v2771_v44 = vld [vmem:[#allocation13 + $0x6b0] sm:$0xff]  ;;  %v2780_v29 = vld [vmem:[#allocation13 + $0x6f8] sm:$0xff] }
 0x24b   :  { %6322 = vmatprep.subr.bf16.mxu0 %v6321_v30  ;;  %6834 = vmatprep.subr.bf16.mxu1 %v6833_v35  ;;  %v2758_v30 = vld [vmem:[#allocation13 + $0x648] sm:$0xff]  ;;  %v6847_v23 = vpack.c.bf16 %v2763_v20, %v2759_v58  ;;  %v2769_v19 = vld [vmem:[#allocation13 + $0x6a0] sm:$0xff]  ;;  %v2775_v11 = vld [vmem:[#allocation13 + $0x6d0] sm:$0xff] }
 0x24c   :  { %v2762_v35 = vld [vmem:[#allocation13 + $0x668] sm:$0xff]  ;;  %v2779_v41 = vld [vmem:[#allocation13 + $0x6f0] sm:$0xff]  ;;  %v2784_v58 = vld [vmem:[#allocation13 + $0x718] sm:$0xff] }
 0x24d   :  { %v2788_v20 = vld [vmem:[#allocation13 + $0x738] sm:$0xff] }
 0x24e   :  { %6324 = vmatpush1.bf16.msra.mxu0 %v6323_v59  ;;  %6836 = vmatpush1.bf16.msra.mxu1 %v6835_v47  ;;  %v6333_v59 = vpack.c.bf16 %v2762_v35, %v2758_v30  ;;  %v6845_v47 = vpack.c.bf16 %v2764_v39, %v2760_v36  ;;  %v6339_v30 = vpack.c.bf16 %v2769_v19, %v2765_v14  ;;  %v2773_v36 = vld [vmem:[#allocation13 + $0x6c0] sm:$0xff]  ;;  %v2783_v14 = vld [vmem:[#allocation13 + $0x710] sm:$0xff] }
 0x24f   :  { %6326 = vmatprep.subr.bf16.mxu0 %v6325_v16  ;;  %6838 = vmatprep.subr.bf16.mxu1 %v6837_v17  ;;  %v2766_v16 = vld [vmem:[#allocation13 + $0x688] sm:$0xff]  ;;  %v6851_v35 = vpack.c.bf16 %v2771_v44, %v2767_v38  ;;  %v2777_v39 = vld [vmem:[#allocation13 + $0x6e0] sm:$0xff]  ;;  %v2787_v19 = vld [vmem:[#allocation13 + $0x730] sm:$0xff] }
 0x250   :  { %v2770_v17 = vld [vmem:[#allocation13 + $0x6a8] sm:$0xff]  ;;  %v2792_v38 = vld [vmem:[#allocation13 + $0x758] sm:$0xff] }
 0x251   :  { %v2796_v44 = vld [vmem:[#allocation13 + $0x778] sm:$0xff] }
 0x252   :  { %6328 = vmatpush1.bf16.msra.mxu0 %v6327_v40  ;;  %6840 = vmatpush1.bf16.msra.mxu1 %v6839_v37  ;;  %v6337_v40 = vpack.c.bf16 %v2770_v17, %v2766_v16  ;;  %v6849_v37 = vpack.c.bf16 %v2772_v1, %v2768_v22  ;;  %v6343_v16 = vpack.c.bf16 %v2777_v39, %v2773_v36  ;;  %v2781_v22 = vld [vmem:[#allocation13 + $0x700] sm:$0xff]  ;;  %v2791_v36 = vld [vmem:[#allocation13 + $0x750] sm:$0xff] }
 0x253   :  { %6330 = vmatprep.subr.bf16.mxu0 %v6329_v3  ;;  %6842 = vmatprep.subr.bf16.mxu1 %v6841_v34  ;;  %v2774_v3 = vld [vmem:[#allocation13 + $0x6c8] sm:$0xff]  ;;  %v6855_v17 = vpack.c.bf16 %v2779_v41, %v2775_v11  ;;  %v2785_v1 = vld [vmem:[#allocation13 + $0x720] sm:$0xff]  ;;  %v2795_v39 = vld [vmem:[#allocation13 + $0x770] sm:$0xff] }
 0x254   :  { %v2778_v34 = vld [vmem:[#allocation13 + $0x6e8] sm:$0xff]  ;;  %v2800_v11 = vld [vmem:[#allocation13 + $0x798] sm:$0xff] }
 0x255   :  { %v2804_v41 = vld [vmem:[#allocation13 + $0x7b8] sm:$0xff] }
 0x256   :  { %6332 = vmatpush1.bf16.msra.mxu0 %v6331_v6  ;;  %6844 = vmatpush1.bf16.msra.mxu1 %v6843_v46  ;;  %v6341_v6 = vpack.c.bf16 %v2778_v34, %v2774_v3  ;;  %v6853_v46 = vpack.c.bf16 %v2780_v29, %v2776_v28  ;;  %v6347_v3 = vpack.c.bf16 %v2785_v1, %v2781_v22  ;;  %v2789_v28 = vld [vmem:[#allocation13 + $0x740] sm:$0xff]  ;;  %v2799_v22 = vld [vmem:[#allocation13 + $0x790] sm:$0xff] }
 0x257   :  { %6334 = vmatprep.subr.bf16.mxu0 %v6333_v59  ;;  %6846 = vmatprep.subr.bf16.mxu1 %v6845_v47  ;;  %v2782_v59 = vld [vmem:[#allocation13 + $0x708] sm:$0xff]  ;;  %v6859_v34 = vpack.c.bf16 %v2787_v19, %v2783_v14  ;;  %v2793_v29 = vld [vmem:[#allocation13 + $0x760] sm:$0xff]  ;;  %v2803_v1 = vld [vmem:[#allocation13 + $0x7b0] sm:$0xff] }
 0x258   :  { %v2786_v47 = vld [vmem:[#allocation13 + $0x728] sm:$0xff]  ;;  %v2808_v14 = vld [vmem:[#allocation13 + $0x7d8] sm:$0xff] }
 0x259   :  { %v2812_v19 = vld [vmem:[#allocation13 + $0x7f8] sm:$0xff] }
 0x25a   :  { %6336 = vmatpush1.bf16.msra.mxu0 %v6335_v8  ;;  %6848 = vmatpush1.bf16.msra.mxu1 %v6847_v23  ;;  %v6345_v8 = vpack.c.bf16 %v2786_v47, %v2782_v59  ;;  %v6857_v23 = vpack.c.bf16 %v2788_v20, %v2784_v58  ;;  %v6351_v59 = vpack.c.bf16 %v2793_v29, %v2789_v28  ;;  %v2797_v58 = vld [vmem:[#allocation13 + $0x780] sm:$0xff]  ;;  %v2807_v28 = vld [vmem:[#allocation13 + $0x7d0] sm:$0xff] }
 0x25b   :  { %6338 = vmatprep.subr.bf16.mxu0 %v6337_v40  ;;  %6850 = vmatprep.subr.bf16.mxu1 %v6849_v37  ;;  %v2790_v40 = vld [vmem:[#allocation13 + $0x748] sm:$0xff]  ;;  %v6863_v47 = vpack.c.bf16 %v2795_v39, %v2791_v36  ;;  %v2801_v20 = vld [vmem:[#allocation13 + $0x7a0] sm:$0xff]  ;;  %v2811_v29 = vld [vmem:[#allocation13 + $0x7f0] sm:$0xff] }
 0x25c   :  { %v2794_v37 = vld [vmem:[#allocation13 + $0x768] sm:$0xff]  ;;  %v2816_v36 = vld [vmem:[#allocation13 + $0x818] sm:$0xff] }
 0x25d   :  { %v2820_v39 = vld [vmem:[#allocation13 + $0x838] sm:$0xff] }
 0x25e   :  { %6340 = vmatpush1.bf16.msra.mxu0 %v6339_v30  ;;  %6852 = vmatpush1.bf16.msra.mxu1 %v6851_v35  ;;  %v6349_v30 = vpack.c.bf16 %v2794_v37, %v2790_v40  ;;  %v6861_v35 = vpack.c.bf16 %v2796_v44, %v2792_v38  ;;  %v6355_v40 = vpack.c.bf16 %v2801_v20, %v2797_v58  ;;  %v2805_v38 = vld [vmem:[#allocation13 + $0x7c0] sm:$0xff]  ;;  %v2815_v58 = vld [vmem:[#allocation13 + $0x810] sm:$0xff] }
 0x25f   :  { %6342 = vmatprep.subr.bf16.mxu0 %v6341_v6  ;;  %6854 = vmatprep.subr.bf16.mxu1 %v6853_v46  ;;  %v2798_v6 = vld [vmem:[#allocation13 + $0x788] sm:$0xff]  ;;  %v6867_v37 = vpack.c.bf16 %v2803_v1, %v2799_v22  ;;  %v2809_v44 = vld [vmem:[#allocation13 + $0x7e0] sm:$0xff]  ;;  %v2819_v20 = vld [vmem:[#allocation13 + $0x830] sm:$0xff] }
 0x260   :  { %v2802_v46 = vld [vmem:[#allocation13 + $0x7a8] sm:$0xff]  ;;  %v2824_v22 = vld [vmem:[#allocation13 + $0x858] sm:$0xff] }
 0x261   :  { %v2828_v1 = vld [vmem:[#allocation13 + $0x878] sm:$0xff] }
 0x262   :  { %6344 = vmatpush1.bf16.msra.mxu0 %v6343_v16  ;;  %6856 = vmatpush1.bf16.msra.mxu1 %v6855_v17  ;;  %v6353_v16 = vpack.c.bf16 %v2802_v46, %v2798_v6  ;;  %v6865_v17 = vpack.c.bf16 %v2804_v41, %v2800_v11  ;;  %v6359_v6 = vpack.c.bf16 %v2809_v44, %v2805_v38 }
 0x263   :  { %6346 = vmatprep.subr.bf16.mxu0 %v6345_v8  ;;  %6858 = vmatprep.subr.bf16.mxu1 %v6857_v23  ;;  %v2806_v8 = vld [vmem:[#allocation13 + $0x7c8] sm:$0xff]  ;;  %v6871_v46 = vpack.c.bf16 %v2811_v29, %v2807_v28  ;;  %v6873_v41 = vpack.c.bf16 %v2820_v39, %v2816_v36  ;;  %v1176_v38 = vadd.f32 %v9108_v26, %v9043_v56  ;;  %v2829_v39 = vld [vmem:[#allocation13 + $0x880] sm:$0xff]  ;;  %v2835_v26 = vld [vmem:[#allocation13 + $0x8b0] sm:$0xff] }
 0x264   :  { %v2810_v23 = vld [vmem:[#allocation13 + $0x7e8] sm:$0xff] }
 0x265   :  { %v2830_v28 = vld [vmem:[#allocation13 + $0x888] sm:$0xff] }
 0x266   :  { %6348 = vmatpush1.bf16.msra.mxu0 %v6347_v3  ;;  %6860 = vmatpush1.bf16.msra.mxu1 %v6859_v34  ;;  %v6357_v3 = vpack.c.bf16 %v2810_v23, %v2806_v8  ;;  %v6869_v34 = vpack.c.bf16 %v2812_v19, %v2808_v14  ;;  %v1103_v23 = vadd.f32 %v9101_v31, %v9017_v43  ;;  %v2821_v19 = vld [vmem:[#allocation13 + $0x840] sm:$0xff]  ;;  %v2834_v29 = vld [vmem:[#allocation13 + $0x8a8] sm:$0xff] }
 0x267   :  { %6350 = vmatprep.subr.bf16.mxu0 %v6349_v30  ;;  %6862 = vmatprep.subr.bf16.mxu1 %v6861_v35  ;;  %v2814_v30 = vld [vmem:[#allocation13 + $0x808] sm:$0xff]  ;;  %v6875_v14 = vpack.c.bf16 %v2819_v20, %v2815_v58  ;;  %v6369_v36 = vpack.c.bf16 %v2834_v29, %v2830_v28  ;;  %v2849_v28 = vld [vmem:[#allocation13 + $0x920] sm:$0xff]  ;;  %v2847_v29 = vld [vmem:[#allocation13 + $0x910] sm:$0xff] }
 0x268   :  { %v2818_v35 = vld [vmem:[#allocation13 + $0x828] sm:$0xff] }
 0x269   :  { %v6361_v11 = vpack.c.bf16 %v2818_v35, %v2814_v30  ;;  %v2832_v30 = vld [vmem:[#allocation13 + $0x898] sm:$0xff] }
 0x26a   :  { %6352 = vmatpush1.bf16.msra.mxu0 %v6351_v59  ;;  %6864 = vmatpush1.bf16.msra.mxu1 %v6863_v47  ;;  %v2813_v59 = vld [vmem:[#allocation13 + $0x800] sm:$0xff]  ;;  %v2836_v35 = vld [vmem:[#allocation13 + $0x8b8] sm:$0xff] }
 0x26b   :  { %6354 = vmatprep.subr.bf16.mxu0 %v6353_v16  ;;  %6866 = vmatprep.subr.bf16.mxu1 %v6865_v17  ;;  %v2817_v47 = vld [vmem:[#allocation13 + $0x820] sm:$0xff]  ;;  %v2822_v16 = vld [vmem:[#allocation13 + $0x848] sm:$0xff]  ;;  %v6881_v56 = vpack.c.bf16 %v2836_v35, %v2832_v30  ;;  %v2851_v35 = vld [vmem:[#allocation13 + $0x930] sm:$0xff] }
 0x26c   :  { %v2826_v17 = vld [vmem:[#allocation13 + $0x868] sm:$0xff]  ;;  %v6363_v8 = vpack.c.bf16 %v2817_v47, %v2813_v59  ;;  %v2840_v59 = vld [vmem:[#allocation13 + $0x8d8] sm:$0xff] }
 0x26d   :  { %v6365_v44 = vpack.c.bf16 %v2826_v17, %v2822_v16  ;;  %v2844_v47 = vld [vmem:[#allocation13 + $0x8f8] sm:$0xff]  ;;  %v2837_v17 = vld [vmem:[#allocation13 + $0x8c0] sm:$0xff] }
 0x26e   :  { %6356 = vmatpush1.bf16.msra.mxu0 %v6355_v40  ;;  %6868 = vmatpush1.bf16.msra.mxu1 %v6867_v37  ;;  %v2825_v40 = vld [vmem:[#allocation13 + $0x860] sm:$0xff]  ;;  %v2823_v37 = vld [vmem:[#allocation13 + $0x850] sm:$0xff] }
 0x26f   :  { %6358 = vmatprep.subr.bf16.mxu0 %v6357_v3  ;;  %6870 = vmatprep.subr.bf16.mxu1 %v6869_v34  ;;  %v6877_v3 = vpack.c.bf16 %v2828_v1, %v2824_v22  ;;  %v2827_v34 = vld [vmem:[#allocation13 + $0x870] sm:$0xff]  ;;  %v6367_v43 = vpack.c.bf16 %v2825_v40, %v2821_v19  ;;  %v2841_v22 = vld [vmem:[#allocation13 + $0x8e0] sm:$0xff]  ;;  %v2850_v19 = vld [vmem:[#allocation13 + $0x928] sm:$0xff] }
 0x270   :  { %v6879_v31 = vpack.c.bf16 %v2827_v34, %v2823_v37  ;;  %v2839_v1 = vld [vmem:[#allocation13 + $0x8d0] sm:$0xff]  ;;  %v2848_v40 = vld [vmem:[#allocation13 + $0x918] sm:$0xff]  ;;  %v2845_v34 = vld [vmem:[#allocation13 + $0x900] sm:$0xff] }
 0x271   :  { %v2852_v37 = vld [vmem:[#allocation13 + $0x938] sm:$0xff] }
 0x272   :  { %6360 = vmatpush1.bf16.msra.mxu0 %v6359_v6  ;;  %6872 = vmatpush1.bf16.msra.mxu1 %v6871_v46  ;;  %v2833_v6 = vld [vmem:[#allocation13 + $0x8a0] sm:$0xff]  ;;  %v2831_v46 = vld [vmem:[#allocation13 + $0x890] sm:$0xff]  ;;  %v6889_v30 = vpack.c.bf16 %v2852_v37, %v2848_v40 }
 0x273   :  { %6362 = vmatprep.subr.bf16.mxu0 %v6361_v11  ;;  %6874 = vmatprep.subr.bf16.mxu1 %v6873_v41  ;;  %v2838_v11 = vld [vmem:[#allocation13 + $0x8c8] sm:$0xff]  ;;  %v6371_v58 = vpack.c.bf16 %v2833_v6, %v2829_v39  ;;  %v6883_v20 = vpack.c.bf16 %v2835_v26, %v2831_v46  ;;  %v2860_v39 = vld [vmem:[#allocation13 + $0x978] sm:$0xff]  ;;  %v6379_v6 = vpack.c.bf16 %v2849_v28, %v2845_v34  ;;  %v2853_v26 = vld [vmem:[#allocation13 + $0x940] sm:$0xff] }
 0x274   :  { %v2842_v41 = vld [vmem:[#allocation13 + $0x8e8] sm:$0xff]  ;;  %v6891_v46 = vpack.c.bf16 %v2851_v35, %v2847_v29  ;;  %v2867_v37 = vld [vmem:[#allocation13 + $0x9b0] sm:$0xff]  ;;  %v2876_v34 = vld [vmem:[#allocation13 + $0x9f8] sm:$0xff] }
 0x275   :  { %3717 = vmatmul.mubr.f32.vlgmr.msra.gmra.mrb[16].mxu0 %v1103_v23  ;;  %4285 = vmatmul.mubr.f32.vlgmr.msra.gmra.mrb[16].mxu1 %v1103_v23  ;;  %v6373_v16 = vpack.c.bf16 %v2842_v41, %v2838_v11  ;;  %v2843_v23 = vld [vmem:[#allocation13 + $0x8f0] sm:$0xff]  ;;  %v2857_v11 = vld [vmem:[#allocation13 + $0x960] sm:$0xff] }
 0x276   :  { %6364 = vmatpush1.bf16.msra.mxu0 %v6363_v8  ;;  %3787 = vmatprep.mubr.f32.mxu0 %v1176_v38  ;;  %v6885_v8 = vpack.c.bf16 %v2844_v47, %v2840_v59  ;;  %v2855_v41 = vld [vmem:[#allocation13 + $0x950] sm:$0xff]  ;;  %v2869_v35 = vld [vmem:[#allocation13 + $0x9c0] sm:$0xff] }
 0x277   :  { %6876 = vmatpush1.bf16.msra.mxu1 %v6875_v14  ;;  %4355 = vmatprep.mubr.f32.mxu1 %v1176_v38  ;;  %v2846_v14 = vld [vmem:[#allocation13 + $0x908] sm:$0xff]  ;;  %v6375_v38 = vpack.c.bf16 %v2841_v22, %v2837_v17  ;;  %v2859_v47 = vld [vmem:[#allocation13 + $0x970] sm:$0xff]  ;;  %v2868_v17 = vld [vmem:[#allocation13 + $0x9b8] sm:$0xff]  ;;  %v6383_v22 = vpack.c.bf16 %v2857_v11, %v2853_v26 }
 0x278   :  { %6366 = vmatprep.subr.bf16.mxu0 %v6365_v44  ;;  %6878 = vmatprep.subr.bf16.mxu1 %v6877_v3  ;;  %v6887_v44 = vpack.c.bf16 %v2843_v23, %v2839_v1  ;;  %v6377_v3 = vpack.c.bf16 %v2850_v19, %v2846_v14  ;;  %v6895_v1 = vpack.c.bf16 %v2859_v47, %v2855_v41  ;;  %v2861_v23 = vld [vmem:[#allocation13 + $0x980] sm:$0xff]  ;;  %v2863_v19 = vld [vmem:[#allocation13 + $0x990] sm:$0xff]  ;;  %v2884_v26 = vld [vmem:[#allocation13 + $0xa38] sm:$0xff] }
 0x279   :  { %v2865_v14 = vld [vmem:[#allocation13 + $0x9a0] sm:$0xff]  ;;  %v6899_v29 = vpack.c.bf16 %v2867_v37, %v2863_v19 }
 0x27a   :  { %6368 = vmatpush1.bf16.msra.mxu0 %v6367_v43  ;;  %v2854_v43 = vld [vmem:[#allocation13 + $0x948] sm:$0xff]  ;;  %v6387_v28 = vpack.c.bf16 %v2865_v14, %v2861_v23  ;;  %v2877_v47 = vld [vmem:[#allocation13 + $0xa00] sm:$0xff]  ;;  %v2892_v23 = vld [vmem:[#allocation13 + $0xa78] sm:$0xff] }
 0x27b   :  { %6880 = vmatpush1.bf16.msra.mxu1 %v6879_v31  ;;  %6370 = vmatprep.subr.bf16.mxu0 %v6369_v36  ;;  %v2858_v31 = vld [vmem:[#allocation13 + $0x968] sm:$0xff]  ;;  %v2856_v36 = vld [vmem:[#allocation13 + $0x958] sm:$0xff]  ;;  %v2885_v37 = vld [vmem:[#allocation13 + $0xa40] sm:$0xff] }
 0x27c   :  { %6882 = vmatprep.subr.bf16.mxu1 %v6881_v56  ;;  %v6381_v56 = vpack.c.bf16 %v2858_v31, %v2854_v43  ;;  %v6893_v59 = vpack.c.bf16 %v2860_v39, %v2856_v36  ;;  %v2873_v43 = vld [vmem:[#allocation13 + $0x9e0] sm:$0xff]  ;;  %v2871_v31 = vld [vmem:[#allocation13 + $0x9d0] sm:$0xff] }
 0x27d   :  { %v2875_v39 = vld [vmem:[#allocation13 + $0x9f0] sm:$0xff]  ;;  %v6391_v11 = vpack.c.bf16 %v2873_v43, %v2869_v35  ;;  %v2900_v35 = vld [vmem:[#allocation13 + $0xab8] sm:$0xff] }
 0x27e   :  { %6372 = vmatpush1.bf16.msra.mxu0 %v6371_v58  ;;  %v2862_v58 = vld [vmem:[#allocation13 + $0x988] sm:$0xff]  ;;  %v6903_v41 = vpack.c.bf16 %v2875_v39, %v2871_v31  ;;  %v2893_v39 = vld [vmem:[#allocation13 + $0xa80] sm:$0xff] }
 0x27f   :  { %6884 = vmatpush1.bf16.msra.mxu1 %v6883_v20  ;;  %6374 = vmatprep.subr.bf16.mxu0 %v6373_v16  ;;  %v2866_v20 = vld [vmem:[#allocation13 + $0x9a8] sm:$0xff]  ;;  %v2864_v16 = vld [vmem:[#allocation13 + $0x998] sm:$0xff] }
 0x280   :  { %6886 = vmatprep.subr.bf16.mxu1 %v6885_v8  ;;  %v6385_v8 = vpack.c.bf16 %v2866_v20, %v2862_v58  ;;  %v6897_v40 = vpack.c.bf16 %v2868_v17, %v2864_v16  ;;  %v2881_v58 = vld [vmem:[#allocation13 + $0xa20] sm:$0xff]  ;;  %v2879_v20 = vld [vmem:[#allocation13 + $0xa10] sm:$0xff] }
 0x281   :  { %v2883_v17 = vld [vmem:[#allocation13 + $0xa30] sm:$0xff]  ;;  %v6395_v14 = vpack.c.bf16 %v2881_v58, %v2877_v47  ;;  %v2908_v47 = vld [vmem:[#allocation13 + $0xaf8] sm:$0xff] }
 0x282   :  { %6376 = vmatpush1.bf16.msra.mxu0 %v6375_v38  ;;  %v2870_v38 = vld [vmem:[#allocation13 + $0x9c8] sm:$0xff]  ;;  %v6907_v19 = vpack.c.bf16 %v2883_v17, %v2879_v20  ;;  %v2901_v17 = vld [vmem:[#allocation13 + $0xac0] sm:$0xff] }
 0x283   :  { %6888 = vmatpush1.bf16.msra.mxu1 %v6887_v44  ;;  %6378 = vmatprep.subr.bf16.mxu0 %v6377_v3  ;;  %v2874_v44 = vld [vmem:[#allocation13 + $0x9e8] sm:$0xff]  ;;  %v2872_v3 = vld [vmem:[#allocation13 + $0x9d8] sm:$0xff] }
 0x284   :  { %6890 = vmatprep.subr.bf16.mxu1 %v6889_v30  ;;  %v6389_v30 = vpack.c.bf16 %v2874_v44, %v2870_v38  ;;  %v6901_v36 = vpack.c.bf16 %v2876_v34, %v2872_v3  ;;  %v2889_v38 = vld [vmem:[#allocation13 + $0xa60] sm:$0xff]  ;;  %v2887_v44 = vld [vmem:[#allocation13 + $0xa50] sm:$0xff] }
 0x285   :  { %v2891_v34 = vld [vmem:[#allocation13 + $0xa70] sm:$0xff]  ;;  %v6399_v43 = vpack.c.bf16 %v2889_v38, %v2885_v37  ;;  %v2916_v37 = vld [vmem:[#allocation13 + $0xb38] sm:$0xff] }
 0x286   :  { %6380 = vmatpush1.bf16.msra.mxu0 %v6379_v6  ;;  %v2878_v6 = vld [vmem:[#allocation13 + $0xa08] sm:$0xff]  ;;  %v6911_v31 = vpack.c.bf16 %v2891_v34, %v2887_v44  ;;  %v2909_v34 = vld [vmem:[#allocation13 + $0xb00] sm:$0xff] }
 0x287   :  { %6892 = vmatpush1.bf16.msra.mxu1 %v6891_v46  ;;  %6382 = vmatprep.subr.bf16.mxu0 %v6381_v56  ;;  %v2882_v46 = vld [vmem:[#allocation13 + $0xa28] sm:$0xff]  ;;  %v2880_v56 = vld [vmem:[#allocation13 + $0xa18] sm:$0xff] }
 0x288   :  { %6894 = vmatprep.subr.bf16.mxu1 %v6893_v59  ;;  %v6393_v59 = vpack.c.bf16 %v2882_v46, %v2878_v6  ;;  %v6905_v16 = vpack.c.bf16 %v2884_v26, %v2880_v56  ;;  %v2897_v6 = vld [vmem:[#allocation13 + $0xaa0] sm:$0xff]  ;;  %v2895_v46 = vld [vmem:[#allocation13 + $0xa90] sm:$0xff] }
 0x289   :  { %v2899_v26 = vld [vmem:[#allocation13 + $0xab0] sm:$0xff]  ;;  %v6403_v58 = vpack.c.bf16 %v2897_v6, %v2893_v39  ;;  %v2924_v39 = vld [vmem:[#allocation13 + $0xb78] sm:$0xff] }
 0x28a   :  { %6384 = vmatpush1.bf16.msra.mxu0 %v6383_v22  ;;  %v2886_v22 = vld [vmem:[#allocation13 + $0xa48] sm:$0xff]  ;;  %v6915_v20 = vpack.c.bf16 %v2899_v26, %v2895_v46  ;;  %v2917_v26 = vld [vmem:[#allocation13 + $0xb40] sm:$0xff] }
 0x28b   :  { %6896 = vmatpush1.bf16.msra.mxu1 %v6895_v1  ;;  %6386 = vmatprep.subr.bf16.mxu0 %v6385_v8  ;;  %v2890_v1 = vld [vmem:[#allocation13 + $0xa68] sm:$0xff]  ;;  %v2888_v8 = vld [vmem:[#allocation13 + $0xa58] sm:$0xff] }
 0x28c   :  { %6898 = vmatprep.subr.bf16.mxu1 %v6897_v40  ;;  %v6397_v40 = vpack.c.bf16 %v2890_v1, %v2886_v22  ;;  %v6909_v3 = vpack.c.bf16 %v2892_v23, %v2888_v8  ;;  %v2905_v22 = vld [vmem:[#allocation13 + $0xae0] sm:$0xff]  ;;  %v2903_v1 = vld [vmem:[#allocation13 + $0xad0] sm:$0xff] }
 0x28d   :  { %v2907_v23 = vld [vmem:[#allocation13 + $0xaf0] sm:$0xff]  ;;  %v6407_v38 = vpack.c.bf16 %v2905_v22, %v2901_v17  ;;  %v2932_v17 = vld [vmem:[#allocation13 + $0xbb8] sm:$0xff] }
 0x28e   :  { %6388 = vmatpush1.bf16.msra.mxu0 %v6387_v28  ;;  %v2894_v28 = vld [vmem:[#allocation13 + $0xa88] sm:$0xff]  ;;  %v6919_v44 = vpack.c.bf16 %v2907_v23, %v2903_v1  ;;  %v2925_v23 = vld [vmem:[#allocation13 + $0xb80] sm:$0xff] }
 0x28f   :  { %6900 = vmatpush1.bf16.msra.mxu1 %v6899_v29  ;;  %6390 = vmatprep.subr.bf16.mxu0 %v6389_v30  ;;  %v2898_v29 = vld [vmem:[#allocation13 + $0xaa8] sm:$0xff]  ;;  %v2896_v30 = vld [vmem:[#allocation13 + $0xa98] sm:$0xff] }
 0x290   :  { %6902 = vmatprep.subr.bf16.mxu1 %v6901_v36  ;;  %v6401_v36 = vpack.c.bf16 %v2898_v29, %v2894_v28  ;;  %v6913_v56 = vpack.c.bf16 %v2900_v35, %v2896_v30  ;;  %v2913_v28 = vld [vmem:[#allocation13 + $0xb20] sm:$0xff]  ;;  %v2911_v29 = vld [vmem:[#allocation13 + $0xb10] sm:$0xff] }
 0x291   :  { %v2915_v35 = vld [vmem:[#allocation13 + $0xb30] sm:$0xff]  ;;  %v6411_v6 = vpack.c.bf16 %v2913_v28, %v2909_v34  ;;  %v2940_v34 = vld [vmem:[#allocation13 + $0xbf8] sm:$0xff] }
 0x292   :  { %6392 = vmatpush1.bf16.msra.mxu0 %v6391_v11  ;;  %v2902_v11 = vld [vmem:[#allocation13 + $0xac8] sm:$0xff]  ;;  %v6923_v46 = vpack.c.bf16 %v2915_v35, %v2911_v29  ;;  %v2933_v35 = vld [vmem:[#allocation13 + $0xbc0] sm:$0xff] }
 0x293   :  { %6904 = vmatpush1.bf16.msra.mxu1 %v6903_v41  ;;  %6394 = vmatprep.subr.bf16.mxu0 %v6393_v59  ;;  %v2906_v41 = vld [vmem:[#allocation13 + $0xae8] sm:$0xff]  ;;  %v2904_v59 = vld [vmem:[#allocation13 + $0xad8] sm:$0xff] }
 0x294   :  { %6906 = vmatprep.subr.bf16.mxu1 %v6905_v16  ;;  %v6405_v16 = vpack.c.bf16 %v2906_v41, %v2902_v11  ;;  %v6917_v8 = vpack.c.bf16 %v2908_v47, %v2904_v59  ;;  %v2921_v11 = vld [vmem:[#allocation13 + $0xb60] sm:$0xff]  ;;  %v2919_v41 = vld [vmem:[#allocation13 + $0xb50] sm:$0xff] }
 0x295   :  { %v2923_v47 = vld [vmem:[#allocation13 + $0xb70] sm:$0xff]  ;;  %v6415_v22 = vpack.c.bf16 %v2921_v11, %v2917_v26  ;;  %v2948_v26 = vld [vmem:[#allocation13 + $0xc38] sm:$0xff] }
 0x296   :  { %6396 = vmatpush1.bf16.msra.mxu0 %v6395_v14  ;;  %v2910_v14 = vld [vmem:[#allocation13 + $0xb08] sm:$0xff]  ;;  %v6927_v1 = vpack.c.bf16 %v2923_v47, %v2919_v41  ;;  %v2941_v47 = vld [vmem:[#allocation13 + $0xc00] sm:$0xff] }
 0x297   :  { %6908 = vmatpush1.bf16.msra.mxu1 %v6907_v19  ;;  %6398 = vmatprep.subr.bf16.mxu0 %v6397_v40  ;;  %v2914_v19 = vld [vmem:[#allocation13 + $0xb28] sm:$0xff]  ;;  %v2912_v40 = vld [vmem:[#allocation13 + $0xb18] sm:$0xff] }
 0x298   :  { %6910 = vmatprep.subr.bf16.mxu1 %v6909_v3  ;;  %v6409_v3 = vpack.c.bf16 %v2914_v19, %v2910_v14  ;;  %v6921_v30 = vpack.c.bf16 %v2916_v37, %v2912_v40  ;;  %v2929_v14 = vld [vmem:[#allocation13 + $0xba0] sm:$0xff]  ;;  %v2927_v19 = vld [vmem:[#allocation13 + $0xb90] sm:$0xff] }
 0x299   :  { %v2931_v37 = vld [vmem:[#allocation13 + $0xbb0] sm:$0xff]  ;;  %v6419_v28 = vpack.c.bf16 %v2929_v14, %v2925_v23  ;;  %v2952_v23 = vld [vmem:[#allocation13 + $0xc58] sm:$0xff] }
 0x29a   :  { %6400 = vmatpush1.bf16.msra.mxu0 %v6399_v43  ;;  %v2918_v43 = vld [vmem:[#allocation13 + $0xb48] sm:$0xff]  ;;  %v6931_v29 = vpack.c.bf16 %v2931_v37, %v2927_v19  ;;  %v2956_v14 = vld [vmem:[#allocation13 + $0xc78] sm:$0xff]  ;;  %v1174_v19 = vadd.f32 %v9103_v9, %v9030_v52  ;;  %v2949_v37 = vld [vmem:[#allocation13 + $0xc40] sm:$0xff] }
 0x29b   :  { %6912 = vmatpush1.bf16.msra.mxu1 %v6911_v31  ;;  %6402 = vmatprep.subr.bf16.mxu0 %v6401_v36  ;;  %v2922_v31 = vld [vmem:[#allocation13 + $0xb68] sm:$0xff]  ;;  %v2920_v36 = vld [vmem:[#allocation13 + $0xb58] sm:$0xff] }
 0x29c   :  { %6914 = vmatprep.subr.bf16.mxu1 %v6913_v56  ;;  %v6413_v56 = vpack.c.bf16 %v2922_v31, %v2918_v43  ;;  %v6925_v59 = vpack.c.bf16 %v2924_v39, %v2920_v36  ;;  %v2937_v43 = vld [vmem:[#allocation13 + $0xbe0] sm:$0xff]  ;;  %v2935_v31 = vld [vmem:[#allocation13 + $0xbd0] sm:$0xff] }
 0x29d   :  { %v2939_v39 = vld [vmem:[#allocation13 + $0xbf0] sm:$0xff]  ;;  %v6423_v11 = vpack.c.bf16 %v2937_v43, %v2933_v35  ;;  %v6941_v35 = vpack.c.bf16 %v2956_v14, %v2952_v23  ;;  %v2960_v43 = vld [vmem:[#allocation13 + $0xc98] sm:$0xff]  ;;  %v2978_v23 = vld [vmem:[#allocation13 + $0xd28] sm:$0xff] }
 0x29e   :  { %6404 = vmatpush1.bf16.msra.mxu0 %v6403_v58  ;;  %v2926_v58 = vld [vmem:[#allocation13 + $0xb88] sm:$0xff]  ;;  %v6935_v41 = vpack.c.bf16 %v2939_v39, %v2935_v31  ;;  %v2964_v31 = vld [vmem:[#allocation13 + $0xcb8] sm:$0xff]  ;;  %v2957_v39 = vld [vmem:[#allocation13 + $0xc80] sm:$0xff] }
 0x29f   :  { %6916 = vmatpush1.bf16.msra.mxu1 %v6915_v20  ;;  %6406 = vmatprep.subr.bf16.mxu0 %v6405_v16  ;;  %v2930_v20 = vld [vmem:[#allocation13 + $0xba8] sm:$0xff]  ;;  %v2928_v16 = vld [vmem:[#allocation13 + $0xb98] sm:$0xff] }
 0x2a0   :  { %6918 = vmatprep.subr.bf16.mxu1 %v6917_v8  ;;  %v6417_v8 = vpack.c.bf16 %v2930_v20, %v2926_v58  ;;  %v6929_v40 = vpack.c.bf16 %v2932_v17, %v2928_v16  ;;  %v2945_v58 = vld [vmem:[#allocation13 + $0xc20] sm:$0xff]  ;;  %v2943_v16 = vld [vmem:[#allocation13 + $0xc10] sm:$0xff]  ;;  %v2976_v14 = vld [vmem:[#allocation13 + $0xd18] sm:$0xff] }
 0x2a1   :  { %v2947_v17 = vld [vmem:[#allocation13 + $0xc30] sm:$0xff] }
 0x2a2   :  { %6408 = vmatpush1.bf16.msra.mxu0 %v6407_v38  ;;  %v2934_v38 = vld [vmem:[#allocation13 + $0xbc8] sm:$0xff] }
 0x2a3   :  { %6920 = vmatpush1.bf16.msra.mxu1 %v6919_v44  ;;  %6410 = vmatprep.subr.bf16.mxu0 %v6409_v3  ;;  %v2938_v44 = vld [vmem:[#allocation13 + $0xbe8] sm:$0xff]  ;;  %v2936_v3 = vld [vmem:[#allocation13 + $0xbd8] sm:$0xff] }
 0x2a4   :  { %6922 = vmatprep.subr.bf16.mxu1 %v6921_v30  ;;  %v6421_v30 = vpack.c.bf16 %v2938_v44, %v2934_v38  ;;  %v6933_v36 = vpack.c.bf16 %v2940_v34, %v2936_v3  ;;  %v2953_v38 = vld [vmem:[#allocation13 + $0xc60] sm:$0xff]  ;;  %v2951_v44 = vld [vmem:[#allocation13 + $0xc50] sm:$0xff] }
 0x2a5   :  { %v2955_v34 = vld [vmem:[#allocation13 + $0xc70] sm:$0xff]  ;;  %v6431_v52 = vpack.c.bf16 %v2953_v38, %v2949_v37 }
 0x2a6   :  { %6412 = vmatpush1.bf16.msra.mxu0 %v6411_v6  ;;  %v2942_v6 = vld [vmem:[#allocation13 + $0xc08] sm:$0xff]  ;;  %v6943_v9 = vpack.c.bf16 %v2955_v34, %v2951_v44  ;;  %v2973_v44 = vld [vmem:[#allocation13 + $0xd00] sm:$0xff]  ;;  %v2975_v34 = vld [vmem:[#allocation13 + $0xd10] sm:$0xff] }
 0x2a7   :  { %6924 = vmatpush1.bf16.msra.mxu1 %v6923_v46  ;;  %6414 = vmatprep.subr.bf16.mxu0 %v6413_v56  ;;  %v2946_v46 = vld [vmem:[#allocation13 + $0xc28] sm:$0xff]  ;;  %v2944_v56 = vld [vmem:[#allocation13 + $0xc18] sm:$0xff] }
 0x2a8   :  { %6926 = vmatprep.subr.bf16.mxu1 %v6925_v59  ;;  %v6425_v59 = vpack.c.bf16 %v2946_v46, %v2942_v6  ;;  %v6937_v20 = vpack.c.bf16 %v2948_v26, %v2944_v56  ;;  %v2961_v6 = vld [vmem:[#allocation13 + $0xca0] sm:$0xff]  ;;  %v2959_v46 = vld [vmem:[#allocation13 + $0xc90] sm:$0xff]  ;;  %v6945_v56 = vpack.c.bf16 %v2964_v31, %v2960_v43  ;;  %v2984_v43 = vld [vmem:[#allocation13 + $0xd58] sm:$0xff] }
 0x2a9   :  { %v2963_v26 = vld [vmem:[#allocation13 + $0xcb0] sm:$0xff]  ;;  %v2988_v31 = vld [vmem:[#allocation13 + $0xd78] sm:$0xff] }
 0x2aa   :  { %6416 = vmatpush1.bf16.msra.mxu0 %v6415_v22  ;;  %v2950_v22 = vld [vmem:[#allocation13 + $0xc48] sm:$0xff] }
 0x2ab   :  { %6928 = vmatpush1.bf16.msra.mxu1 %v6927_v1  ;;  %6418 = vmatprep.subr.bf16.mxu0 %v6417_v8  ;;  %v2954_v1 = vld [vmem:[#allocation13 + $0xc68] sm:$0xff]  ;;  %v6427_v8 = vpack.c.bf16 %v2945_v58, %v2941_v47  ;;  %v6947_v47 = vpack.c.bf16 %v2963_v26, %v2959_v46  ;;  %v2983_v46 = vld [vmem:[#allocation13 + $0xd50] sm:$0xff] }
 0x2ac   :  { %6930 = vmatprep.subr.bf16.mxu1 %v6929_v40  ;;  %v6939_v40 = vpack.c.bf16 %v2947_v17, %v2943_v16  ;;  %v6429_v3 = vpack.c.bf16 %v2954_v1, %v2950_v22  ;;  %v2969_v16 = vld [vmem:[#allocation13 + $0xce0] sm:$0xff]  ;;  %v2967_v17 = vld [vmem:[#allocation13 + $0xcd0] sm:$0xff] }
 0x2ad   :  { %v2971_v1 = vld [vmem:[#allocation13 + $0xcf0] sm:$0xff] }
 0x2ae   :  { %6420 = vmatpush1.bf16.msra.mxu0 %v6419_v28  ;;  %v2958_v28 = vld [vmem:[#allocation13 + $0xc88] sm:$0xff]  ;;  %v6951_v37 = vpack.c.bf16 %v2971_v1, %v2967_v17  ;;  %v2987_v26 = vld [vmem:[#allocation13 + $0xd70] sm:$0xff] }
 0x2af   :  { %6932 = vmatpush1.bf16.msra.mxu1 %v6931_v29  ;;  %6422 = vmatprep.subr.bf16.mxu0 %v6421_v30  ;;  %v2962_v29 = vld [vmem:[#allocation13 + $0xca8] sm:$0xff]  ;;  %v1247_v30 = vadd.f32 %v9110_v27, %v9047_v57  ;;  %v2968_v27 = vld [vmem:[#allocation13 + $0xcd8] sm:$0xff]  ;;  %v2991_v17 = vld [vmem:[#allocation13 + $0xd90] sm:$0xff] }
 0x2b0   :  { %6934 = vmatprep.subr.bf16.mxu1 %v6933_v36  ;;  %v6433_v36 = vpack.c.bf16 %v2962_v29, %v2958_v28  ;;  %v2970_v57 = vld [vmem:[#allocation13 + $0xce8] sm:$0xff]  ;;  %v2979_v29 = vld [vmem:[#allocation13 + $0xd30] sm:$0xff] }
 0x2b1   :  { %v2995_v1 = vld [vmem:[#allocation13 + $0xdb0] sm:$0xff] }
 0x2b2   :  { %6424 = vmatpush1.bf16.msra.mxu0 %v6423_v11  ;;  %v2966_v11 = vld [vmem:[#allocation13 + $0xcc8] sm:$0xff] }
 0x2b3   :  { %6936 = vmatpush1.bf16.msra.mxu1 %v6935_v41  ;;  %6426 = vmatprep.subr.bf16.mxu0 %v6425_v59  ;;  %v2972_v41 = vld [vmem:[#allocation13 + $0xcf8] sm:$0xff]  ;;  %v6435_v59 = vpack.c.bf16 %v2961_v6, %v2957_v39  ;;  %v6437_v58 = vpack.c.bf16 %v2970_v57, %v2966_v11  ;;  %v2981_v39 = vld [vmem:[#allocation13 + $0xd40] sm:$0xff]  ;;  %v2990_v11 = vld [vmem:[#allocation13 + $0xd88] sm:$0xff] }
 0x2b4   :  { %6938 = vmatprep.subr.bf16.mxu1 %v6937_v20  ;;  %v2965_v20 = vld [vmem:[#allocation13 + $0xcc0] sm:$0xff]  ;;  %v6949_v22 = vpack.c.bf16 %v2972_v41, %v2968_v27  ;;  %v2994_v57 = vld [vmem:[#allocation13 + $0xda8] sm:$0xff]  ;;  %v2992_v27 = vld [vmem:[#allocation13 + $0xd98] sm:$0xff] }
 0x2b5   :  { %3788 = vmatmul.mubr.f32.vlgmr.msra.gmra.mrb[16].mxu0 %v1174_v19  ;;  %v2985_v6 = vld [vmem:[#allocation13 + $0xd60] sm:$0xff]  ;;  %v2996_v41 = vld [vmem:[#allocation13 + $0xdb8] sm:$0xff] }
 0x2b6   :  { %4356 = vmatmul.mubr.f32.vlgmr.msra.gmra.mrb[16].mxu1 %v1174_v19  ;;  %6428 = vmatpush1.bf16.msra.mxu0 %v6427_v8  ;;  %v2974_v8 = vld [vmem:[#allocation13 + $0xd08] sm:$0xff]  ;;  %v2980_v19 = vld [vmem:[#allocation13 + $0xd38] sm:$0xff] }
 0x2b7   :  { %3858 = vmatprep.mubr.f32.mxu0 %v1247_v30  ;;  %6940 = vmatpush1.bf16.msra.mxu1 %v6939_v40  ;;  %v6439_v40 = vpack.c.bf16 %v2969_v16, %v2965_v20  ;;  %v6441_v38 = vpack.c.bf16 %v2978_v23, %v2974_v8  ;;  %v6953_v28 = vpack.c.bf16 %v2980_v19, %v2976_v14  ;;  %v2989_v20 = vld [vmem:[#allocation13 + $0xd80] sm:$0xff]  ;;  %v2998_v8 = vld [vmem:[#allocation13 + $0xdc8] sm:$0xff]  ;;  %v3000_v14 = vld [vmem:[#allocation13 + $0xdd8] sm:$0xff] }
 0x2b8   :  { %4426 = vmatprep.mubr.f32.mxu1 %v1247_v30  ;;  %6430 = vmatprep.subr.bf16.mxu0 %v6429_v3  ;;  %v2977_v3 = vld [vmem:[#allocation13 + $0xd20] sm:$0xff]  ;;  %v2982_v30 = vld [vmem:[#allocation13 + $0xd48] sm:$0xff]  ;;  %v3004_v19 = vld [vmem:[#allocation13 + $0xdf8] sm:$0xff] }
 0x2b9   :  { %6942 = vmatprep.subr.bf16.mxu1 %v6941_v35  ;;  %v2986_v35 = vld [vmem:[#allocation13 + $0xd68] sm:$0xff]  ;;  %v2993_v16 = vld [vmem:[#allocation13 + $0xda0] sm:$0xff] }
 0x2ba   :  { %6432 = vmatpush1.bf16.msra.mxu0 %v6431_v52  ;;  %v6443_v52 = vpack.c.bf16 %v2977_v3, %v2973_v44  ;;  %v3002_v23 = vld [vmem:[#allocation13 + $0xde8] sm:$0xff]  ;;  %v2997_v44 = vld [vmem:[#allocation13 + $0xdc0] sm:$0xff] }
 0x2bb   :  { %6944 = vmatpush1.bf16.msra.mxu1 %v6943_v9  ;;  %6434 = vmatprep.subr.bf16.mxu0 %v6433_v36  ;;  %v6955_v9 = vpack.c.bf16 %v2979_v29, %v2975_v34  ;;  %v6445_v36 = vpack.c.bf16 %v2986_v35, %v2982_v30  ;;  %v3001_v3 = vld [vmem:[#allocation13 + $0xde0] sm:$0xff]  ;;  %v2999_v34 = vld [vmem:[#allocation13 + $0xdd0] sm:$0xff]  ;;  %v3006_v30 = vld [vmem:[#allocation13 + $0xe08] sm:$0xff] }
 0x2bc   :  { %6946 = vmatprep.subr.bf16.mxu1 %v6945_v56  ;;  %v6957_v56 = vpack.c.bf16 %v2988_v31, %v2984_v43  ;;  %v3003_v29 = vld [vmem:[#allocation13 + $0xdf0] sm:$0xff]  ;;  %v3010_v35 = vld [vmem:[#allocation13 + $0xe28] sm:$0xff]  ;;  %v3008_v43 = vld [vmem:[#allocation13 + $0xe18] sm:$0xff] }
 0x2bd   :  { %v3012_v31 = vld [vmem:[#allocation13 + $0xe38] sm:$0xff] }
 0x2be   :  { %6436 = vmatpush1.bf16.msra.mxu0 %v6435_v59  ;;  %v6447_v59 = vpack.c.bf16 %v2985_v6, %v2981_v39  ;;  %v3005_v39 = vld [vmem:[#allocation13 + $0xe00] sm:$0xff] }
 0x2bf   :  { %6948 = vmatpush1.bf16.msra.mxu1 %v6947_v47  ;;  %6438 = vmatprep.subr.bf16.mxu0 %v6437_v58  ;;  %v6959_v47 = vpack.c.bf16 %v2987_v26, %v2983_v46  ;;  %v6449_v58 = vpack.c.bf16 %v2994_v57, %v2990_v11  ;;  %v3009_v6 = vld [vmem:[#allocation13 + $0xe20] sm:$0xff]  ;;  %v3007_v46 = vld [vmem:[#allocation13 + $0xe10] sm:$0xff]  ;;  %v3014_v11 = vld [vmem:[#allocation13 + $0xe48] sm:$0xff] }
 0x2c0   :  { %6950 = vmatprep.subr.bf16.mxu1 %v6949_v22  ;;  %v6961_v22 = vpack.c.bf16 %v2996_v41, %v2992_v27  ;;  %v3011_v26 = vld [vmem:[#allocation13 + $0xe30] sm:$0xff]  ;;  %v3018_v57 = vld [vmem:[#allocation13 + $0xe68] sm:$0xff]  ;;  %v3016_v27 = vld [vmem:[#allocation13 + $0xe58] sm:$0xff] }
 0x2c1   :  { %v3020_v41 = vld [vmem:[#allocation13 + $0xe78] sm:$0xff] }
 0x2c2   :  { %6440 = vmatpush1.bf16.msra.mxu0 %v6439_v40  ;;  %v6451_v40 = vpack.c.bf16 %v2993_v16, %v2989_v20  ;;  %v3013_v20 = vld [vmem:[#allocation13 + $0xe40] sm:$0xff] }
 0x2c3   :  { %6952 = vmatpush1.bf16.msra.mxu1 %v6951_v37  ;;  %6442 = vmatprep.subr.bf16.mxu0 %v6441_v38  ;;  %v6963_v37 = vpack.c.bf16 %v2995_v1, %v2991_v17  ;;  %v6453_v38 = vpack.c.bf16 %v3002_v23, %v2998_v8  ;;  %v3017_v16 = vld [vmem:[#allocation13 + $0xe60] sm:$0xff]  ;;  %v3015_v17 = vld [vmem:[#allocation13 + $0xe50] sm:$0xff]  ;;  %v3022_v8 = vld [vmem:[#allocation13 + $0xe88] sm:$0xff] }
 0x2c4   :  { %6954 = vmatprep.subr.bf16.mxu1 %v6953_v28  ;;  %v6965_v28 = vpack.c.bf16 %v3004_v19, %v3000_v14  ;;  %v3019_v1 = vld [vmem:[#allocation13 + $0xe70] sm:$0xff]  ;;  %v3026_v23 = vld [vmem:[#allocation13 + $0xea8] sm:$0xff]  ;;  %v3024_v14 = vld [vmem:[#allocation13 + $0xe98] sm:$0xff] }
 0x2c5   :  { %v3028_v19 = vld [vmem:[#allocation13 + $0xeb8] sm:$0xff] }
 0x2c6   :  { %6444 = vmatpush1.bf16.msra.mxu0 %v6443_v52  ;;  %v6455_v52 = vpack.c.bf16 %v3001_v3, %v2997_v44  ;;  %v3021_v44 = vld [vmem:[#allocation13 + $0xe80] sm:$0xff] }
 0x2c7   :  { %6956 = vmatpush1.bf16.msra.mxu1 %v6955_v9  ;;  %6446 = vmatprep.subr.bf16.mxu0 %v6445_v36  ;;  %v6967_v9 = vpack.c.bf16 %v3003_v29, %v2999_v34  ;;  %v6457_v36 = vpack.c.bf16 %v3010_v35, %v3006_v30  ;;  %v3025_v3 = vld [vmem:[#allocation13 + $0xea0] sm:$0xff]  ;;  %v3023_v34 = vld [vmem:[#allocation13 + $0xe90] sm:$0xff]  ;;  %v3030_v30 = vld [vmem:[#allocation13 + $0xec8] sm:$0xff] }
 0x2c8   :  { %6958 = vmatprep.subr.bf16.mxu1 %v6957_v56  ;;  %v6969_v56 = vpack.c.bf16 %v3012_v31, %v3008_v43  ;;  %v3027_v29 = vld [vmem:[#allocation13 + $0xeb0] sm:$0xff]  ;;  %v3034_v35 = vld [vmem:[#allocation13 + $0xee8] sm:$0xff]  ;;  %v3032_v43 = vld [vmem:[#allocation13 + $0xed8] sm:$0xff] }
 0x2c9   :  { %v3036_v31 = vld [vmem:[#allocation13 + $0xef8] sm:$0xff] }
 0x2ca   :  { %6448 = vmatpush1.bf16.msra.mxu0 %v6447_v59  ;;  %v6459_v59 = vpack.c.bf16 %v3009_v6, %v3005_v39  ;;  %v3029_v39 = vld [vmem:[#allocation13 + $0xec0] sm:$0xff] }
 0x2cb   :  { %6960 = vmatpush1.bf16.msra.mxu1 %v6959_v47  ;;  %6450 = vmatprep.subr.bf16.mxu0 %v6449_v58  ;;  %v6971_v47 = vpack.c.bf16 %v3011_v26, %v3007_v46  ;;  %v6461_v58 = vpack.c.bf16 %v3018_v57, %v3014_v11  ;;  %v3033_v6 = vld [vmem:[#allocation13 + $0xee0] sm:$0xff]  ;;  %v3031_v46 = vld [vmem:[#allocation13 + $0xed0] sm:$0xff]  ;;  %v3038_v11 = vld [vmem:[#allocation13 + $0xf08] sm:$0xff] }
 0x2cc   :  { %6962 = vmatprep.subr.bf16.mxu1 %v6961_v22  ;;  %v6973_v22 = vpack.c.bf16 %v3020_v41, %v3016_v27  ;;  %v3035_v26 = vld [vmem:[#allocation13 + $0xef0] sm:$0xff]  ;;  %v3042_v57 = vld [vmem:[#allocation13 + $0xf28] sm:$0xff]  ;;  %v3040_v27 = vld [vmem:[#allocation13 + $0xf18] sm:$0xff] }
 0x2cd   :  { %v3044_v41 = vld [vmem:[#allocation13 + $0xf38] sm:$0xff] }
 0x2ce   :  { %6452 = vmatpush1.bf16.msra.mxu0 %v6451_v40  ;;  %v6463_v40 = vpack.c.bf16 %v3017_v16, %v3013_v20  ;;  %v3037_v20 = vld [vmem:[#allocation13 + $0xf00] sm:$0xff] }
 0x2cf   :  { %6964 = vmatpush1.bf16.msra.mxu1 %v6963_v37  ;;  %6454 = vmatprep.subr.bf16.mxu0 %v6453_v38  ;;  %v6975_v37 = vpack.c.bf16 %v3019_v1, %v3015_v17  ;;  %v6465_v38 = vpack.c.bf16 %v3026_v23, %v3022_v8  ;;  %v3041_v16 = vld [vmem:[#allocation13 + $0xf20] sm:$0xff]  ;;  %v3039_v17 = vld [vmem:[#allocation13 + $0xf10] sm:$0xff]  ;;  %v3046_v8 = vld [vmem:[#allocation13 + $0xf48] sm:$0xff] }
 0x2d0   :  { %6966 = vmatprep.subr.bf16.mxu1 %v6965_v28  ;;  %v6977_v28 = vpack.c.bf16 %v3028_v19, %v3024_v14  ;;  %v3043_v1 = vld [vmem:[#allocation13 + $0xf30] sm:$0xff]  ;;  %v3050_v23 = vld [vmem:[#allocation13 + $0xf68] sm:$0xff]  ;;  %v3048_v14 = vld [vmem:[#allocation13 + $0xf58] sm:$0xff] }
 0x2d1   :  { %v3052_v19 = vld [vmem:[#allocation13 + $0xf78] sm:$0xff] }
 0x2d2   :  { %6456 = vmatpush1.bf16.msra.mxu0 %v6455_v52  ;;  %v6467_v52 = vpack.c.bf16 %v3025_v3, %v3021_v44  ;;  %v3045_v44 = vld [vmem:[#allocation13 + $0xf40] sm:$0xff] }
 0x2d3   :  { %6968 = vmatpush1.bf16.msra.mxu1 %v6967_v9  ;;  %6458 = vmatprep.subr.bf16.mxu0 %v6457_v36  ;;  %v6979_v9 = vpack.c.bf16 %v3027_v29, %v3023_v34  ;;  %v6469_v36 = vpack.c.bf16 %v3034_v35, %v3030_v30  ;;  %v3049_v3 = vld [vmem:[#allocation13 + $0xf60] sm:$0xff]  ;;  %v3047_v34 = vld [vmem:[#allocation13 + $0xf50] sm:$0xff]  ;;  %v3054_v30 = vld [vmem:[#allocation13 + $0xf88] sm:$0xff] }
 0x2d4   :  { %6970 = vmatprep.subr.bf16.mxu1 %v6969_v56  ;;  %v6981_v56 = vpack.c.bf16 %v3036_v31, %v3032_v43  ;;  %v3051_v29 = vld [vmem:[#allocation13 + $0xf70] sm:$0xff]  ;;  %v3058_v35 = vld [vmem:[#allocation13 + $0xfa8] sm:$0xff]  ;;  %v3056_v43 = vld [vmem:[#allocation13 + $0xf98] sm:$0xff] }
 0x2d5   :  { %v3060_v31 = vld [vmem:[#allocation13 + $0xfb8] sm:$0xff] }
 0x2d6   :  { %6460 = vmatpush1.bf16.msra.mxu0 %v6459_v59  ;;  %v6471_v59 = vpack.c.bf16 %v3033_v6, %v3029_v39  ;;  %v3053_v39 = vld [vmem:[#allocation13 + $0xf80] sm:$0xff] }
 0x2d7   :  { %6972 = vmatpush1.bf16.msra.mxu1 %v6971_v47  ;;  %6462 = vmatprep.subr.bf16.mxu0 %v6461_v58  ;;  %v6983_v47 = vpack.c.bf16 %v3035_v26, %v3031_v46  ;;  %v6473_v58 = vpack.c.bf16 %v3042_v57, %v3038_v11  ;;  %v3057_v6 = vld [vmem:[#allocation13 + $0xfa0] sm:$0xff]  ;;  %v3055_v46 = vld [vmem:[#allocation13 + $0xf90] sm:$0xff]  ;;  %v3062_v11 = vld [vmem:[#allocation13 + $0xfc8] sm:$0xff] }
 0x2d8   :  { %6974 = vmatprep.subr.bf16.mxu1 %v6973_v22  ;;  %v6985_v22 = vpack.c.bf16 %v3044_v41, %v3040_v27  ;;  %v3059_v26 = vld [vmem:[#allocation13 + $0xfb0] sm:$0xff]  ;;  %v3066_v57 = vld [vmem:[#allocation13 + $0xfe8] sm:$0xff]  ;;  %v3064_v27 = vld [vmem:[#allocation13 + $0xfd8] sm:$0xff] }
 0x2d9   :  { %v3068_v41 = vld [vmem:[#allocation13 + $0xff8] sm:$0xff] }
 0x2da   :  { %6464 = vmatpush1.bf16.msra.mxu0 %v6463_v40  ;;  %v6475_v40 = vpack.c.bf16 %v3041_v16, %v3037_v20  ;;  %v3061_v20 = vld [vmem:[#allocation13 + $0xfc0] sm:$0xff] }
 0x2db   :  { %6976 = vmatpush1.bf16.msra.mxu1 %v6975_v37  ;;  %6466 = vmatprep.subr.bf16.mxu0 %v6465_v38  ;;  %v6987_v37 = vpack.c.bf16 %v3043_v1, %v3039_v17  ;;  %v6477_v38 = vpack.c.bf16 %v3050_v23, %v3046_v8  ;;  %v3065_v16 = vld [vmem:[#allocation13 + $0xfe0] sm:$0xff]  ;;  %v3063_v17 = vld [vmem:[#allocation13 + $0xfd0] sm:$0xff]  ;;  %v3070_v8 = vld [vmem:[#allocation13 + $0x1008] sm:$0xff] }
 0x2dc   :  { %6978 = vmatprep.subr.bf16.mxu1 %v6977_v28  ;;  %v6989_v28 = vpack.c.bf16 %v3052_v19, %v3048_v14  ;;  %v3067_v1 = vld [vmem:[#allocation13 + $0xff0] sm:$0xff]  ;;  %v3074_v23 = vld [vmem:[#allocation13 + $0x1028] sm:$0xff]  ;;  %v3072_v14 = vld [vmem:[#allocation13 + $0x1018] sm:$0xff] }
 0x2dd   :  { %v3076_v19 = vld [vmem:[#allocation13 + $0x1038] sm:$0xff] }
 0x2de   :  { %6468 = vmatpush1.bf16.msra.mxu0 %v6467_v52  ;;  %v6479_v52 = vpack.c.bf16 %v3049_v3, %v3045_v44  ;;  %v3069_v44 = vld [vmem:[#allocation13 + $0x1000] sm:$0xff] }
 0x2df   :  { %6980 = vmatpush1.bf16.msra.mxu1 %v6979_v9  ;;  %6470 = vmatprep.subr.bf16.mxu0 %v6469_v36  ;;  %v6991_v9 = vpack.c.bf16 %v3051_v29, %v3047_v34  ;;  %v6481_v36 = vpack.c.bf16 %v3058_v35, %v3054_v30  ;;  %v3073_v3 = vld [vmem:[#allocation13 + $0x1020] sm:$0xff]  ;;  %v7001_v34 = vpack.c.bf16 %v3076_v19, %v3072_v14  ;;  %v3075_v29 = vld [vmem:[#allocation13 + $0x1030] sm:$0xff]  ;;  %v3078_v30 = vld [vmem:[#allocation13 + $0x1048] sm:$0xff] }
 0x2e0   :  { %6982 = vmatprep.subr.bf16.mxu1 %v6981_v56  ;;  %v6993_v56 = vpack.c.bf16 %v3060_v31, %v3056_v43  ;;  %v3082_v35 = vld [vmem:[#allocation13 + $0x1068] sm:$0xff]  ;;  %v6491_v43 = vpack.c.bf16 %v3073_v3, %v3069_v44  ;;  %v3080_v31 = vld [vmem:[#allocation13 + $0x1058] sm:$0xff]  ;;  %v3095_v44 = vld [vmem:[#allocation13 + $0x10d0] sm:$0xff] }
 0x2e2   :  { %6472 = vmatpush1.bf16.msra.mxu0 %v6471_v59  ;;  %v6483_v59 = vpack.c.bf16 %v3057_v6, %v3053_v39  ;;  %v3077_v39 = vld [vmem:[#allocation13 + $0x1040] sm:$0xff] }
 0x2e3   :  { %6984 = vmatpush1.bf16.msra.mxu1 %v6983_v47  ;;  %6474 = vmatprep.subr.bf16.mxu0 %v6473_v58  ;;  %v6995_v47 = vpack.c.bf16 %v3059_v26, %v3055_v46  ;;  %v6485_v58 = vpack.c.bf16 %v3066_v57, %v3062_v11  ;;  %v3081_v6 = vld [vmem:[#allocation13 + $0x1060] sm:$0xff]  ;;  %v3079_v46 = vld [vmem:[#allocation13 + $0x1050] sm:$0xff]  ;;  %v3086_v11 = vld [vmem:[#allocation13 + $0x1088] sm:$0xff] }
 0x2e4   :  { %6986 = vmatprep.subr.bf16.mxu1 %v6985_v22  ;;  %v6997_v22 = vpack.c.bf16 %v3068_v41, %v3064_v27  ;;  %v3083_v26 = vld [vmem:[#allocation13 + $0x1070] sm:$0xff]  ;;  %v3090_v57 = vld [vmem:[#allocation13 + $0x10a8] sm:$0xff]  ;;  %v1318_v27 = vadd.f32 %v9117_v50, %v9071_v5  ;;  %v3096_v50 = vld [vmem:[#allocation13 + $0x10d8] sm:$0xff] }
 0x2e5   :  { %v3098_v5 = vld [vmem:[#allocation13 + $0x10e8] sm:$0xff] }
 0x2e6   :  { %6476 = vmatpush1.bf16.msra.mxu0 %v6475_v40  ;;  %v6487_v40 = vpack.c.bf16 %v3065_v16, %v3061_v20  ;;  %v3085_v20 = vld [vmem:[#allocation13 + $0x1080] sm:$0xff] }
 0x2e7   :  { %6988 = vmatpush1.bf16.msra.mxu1 %v6987_v37  ;;  %6478 = vmatprep.subr.bf16.mxu0 %v6477_v38  ;;  %v6999_v37 = vpack.c.bf16 %v3067_v1, %v3063_v17  ;;  %v6489_v38 = vpack.c.bf16 %v3074_v23, %v3070_v8  ;;  %v3089_v16 = vld [vmem:[#allocation13 + $0x10a0] sm:$0xff]  ;;  %v3087_v17 = vld [vmem:[#allocation13 + $0x1090] sm:$0xff]  ;;  %v3094_v8 = vld [vmem:[#allocation13 + $0x10c8] sm:$0xff] }
 0x2e8   :  { %6990 = vmatprep.subr.bf16.mxu1 %v6989_v28  ;;  %v3071_v28 = vld [vmem:[#allocation13 + $0x1010] sm:$0xff]  ;;  %v3100_v23 = vld [vmem:[#allocation13 + $0x10f8] sm:$0xff]  ;;  %v6499_v14 = vpack.c.bf16 %v3089_v16, %v3085_v20  ;;  %v3118_v16 = vld [vmem:[#allocation13 + $0x1188] sm:$0xff] }
 0x2e9   :  { %v3091_v1 = vld [vmem:[#allocation13 + $0x10b0] sm:$0xff]  ;;  %v7013_v3 = vpack.c.bf16 %v3100_v23, %v3096_v50  ;;  %v3117_v23 = vld [vmem:[#allocation13 + $0x1180] sm:$0xff] }
 0x2ea   :  { %6480 = vmatpush1.bf16.msra.mxu0 %v6479_v52  ;;  %v3084_v52 = vld [vmem:[#allocation13 + $0x1078] sm:$0xff]  ;;  %v7011_v19 = vpack.c.bf16 %v3091_v1, %v3087_v17  ;;  %v3115_v20 = vld [vmem:[#allocation13 + $0x1170] sm:$0xff]  ;;  %v3122_v17 = vld [vmem:[#allocation13 + $0x11a8] sm:$0xff] }
 0x2eb   :  { %6992 = vmatpush1.bf16.msra.mxu1 %v6991_v9  ;;  %6482 = vmatprep.subr.bf16.mxu0 %v6481_v36  ;;  %v1245_v9 = vadd.f32 %v9105_v13, %v9034_v53  ;;  %v7003_v36 = vpack.c.bf16 %v3075_v29, %v3071_v28  ;;  %v7005_v41 = vpack.c.bf16 %v3084_v52, %v3080_v31  ;;  %v3102_v28 = vld [vmem:[#allocation13 + $0x1108] sm:$0xff]  ;;  %v3124_v1 = vld [vmem:[#allocation13 + $0x11b8] sm:$0xff] }
 0x2ec   :  { %6994 = vmatprep.subr.bf16.mxu1 %v6993_v56  ;;  %v6493_v56 = vpack.c.bf16 %v3082_v35, %v3078_v30  ;;  %v6495_v53 = vpack.c.bf16 %v3081_v6, %v3077_v39  ;;  %v7007_v13 = vpack.c.bf16 %v3083_v26, %v3079_v46  ;;  %v3106_v29 = vld [vmem:[#allocation13 + $0x1128] sm:$0xff]  ;;  %v3104_v30 = vld [vmem:[#allocation13 + $0x1118] sm:$0xff]  ;;  %v3103_v39 = vld [vmem:[#allocation13 + $0x1110] sm:$0xff]  ;;  %v6513_v50 = vpack.c.bf16 %v3122_v17, %v3118_v16 }
 0x2ed   :  { %v3108_v35 = vld [vmem:[#allocation13 + $0x1138] sm:$0xff]  ;;  %v6505_v52 = vpack.c.bf16 %v3106_v29, %v3102_v28  ;;  %v3107_v46 = vld [vmem:[#allocation13 + $0x1130] sm:$0xff]  ;;  %v3114_v26 = vld [vmem:[#allocation13 + $0x1168] sm:$0xff] }
 0x2ee   :  { %6484 = vmatpush1.bf16.msra.mxu0 %v6483_v59  ;;  %v3088_v59 = vld [vmem:[#allocation13 + $0x1098] sm:$0xff]  ;;  %v7017_v6 = vpack.c.bf16 %v3108_v35, %v3104_v30  ;;  %v3125_v35 = vld [vmem:[#allocation13 + $0x11c0] sm:$0xff] }
 0x2ef   :  { %6996 = vmatpush1.bf16.msra.mxu1 %v6995_v47  ;;  %6486 = vmatprep.subr.bf16.mxu0 %v6485_v58  ;;  %v3092_v47 = vld [vmem:[#allocation13 + $0x10b8] sm:$0xff]  ;;  %v6497_v58 = vpack.c.bf16 %v3090_v57, %v3086_v11 }
 0x2f0   :  { %6998 = vmatprep.subr.bf16.mxu1 %v6997_v22  ;;  %v7009_v22 = vpack.c.bf16 %v3092_v47, %v3088_v59  ;;  %v3112_v11 = vld [vmem:[#allocation13 + $0x1158] sm:$0xff]  ;;  %v3109_v47 = vld [vmem:[#allocation13 + $0x1140] sm:$0xff] }
 0x2f1   :  { %v3116_v57 = vld [vmem:[#allocation13 + $0x1178] sm:$0xff] }
 0x2f2   :  { %6488 = vmatpush1.bf16.msra.mxu0 %v6487_v40  ;;  %v6501_v40 = vpack.c.bf16 %v3098_v5, %v3094_v8 }
 0x2f3   :  { %7000 = vmatpush1.bf16.msra.mxu1 %v6999_v37  ;;  %6490 = vmatprep.subr.bf16.mxu0 %v6489_v38  ;;  %v3093_v37 = vld [vmem:[#allocation13 + $0x10c0] sm:$0xff] }
 0x2f4   :  { %7002 = vmatprep.subr.bf16.mxu1 %v7001_v34  ;;  %v3097_v38 = vld [vmem:[#allocation13 + $0x10e0] sm:$0xff]  ;;  %v3099_v34 = vld [vmem:[#allocation13 + $0x10f0] sm:$0xff] }
 0x2f5   :  { %3859 = vmatmul.mubr.f32.vlgmr.msra.gmra.mrb[16].mxu0 %v1245_v9  ;;  %v7015_v31 = vpack.c.bf16 %v3099_v34, %v3095_v44  ;;  %v3130_v44 = vld [vmem:[#allocation13 + $0x11e8] sm:$0xff]  ;;  %v3132_v34 = vld [vmem:[#allocation13 + $0x11f8] sm:$0xff] }
 0x2f6   :  { %4427 = vmatmul.mubr.f32.vlgmr.msra.gmra.mrb[16].mxu1 %v1245_v9  ;;  %6492 = vmatpush1.bf16.msra.mxu0 %v6491_v43  ;;  %v6503_v43 = vpack.c.bf16 %v3097_v38, %v3093_v37  ;;  %v3101_v9 = vld [vmem:[#allocation13 + $0x1100] sm:$0xff]  ;;  %v3123_v37 = vld [vmem:[#allocation13 + $0x11b0] sm:$0xff]  ;;  %v3126_v38 = vld [vmem:[#allocation13 + $0x11c8] sm:$0xff] }
 0x2f7   :  { %3929 = vmatprep.mubr.f32.mxu0 %v1318_v27  ;;  %7004 = vmatpush1.bf16.msra.mxu1 %v7003_v36  ;;  %v3105_v36 = vld [vmem:[#allocation13 + $0x1120] sm:$0xff]  ;;  %v6517_v30 = vpack.c.bf16 %v3130_v44, %v3126_v38 }
 0x2f8   :  { %4497 = vmatprep.mubr.f32.mxu1 %v1318_v27  ;;  %6494 = vmatprep.subr.bf16.mxu0 %v6493_v56  ;;  %v3110_v56 = vld [vmem:[#allocation13 + $0x1148] sm:$0xff]  ;;  %v6507_v27 = vpack.c.bf16 %v3105_v36, %v3101_v9  ;;  %v3131_v9 = vld [vmem:[#allocation13 + $0x11f0] sm:$0xff] }
 0x2f9   :  { %7006 = vmatprep.subr.bf16.mxu1 %v7005_v41  ;;  %v7019_v41 = vpack.c.bf16 %v3107_v46, %v3103_v39  ;;  %v6509_v59 = vpack.c.bf16 %v3114_v26, %v3110_v56  ;;  %v3134_v36 = vld [vmem:[#allocation13 + $0x1208] sm:$0xff]  ;;  %v3140_v46 = vld [vmem:[#allocation13 + $0x1238] sm:$0xff] }
 0x2fa   :  { %6496 = vmatpush1.bf16.msra.mxu0 %v6495_v53  ;;  %v3113_v53 = vld [vmem:[#allocation13 + $0x1160] sm:$0xff]  ;;  %v3138_v39 = vld [vmem:[#allocation13 + $0x1228] sm:$0xff] }
 0x2fb   :  { %7008 = vmatpush1.bf16.msra.mxu1 %v7007_v13  ;;  %6498 = vmatprep.subr.bf16.mxu0 %v6497_v58  ;;  %v3111_v13 = vld [vmem:[#allocation13 + $0x1150] sm:$0xff]  ;;  %v7021_v58 = vpack.c.bf16 %v3116_v57, %v3112_v11  ;;  %v6511_v8 = vpack.c.bf16 %v3113_v53, %v3109_v47  ;;  %v6521_v11 = vpack.c.bf16 %v3138_v39, %v3134_v36  ;;  %v3133_v57 = vld [vmem:[#allocation13 + $0x1200] sm:$0xff]  ;;  %v3142_v53 = vld [vmem:[#allocation13 + $0x1248] sm:$0xff] }
 0x2fc   :  { %7010 = vmatprep.subr.bf16.mxu1 %v7009_v22  ;;  %v3120_v22 = vld [vmem:[#allocation13 + $0x1198] sm:$0xff]  ;;  %v7023_v5 = vpack.c.bf16 %v3115_v20, %v3111_v13  ;;  %v3139_v47 = vld [vmem:[#allocation13 + $0x1230] sm:$0xff]  ;;  %v3146_v13 = vld [vmem:[#allocation13 + $0x1268] sm:$0xff] }
 0x2fd   :  { %v3148_v20 = vld [vmem:[#allocation13 + $0x1278] sm:$0xff] }
 0x2fe   :  { %6500 = vmatpush1.bf16.msra.mxu0 %v6499_v14  ;;  %v3121_v14 = vld [vmem:[#allocation13 + $0x11a0] sm:$0xff] }
 0x2ff   :  { %7012 = vmatpush1.bf16.msra.mxu1 %v7011_v19  ;;  %6502 = vmatprep.subr.bf16.mxu0 %v6501_v40  ;;  %v3119_v19 = vld [vmem:[#allocation13 + $0x1190] sm:$0xff]  ;;  %v7025_v40 = vpack.c.bf16 %v3124_v1, %v3120_v22  ;;  %v6515_v28 = vpack.c.bf16 %v3121_v14, %v3117_v23  ;;  %v6525_v22 = vpack.c.bf16 %v3146_v13, %v3142_v53  ;;  %v3141_v1 = vld [vmem:[#allocation13 + $0x1240] sm:$0xff]  ;;  %v3150_v14 = vld [vmem:[#allocation13 + $0x1288] sm:$0xff] }
 0x300   :  { %7014 = vmatprep.subr.bf16.mxu1 %v7013_v3  ;;  %v3128_v3 = vld [vmem:[#allocation13 + $0x11d8] sm:$0xff]  ;;  %v7027_v29 = vpack.c.bf16 %v3123_v37, %v3119_v19  ;;  %v3147_v23 = vld [vmem:[#allocation13 + $0x1270] sm:$0xff]  ;;  %v3154_v19 = vld [vmem:[#allocation13 + $0x12a8] sm:$0xff] }
 0x301   :  { %v3156_v37 = vld [vmem:[#allocation13 + $0x12b8] sm:$0xff] }
 0x302   :  { %6504 = vmatpush1.bf16.msra.mxu0 %v6503_v43  ;;  %v3129_v43 = vld [vmem:[#allocation13 + $0x11e0] sm:$0xff] }
 0x303   :  { %7016 = vmatpush1.bf16.msra.mxu1 %v7015_v31  ;;  %6506 = vmatprep.subr.bf16.mxu0 %v6505_v52  ;;  %v3127_v31 = vld [vmem:[#allocation13 + $0x11d0] sm:$0xff]  ;;  %v7029_v52 = vpack.c.bf16 %v3132_v34, %v3128_v3  ;;  %v6519_v56 = vpack.c.bf16 %v3129_v43, %v3125_v35  ;;  %v6529_v3 = vpack.c.bf16 %v3154_v19, %v3150_v14  ;;  %v3149_v34 = vld [vmem:[#allocation13 + $0x1280] sm:$0xff]  ;;  %v3158_v43 = vld [vmem:[#allocation13 + $0x12c8] sm:$0xff] }
 0x304   :  { %7018 = vmatprep.subr.bf16.mxu1 %v7017_v6  ;;  %v3136_v6 = vld [vmem:[#allocation13 + $0x1218] sm:$0xff]  ;;  %v7031_v26 = vpack.c.bf16 %v3131_v9, %v3127_v31  ;;  %v3155_v35 = vld [vmem:[#allocation13 + $0x12b0] sm:$0xff]  ;;  %v3162_v31 = vld [vmem:[#allocation13 + $0x12e8] sm:$0xff] }
 0x305   :  { %v3164_v9 = vld [vmem:[#allocation13 + $0x12f8] sm:$0xff] }
 0x306   :  { %6508 = vmatpush1.bf16.msra.mxu0 %v6507_v27  ;;  %v3137_v27 = vld [vmem:[#allocation13 + $0x1220] sm:$0xff] }
 0x307   :  { %7020 = vmatpush1.bf16.msra.mxu1 %v7019_v41  ;;  %6510 = vmatprep.subr.bf16.mxu0 %v6509_v59  ;;  %v3135_v41 = vld [vmem:[#allocation13 + $0x1210] sm:$0xff]  ;;  %v7033_v59 = vpack.c.bf16 %v3140_v46, %v3136_v6  ;;  %v6523_v16 = vpack.c.bf16 %v3137_v27, %v3133_v57  ;;  %v6533_v6 = vpack.c.bf16 %v3162_v31, %v3158_v43  ;;  %v3157_v46 = vld [vmem:[#allocation13 + $0x12c0] sm:$0xff]  ;;  %v3166_v27 = vld [vmem:[#allocation13 + $0x1308] sm:$0xff] }
 0x308   :  { %7022 = vmatprep.subr.bf16.mxu1 %v7021_v58  ;;  %v3144_v58 = vld [vmem:[#allocation13 + $0x1258] sm:$0xff]  ;;  %v7035_v17 = vpack.c.bf16 %v3139_v47, %v3135_v41  ;;  %v3163_v57 = vld [vmem:[#allocation13 + $0x12f0] sm:$0xff]  ;;  %v3170_v41 = vld [vmem:[#allocation13 + $0x1328] sm:$0xff] }
 0x309   :  { %v3172_v47 = vld [vmem:[#allocation13 + $0x1338] sm:$0xff] }
 0x30a   :  { %6512 = vmatpush1.bf16.msra.mxu0 %v6511_v8  ;;  %v3145_v8 = vld [vmem:[#allocation13 + $0x1260] sm:$0xff] }
 0x30b   :  { %7024 = vmatpush1.bf16.msra.mxu1 %v7023_v5  ;;  %6514 = vmatprep.subr.bf16.mxu0 %v6513_v50  ;;  %v3143_v5 = vld [vmem:[#allocation13 + $0x1250] sm:$0xff]  ;;  %v7037_v50 = vpack.c.bf16 %v3148_v20, %v3144_v58  ;;  %v6527_v38 = vpack.c.bf16 %v3145_v8, %v3141_v1  ;;  %v6537_v58 = vpack.c.bf16 %v3170_v41, %v3166_v27  ;;  %v3165_v20 = vld [vmem:[#allocation13 + $0x1300] sm:$0xff]  ;;  %v3174_v8 = vld [vmem:[#allocation13 + $0x1348] sm:$0xff] }
 0x30c   :  { %7026 = vmatprep.subr.bf16.mxu1 %v7025_v40  ;;  %v3152_v40 = vld [vmem:[#allocation13 + $0x1298] sm:$0xff]  ;;  %v7039_v44 = vpack.c.bf16 %v3147_v23, %v3143_v5  ;;  %v3171_v1 = vld [vmem:[#allocation13 + $0x1330] sm:$0xff]  ;;  %v3178_v5 = vld [vmem:[#allocation13 + $0x1368] sm:$0xff] }
 0x30d   :  { %v3180_v23 = vld [vmem:[#allocation13 + $0x1378] sm:$0xff] }
 0x30e   :  { %6516 = vmatpush1.bf16.msra.mxu0 %v6515_v28  ;;  %v3153_v28 = vld [vmem:[#allocation13 + $0x12a0] sm:$0xff] }
 0x30f   :  { %7028 = vmatpush1.bf16.msra.mxu1 %v7027_v29  ;;  %6518 = vmatprep.subr.bf16.mxu0 %v6517_v30  ;;  %v3151_v29 = vld [vmem:[#allocation13 + $0x1290] sm:$0xff]  ;;  %v7041_v30 = vpack.c.bf16 %v3156_v37, %v3152_v40  ;;  %v6531_v36 = vpack.c.bf16 %v3153_v28, %v3149_v34  ;;  %v6541_v40 = vpack.c.bf16 %v3178_v5, %v3174_v8  ;;  %v3173_v37 = vld [vmem:[#allocation13 + $0x1340] sm:$0xff]  ;;  %v3182_v28 = vld [vmem:[#allocation13 + $0x1388] sm:$0xff] }
 0x310   :  { %7030 = vmatprep.subr.bf16.mxu1 %v7029_v52  ;;  %v3160_v52 = vld [vmem:[#allocation13 + $0x12d8] sm:$0xff]  ;;  %v7043_v39 = vpack.c.bf16 %v3155_v35, %v3151_v29  ;;  %v3179_v34 = vld [vmem:[#allocation13 + $0x1370] sm:$0xff]  ;;  %v3186_v29 = vld [vmem:[#allocation13 + $0x13a8] sm:$0xff] }
 0x311   :  { %v3188_v35 = vld [vmem:[#allocation13 + $0x13b8] sm:$0xff] }
 0x312   :  { %6520 = vmatpush1.bf16.msra.mxu0 %v6519_v56  ;;  %v3161_v56 = vld [vmem:[#allocation13 + $0x12e0] sm:$0xff] }
 0x313   :  { %7032 = vmatpush1.bf16.msra.mxu1 %v7031_v26  ;;  %6522 = vmatprep.subr.bf16.mxu0 %v6521_v11  ;;  %v3159_v26 = vld [vmem:[#allocation13 + $0x12d0] sm:$0xff]  ;;  %v7045_v11 = vpack.c.bf16 %v3164_v9, %v3160_v52  ;;  %v6535_v53 = vpack.c.bf16 %v3161_v56, %v3157_v46  ;;  %v6545_v52 = vpack.c.bf16 %v3186_v29, %v3182_v28  ;;  %v3181_v9 = vld [vmem:[#allocation13 + $0x1380] sm:$0xff]  ;;  %v3190_v56 = vld [vmem:[#allocation13 + $0x13c8] sm:$0xff] }
 0x314   :  { %7034 = vmatprep.subr.bf16.mxu1 %v7033_v59  ;;  %v3168_v59 = vld [vmem:[#allocation13 + $0x1318] sm:$0xff]  ;;  %v7047_v13 = vpack.c.bf16 %v3163_v57, %v3159_v26  ;;  %v3187_v46 = vld [vmem:[#allocation13 + $0x13b0] sm:$0xff]  ;;  %v3194_v26 = vld [vmem:[#allocation13 + $0x13e8] sm:$0xff]  ;;  %v1316_v29 = vadd.f32 %v9112_v45, %v9057_v2 }
 0x315   :  { %v3196_v57 = vld [vmem:[#allocation13 + $0x13f8] sm:$0xff] }
 0x316   :  { %6524 = vmatpush1.bf16.msra.mxu0 %v6523_v16  ;;  %v3169_v16 = vld [vmem:[#allocation13 + $0x1320] sm:$0xff]  ;;  %v3212_v28 = vld [vmem:[#allocation13 + $0x1478] sm:$0xff] }
 0x317   :  { %7036 = vmatpush1.bf16.msra.mxu1 %v7035_v17  ;;  %6526 = vmatprep.subr.bf16.mxu0 %v6525_v22  ;;  %v3167_v17 = vld [vmem:[#allocation13 + $0x1310] sm:$0xff]  ;;  %v7049_v22 = vpack.c.bf16 %v3172_v47, %v3168_v59  ;;  %v6539_v14 = vpack.c.bf16 %v3169_v16, %v3165_v20  ;;  %v6549_v59 = vpack.c.bf16 %v3194_v26, %v3190_v56  ;;  %v3189_v47 = vld [vmem:[#allocation13 + $0x13c0] sm:$0xff]  ;;  %v3198_v16 = vld [vmem:[#allocation13 + $0x1408] sm:$0xff] }
 0x318   :  { %7038 = vmatprep.subr.bf16.mxu1 %v7037_v50  ;;  %v3176_v50 = vld [vmem:[#allocation13 + $0x1358] sm:$0xff]  ;;  %v7051_v19 = vpack.c.bf16 %v3171_v1, %v3167_v17  ;;  %v3195_v20 = vld [vmem:[#allocation13 + $0x13f0] sm:$0xff]  ;;  %v3202_v17 = vld [vmem:[#allocation13 + $0x1428] sm:$0xff] }
 0x319   :  { %v3204_v1 = vld [vmem:[#allocation13 + $0x1438] sm:$0xff] }
 0x31a   :  { %6528 = vmatpush1.bf16.msra.mxu0 %v6527_v38  ;;  %v3177_v38 = vld [vmem:[#allocation13 + $0x1360] sm:$0xff]  ;;  %v3220_v56 = vld [vmem:[#allocation13 + $0x14b8] sm:$0xff] }
 0x31b   :  { %7040 = vmatpush1.bf16.msra.mxu1 %v7039_v44  ;;  %6530 = vmatprep.subr.bf16.mxu0 %v6529_v3  ;;  %v3175_v44 = vld [vmem:[#allocation13 + $0x1350] sm:$0xff]  ;;  %v7053_v3 = vpack.c.bf16 %v3180_v23, %v3176_v50  ;;  %v6543_v43 = vpack.c.bf16 %v3177_v38, %v3173_v37  ;;  %v6553_v50 = vpack.c.bf16 %v3202_v17, %v3198_v16  ;;  %v3197_v23 = vld [vmem:[#allocation13 + $0x1400] sm:$0xff]  ;;  %v3206_v38 = vld [vmem:[#allocation13 + $0x1448] sm:$0xff] }
 0x31c   :  { %7042 = vmatprep.subr.bf16.mxu1 %v7041_v30  ;;  %v3184_v30 = vld [vmem:[#allocation13 + $0x1398] sm:$0xff]  ;;  %v7055_v31 = vpack.c.bf16 %v3179_v34, %v3175_v44  ;;  %v3203_v37 = vld [vmem:[#allocation13 + $0x1430] sm:$0xff]  ;;  %v3210_v44 = vld [vmem:[#allocation13 + $0x1468] sm:$0xff] }
 0x31d   :  { %v3208_v34 = vld [vmem:[#allocation13 + $0x1458] sm:$0xff] }
 0x31e   :  { %6532 = vmatpush1.bf16.msra.mxu0 %v6531_v36  ;;  %v3185_v36 = vld [vmem:[#allocation13 + $0x13a0] sm:$0xff] }
 0x31f   :  { %7044 = vmatpush1.bf16.msra.mxu1 %v7043_v39  ;;  %6534 = vmatprep.subr.bf16.mxu0 %v6533_v6  ;;  %v3183_v39 = vld [vmem:[#allocation13 + $0x1390] sm:$0xff]  ;;  %v7057_v6 = vpack.c.bf16 %v3188_v35, %v3184_v30  ;;  %v6547_v27 = vpack.c.bf16 %v3185_v36, %v3181_v9  ;;  %v3205_v35 = vld [vmem:[#allocation13 + $0x1440] sm:$0xff]  ;;  %v3214_v36 = vld [vmem:[#allocation13 + $0x1488] sm:$0xff] }
 0x320   :  { %7046 = vmatprep.subr.bf16.mxu1 %v7045_v11  ;;  %v3192_v11 = vld [vmem:[#allocation13 + $0x13d8] sm:$0xff]  ;;  %v7059_v41 = vpack.c.bf16 %v3187_v46, %v3183_v39  ;;  %v3211_v9 = vld [vmem:[#allocation13 + $0x1470] sm:$0xff]  ;;  %v3218_v39 = vld [vmem:[#allocation13 + $0x14a8] sm:$0xff] }
 0x321   :  { %v3216_v46 = vld [vmem:[#allocation13 + $0x1498] sm:$0xff]  ;;  %v6561_v45 = vpack.c.bf16 %v3218_v39, %v3214_v36  ;;  %v3237_v39 = vld [vmem:[#allocation13 + $0x1540] sm:$0xff] }
 0x322   :  { %6536 = vmatpush1.bf16.msra.mxu0 %v6535_v53  ;;  %v3193_v53 = vld [vmem:[#allocation13 + $0x13e0] sm:$0xff] }
 0x323   :  { %7048 = vmatpush1.bf16.msra.mxu1 %v7047_v13  ;;  %6538 = vmatprep.subr.bf16.mxu0 %v6537_v58  ;;  %v3191_v13 = vld [vmem:[#allocation13 + $0x13d0] sm:$0xff]  ;;  %v7061_v58 = vpack.c.bf16 %v3196_v57, %v3192_v11  ;;  %v6551_v8 = vpack.c.bf16 %v3193_v53, %v3189_v47  ;;  %v3213_v11 = vld [vmem:[#allocation13 + $0x1480] sm:$0xff]  ;;  %v3222_v47 = vld [vmem:[#allocation13 + $0x14c8] sm:$0xff] }
 0x324   :  { %7050 = vmatprep.subr.bf16.mxu1 %v7049_v22  ;;  %v3200_v22 = vld [vmem:[#allocation13 + $0x1418] sm:$0xff]  ;;  %v7063_v5 = vpack.c.bf16 %v3195_v20, %v3191_v13  ;;  %v3217_v57 = vld [vmem:[#allocation13 + $0x14a0] sm:$0xff]  ;;  %v3226_v53 = vld [vmem:[#allocation13 + $0x14e8] sm:$0xff] }
 0x325   :  { %v3224_v13 = vld [vmem:[#allocation13 + $0x14d8] sm:$0xff]  ;;  %v6563_v20 = vpack.c.bf16 %v3217_v57, %v3213_v11  ;;  %v6565_v17 = vpack.c.bf16 %v3226_v53, %v3222_v47  ;;  %v3245_v47 = vld [vmem:[#allocation13 + $0x1580] sm:$0xff] }
 0x326   :  { %6540 = vmatpush1.bf16.msra.mxu0 %v6539_v14  ;;  %v3201_v14 = vld [vmem:[#allocation13 + $0x1420] sm:$0xff]  ;;  %v3248_v11 = vld [vmem:[#allocation13 + $0x1598] sm:$0xff] }
 0x327   :  { %7052 = vmatpush1.bf16.msra.mxu1 %v7051_v19  ;;  %6542 = vmatprep.subr.bf16.mxu0 %v6541_v40  ;;  %v7065_v19 = vpack.c.bf16 %v3204_v1, %v3200_v22  ;;  %v3199_v40 = vld [vmem:[#allocation13 + $0x1410] sm:$0xff]  ;;  %v3221_v22 = vld [vmem:[#allocation13 + $0x14c0] sm:$0xff]  ;;  %v3252_v57 = vld [vmem:[#allocation13 + $0x15b8] sm:$0xff] }
 0x328   :  { %7054 = vmatprep.subr.bf16.mxu1 %v7053_v3  ;;  %v6555_v3 = vpack.c.bf16 %v3201_v14, %v3197_v23  ;;  %v7067_v30 = vpack.c.bf16 %v3203_v37, %v3199_v40  ;;  %v3225_v1 = vld [vmem:[#allocation13 + $0x14e0] sm:$0xff]  ;;  %v3234_v23 = vld [vmem:[#allocation13 + $0x1528] sm:$0xff]  ;;  %v3232_v14 = vld [vmem:[#allocation13 + $0x1518] sm:$0xff] }
 0x329   :  { %v6567_v40 = vpack.c.bf16 %v3225_v1, %v3221_v22  ;;  %v3249_v53 = vld [vmem:[#allocation13 + $0x15a0] sm:$0xff]  ;;  %v3256_v22 = vld [vmem:[#allocation13 + $0x15d8] sm:$0xff] }
 0x32a   :  { %6544 = vmatpush1.bf16.msra.mxu0 %v6543_v43  ;;  %v3209_v43 = vld [vmem:[#allocation13 + $0x1460] sm:$0xff]  ;;  %v3260_v1 = vld [vmem:[#allocation13 + $0x15f8] sm:$0xff] }
 0x32b   :  { %7056 = vmatpush1.bf16.msra.mxu1 %v7055_v31  ;;  %6546 = vmatprep.subr.bf16.mxu0 %v6545_v52  ;;  %v3207_v31 = vld [vmem:[#allocation13 + $0x1450] sm:$0xff]  ;;  %v6557_v52 = vpack.c.bf16 %v3210_v44, %v3206_v38  ;;  %v6559_v26 = vpack.c.bf16 %v3209_v43, %v3205_v35  ;;  %v3229_v44 = vld [vmem:[#allocation13 + $0x1500] sm:$0xff]  ;;  %v3242_v35 = vld [vmem:[#allocation13 + $0x1568] sm:$0xff] }
 0x32c   :  { %7058 = vmatprep.subr.bf16.mxu1 %v7057_v6  ;;  %v7069_v6 = vpack.c.bf16 %v3212_v28, %v3208_v34  ;;  %v7071_v2 = vpack.c.bf16 %v3211_v9, %v3207_v31  ;;  %v3231_v34 = vld [vmem:[#allocation13 + $0x1510] sm:$0xff]  ;;  %v3240_v43 = vld [vmem:[#allocation13 + $0x1558] sm:$0xff] }
 0x32d   :  { %v3244_v31 = vld [vmem:[#allocation13 + $0x1578] sm:$0xff] }
 0x32e   :  { %6548 = vmatpush1.bf16.msra.mxu0 %v6547_v27  ;;  %v3215_v27 = vld [vmem:[#allocation13 + $0x1490] sm:$0xff] }
 0x32f   :  { %7060 = vmatpush1.bf16.msra.mxu1 %v7059_v41  ;;  %6550 = vmatprep.subr.bf16.mxu0 %v6549_v59  ;;  %v7073_v41 = vpack.c.bf16 %v3220_v56, %v3216_v46  ;;  %v3219_v59 = vld [vmem:[#allocation13 + $0x14b0] sm:$0xff]  ;;  %v7085_v56 = vpack.c.bf16 %v3244_v31, %v3240_v43 }
 0x330   :  { %7062 = vmatprep.subr.bf16.mxu1 %v7061_v58  ;;  %v3228_v58 = vld [vmem:[#allocation13 + $0x14f8] sm:$0xff]  ;;  %v7075_v16 = vpack.c.bf16 %v3219_v59, %v3215_v27  ;;  %v3239_v46 = vld [vmem:[#allocation13 + $0x1550] sm:$0xff] }
 0x331   :  { %v3263_v43 = vld [vmem:[#allocation13 + $0x1610] sm:$0xff] }
 0x332   :  { %6552 = vmatpush1.bf16.msra.mxu0 %v6551_v8  ;;  %v3223_v8 = vld [vmem:[#allocation13 + $0x14d0] sm:$0xff] }
 0x333   :  { %7064 = vmatpush1.bf16.msra.mxu1 %v7063_v5  ;;  %6554 = vmatprep.subr.bf16.mxu0 %v6553_v50  ;;  %v7077_v5 = vpack.c.bf16 %v3228_v58, %v3224_v13  ;;  %v3230_v50 = vld [vmem:[#allocation13 + $0x1508] sm:$0xff]  ;;  %v3247_v13 = vld [vmem:[#allocation13 + $0x1590] sm:$0xff]  ;;  %v7089_v58 = vpack.c.bf16 %v3252_v57, %v3248_v11 }
 0x334   :  { %7066 = vmatprep.subr.bf16.mxu1 %v7065_v19  ;;  %v3236_v19 = vld [vmem:[#allocation13 + $0x1538] sm:$0xff]  ;;  %v6569_v38 = vpack.c.bf16 %v3234_v23, %v3230_v50  ;;  %v3253_v50 = vld [vmem:[#allocation13 + $0x15c0] sm:$0xff]  ;;  %v3271_v11 = vld [vmem:[#allocation13 + $0x1650] sm:$0xff] }
 0x335   :  { %3930 = vmatmul.mubr.f32.vlgmr.msra.gmra.mrb[16].mxu0 %v1316_v29  ;;  %v7081_v28 = vpack.c.bf16 %v3236_v19, %v3232_v14  ;;  %v3257_v23 = vld [vmem:[#allocation13 + $0x15e0] sm:$0xff]  ;;  %v3255_v14 = vld [vmem:[#allocation13 + $0x15d0] sm:$0xff]  ;;  %v7093_v19 = vpack.c.bf16 %v3260_v1, %v3256_v22 }
 0x336   :  { %4498 = vmatmul.mubr.f32.vlgmr.msra.gmra.mrb[16].mxu1 %v1316_v29  ;;  %6556 = vmatpush1.bf16.msra.mxu0 %v6555_v3  ;;  %v3233_v3 = vld [vmem:[#allocation13 + $0x1520] sm:$0xff]  ;;  %v3235_v29 = vld [vmem:[#allocation13 + $0x1530] sm:$0xff] }
 0x337   :  { %4000 = vmatprep.mubr.f32.mxu0 %v9120_v63  ;;  %7068 = vmatpush1.bf16.msra.mxu1 %v7067_v30  ;;  %v3238_v30 = vld [vmem:[#allocation13 + $0x1548] sm:$0xff]  ;;  %v7083_v9 = vpack.c.bf16 %v3235_v29, %v3231_v34  ;;  %v6583_v34 = vpack.c.bf16 %v3257_v23, %v3253_v50  ;;  %v3279_v22 = vld [vmem:[#allocation13 + $0x1690] sm:$0xff]  ;;  %v3288_v50 = vld [vmem:[#allocation13 + $0x16d8] sm:$0xff] }
 0x338   :  { %4568 = vmatprep.mubr.f32.mxu1 %v9120_v63  ;;  %6558 = vmatprep.subr.bf16.mxu0 %v6557_v52  ;;  %v3227_v63 = vld [vmem:[#allocation13 + $0x14f0] sm:$0xff]  ;;  %v6571_v52 = vpack.c.bf16 %v3233_v3, %v3229_v44  ;;  %v6573_v36 = vpack.c.bf16 %v3242_v35, %v3238_v30  ;;  %v3264_v44 = vld [vmem:[#allocation13 + $0x1618] sm:$0xff]  ;;  %v3261_v30 = vld [vmem:[#allocation13 + $0x1600] sm:$0xff] }
 0x339   :  { %7070 = vmatprep.subr.bf16.mxu1 %v7069_v6  ;;  %v7079_v37 = vpack.c.bf16 %v3227_v63, %v3223_v8  ;;  %v3241_v6 = vld [vmem:[#allocation13 + $0x1560] sm:$0xff]  ;;  %v6579_v8 = vpack.c.bf16 %v3249_v53, %v3245_v47  ;;  %v3268_v3 = vld [vmem:[#allocation13 + $0x1638] sm:$0xff] }
 0x33a   :  { %6560 = vmatpush1.bf16.msra.mxu0 %v6559_v26  ;;  %v3243_v26 = vld [vmem:[#allocation13 + $0x1570] sm:$0xff]  ;;  %v6575_v27 = vpack.c.bf16 %v3241_v6, %v3237_v39  ;;  %v3265_v35 = vld [vmem:[#allocation13 + $0x1620] sm:$0xff]  ;;  %v7097_v31 = vpack.c.bf16 %v3268_v3, %v3264_v44  ;;  %v3272_v39 = vld [vmem:[#allocation13 + $0x1658] sm:$0xff] }
 0x33b   :  { %7072 = vmatpush1.bf16.msra.mxu1 %v7071_v2  ;;  %6562 = vmatprep.subr.bf16.mxu0 %v6561_v45  ;;  %v3246_v2 = vld [vmem:[#allocation13 + $0x1588] sm:$0xff]  ;;  %v3276_v6 = vld [vmem:[#allocation13 + $0x1678] sm:$0xff]  ;;  %v3287_v44 = vld [vmem:[#allocation13 + $0x16d0] sm:$0xff] }
 0x33c   :  { %7074 = vmatprep.subr.bf16.mxu1 %v7073_v41  ;;  %v3250_v45 = vld [vmem:[#allocation13 + $0x15a8] sm:$0xff]  ;;  %v7087_v41 = vpack.c.bf16 %v3243_v26, %v3239_v46  ;;  %v6587_v46 = vpack.c.bf16 %v3265_v35, %v3261_v30  ;;  %v7101_v57 = vpack.c.bf16 %v3276_v6, %v3272_v39  ;;  %v3280_v47 = vld [vmem:[#allocation13 + $0x1698] sm:$0xff]  ;;  %v3295_v39 = vld [vmem:[#allocation13 + $0x1710] sm:$0xff] }
 0x33d   :  { %v6577_v59 = vpack.c.bf16 %v3250_v45, %v3246_v2  ;;  %v3269_v2 = vld [vmem:[#allocation13 + $0x1640] sm:$0xff]  ;;  %v3284_v53 = vld [vmem:[#allocation13 + $0x16b8] sm:$0xff] }
 0x33e   :  { %6564 = vmatpush1.bf16.msra.mxu0 %v6563_v20  ;;  %v3251_v20 = vld [vmem:[#allocation13 + $0x15b0] sm:$0xff]  ;;  %v3273_v45 = vld [vmem:[#allocation13 + $0x1660] sm:$0xff]  ;;  %v7105_v1 = vpack.c.bf16 %v3284_v53, %v3280_v47  ;;  %v3292_v23 = vld [vmem:[#allocation13 + $0x16f8] sm:$0xff] }
 0x33f   :  { %7076 = vmatpush1.bf16.msra.mxu1 %v7075_v16  ;;  %6566 = vmatprep.subr.bf16.mxu0 %v6565_v17  ;;  %v3254_v16 = vld [vmem:[#allocation13 + $0x15c8] sm:$0xff]  ;;  %v7109_v3 = vpack.c.bf16 %v3292_v23, %v3288_v50  ;;  %v3296_v30 = vld [vmem:[#allocation13 + $0x1718] sm:$0xff]  ;;  %v3303_v47 = vld [vmem:[#allocation13 + $0x1750] sm:$0xff] }
 0x340   :  { %7078 = vmatprep.subr.bf16.mxu1 %v7077_v5  ;;  %v3258_v17 = vld [vmem:[#allocation13 + $0x15e8] sm:$0xff]  ;;  %v7091_v5 = vpack.c.bf16 %v3251_v20, %v3247_v13  ;;  %v6591_v13 = vpack.c.bf16 %v3273_v45, %v3269_v2  ;;  %v3300_v35 = vld [vmem:[#allocation13 + $0x1738] sm:$0xff]  ;;  %v3311_v50 = vld [vmem:[#allocation13 + $0x1790] sm:$0xff] }
 0x341   :  { %v6581_v63 = vpack.c.bf16 %v3258_v17, %v3254_v16  ;;  %v3277_v16 = vld [vmem:[#allocation13 + $0x1680] sm:$0xff]  ;;  %v7113_v6 = vpack.c.bf16 %v3300_v35, %v3296_v30  ;;  %v3304_v2 = vld [vmem:[#allocation13 + $0x1758] sm:$0xff]  ;;  %v3319_v30 = vld [vmem:[#allocation13 + $0x17d0] sm:$0xff] }
 0x342   :  { %6568 = vmatpush1.bf16.msra.mxu0 %v6567_v40  ;;  %v3259_v40 = vld [vmem:[#allocation13 + $0x15f0] sm:$0xff]  ;;  %v3281_v17 = vld [vmem:[#allocation13 + $0x16a0] sm:$0xff]  ;;  %v3308_v45 = vld [vmem:[#allocation13 + $0x1778] sm:$0xff] }
 0x343   :  { %7080 = vmatpush1.bf16.msra.mxu1 %v7079_v37  ;;  %6570 = vmatprep.subr.bf16.mxu0 %v6569_v38  ;;  %v3262_v37 = vld [vmem:[#allocation13 + $0x1608] sm:$0xff]  ;;  %v7117_v53 = vpack.c.bf16 %v3308_v45, %v3304_v2  ;;  %v3327_v45 = vld [vmem:[#allocation13 + $0x1810] sm:$0xff] }
 0x344   :  { %7082 = vmatprep.subr.bf16.mxu1 %v7081_v28  ;;  %v3266_v38 = vld [vmem:[#allocation13 + $0x1628] sm:$0xff]  ;;  %v7095_v28 = vpack.c.bf16 %v3259_v40, %v3255_v14  ;;  %v6595_v14 = vpack.c.bf16 %v3281_v17, %v3277_v16  ;;  %v3312_v16 = vld [vmem:[#allocation13 + $0x1798] sm:$0xff] }
 0x345   :  { %v6585_v29 = vpack.c.bf16 %v3266_v38, %v3262_v37  ;;  %v3285_v37 = vld [vmem:[#allocation13 + $0x16c0] sm:$0xff]  ;;  %v3316_v17 = vld [vmem:[#allocation13 + $0x17b8] sm:$0xff] }
 0x346   :  { %6572 = vmatpush1.bf16.msra.mxu0 %v6571_v52  ;;  %v3267_v52 = vld [vmem:[#allocation13 + $0x1630] sm:$0xff]  ;;  %v3289_v38 = vld [vmem:[#allocation13 + $0x16e0] sm:$0xff]  ;;  %v7121_v23 = vpack.c.bf16 %v3316_v17, %v3312_v16 }
 0x347   :  { %7084 = vmatpush1.bf16.msra.mxu1 %v7083_v9  ;;  %6574 = vmatprep.subr.bf16.mxu0 %v6573_v36  ;;  %v3270_v9 = vld [vmem:[#allocation13 + $0x1648] sm:$0xff]  ;;  %v3339_v17 = vld [vmem:[#allocation13 + $0x1870] sm:$0xff] }
 0x348   :  { %7086 = vmatprep.subr.bf16.mxu1 %v7085_v56  ;;  %v3274_v36 = vld [vmem:[#allocation13 + $0x1668] sm:$0xff]  ;;  %v7099_v56 = vpack.c.bf16 %v3267_v52, %v3263_v43  ;;  %v6599_v43 = vpack.c.bf16 %v3289_v38, %v3285_v37  ;;  %v3320_v37 = vld [vmem:[#allocation13 + $0x17d8] sm:$0xff] }
 0x349   :  { %v6589_v26 = vpack.c.bf16 %v3274_v36, %v3270_v9  ;;  %v3293_v9 = vld [vmem:[#allocation13 + $0x1700] sm:$0xff]  ;;  %v3324_v38 = vld [vmem:[#allocation13 + $0x17f8] sm:$0xff] }
 0x34a   :  { %6576 = vmatpush1.bf16.msra.mxu0 %v6575_v27  ;;  %v3275_v27 = vld [vmem:[#allocation13 + $0x1670] sm:$0xff]  ;;  %v3297_v36 = vld [vmem:[#allocation13 + $0x1720] sm:$0xff]  ;;  %v7125_v35 = vpack.c.bf16 %v3324_v38, %v3320_v37 }
 0x34b   :  { %7088 = vmatpush1.bf16.msra.mxu1 %v7087_v41  ;;  %6578 = vmatprep.subr.bf16.mxu0 %v6577_v59  ;;  %v3278_v41 = vld [vmem:[#allocation13 + $0x1688] sm:$0xff]  ;;  %v3343_v37 = vld [vmem:[#allocation13 + $0x1890] sm:$0xff] }
 0x34c   :  { %7090 = vmatprep.subr.bf16.mxu1 %v7089_v58  ;;  %v3282_v59 = vld [vmem:[#allocation13 + $0x16a8] sm:$0xff]  ;;  %v7103_v58 = vpack.c.bf16 %v3275_v27, %v3271_v11  ;;  %v6603_v11 = vpack.c.bf16 %v3297_v36, %v3293_v9  ;;  %v3328_v9 = vld [vmem:[#allocation13 + $0x1818] sm:$0xff] }
 0x34d   :  { %v6593_v20 = vpack.c.bf16 %v3282_v59, %v3278_v41  ;;  %v3301_v41 = vld [vmem:[#allocation13 + $0x1740] sm:$0xff]  ;;  %v3332_v36 = vld [vmem:[#allocation13 + $0x1838] sm:$0xff] }
 0x34e   :  { %6580 = vmatpush1.bf16.msra.mxu0 %v6579_v8  ;;  %v3283_v8 = vld [vmem:[#allocation13 + $0x16b0] sm:$0xff]  ;;  %v3305_v59 = vld [vmem:[#allocation13 + $0x1760] sm:$0xff]  ;;  %v7129_v2 = vpack.c.bf16 %v3332_v36, %v3328_v9  ;;  %v3358_v36 = vld [vmem:[#allocation13 + $0x1908] sm:$0xff] }
 0x34f   :  { %7092 = vmatpush1.bf16.msra.mxu1 %v7091_v5  ;;  %6582 = vmatprep.subr.bf16.mxu0 %v6581_v63  ;;  %v3286_v5 = vld [vmem:[#allocation13 + $0x16c8] sm:$0xff] }
 0x350   :  { %7094 = vmatprep.subr.bf16.mxu1 %v7093_v19  ;;  %v3290_v63 = vld [vmem:[#allocation13 + $0x16e8] sm:$0xff]  ;;  %v7107_v19 = vpack.c.bf16 %v3283_v8, %v3279_v22  ;;  %v6607_v22 = vpack.c.bf16 %v3305_v59, %v3301_v41  ;;  %v3336_v59 = vld [vmem:[#allocation13 + $0x1858] sm:$0xff] }
 0x351   :  { %v6597_v40 = vpack.c.bf16 %v3290_v63, %v3286_v5  ;;  %v3309_v5 = vld [vmem:[#allocation13 + $0x1780] sm:$0xff] }
 0x352   :  { %6584 = vmatpush1.bf16.msra.mxu0 %v6583_v34  ;;  %v3291_v34 = vld [vmem:[#allocation13 + $0x16f0] sm:$0xff]  ;;  %v3313_v63 = vld [vmem:[#allocation13 + $0x17a0] sm:$0xff] }
 0x353   :  { %7096 = vmatpush1.bf16.msra.mxu1 %v7095_v28  ;;  %6586 = vmatprep.subr.bf16.mxu0 %v6585_v29  ;;  %v3294_v28 = vld [vmem:[#allocation13 + $0x1708] sm:$0xff] }
 0x354   :  { %7098 = vmatprep.subr.bf16.mxu1 %v7097_v31  ;;  %v3298_v29 = vld [vmem:[#allocation13 + $0x1728] sm:$0xff]  ;;  %v7111_v31 = vpack.c.bf16 %v3291_v34, %v3287_v44  ;;  %v6611_v44 = vpack.c.bf16 %v3313_v63, %v3309_v5  ;;  %v3344_v5 = vld [vmem:[#allocation13 + $0x1898] sm:$0xff] }
 0x355   :  { %v6601_v52 = vpack.c.bf16 %v3298_v29, %v3294_v28  ;;  %v3317_v28 = vld [vmem:[#allocation13 + $0x17c0] sm:$0xff]  ;;  %v3348_v63 = vld [vmem:[#allocation13 + $0x18b8] sm:$0xff] }
 0x356   :  { %6588 = vmatpush1.bf16.msra.mxu0 %v6587_v46  ;;  %v3299_v46 = vld [vmem:[#allocation13 + $0x1730] sm:$0xff]  ;;  %v3321_v29 = vld [vmem:[#allocation13 + $0x17e0] sm:$0xff]  ;;  %v7137_v38 = vpack.c.bf16 %v3348_v63, %v3344_v5  ;;  %v3374_v63 = vld [vmem:[#allocation13 + $0x1988] sm:$0xff] }
 0x357   :  { %7100 = vmatpush1.bf16.msra.mxu1 %v7099_v56  ;;  %6590 = vmatprep.subr.bf16.mxu0 %v6589_v26  ;;  %v3302_v56 = vld [vmem:[#allocation13 + $0x1748] sm:$0xff]  ;;  %v3371_v5 = vld [vmem:[#allocation13 + $0x1970] sm:$0xff] }
 0x358   :  { %7102 = vmatprep.subr.bf16.mxu1 %v7101_v57  ;;  %v3306_v26 = vld [vmem:[#allocation13 + $0x1768] sm:$0xff]  ;;  %v7115_v57 = vpack.c.bf16 %v3299_v46, %v3295_v39  ;;  %v6615_v39 = vpack.c.bf16 %v3321_v29, %v3317_v28  ;;  %v3352_v28 = vld [vmem:[#allocation13 + $0x18d8] sm:$0xff] }
 0x359   :  { %v6605_v27 = vpack.c.bf16 %v3306_v26, %v3302_v56  ;;  %v3325_v56 = vld [vmem:[#allocation13 + $0x1800] sm:$0xff] }
 0x35a   :  { %6592 = vmatpush1.bf16.msra.mxu0 %v6591_v13  ;;  %v3307_v13 = vld [vmem:[#allocation13 + $0x1770] sm:$0xff]  ;;  %v3329_v26 = vld [vmem:[#allocation13 + $0x1820] sm:$0xff] }
 0x35b   :  { %7104 = vmatpush1.bf16.msra.mxu1 %v7103_v58  ;;  %6594 = vmatprep.subr.bf16.mxu0 %v6593_v20  ;;  %v3310_v58 = vld [vmem:[#allocation13 + $0x1788] sm:$0xff]  ;;  %v6619_v41 = vpack.c.bf16 %v3329_v26, %v3325_v56 }
 0x35c   :  { %7106 = vmatprep.subr.bf16.mxu1 %v7105_v1  ;;  %v3314_v20 = vld [vmem:[#allocation13 + $0x17a8] sm:$0xff]  ;;  %v7119_v1 = vpack.c.bf16 %v3307_v13, %v3303_v47  ;;  %v3340_v47 = vld [vmem:[#allocation13 + $0x1878] sm:$0xff]  ;;  %v3333_v13 = vld [vmem:[#allocation13 + $0x1840] sm:$0xff] }
 0x35d   :  { %v6609_v8 = vpack.c.bf16 %v3314_v20, %v3310_v58  ;;  %v3337_v58 = vld [vmem:[#allocation13 + $0x1860] sm:$0xff]  ;;  %v3335_v20 = vld [vmem:[#allocation13 + $0x1850] sm:$0xff] }
 0x35e   :  { %6596 = vmatpush1.bf16.msra.mxu0 %v6595_v14  ;;  %v3315_v14 = vld [vmem:[#allocation13 + $0x17b0] sm:$0xff] }
 0x35f   :  { %7108 = vmatpush1.bf16.msra.mxu1 %v7107_v19  ;;  %6598 = vmatprep.subr.bf16.mxu0 %v6597_v40  ;;  %v3318_v19 = vld [vmem:[#allocation13 + $0x17c8] sm:$0xff] }
 0x360   :  { %7110 = vmatprep.subr.bf16.mxu1 %v7109_v3  ;;  %v3322_v40 = vld [vmem:[#allocation13 + $0x17e8] sm:$0xff]  ;;  %v7123_v3 = vpack.c.bf16 %v3315_v14, %v3311_v50  ;;  %v6623_v50 = vpack.c.bf16 %v3337_v58, %v3333_v13  ;;  %v3372_v13 = vld [vmem:[#allocation13 + $0x1978] sm:$0xff] }
 0x361   :  { %v6613_v34 = vpack.c.bf16 %v3322_v40, %v3318_v19  ;;  %v3341_v19 = vld [vmem:[#allocation13 + $0x1880] sm:$0xff] }
 0x362   :  { %6600 = vmatpush1.bf16.msra.mxu0 %v6599_v43  ;;  %v3323_v43 = vld [vmem:[#allocation13 + $0x17f0] sm:$0xff]  ;;  %v3345_v40 = vld [vmem:[#allocation13 + $0x18a0] sm:$0xff] }
 0x363   :  { %7112 = vmatpush1.bf16.msra.mxu1 %v7111_v31  ;;  %6602 = vmatprep.subr.bf16.mxu0 %v6601_v52  ;;  %v3326_v31 = vld [vmem:[#allocation13 + $0x1808] sm:$0xff]  ;;  %v6627_v29 = vpack.c.bf16 %v3345_v40, %v3341_v19 }
 0x364   :  { %7114 = vmatprep.subr.bf16.mxu1 %v7113_v6  ;;  %v3330_v52 = vld [vmem:[#allocation13 + $0x1828] sm:$0xff]  ;;  %v7127_v6 = vpack.c.bf16 %v3323_v43, %v3319_v30  ;;  %v3349_v43 = vld [vmem:[#allocation13 + $0x18c0] sm:$0xff] }
 0x365   :  { %v6617_v46 = vpack.c.bf16 %v3330_v52, %v3326_v31  ;;  %v3353_v31 = vld [vmem:[#allocation13 + $0x18e0] sm:$0xff]  ;;  %v3351_v52 = vld [vmem:[#allocation13 + $0x18d0] sm:$0xff] }
 0x366   :  { %6604 = vmatpush1.bf16.msra.mxu0 %v6603_v11  ;;  %v3331_v11 = vld [vmem:[#allocation13 + $0x1830] sm:$0xff]  ;;  %v6631_v56 = vpack.c.bf16 %v3353_v31, %v3349_v43 }
 0x367   :  { %7116 = vmatpush1.bf16.msra.mxu1 %v7115_v57  ;;  %6606 = vmatprep.subr.bf16.mxu0 %v6605_v27  ;;  %v3334_v57 = vld [vmem:[#allocation13 + $0x1848] sm:$0xff] }
 0x368   :  { %7118 = vmatprep.subr.bf16.mxu1 %v7117_v53  ;;  %v3338_v27 = vld [vmem:[#allocation13 + $0x1868] sm:$0xff]  ;;  %v7131_v53 = vpack.c.bf16 %v3331_v11, %v3327_v45  ;;  %v3357_v45 = vld [vmem:[#allocation13 + $0x1900] sm:$0xff] }
 0x369   :  { %v6621_v16 = vpack.c.bf16 %v3338_v27, %v3334_v57  ;;  %v3361_v11 = vld [vmem:[#allocation13 + $0x1920] sm:$0xff]  ;;  %v3359_v57 = vld [vmem:[#allocation13 + $0x1910] sm:$0xff] }
 0x36a   :  { %6608 = vmatpush1.bf16.msra.mxu0 %v6607_v22  ;;  %v3342_v22 = vld [vmem:[#allocation13 + $0x1888] sm:$0xff]  ;;  %v6635_v58 = vpack.c.bf16 %v3361_v11, %v3357_v45 }
 0x36b   :  { %7120 = vmatpush1.bf16.msra.mxu1 %v7119_v1  ;;  %6610 = vmatprep.subr.bf16.mxu0 %v6609_v8  ;;  %v3346_v1 = vld [vmem:[#allocation13 + $0x18a8] sm:$0xff]  ;;  %v7133_v8 = vpack.c.bf16 %v3340_v47, %v3336_v59 }
 0x36c   :  { %7122 = vmatprep.subr.bf16.mxu1 %v7121_v23  ;;  %v7135_v23 = vpack.c.bf16 %v3339_v17, %v3335_v20  ;;  %v6625_v14 = vpack.c.bf16 %v3346_v1, %v3342_v22  ;;  %v3366_v59 = vld [vmem:[#allocation13 + $0x1948] sm:$0xff]  ;;  %v3365_v17 = vld [vmem:[#allocation13 + $0x1940] sm:$0xff]  ;;  %v3367_v1 = vld [vmem:[#allocation13 + $0x1950] sm:$0xff] }
 0x36d   :  { %v3370_v47 = vld [vmem:[#allocation13 + $0x1968] sm:$0xff]  ;;  %v3369_v22 = vld [vmem:[#allocation13 + $0x1960] sm:$0xff]  ;;  %v7151_v40 = vpack.c.bf16 %v3371_v5, %v3367_v1 }
 0x36e   :  { %6612 = vmatpush1.bf16.msra.mxu0 %v6611_v44  ;;  %v3347_v44 = vld [vmem:[#allocation13 + $0x18b0] sm:$0xff]  ;;  %v6639_v19 = vpack.c.bf16 %v3369_v22, %v3365_v17  ;;  %v3401_v5 = vld [vmem:[#allocation13 + $0x1a60] sm:$0xff] }
 0x36f   :  { %7124 = vmatpush1.bf16.msra.mxu1 %v7123_v3  ;;  %6614 = vmatprep.subr.bf16.mxu0 %v6613_v34  ;;  %v3350_v3 = vld [vmem:[#allocation13 + $0x18c8] sm:$0xff]  ;;  %v7139_v30 = vpack.c.bf16 %v3347_v44, %v3343_v37  ;;  %v3377_v44 = vld [vmem:[#allocation13 + $0x19a0] sm:$0xff] }
 0x370   :  { %7126 = vmatprep.subr.bf16.mxu1 %v7125_v35  ;;  %v3354_v34 = vld [vmem:[#allocation13 + $0x18e8] sm:$0xff] }
 0x371   :  { %v6629_v35 = vpack.c.bf16 %v3354_v34, %v3350_v3  ;;  %v3375_v3 = vld [vmem:[#allocation13 + $0x1990] sm:$0xff] }
 0x372   :  { %6616 = vmatpush1.bf16.msra.mxu0 %v6615_v39  ;;  %v3362_v39 = vld [vmem:[#allocation13 + $0x1928] sm:$0xff] }
 0x373   :  { %7128 = vmatpush1.bf16.msra.mxu1 %v7127_v6  ;;  %6618 = vmatprep.subr.bf16.mxu0 %v6617_v46  ;;  %v3360_v6 = vld [vmem:[#allocation13 + $0x1918] sm:$0xff] }
 0x374   :  { %7130 = vmatprep.subr.bf16.mxu1 %v7129_v2  ;;  %v3364_v46 = vld [vmem:[#allocation13 + $0x1938] sm:$0xff]  ;;  %v6633_v2 = vpack.c.bf16 %v3362_v39, %v3358_v36  ;;  %v3383_v36 = vld [vmem:[#allocation13 + $0x19d0] sm:$0xff] }
 0x375   :  { %4001 = vmatmul.mubr.f32.vlgmr.msra.gmra.mrb[16].mxu0 %v9115_v49  ;;  %v7145_v27 = vpack.c.bf16 %v3364_v46, %v3360_v6  ;;  %v3387_v6 = vld [vmem:[#allocation13 + $0x19f0] sm:$0xff]  ;;  %v3390_v46 = vld [vmem:[#allocation13 + $0x1a08] sm:$0xff] }
 0x376   :  { %4569 = vmatmul.mubr.f32.vlgmr.msra.gmra.mrb[16].mxu1 %v9115_v49  ;;  %6620 = vmatpush1.bf16.msra.mxu0 %v6619_v41  ;;  %v3356_v49 = vld [vmem:[#allocation13 + $0x18f8] sm:$0xff]  ;;  %v3363_v41 = vld [vmem:[#allocation13 + $0x1930] sm:$0xff]  ;;  %v7159_v11 = vpack.c.bf16 %v3387_v6, %v3383_v36  ;;  %v3417_v6 = vld [vmem:[#allocation13 + $0x1ae0] sm:$0xff] }
 0x377   :  { %4071 = vmatprep.mubr.f32.mxu0 %v9129_v32  ;;  %7132 = vmatpush1.bf16.msra.mxu1 %v7131_v53  ;;  %v7141_v9 = vpack.c.bf16 %v3356_v49, %v3352_v28  ;;  %v3368_v53 = vld [vmem:[#allocation13 + $0x1958] sm:$0xff]  ;;  %v7147_v20 = vpack.c.bf16 %v3363_v41, %v3359_v57  ;;  %v3379_v28 = vld [vmem:[#allocation13 + $0x19b0] sm:$0xff]  ;;  %v3382_v49 = vld [vmem:[#allocation13 + $0x19c8] sm:$0xff] }
 0x378   :  { %4639 = vmatprep.mubr.f32.mxu1 %v9129_v32  ;;  %6622 = vmatprep.subr.bf16.mxu0 %v6621_v16  ;;  %v3355_v32 = vld [vmem:[#allocation13 + $0x18f0] sm:$0xff]  ;;  %v6637_v16 = vpack.c.bf16 %v3370_v47, %v3366_v59  ;;  %v7155_v31 = vpack.c.bf16 %v3379_v28, %v3375_v3  ;;  %v3393_v41 = vld [vmem:[#allocation13 + $0x1a20] sm:$0xff] }
 0x379   :  { %7134 = vmatprep.subr.bf16.mxu1 %v7133_v8  ;;  %v7143_v26 = vpack.c.bf16 %v3355_v32, %v3351_v52  ;;  %v7149_v8 = vpack.c.bf16 %v3372_v13, %v3368_v53  ;;  %v3385_v32 = vld [vmem:[#allocation13 + $0x19e0] sm:$0xff]  ;;  %v3391_v59 = vld [vmem:[#allocation13 + $0x1a10] sm:$0xff]  ;;  %v3398_v13 = vld [vmem:[#allocation13 + $0x1a48] sm:$0xff] }
 0x37a   :  { %6624 = vmatpush1.bf16.msra.mxu0 %v6623_v50  ;;  %v3378_v50 = vld [vmem:[#allocation13 + $0x19a8] sm:$0xff]  ;;  %v3395_v53 = vld [vmem:[#allocation13 + $0x1a30] sm:$0xff]  ;;  %v3409_v28 = vld [vmem:[#allocation13 + $0x1aa0] sm:$0xff] }
 0x37b   :  { %7136 = vmatpush1.bf16.msra.mxu1 %v7135_v23  ;;  %6626 = vmatprep.subr.bf16.mxu0 %v6625_v14  ;;  %v3376_v23 = vld [vmem:[#allocation13 + $0x1998] sm:$0xff]  ;;  %v6641_v37 = vpack.c.bf16 %v3378_v50, %v3374_v63  ;;  %v7163_v22 = vpack.c.bf16 %v3395_v53, %v3391_v59  ;;  %v3399_v63 = vld [vmem:[#allocation13 + $0x1a50] sm:$0xff]  ;;  %v3425_v53 = vld [vmem:[#allocation13 + $0x1b20] sm:$0xff] }
 0x37c   :  { %7138 = vmatprep.subr.bf16.mxu1 %v7137_v38  ;;  %v3380_v14 = vld [vmem:[#allocation13 + $0x19b8] sm:$0xff]  ;;  %v3373_v38 = vld [vmem:[#allocation13 + $0x1980] sm:$0xff] }
 0x37d   :  { %v7153_v34 = vpack.c.bf16 %v3380_v14, %v3376_v23  ;;  %v6643_v43 = vpack.c.bf16 %v3377_v44, %v3373_v38  ;;  %v3403_v23 = vld [vmem:[#allocation13 + $0x1a70] sm:$0xff]  ;;  %v3406_v14 = vld [vmem:[#allocation13 + $0x1a88] sm:$0xff] }
 0x37e   :  { %6628 = vmatpush1.bf16.msra.mxu0 %v6627_v29  ;;  %v3386_v29 = vld [vmem:[#allocation13 + $0x19e8] sm:$0xff]  ;;  %v7167_v44 = vpack.c.bf16 %v3403_v23, %v3399_v63  ;;  %v3433_v23 = vld [vmem:[#allocation13 + $0x1b60] sm:$0xff] }
 0x37f   :  { %7140 = vmatpush1.bf16.msra.mxu1 %v7139_v30  ;;  %6630 = vmatprep.subr.bf16.mxu0 %v6629_v35  ;;  %v3384_v30 = vld [vmem:[#allocation13 + $0x19d8] sm:$0xff]  ;;  %v6645_v52 = vpack.c.bf16 %v3386_v29, %v3382_v49  ;;  %v3407_v49 = vld [vmem:[#allocation13 + $0x1a90] sm:$0xff] }
 0x380   :  { %7142 = vmatprep.subr.bf16.mxu1 %v7141_v9  ;;  %v3388_v35 = vld [vmem:[#allocation13 + $0x19f8] sm:$0xff]  ;;  %v3381_v9 = vld [vmem:[#allocation13 + $0x19c0] sm:$0xff] }
 0x381   :  { %v7157_v39 = vpack.c.bf16 %v3388_v35, %v3384_v30  ;;  %v6647_v45 = vpack.c.bf16 %v3385_v32, %v3381_v9  ;;  %v3411_v30 = vld [vmem:[#allocation13 + $0x1ab0] sm:$0xff]  ;;  %v3414_v35 = vld [vmem:[#allocation13 + $0x1ac8] sm:$0xff] }
 0x382   :  { %6632 = vmatpush1.bf16.msra.mxu0 %v6631_v56  ;;  %v3394_v56 = vld [vmem:[#allocation13 + $0x1a28] sm:$0xff]  ;;  %v7171_v32 = vpack.c.bf16 %v3411_v30, %v3407_v49  ;;  %v3441_v30 = vld [vmem:[#allocation13 + $0x1ba0] sm:$0xff] }
 0x383   :  { %7144 = vmatpush1.bf16.msra.mxu1 %v7143_v26  ;;  %6634 = vmatprep.subr.bf16.mxu0 %v6633_v2  ;;  %v3392_v26 = vld [vmem:[#allocation13 + $0x1a18] sm:$0xff]  ;;  %v6649_v57 = vpack.c.bf16 %v3394_v56, %v3390_v46  ;;  %v3415_v46 = vld [vmem:[#allocation13 + $0x1ad0] sm:$0xff] }
 0x384   :  { %7146 = vmatprep.subr.bf16.mxu1 %v7145_v27  ;;  %v3396_v2 = vld [vmem:[#allocation13 + $0x1a38] sm:$0xff]  ;;  %v3389_v27 = vld [vmem:[#allocation13 + $0x1a00] sm:$0xff] }
 0x385   :  { %v7161_v47 = vpack.c.bf16 %v3396_v2, %v3392_v26  ;;  %v6651_v17 = vpack.c.bf16 %v3393_v41, %v3389_v27  ;;  %v3419_v26 = vld [vmem:[#allocation13 + $0x1af0] sm:$0xff]  ;;  %v3422_v2 = vld [vmem:[#allocation13 + $0x1b08] sm:$0xff] }
 0x386   :  { %6636 = vmatpush1.bf16.msra.mxu0 %v6635_v58  ;;  %v3402_v58 = vld [vmem:[#allocation13 + $0x1a68] sm:$0xff]  ;;  %v7175_v41 = vpack.c.bf16 %v3419_v26, %v3415_v46  ;;  %v3449_v26 = vld [vmem:[#allocation13 + $0x1be0] sm:$0xff] }
 0x387   :  { %7148 = vmatpush1.bf16.msra.mxu1 %v7147_v20  ;;  %6638 = vmatprep.subr.bf16.mxu0 %v6637_v16  ;;  %v3400_v20 = vld [vmem:[#allocation13 + $0x1a58] sm:$0xff]  ;;  %v6653_v1 = vpack.c.bf16 %v3402_v58, %v3398_v13  ;;  %v3423_v13 = vld [vmem:[#allocation13 + $0x1b10] sm:$0xff] }
 0x388   :  { %7150 = vmatprep.subr.bf16.mxu1 %v7149_v8  ;;  %v3404_v16 = vld [vmem:[#allocation13 + $0x1a78] sm:$0xff]  ;;  %v3397_v8 = vld [vmem:[#allocation13 + $0x1a40] sm:$0xff] }
 0x389   :  { %v7165_v50 = vpack.c.bf16 %v3404_v16, %v3400_v20  ;;  %v6655_v38 = vpack.c.bf16 %v3401_v5, %v3397_v8  ;;  %v3427_v20 = vld [vmem:[#allocation13 + $0x1b30] sm:$0xff]  ;;  %v3430_v16 = vld [vmem:[#allocation13 + $0x1b48] sm:$0xff] }
 0x38a   :  { %6640 = vmatpush1.bf16.msra.mxu0 %v6639_v19  ;;  %v3410_v19 = vld [vmem:[#allocation13 + $0x1aa8] sm:$0xff]  ;;  %v7179_v5 = vpack.c.bf16 %v3427_v20, %v3423_v13  ;;  %v3457_v20 = vld [vmem:[#allocation13 + $0x1c20] sm:$0xff] }
 0x38b   :  { %7152 = vmatpush1.bf16.msra.mxu1 %v7151_v40  ;;  %6642 = vmatprep.subr.bf16.mxu0 %v6641_v37  ;;  %v3408_v40 = vld [vmem:[#allocation13 + $0x1a98] sm:$0xff]  ;;  %v6657_v3 = vpack.c.bf16 %v3410_v19, %v3406_v14  ;;  %v3431_v14 = vld [vmem:[#allocation13 + $0x1b50] sm:$0xff] }
 0x38c   :  { %7154 = vmatprep.subr.bf16.mxu1 %v7153_v34  ;;  %v3412_v37 = vld [vmem:[#allocation13 + $0x1ab8] sm:$0xff]  ;;  %v3405_v34 = vld [vmem:[#allocation13 + $0x1a80] sm:$0xff] }
 0x38d   :  { %v7169_v29 = vpack.c.bf16 %v3412_v37, %v3408_v40  ;;  %v6659_v9 = vpack.c.bf16 %v3409_v28, %v3405_v34  ;;  %v3435_v40 = vld [vmem:[#allocation13 + $0x1b70] sm:$0xff]  ;;  %v3438_v37 = vld [vmem:[#allocation13 + $0x1b88] sm:$0xff] }
 0x38e   :  { %6644 = vmatpush1.bf16.msra.mxu0 %v6643_v43  ;;  %v3418_v43 = vld [vmem:[#allocation13 + $0x1ae8] sm:$0xff]  ;;  %v7183_v28 = vpack.c.bf16 %v3435_v40, %v3431_v14  ;;  %v3461_v14 = vld [vmem:[#allocation13 + $0x1c40] sm:$0xff]  ;;  %v3463_v40 = vld [vmem:[#allocation13 + $0x1c50] sm:$0xff] }
 0x38f   :  { %7156 = vmatpush1.bf16.msra.mxu1 %v7155_v31  ;;  %6646 = vmatprep.subr.bf16.mxu0 %v6645_v52  ;;  %v3416_v31 = vld [vmem:[#allocation13 + $0x1ad8] sm:$0xff]  ;;  %v6661_v36 = vpack.c.bf16 %v3418_v43, %v3414_v35  ;;  %v3439_v35 = vld [vmem:[#allocation13 + $0x1b90] sm:$0xff] }
 0x390   :  { %7158 = vmatprep.subr.bf16.mxu1 %v7157_v39  ;;  %v3420_v52 = vld [vmem:[#allocation13 + $0x1af8] sm:$0xff]  ;;  %v3413_v39 = vld [vmem:[#allocation13 + $0x1ac0] sm:$0xff] }
 0x391   :  { %v7173_v56 = vpack.c.bf16 %v3420_v52, %v3416_v31  ;;  %v6663_v27 = vpack.c.bf16 %v3417_v6, %v3413_v39  ;;  %v3443_v31 = vld [vmem:[#allocation13 + $0x1bb0] sm:$0xff]  ;;  %v3446_v52 = vld [vmem:[#allocation13 + $0x1bc8] sm:$0xff] }
 0x392   :  { %6648 = vmatpush1.bf16.msra.mxu0 %v6647_v45  ;;  %v3426_v45 = vld [vmem:[#allocation13 + $0x1b28] sm:$0xff]  ;;  %v7187_v6 = vpack.c.bf16 %v3443_v31, %v3439_v35  ;;  %v3473_v31 = vld [vmem:[#allocation13 + $0x1ca0] sm:$0xff] }
 0x393   :  { %7160 = vmatpush1.bf16.msra.mxu1 %v7159_v11  ;;  %6650 = vmatprep.subr.bf16.mxu0 %v6649_v57  ;;  %v3424_v11 = vld [vmem:[#allocation13 + $0x1b18] sm:$0xff]  ;;  %v6665_v59 = vpack.c.bf16 %v3426_v45, %v3422_v2  ;;  %v3447_v2 = vld [vmem:[#allocation13 + $0x1bd0] sm:$0xff] }
 0x394   :  { %7162 = vmatprep.subr.bf16.mxu1 %v7161_v47  ;;  %v3428_v57 = vld [vmem:[#allocation13 + $0x1b38] sm:$0xff]  ;;  %v3421_v47 = vld [vmem:[#allocation13 + $0x1b00] sm:$0xff] }
 0x395   :  { %v7177_v58 = vpack.c.bf16 %v3428_v57, %v3424_v11  ;;  %v6667_v8 = vpack.c.bf16 %v3425_v53, %v3421_v47  ;;  %v3451_v11 = vld [vmem:[#allocation13 + $0x1bf0] sm:$0xff]  ;;  %v3454_v57 = vld [vmem:[#allocation13 + $0x1c08] sm:$0xff] }
 0x396   :  { %6652 = vmatpush1.bf16.msra.mxu0 %v6651_v17  ;;  %v3434_v17 = vld [vmem:[#allocation13 + $0x1b68] sm:$0xff]  ;;  %v7191_v53 = vpack.c.bf16 %v3451_v11, %v3447_v2  ;;  %v3477_v2 = vld [vmem:[#allocation13 + $0x1cc0] sm:$0xff]  ;;  %v3479_v11 = vld [vmem:[#allocation13 + $0x1cd0] sm:$0xff] }
 0x397   :  { %7164 = vmatpush1.bf16.msra.mxu1 %v7163_v22  ;;  %6654 = vmatprep.subr.bf16.mxu0 %v6653_v1  ;;  %v3432_v22 = vld [vmem:[#allocation13 + $0x1b58] sm:$0xff]  ;;  %v6669_v63 = vpack.c.bf16 %v3434_v17, %v3430_v16  ;;  %v3455_v17 = vld [vmem:[#allocation13 + $0x1c10] sm:$0xff] }
 0x398   :  { %7166 = vmatprep.subr.bf16.mxu1 %v7165_v50  ;;  %v3436_v1 = vld [vmem:[#allocation13 + $0x1b78] sm:$0xff]  ;;  %v3429_v50 = vld [vmem:[#allocation13 + $0x1b40] sm:$0xff] }
 0x399   :  { %v7181_v19 = vpack.c.bf16 %v3436_v1, %v3432_v22  ;;  %v6671_v34 = vpack.c.bf16 %v3433_v23, %v3429_v50  ;;  %v3459_v22 = vld [vmem:[#allocation13 + $0x1c30] sm:$0xff]  ;;  %v3462_v1 = vld [vmem:[#allocation13 + $0x1c48] sm:$0xff]  ;;  %v3468_v50 = vld [vmem:[#allocation13 + $0x1c78] sm:$0xff] }
 0x39a   :  { %6656 = vmatpush1.bf16.msra.mxu0 %v6655_v38  ;;  %v3442_v38 = vld [vmem:[#allocation13 + $0x1ba8] sm:$0xff]  ;;  %v7195_v23 = vpack.c.bf16 %v3459_v22, %v3455_v17  ;;  %v3487_v17 = vld [vmem:[#allocation13 + $0x1d10] sm:$0xff] }
 0x39b   :  { %7168 = vmatpush1.bf16.msra.mxu1 %v7167_v44  ;;  %6658 = vmatprep.subr.bf16.mxu0 %v6657_v3  ;;  %v3440_v44 = vld [vmem:[#allocation13 + $0x1b98] sm:$0xff]  ;;  %v6673_v49 = vpack.c.bf16 %v3442_v38, %v3438_v37  ;;  %v3467_v38 = vld [vmem:[#allocation13 + $0x1c70] sm:$0xff] }
 0x39c   :  { %7170 = vmatprep.subr.bf16.mxu1 %v7169_v29  ;;  %v3444_v3 = vld [vmem:[#allocation13 + $0x1bb8] sm:$0xff]  ;;  %v3437_v29 = vld [vmem:[#allocation13 + $0x1b80] sm:$0xff] }
 0x39d   :  { %v7185_v43 = vpack.c.bf16 %v3444_v3, %v3440_v44  ;;  %v6675_v39 = vpack.c.bf16 %v3441_v30, %v3437_v29  ;;  %v3470_v44 = vld [vmem:[#allocation13 + $0x1c88] sm:$0xff]  ;;  %v7199_v30 = vpack.c.bf16 %v3467_v38, %v3463_v40  ;;  %v3493_v40 = vld [vmem:[#allocation13 + $0x1d40] sm:$0xff]  ;;  %v3495_v38 = vld [vmem:[#allocation13 + $0x1d50] sm:$0xff] }
 0x39e   :  { %6660 = vmatpush1.bf16.msra.mxu0 %v6659_v9  ;;  %v3450_v9 = vld [vmem:[#allocation13 + $0x1be8] sm:$0xff] }
 0x39f   :  { %7172 = vmatpush1.bf16.msra.mxu1 %v7171_v32  ;;  %6662 = vmatprep.subr.bf16.mxu0 %v6661_v36  ;;  %v3448_v32 = vld [vmem:[#allocation13 + $0x1bd8] sm:$0xff]  ;;  %v6677_v46 = vpack.c.bf16 %v3450_v9, %v3446_v52  ;;  %v3474_v3 = vld [vmem:[#allocation13 + $0x1ca8] sm:$0xff]  ;;  %v3471_v52 = vld [vmem:[#allocation13 + $0x1c90] sm:$0xff] }
 0x3a0   :  { %7174 = vmatprep.subr.bf16.mxu1 %v7173_v56  ;;  %v3452_v36 = vld [vmem:[#allocation13 + $0x1bf8] sm:$0xff]  ;;  %v3445_v56 = vld [vmem:[#allocation13 + $0x1bc0] sm:$0xff]  ;;  %v6689_v35 = vpack.c.bf16 %v3474_v3, %v3470_v44  ;;  %v3499_v3 = vld [vmem:[#allocation13 + $0x1d70] sm:$0xff] }
 0x3a1   :  { %v7189_v45 = vpack.c.bf16 %v3452_v36, %v3448_v32  ;;  %v6679_v47 = vpack.c.bf16 %v3449_v26, %v3445_v56  ;;  %v3475_v32 = vld [vmem:[#allocation13 + $0x1cb0] sm:$0xff]  ;;  %v3478_v36 = vld [vmem:[#allocation13 + $0x1cc8] sm:$0xff] }
 0x3a2   :  { %6664 = vmatpush1.bf16.msra.mxu0 %v6663_v27  ;;  %v3458_v27 = vld [vmem:[#allocation13 + $0x1c28] sm:$0xff]  ;;  %v7203_v56 = vpack.c.bf16 %v3475_v32, %v3471_v52  ;;  %v3505_v52 = vld [vmem:[#allocation13 + $0x1da0] sm:$0xff] }
 0x3a3   :  { %7176 = vmatpush1.bf16.msra.mxu1 %v7175_v41  ;;  %6666 = vmatprep.subr.bf16.mxu0 %v6665_v59  ;;  %v3456_v41 = vld [vmem:[#allocation13 + $0x1c18] sm:$0xff]  ;;  %v6681_v13 = vpack.c.bf16 %v3458_v27, %v3454_v57  ;;  %v3486_v27 = vld [vmem:[#allocation13 + $0x1d08] sm:$0xff] }
 0x3a4   :  { %7178 = vmatprep.subr.bf16.mxu1 %v7177_v58  ;;  %v3460_v59 = vld [vmem:[#allocation13 + $0x1c38] sm:$0xff]  ;;  %v3453_v58 = vld [vmem:[#allocation13 + $0x1c00] sm:$0xff] }
 0x3a5   :  { %v7193_v16 = vpack.c.bf16 %v3460_v59, %v3456_v41  ;;  %v3490_v41 = vld [vmem:[#allocation13 + $0x1d28] sm:$0xff]  ;;  %v3488_v59 = vld [vmem:[#allocation13 + $0x1d18] sm:$0xff] }
 0x3a6   :  { %6668 = vmatpush1.bf16.msra.mxu0 %v6667_v8  ;;  %v3466_v8 = vld [vmem:[#allocation13 + $0x1c68] sm:$0xff] }
 0x3a7   :  { %7180 = vmatpush1.bf16.msra.mxu1 %v7179_v5  ;;  %6670 = vmatprep.subr.bf16.mxu0 %v6669_v63  ;;  %v6683_v5 = vpack.c.bf16 %v3457_v20, %v3453_v58  ;;  %v3464_v63 = vld [vmem:[#allocation13 + $0x1c58] sm:$0xff]  ;;  %v6685_v37 = vpack.c.bf16 %v3466_v8, %v3462_v1  ;;  %v6697_v58 = vpack.c.bf16 %v3490_v41, %v3486_v27  ;;  %v3485_v20 = vld [vmem:[#allocation13 + $0x1d00] sm:$0xff]  ;;  %v3491_v1 = vld [vmem:[#allocation13 + $0x1d30] sm:$0xff] }
 0x3a8   :  { %7182 = vmatprep.subr.bf16.mxu1 %v7181_v19  ;;  %v3465_v19 = vld [vmem:[#allocation13 + $0x1c60] sm:$0xff]  ;;  %v3494_v8 = vld [vmem:[#allocation13 + $0x1d48] sm:$0xff]  ;;  %v3515_v27 = vld [vmem:[#allocation13 + $0x1df0] sm:$0xff] }
 0x3a9   :  { %v6687_v29 = vpack.c.bf16 %v3465_v19, %v3461_v14  ;;  %v7211_v14 = vpack.c.bf16 %v3491_v1, %v3487_v17  ;;  %v3518_v41 = vld [vmem:[#allocation13 + $0x1e08] sm:$0xff]  ;;  %v3521_v17 = vld [vmem:[#allocation13 + $0x1e20] sm:$0xff] }
 0x3aa   :  { %6672 = vmatpush1.bf16.msra.mxu0 %v6671_v34  ;;  %v7197_v34 = vpack.c.bf16 %v3468_v50, %v3464_v63  ;;  %v3496_v63 = vld [vmem:[#allocation13 + $0x1d58] sm:$0xff] }
 0x3ab   :  { %7184 = vmatpush1.bf16.msra.mxu1 %v7183_v28  ;;  %6674 = vmatprep.subr.bf16.mxu0 %v6673_v49  ;;  %v3472_v28 = vld [vmem:[#allocation13 + $0x1c98] sm:$0xff] }
 0x3ac   :  { %7186 = vmatprep.subr.bf16.mxu1 %v7185_v43  ;;  %v3476_v49 = vld [vmem:[#allocation13 + $0x1cb8] sm:$0xff]  ;;  %v3469_v43 = vld [vmem:[#allocation13 + $0x1c80] sm:$0xff] }
 0x3ad   :  { %v7201_v9 = vpack.c.bf16 %v3476_v49, %v3472_v28  ;;  %v3500_v50 = vld [vmem:[#allocation13 + $0x1d78] sm:$0xff]  ;;  %v3506_v28 = vld [vmem:[#allocation13 + $0x1da8] sm:$0xff] }
 0x3ae   :  { %6676 = vmatpush1.bf16.msra.mxu0 %v6675_v39  ;;  %v3482_v39 = vld [vmem:[#allocation13 + $0x1ce8] sm:$0xff]  ;;  %v7213_v44 = vpack.c.bf16 %v3500_v50, %v3496_v63  ;;  %v3504_v49 = vld [vmem:[#allocation13 + $0x1d98] sm:$0xff] }
 0x3af   :  { %7188 = vmatpush1.bf16.msra.mxu1 %v7187_v6  ;;  %6678 = vmatprep.subr.bf16.mxu0 %v6677_v46  ;;  %v3480_v6 = vld [vmem:[#allocation13 + $0x1cd8] sm:$0xff]  ;;  %v6691_v46 = vpack.c.bf16 %v3473_v31, %v3469_v43  ;;  %v6693_v26 = vpack.c.bf16 %v3482_v39, %v3478_v36  ;;  %v3501_v31 = vld [vmem:[#allocation13 + $0x1d80] sm:$0xff]  ;;  %v3507_v36 = vld [vmem:[#allocation13 + $0x1db0] sm:$0xff] }
 0x3b0   :  { %7190 = vmatprep.subr.bf16.mxu1 %v7189_v45  ;;  %v3481_v45 = vld [vmem:[#allocation13 + $0x1ce0] sm:$0xff]  ;;  %v3510_v39 = vld [vmem:[#allocation13 + $0x1dc8] sm:$0xff]  ;;  %v3528_v50 = vld [vmem:[#allocation13 + $0x1e58] sm:$0xff] }
 0x3b1   :  { %v3530_v63 = vld [vmem:[#allocation13 + $0x1e68] sm:$0xff] }
 0x3b2   :  { %6680 = vmatpush1.bf16.msra.mxu0 %v6679_v47  ;;  %v3492_v47 = vld [vmem:[#allocation13 + $0x1d38] sm:$0xff] }
 0x3b3   :  { %7192 = vmatpush1.bf16.msra.mxu1 %v7191_v53  ;;  %6682 = vmatprep.subr.bf16.mxu0 %v6681_v13  ;;  %v6695_v53 = vpack.c.bf16 %v3481_v45, %v3477_v2  ;;  %v7209_v22 = vpack.c.bf16 %v3492_v47, %v3488_v59  ;;  %v3509_v45 = vld [vmem:[#allocation13 + $0x1dc0] sm:$0xff]  ;;  %v3522_v59 = vld [vmem:[#allocation13 + $0x1e28] sm:$0xff]  ;;  %v3520_v47 = vld [vmem:[#allocation13 + $0x1e18] sm:$0xff] }
 0x3b4   :  { %7194 = vmatprep.subr.bf16.mxu1 %v7193_v16  ;;  %v3489_v16 = vld [vmem:[#allocation13 + $0x1d20] sm:$0xff] }
 0x3b5   :  { %4072 = vmatmul.mubr.f32.vlgmr.msra.gmra.mrb[16].mxu0 %v9123_v7 }
 0x3b6   :  { %4640 = vmatmul.mubr.f32.vlgmr.msra.gmra.mrb[16].mxu1 %v9123_v7  ;;  %6684 = vmatpush1.bf16.msra.mxu0 %v6683_v5  ;;  %v3484_v7 = vld [vmem:[#allocation13 + $0x1cf8] sm:$0xff]  ;;  %v3498_v5 = vld [vmem:[#allocation13 + $0x1d68] sm:$0xff] }
 0x3b7   :  { %4142 = vmatprep.mubr.f32.mxu0 %v9132_v33  ;;  %7196 = vmatpush1.bf16.msra.mxu1 %v7195_v23  ;;  %v7205_v57 = vpack.c.bf16 %v3484_v7, %v3480_v6  ;;  %v6699_v23 = vpack.c.bf16 %v3489_v16, %v3485_v20  ;;  %v6701_v19 = vpack.c.bf16 %v3498_v5, %v3494_v8  ;;  %v3514_v6 = vld [vmem:[#allocation13 + $0x1de8] sm:$0xff]  ;;  %v3512_v7 = vld [vmem:[#allocation13 + $0x1dd8] sm:$0xff]  ;;  %v3517_v16 = vld [vmem:[#allocation13 + $0x1e00] sm:$0xff] }
 0x3b8   :  { %4710 = vmatprep.mubr.f32.mxu1 %v9132_v33  ;;  %6686 = vmatprep.subr.bf16.mxu0 %v6685_v37  ;;  %v3483_v33 = vld [vmem:[#allocation13 + $0x1cf0] sm:$0xff]  ;;  %v3497_v37 = vld [vmem:[#allocation13 + $0x1d60] sm:$0xff]  ;;  %v6709_v2 = vpack.c.bf16 %v3514_v6, %v3510_v39  ;;  %v6713_v20 = vpack.c.bf16 %v3522_v59, %v3518_v41  ;;  %v3526_v5 = vld [vmem:[#allocation13 + $0x1e48] sm:$0xff] }
 0x3b9   :  { %7198 = vmatprep.subr.bf16.mxu1 %v7197_v34  ;;  %v7207_v13 = vpack.c.bf16 %v3483_v33, %v3479_v11  ;;  %v3502_v34 = vld [vmem:[#allocation13 + $0x1d88] sm:$0xff]  ;;  %v3513_v11 = vld [vmem:[#allocation13 + $0x1de0] sm:$0xff]  ;;  %v3523_v8 = vld [vmem:[#allocation13 + $0x1e30] sm:$0xff] }
 0x3ba   :  { %6688 = vmatpush1.bf16.msra.mxu0 %v6687_v29  ;;  %v3508_v29 = vld [vmem:[#allocation13 + $0x1db8] sm:$0xff]  ;;  %v6705_v43 = vpack.c.bf16 %v3506_v28, %v3502_v34  ;;  %v3531_v34 = vld [vmem:[#allocation13 + $0x1e70] sm:$0xff]  ;;  %v3534_v28 = vld [vmem:[#allocation13 + $0x1e88] sm:$0xff] }
 0x3bb   :  { %7200 = vmatpush1.bf16.msra.mxu1 %v7199_v30  ;;  %6690 = vmatprep.subr.bf16.mxu0 %v6689_v35  ;;  %v6703_v30 = vpack.c.bf16 %v3497_v37, %v3493_v40  ;;  %v7215_v35 = vpack.c.bf16 %v3499_v3, %v3495_v38  ;;  %v7217_v32 = vpack.c.bf16 %v3508_v29, %v3504_v49  ;;  %v3525_v37 = vld [vmem:[#allocation13 + $0x1e40] sm:$0xff]  ;;  %v3538_v49 = vld [vmem:[#allocation13 + $0x1ea8] sm:$0xff]  ;;  %v3536_v29 = vld [vmem:[#allocation13 + $0x1e98] sm:$0xff] }
 0x3bc   :  { %7202 = vmatprep.subr.bf16.mxu1 %v7201_v9  ;;  %v3503_v9 = vld [vmem:[#allocation13 + $0x1d90] sm:$0xff]  ;;  %v6717_v40 = vpack.c.bf16 %v3530_v63, %v3526_v5  ;;  %v3529_v38 = vld [vmem:[#allocation13 + $0x1e60] sm:$0xff]  ;;  %v3542_v6 = vld [vmem:[#allocation13 + $0x1ec8] sm:$0xff] }
 0x3bd   :  { %v3539_v39 = vld [vmem:[#allocation13 + $0x1eb0] sm:$0xff]  ;;  %v3550_v59 = vld [vmem:[#allocation13 + $0x1f08] sm:$0xff] }
 0x3be   :  { %6692 = vmatpush1.bf16.msra.mxu0 %v6691_v46  ;;  %v3516_v46 = vld [vmem:[#allocation13 + $0x1df8] sm:$0xff]  ;;  %v3547_v41 = vld [vmem:[#allocation13 + $0x1ef0] sm:$0xff]  ;;  %v3558_v63 = vld [vmem:[#allocation13 + $0x1f48] sm:$0xff] }
 0x3bf   :  { %7204 = vmatpush1.bf16.msra.mxu1 %v7203_v56  ;;  %6694 = vmatprep.subr.bf16.mxu0 %v6693_v26  ;;  %v6707_v56 = vpack.c.bf16 %v3505_v52, %v3501_v31  ;;  %v7219_v26 = vpack.c.bf16 %v3507_v36, %v3503_v9  ;;  %v7221_v33 = vpack.c.bf16 %v3516_v46, %v3512_v7  ;;  %v3533_v52 = vld [vmem:[#allocation13 + $0x1e80] sm:$0xff]  ;;  %v3546_v7 = vld [vmem:[#allocation13 + $0x1ee8] sm:$0xff]  ;;  %v3544_v46 = vld [vmem:[#allocation13 + $0x1ed8] sm:$0xff] }
 0x3c0   :  { %7206 = vmatprep.subr.bf16.mxu1 %v7205_v57  ;;  %v3511_v57 = vld [vmem:[#allocation13 + $0x1dd0] sm:$0xff]  ;;  %v6721_v31 = vpack.c.bf16 %v3538_v49, %v3534_v28  ;;  %v3537_v9 = vld [vmem:[#allocation13 + $0x1ea0] sm:$0xff]  ;;  %v3566_v49 = vld [vmem:[#allocation13 + $0x1f88] sm:$0xff] }
 0x3c1   :  { %v3555_v5 = vld [vmem:[#allocation13 + $0x1f30] sm:$0xff] }
 0x3c2   :  { %6696 = vmatpush1.bf16.msra.mxu0 %v6695_v53  ;;  %v3524_v53 = vld [vmem:[#allocation13 + $0x1e38] sm:$0xff]  ;;  %v3563_v28 = vld [vmem:[#allocation13 + $0x1f70] sm:$0xff] }
 0x3c3   :  { %7208 = vmatpush1.bf16.msra.mxu1 %v7207_v13  ;;  %6698 = vmatprep.subr.bf16.mxu0 %v6697_v58  ;;  %v6711_v13 = vpack.c.bf16 %v3513_v11, %v3509_v45  ;;  %v7223_v58 = vpack.c.bf16 %v3515_v27, %v3511_v57  ;;  %v7225_v1 = vpack.c.bf16 %v3524_v53, %v3520_v47  ;;  %v3541_v11 = vld [vmem:[#allocation13 + $0x1ec0] sm:$0xff]  ;;  %v3554_v47 = vld [vmem:[#allocation13 + $0x1f28] sm:$0xff]  ;;  %v3552_v53 = vld [vmem:[#allocation13 + $0x1f18] sm:$0xff] }
 0x3c4   :  { %7210 = vmatprep.subr.bf16.mxu1 %v7209_v22  ;;  %v3519_v22 = vld [vmem:[#allocation13 + $0x1e10] sm:$0xff]  ;;  %v6725_v45 = vpack.c.bf16 %v3546_v7, %v3542_v6  ;;  %v3545_v57 = vld [vmem:[#allocation13 + $0x1ee0] sm:$0xff]  ;;  %v3574_v7 = vld [vmem:[#allocation13 + $0x1fc8] sm:$0xff] }
 0x3c5   :  { %v3571_v6 = vld [vmem:[#allocation13 + $0x1fb0] sm:$0xff] }
 0x3c6   :  { %6700 = vmatpush1.bf16.msra.mxu0 %v6699_v23  ;;  %v3532_v23 = vld [vmem:[#allocation13 + $0x1e78] sm:$0xff] }
 0x3c7   :  { %7212 = vmatpush1.bf16.msra.mxu1 %v7211_v14  ;;  %6702 = vmatprep.subr.bf16.mxu0 %v6701_v19  ;;  %v6715_v14 = vpack.c.bf16 %v3521_v17, %v3517_v16  ;;  %v7227_v19 = vpack.c.bf16 %v3523_v8, %v3519_v22  ;;  %v7229_v3 = vpack.c.bf16 %v3532_v23, %v3528_v50  ;;  %v3549_v17 = vld [vmem:[#allocation13 + $0x1f00] sm:$0xff]  ;;  %v3562_v50 = vld [vmem:[#allocation13 + $0x1f68] sm:$0xff]  ;;  %v3560_v23 = vld [vmem:[#allocation13 + $0x1f58] sm:$0xff] }
 0x3c8   :  { %7214 = vmatprep.subr.bf16.mxu1 %v7213_v44  ;;  %v3527_v44 = vld [vmem:[#allocation13 + $0x1e50] sm:$0xff]  ;;  %v6729_v16 = vpack.c.bf16 %v3554_v47, %v3550_v59  ;;  %v3553_v22 = vld [vmem:[#allocation13 + $0x1f20] sm:$0xff]  ;;  %v1534_v47 = vld [vmem:[#allocation12 + $0x8] sm:$0xff] }
 0x3c9   :  { %v3579_v59 = vld [vmem:[#allocation13 + $0x1ff0] sm:$0xff] }
 0x3ca   :  { %6704 = vmatpush1.bf16.msra.mxu0 %v6703_v30  ;;  %v3540_v30 = vld [vmem:[#allocation13 + $0x1eb8] sm:$0xff] }
 0x3cb   :  { %7216 = vmatpush1.bf16.msra.mxu1 %v7215_v35  ;;  %6706 = vmatprep.subr.bf16.mxu0 %v6705_v43  ;;  %v6719_v35 = vpack.c.bf16 %v3529_v38, %v3525_v37  ;;  %v7231_v43 = vpack.c.bf16 %v3531_v34, %v3527_v44  ;;  %v7233_v36 = vpack.c.bf16 %v3540_v30, %v3536_v29  ;;  %v3557_v38 = vld [vmem:[#allocation13 + $0x1f40] sm:$0xff]  ;;  %v3570_v29 = vld [vmem:[#allocation13 + $0x1fa8] sm:$0xff]  ;;  %v3568_v30 = vld [vmem:[#allocation13 + $0x1f98] sm:$0xff] }
 0x3cc   :  { %7218 = vmatprep.subr.bf16.mxu1 %v7217_v32  ;;  %v3535_v32 = vld [vmem:[#allocation13 + $0x1e90] sm:$0xff]  ;;  %v6733_v37 = vpack.c.bf16 %v3562_v50, %v3558_v63  ;;  %v3561_v44 = vld [vmem:[#allocation13 + $0x1f60] sm:$0xff]  ;;  %v1542_v50 = vld [vmem:[#allocation12 + $0x48] sm:$0xff] }
 0x3cd   :  { %v1539_v63 = vld [vmem:[#allocation12 + $0x30] sm:$0xff] }
 0x3ce   :  { %6708 = vmatpush1.bf16.msra.mxu0 %v6707_v56  ;;  %v3548_v56 = vld [vmem:[#allocation13 + $0x1ef8] sm:$0xff] }
 0x3cf   :  { %7220 = vmatpush1.bf16.msra.mxu1 %v7219_v26  ;;  %6710 = vmatprep.subr.bf16.mxu0 %v6709_v2  ;;  %v6723_v26 = vpack.c.bf16 %v3537_v9, %v3533_v52  ;;  %v7235_v2 = vpack.c.bf16 %v3539_v39, %v3535_v32  ;;  %v7237_v27 = vpack.c.bf16 %v3548_v56, %v3544_v46  ;;  %v3565_v9 = vld [vmem:[#allocation13 + $0x1f80] sm:$0xff]  ;;  %v3578_v46 = vld [vmem:[#allocation13 + $0x1fe8] sm:$0xff]  ;;  %v3576_v56 = vld [vmem:[#allocation13 + $0x1fd8] sm:$0xff] }
 0x3d0   :  { %7222 = vmatprep.subr.bf16.mxu1 %v7221_v33  ;;  %v3543_v33 = vld [vmem:[#allocation13 + $0x1ed0] sm:$0xff]  ;;  %v6737_v52 = vpack.c.bf16 %v3570_v29, %v3566_v49  ;;  %v3569_v32 = vld [vmem:[#allocation13 + $0x1fa0] sm:$0xff]  ;;  %v1550_v49 = vld [vmem:[#allocation12 + $0x88] sm:$0xff] }
 0x3d1   :  { %v1554_v29 = vld [vmem:[#allocation12 + $0xa8] sm:$0xff] }
 0x3d2   :  { %6712 = vmatpush1.bf16.msra.mxu0 %v6711_v13  ;;  %v3556_v13 = vld [vmem:[#allocation13 + $0x1f38] sm:$0xff] }
 0x3d3   :  { %7224 = vmatpush1.bf16.msra.mxu1 %v7223_v58  ;;  %6714 = vmatprep.subr.bf16.mxu0 %v6713_v20  ;;  %v6727_v58 = vpack.c.bf16 %v3545_v57, %v3541_v11  ;;  %v7239_v20 = vpack.c.bf16 %v3547_v41, %v3543_v33  ;;  %v7241_v8 = vpack.c.bf16 %v3556_v13, %v3552_v53  ;;  %v3573_v57 = vld [vmem:[#allocation13 + $0x1fc0] sm:$0xff]  ;;  %v1538_v53 = vld [vmem:[#allocation12 + $0x28] sm:$0xff]  ;;  %v1536_v13 = vld [vmem:[#allocation12 + $0x18] sm:$0xff] }
 0x3d4   :  { %7226 = vmatprep.subr.bf16.mxu1 %v7225_v1  ;;  %v3551_v1 = vld [vmem:[#allocation13 + $0x1f10] sm:$0xff]  ;;  %v6741_v11 = vpack.c.bf16 %v3578_v46, %v3574_v7  ;;  %v3577_v33 = vld [vmem:[#allocation13 + $0x1fe0] sm:$0xff]  ;;  %v1558_v46 = vld [vmem:[#allocation12 + $0xc8] sm:$0xff] }
 0x3d5   :  { %v1555_v7 = vld [vmem:[#allocation12 + $0xb0] sm:$0xff] }
 0x3d6   :  { %6716 = vmatpush1.bf16.msra.mxu0 %v6715_v14  ;;  %v3564_v14 = vld [vmem:[#allocation13 + $0x1f78] sm:$0xff] }
 0x3d7   :  { %7228 = vmatpush1.bf16.msra.mxu1 %v7227_v19  ;;  %6718 = vmatprep.subr.bf16.mxu0 %v6717_v40  ;;  %v6731_v19 = vpack.c.bf16 %v3553_v22, %v3549_v17  ;;  %v7243_v40 = vpack.c.bf16 %v3555_v5, %v3551_v1  ;;  %v7245_v34 = vpack.c.bf16 %v3564_v14, %v3560_v23  ;;  %v1533_v22 = vld [vmem:[#allocation12] sm:$0xff]  ;;  %v1535_v5 = vld [vmem:[#allocation12 + $0x10] sm:$0xff]  ;;  %v1546_v23 = vld [vmem:[#allocation12 + $0x68] sm:$0xff] }
 0x3d8   :  { %7230 = vmatprep.subr.bf16.mxu1 %v7229_v3  ;;  %v3559_v3 = vld [vmem:[#allocation13 + $0x1f50] sm:$0xff]  ;;  %v7257_v17 = vpack.c.bf16 %v1538_v53, %v1534_v47  ;;  %v1537_v1 = vld [vmem:[#allocation12 + $0x20] sm:$0xff]  ;;  %v1570_v47 = vld [vmem:[#allocation12 + $0x128] sm:$0xff] }
 0x3d9   :  { %v7259_v14 = vpack.c.bf16 %v1537_v1, %v1533_v22  ;;  %v1568_v53 = vld [vmem:[#allocation12 + $0x118] sm:$0xff]  ;;  %v1569_v22 = vld [vmem:[#allocation12 + $0x120] sm:$0xff]  ;;  %v1567_v1 = vld [vmem:[#allocation12 + $0x110] sm:$0xff] }
 0x3da   :  { %6720 = vmatpush1.bf16.msra.mxu0 %v6719_v35  ;;  %v3572_v35 = vld [vmem:[#allocation13 + $0x1fb8] sm:$0xff] }
 0x3db   :  { %7232 = vmatpush1.bf16.msra.mxu1 %v7231_v43  ;;  %6722 = vmatprep.subr.bf16.mxu0 %v6721_v31  ;;  %v6735_v43 = vpack.c.bf16 %v3561_v44, %v3557_v38  ;;  %v7247_v31 = vpack.c.bf16 %v3563_v28, %v3559_v3  ;;  %v7249_v39 = vpack.c.bf16 %v3572_v35, %v3568_v30  ;;  %v1541_v38 = vld [vmem:[#allocation12 + $0x40] sm:$0xff]  ;;  %v1543_v3 = vld [vmem:[#allocation12 + $0x50] sm:$0xff]  ;;  %v1552_v35 = vld [vmem:[#allocation12 + $0x98] sm:$0xff] }
 0x3dc   :  { %7234 = vmatprep.subr.bf16.mxu1 %v7233_v36  ;;  %v3567_v36 = vld [vmem:[#allocation13 + $0x1f90] sm:$0xff]  ;;  %v1545_v44 = vld [vmem:[#allocation12 + $0x60] sm:$0xff] }
 0x3dd   :  { %v1547_v28 = vld [vmem:[#allocation12 + $0x70] sm:$0xff] }
 0x3de   :  { %6724 = vmatpush1.bf16.msra.mxu0 %v6723_v26  ;;  %v3580_v26 = vld [vmem:[#allocation13 + $0x1ff8] sm:$0xff] }
 0x3df   :  { %7236 = vmatpush1.bf16.msra.mxu1 %v7235_v2  ;;  %6726 = vmatprep.subr.bf16.mxu0 %v6725_v45  ;;  %v6739_v2 = vpack.c.bf16 %v3569_v32, %v3565_v9  ;;  %v7251_v45 = vpack.c.bf16 %v3571_v6, %v3567_v36  ;;  %v7253_v41 = vpack.c.bf16 %v3580_v26, %v3576_v56  ;;  %v1549_v32 = vld [vmem:[#allocation12 + $0x80] sm:$0xff]  ;;  %v1562_v56 = vld [vmem:[#allocation12 + $0xe8] sm:$0xff]  ;;  %v1560_v26 = vld [vmem:[#allocation12 + $0xd8] sm:$0xff] }
 0x3e0   :  { %7238 = vmatprep.subr.bf16.mxu1 %v7237_v27  ;;  %v3575_v27 = vld [vmem:[#allocation13 + $0x1fd0] sm:$0xff]  ;;  %v7265_v9 = vpack.c.bf16 %v1554_v29, %v1550_v49  ;;  %v1553_v36 = vld [vmem:[#allocation12 + $0xa0] sm:$0xff]  ;;  %v1582_v49 = vld [vmem:[#allocation12 + $0x188] sm:$0xff] }
 0x3e1   :  { %v1586_v29 = vld [vmem:[#allocation12 + $0x1a8] sm:$0xff] }
 0x3e2   :  { %6728 = vmatpush1.bf16.msra.mxu0 %v6727_v58  ;;  %v1540_v58 = vld [vmem:[#allocation12 + $0x38] sm:$0xff] }
 0x3e3   :  { %7240 = vmatpush1.bf16.msra.mxu1 %v7239_v20  ;;  %6730 = vmatprep.subr.bf16.mxu0 %v6729_v16  ;;  %v6743_v20 = vpack.c.bf16 %v3577_v33, %v3573_v57  ;;  %v7255_v16 = vpack.c.bf16 %v3579_v59, %v3575_v27  ;;  %v1557_v57 = vld [vmem:[#allocation12 + $0xc0] sm:$0xff]  ;;  %v1559_v27 = vld [vmem:[#allocation12 + $0xd0] sm:$0xff]  ;;  %v1566_v59 = vld [vmem:[#allocation12 + $0x108] sm:$0xff] }
 0x3e4   :  { %7242 = vmatprep.subr.bf16.mxu1 %v7241_v8  ;;  %v7769_v8 = vpack.c.bf16 %v1540_v58, %v1536_v13  ;;  %v1561_v33 = vld [vmem:[#allocation12 + $0xe0] sm:$0xff]  ;;  %v1572_v13 = vld [vmem:[#allocation12 + $0x138] sm:$0xff] }
 0x3e5   :  { %v7271_v58 = vpack.c.bf16 %v1561_v33, %v1557_v57  ;;  %v1593_v57 = vld [vmem:[#allocation12 + $0x1e0] sm:$0xff]  ;;  %v1591_v33 = vld [vmem:[#allocation12 + $0x1d0] sm:$0xff] }
 0x3e6   :  { %6732 = vmatpush1.bf16.msra.mxu0 %v6731_v19  ;;  %v1544_v19 = vld [vmem:[#allocation12 + $0x58] sm:$0xff] }
 0x3e7   :  { %7244 = vmatpush1.bf16.msra.mxu1 %v7243_v40  ;;  %6734 = vmatprep.subr.bf16.mxu0 %v6733_v37  ;;  %v1548_v40 = vld [vmem:[#allocation12 + $0x78] sm:$0xff]  ;;  %v7771_v37 = vpack.c.bf16 %v1539_v63, %v1535_v5  ;;  %v1571_v5 = vld [vmem:[#allocation12 + $0x130] sm:$0xff]  ;;  %v1574_v63 = vld [vmem:[#allocation12 + $0x148] sm:$0xff] }
 0x3e8   :  { %7246 = vmatprep.subr.bf16.mxu1 %v7245_v34  ;;  %v7261_v34 = vpack.c.bf16 %v1546_v23, %v1542_v50  ;;  %v7773_v30 = vpack.c.bf16 %v1548_v40, %v1544_v19  ;;  %v1578_v50 = vld [vmem:[#allocation12 + $0x168] sm:$0xff]  ;;  %v1576_v23 = vld [vmem:[#allocation12 + $0x158] sm:$0xff]  ;;  %v7787_v40 = vpack.c.bf16 %v1571_v5, %v1567_v1 }
 0x3e9   :  { %v1606_v5 = vld [vmem:[#allocation12 + $0x248] sm:$0xff] }
 0x3ea   :  { %6736 = vmatpush1.bf16.msra.mxu0 %v6735_v43  ;;  %v1556_v43 = vld [vmem:[#allocation12 + $0xb8] sm:$0xff] }
 0x3eb   :  { %7248 = vmatpush1.bf16.msra.mxu1 %v7247_v31  ;;  %6738 = vmatprep.subr.bf16.mxu0 %v6737_v52  ;;  %v7263_v31 = vpack.c.bf16 %v1545_v44, %v1541_v38  ;;  %v7775_v52 = vpack.c.bf16 %v1547_v28, %v1543_v3  ;;  %v7777_v6 = vpack.c.bf16 %v1556_v43, %v1552_v35  ;;  %v1573_v38 = vld [vmem:[#allocation12 + $0x140] sm:$0xff]  ;;  %v1575_v3 = vld [vmem:[#allocation12 + $0x150] sm:$0xff]  ;;  %v1588_v35 = vld [vmem:[#allocation12 + $0x1b8] sm:$0xff] }
 0x3ec   :  { %7250 = vmatprep.subr.bf16.mxu1 %v7249_v39  ;;  %v1551_v39 = vld [vmem:[#allocation12 + $0x90] sm:$0xff]  ;;  %v1577_v44 = vld [vmem:[#allocation12 + $0x160] sm:$0xff] }
 0x3ed   :  { %v1579_v28 = vld [vmem:[#allocation12 + $0x170] sm:$0xff]  ;;  %v7279_v43 = vpack.c.bf16 %v1577_v44, %v1573_v38  ;;  %v1609_v38 = vld [vmem:[#allocation12 + $0x260] sm:$0xff] }
 0x3ee   :  { %6740 = vmatpush1.bf16.msra.mxu0 %v6739_v2  ;;  %v7267_v2 = vpack.c.bf16 %v1553_v36, %v1549_v32  ;;  %v1585_v32 = vld [vmem:[#allocation12 + $0x1a0] sm:$0xff]  ;;  %v1583_v36 = vld [vmem:[#allocation12 + $0x190] sm:$0xff] }
 0x3ef   :  { %7252 = vmatpush1.bf16.msra.mxu1 %v7251_v45  ;;  %6742 = vmatprep.subr.bf16.mxu0 %v6741_v11  ;;  %v7779_v45 = vpack.c.bf16 %v1555_v7, %v1551_v39  ;;  %v7269_v11 = vpack.c.bf16 %v1562_v56, %v1558_v46  ;;  %v1590_v7 = vld [vmem:[#allocation12 + $0x1c8] sm:$0xff]  ;;  %v1592_v56 = vld [vmem:[#allocation12 + $0x1d8] sm:$0xff]  ;;  %v1607_v44 = vld [vmem:[#allocation12 + $0x250] sm:$0xff] }
 0x3f0   :  { %7254 = vmatprep.subr.bf16.mxu1 %v7253_v41  ;;  %v1594_v46 = vld [vmem:[#allocation12 + $0x1e8] sm:$0xff] }
 0x3f2   :  { %6744 = vmatpush1.bf16.msra.mxu0 %v6743_v20 }
 0x3f3   :  { %7256 = vmatpush1.bf16.msra.mxu1 %v7255_v16  ;;  %7258 = vmatprep.subr.bf16.mxu0 %v7257_v17  ;;  %v7273_v16 = vpack.c.bf16 %v1570_v47, %v1566_v59  ;;  %v1565_v17 = vld [vmem:[#allocation12 + $0x100] sm:$0xff]  ;;  %v1602_v59 = vld [vmem:[#allocation12 + $0x228] sm:$0xff]  ;;  %v1600_v47 = vld [vmem:[#allocation12 + $0x218] sm:$0xff] }
 0x3f4   :  { %7770 = vmatprep.subr.bf16.mxu1 %v7769_v8  ;;  %v7785_v8 = vpack.c.bf16 %v1572_v13, %v1568_v53  ;;  %v7275_v19 = vpack.c.bf16 %v1569_v22, %v1565_v17  ;;  %v1604_v53 = vld [vmem:[#allocation12 + $0x238] sm:$0xff]  ;;  %v1601_v17 = vld [vmem:[#allocation12 + $0x220] sm:$0xff]  ;;  %v1599_v22 = vld [vmem:[#allocation12 + $0x210] sm:$0xff] }
 0x3f5   :  { %4143 = vmatmul.mubr.f32.vlgmr.msra.gmra.mrb[16].mxu0 %v9126_v42  ;;  %v7801_v1 = vpack.c.bf16 %v1604_v53, %v1600_v47  ;;  %v1636_v47 = vld [vmem:[#allocation12 + $0x338] sm:$0xff] }
 0x3f6   :  { %4711 = vmatmul.mubr.f32.vlgmr.msra.gmra.mrb[16].mxu1 %v9126_v42  ;;  %7260 = vmatpush1.bf16.msra.mxu0 %v7259_v14  ;;  %v1564_v42 = vld [vmem:[#allocation12 + $0xf8] sm:$0xff] }
 0x3f7   :  { %4781 = vmatprep.mubr.f32.mxu0 %v9036_v54  ;;  %7772 = vmatpush1.bf16.msra.mxu1 %v7771_v37  ;;  %v7781_v41 = vpack.c.bf16 %v1564_v42, %v1560_v26  ;;  %v1580_v14 = vld [vmem:[#allocation12 + $0x178] sm:$0xff]  ;;  %v7277_v37 = vpack.c.bf16 %v1578_v50, %v1574_v63  ;;  %v1610_v63 = vld [vmem:[#allocation12 + $0x268] sm:$0xff] }
 0x3f8   :  { %5349 = vmatprep.mubr.f32.mxu1 %v9036_v54  ;;  %7262 = vmatprep.subr.bf16.mxu0 %v7261_v34  ;;  %v1563_v54 = vld [vmem:[#allocation12 + $0xf0] sm:$0xff]  ;;  %v7789_v34 = vpack.c.bf16 %v1580_v14, %v1576_v23  ;;  %v1596_v26 = vld [vmem:[#allocation12 + $0x1f8] sm:$0xff] }
 0x3f9   :  { %7774 = vmatprep.subr.bf16.mxu1 %v7773_v30  ;;  %v7783_v20 = vpack.c.bf16 %v1563_v54, %v1559_v27  ;;  %v1584_v30 = vld [vmem:[#allocation12 + $0x198] sm:$0xff]  ;;  %v7797_v27 = vpack.c.bf16 %v1596_v26, %v1592_v56  ;;  %v1598_v54 = vld [vmem:[#allocation12 + $0x208] sm:$0xff] }
 0x3fa   :  { %7264 = vmatpush1.bf16.msra.mxu0 %v7263_v31  ;;  %v7791_v31 = vpack.c.bf16 %v1579_v28, %v1575_v3  ;;  %v7793_v39 = vpack.c.bf16 %v1588_v35, %v1584_v30  ;;  %v1608_v50 = vld [vmem:[#allocation12 + $0x258] sm:$0xff]  ;;  %v1614_v28 = vld [vmem:[#allocation12 + $0x288] sm:$0xff] }
 0x3fb   :  { %7776 = vmatpush1.bf16.msra.mxu1 %v7775_v52  ;;  %7266 = vmatprep.subr.bf16.mxu0 %v7265_v9  ;;  %v7281_v52 = vpack.c.bf16 %v1586_v29, %v1582_v49  ;;  %v1581_v9 = vld [vmem:[#allocation12 + $0x180] sm:$0xff]  ;;  %v1612_v23 = vld [vmem:[#allocation12 + $0x278] sm:$0xff]  ;;  %v1618_v49 = vld [vmem:[#allocation12 + $0x2a8] sm:$0xff] }
 0x3fc   :  { %7778 = vmatprep.subr.bf16.mxu1 %v7777_v6  ;;  %v1587_v6 = vld [vmem:[#allocation12 + $0x1b0] sm:$0xff]  ;;  %v7283_v42 = vpack.c.bf16 %v1585_v32, %v1581_v9  ;;  %v7805_v3 = vpack.c.bf16 %v1612_v23, %v1608_v50  ;;  %v1616_v29 = vld [vmem:[#allocation12 + $0x298] sm:$0xff]  ;;  %v1617_v9 = vld [vmem:[#allocation12 + $0x2a0] sm:$0xff] }
 0x3fd   :  { %v1620_v30 = vld [vmem:[#allocation12 + $0x2b8] sm:$0xff]  ;;  %v1615_v32 = vld [vmem:[#allocation12 + $0x290] sm:$0xff] }
 0x3fe   :  { %7268 = vmatpush1.bf16.msra.mxu0 %v7267_v2  ;;  %v7795_v2 = vpack.c.bf16 %v1587_v6, %v1583_v36  ;;  %v7809_v36 = vpack.c.bf16 %v1620_v30, %v1616_v29  ;;  %v1622_v6 = vld [vmem:[#allocation12 + $0x2c8] sm:$0xff]  ;;  %v1628_v56 = vld [vmem:[#allocation12 + $0x2f8] sm:$0xff] }
 0x3ff   :  { %7780 = vmatpush1.bf16.msra.mxu1 %v7779_v45  ;;  %7270 = vmatprep.subr.bf16.mxu0 %v7269_v11  ;;  %v7285_v45 = vpack.c.bf16 %v1594_v46, %v1590_v7  ;;  %v1589_v11 = vld [vmem:[#allocation12 + $0x1c0] sm:$0xff]  ;;  %v1626_v7 = vld [vmem:[#allocation12 + $0x2e8] sm:$0xff]  ;;  %v1624_v46 = vld [vmem:[#allocation12 + $0x2d8] sm:$0xff] }
 0x400   :  { %7782 = vmatprep.subr.bf16.mxu1 %v7781_v41  ;;  %v1595_v41 = vld [vmem:[#allocation12 + $0x1f0] sm:$0xff]  ;;  %v7287_v13 = vpack.c.bf16 %v1593_v57, %v1589_v11  ;;  %v1625_v11 = vld [vmem:[#allocation12 + $0x2e0] sm:$0xff]  ;;  %v1644_v50 = vld [vmem:[#allocation12 + $0x378] sm:$0xff] }
 0x401   :  { %v1623_v57 = vld [vmem:[#allocation12 + $0x2d0] sm:$0xff]  ;;  %v1652_v29 = vld [vmem:[#allocation12 + $0x3b8] sm:$0xff] }
 0x402   :  { %7272 = vmatpush1.bf16.msra.mxu0 %v7271_v58  ;;  %v7799_v58 = vpack.c.bf16 %v1595_v41, %v1591_v33  ;;  %v7813_v33 = vpack.c.bf16 %v1628_v56, %v1624_v46  ;;  %v1630_v41 = vld [vmem:[#allocation12 + $0x308] sm:$0xff]  ;;  %v1660_v46 = vld [vmem:[#allocation12 + $0x3f8] sm:$0xff] }
 0x403   :  { %7784 = vmatpush1.bf16.msra.mxu1 %v7783_v20  ;;  %7274 = vmatprep.subr.bf16.mxu0 %v7273_v16  ;;  %v7289_v20 = vpack.c.bf16 %v1602_v59, %v1598_v54  ;;  %v1597_v16 = vld [vmem:[#allocation12 + $0x200] sm:$0xff]  ;;  %v1634_v54 = vld [vmem:[#allocation12 + $0x328] sm:$0xff]  ;;  %v1632_v59 = vld [vmem:[#allocation12 + $0x318] sm:$0xff] }
 0x404   :  { %7786 = vmatprep.subr.bf16.mxu1 %v7785_v8  ;;  %v1603_v8 = vld [vmem:[#allocation12 + $0x230] sm:$0xff]  ;;  %v7291_v14 = vpack.c.bf16 %v1601_v17, %v1597_v16  ;;  %v1633_v16 = vld [vmem:[#allocation12 + $0x320] sm:$0xff] }
 0x405   :  { %v1631_v17 = vld [vmem:[#allocation12 + $0x310] sm:$0xff] }
 0x406   :  { %7276 = vmatpush1.bf16.msra.mxu0 %v7275_v19  ;;  %v7803_v19 = vpack.c.bf16 %v1603_v8, %v1599_v22  ;;  %v7817_v22 = vpack.c.bf16 %v1636_v47, %v1632_v59  ;;  %v1638_v8 = vld [vmem:[#allocation12 + $0x348] sm:$0xff]  ;;  %v1668_v59 = vld [vmem:[#allocation12 + $0x438] sm:$0xff] }
 0x407   :  { %7788 = vmatpush1.bf16.msra.mxu1 %v7787_v40  ;;  %7278 = vmatprep.subr.bf16.mxu0 %v7277_v37  ;;  %v7293_v40 = vpack.c.bf16 %v1610_v63, %v1606_v5  ;;  %v1605_v37 = vld [vmem:[#allocation12 + $0x240] sm:$0xff]  ;;  %v1642_v5 = vld [vmem:[#allocation12 + $0x368] sm:$0xff]  ;;  %v1640_v63 = vld [vmem:[#allocation12 + $0x358] sm:$0xff] }
 0x408   :  { %7790 = vmatprep.subr.bf16.mxu1 %v7789_v34  ;;  %v1611_v34 = vld [vmem:[#allocation12 + $0x270] sm:$0xff]  ;;  %v7295_v35 = vpack.c.bf16 %v1609_v38, %v1605_v37  ;;  %v1641_v37 = vld [vmem:[#allocation12 + $0x360] sm:$0xff] }
 0x409   :  { %v1639_v38 = vld [vmem:[#allocation12 + $0x350] sm:$0xff] }
 0x40a   :  { %7280 = vmatpush1.bf16.msra.mxu0 %v7279_v43  ;;  %v7807_v43 = vpack.c.bf16 %v1611_v34, %v1607_v44  ;;  %v7821_v44 = vpack.c.bf16 %v1644_v50, %v1640_v63  ;;  %v1646_v34 = vld [vmem:[#allocation12 + $0x388] sm:$0xff]  ;;  %v1672_v63 = vld [vmem:[#allocation12 + $0x458] sm:$0xff] }
 0x40b   :  { %7792 = vmatpush1.bf16.msra.mxu1 %v7791_v31  ;;  %7282 = vmatprep.subr.bf16.mxu0 %v7281_v52  ;;  %v7297_v31 = vpack.c.bf16 %v1618_v49, %v1614_v28  ;;  %v1613_v52 = vld [vmem:[#allocation12 + $0x280] sm:$0xff]  ;;  %v1650_v28 = vld [vmem:[#allocation12 + $0x3a8] sm:$0xff]  ;;  %v1648_v49 = vld [vmem:[#allocation12 + $0x398] sm:$0xff] }
 0x40c   :  { %7794 = vmatprep.subr.bf16.mxu1 %v7793_v39  ;;  %v1619_v39 = vld [vmem:[#allocation12 + $0x2b0] sm:$0xff]  ;;  %v7299_v26 = vpack.c.bf16 %v1617_v9, %v1613_v52  ;;  %v1649_v52 = vld [vmem:[#allocation12 + $0x3a0] sm:$0xff]  ;;  %v1676_v50 = vld [vmem:[#allocation12 + $0x478] sm:$0xff] }
 0x40d   :  { %v1647_v9 = vld [vmem:[#allocation12 + $0x390] sm:$0xff] }
 0x40e   :  { %7284 = vmatpush1.bf16.msra.mxu0 %v7283_v42  ;;  %v7811_v42 = vpack.c.bf16 %v1619_v39, %v1615_v32  ;;  %v7825_v32 = vpack.c.bf16 %v1652_v29, %v1648_v49  ;;  %v1654_v39 = vld [vmem:[#allocation12 + $0x3c8] sm:$0xff]  ;;  %v1684_v49 = vld [vmem:[#allocation12 + $0x4b8] sm:$0xff] }
 0x40f   :  { %7796 = vmatpush1.bf16.msra.mxu1 %v7795_v2  ;;  %7286 = vmatprep.subr.bf16.mxu0 %v7285_v45  ;;  %v7301_v2 = vpack.c.bf16 %v1626_v7, %v1622_v6  ;;  %v1621_v45 = vld [vmem:[#allocation12 + $0x2c0] sm:$0xff]  ;;  %v1658_v6 = vld [vmem:[#allocation12 + $0x3e8] sm:$0xff]  ;;  %v1656_v7 = vld [vmem:[#allocation12 + $0x3d8] sm:$0xff] }
 0x410   :  { %7798 = vmatprep.subr.bf16.mxu1 %v7797_v27  ;;  %v1627_v27 = vld [vmem:[#allocation12 + $0x2f0] sm:$0xff]  ;;  %v7303_v53 = vpack.c.bf16 %v1625_v11, %v1621_v45  ;;  %v1657_v45 = vld [vmem:[#allocation12 + $0x3e0] sm:$0xff] }
 0x411   :  { %v1655_v11 = vld [vmem:[#allocation12 + $0x3d0] sm:$0xff] }
 0x412   :  { %7288 = vmatpush1.bf16.msra.mxu0 %v7287_v13  ;;  %v7815_v13 = vpack.c.bf16 %v1627_v27, %v1623_v57  ;;  %v7829_v57 = vpack.c.bf16 %v1660_v46, %v1656_v7  ;;  %v1662_v27 = vld [vmem:[#allocation12 + $0x408] sm:$0xff] }
 0x413   :  { %7800 = vmatpush1.bf16.msra.mxu1 %v7799_v58  ;;  %7290 = vmatprep.subr.bf16.mxu0 %v7289_v20  ;;  %v7305_v58 = vpack.c.bf16 %v1634_v54, %v1630_v41  ;;  %v1629_v20 = vld [vmem:[#allocation12 + $0x300] sm:$0xff]  ;;  %v1666_v41 = vld [vmem:[#allocation12 + $0x428] sm:$0xff]  ;;  %v1664_v54 = vld [vmem:[#allocation12 + $0x418] sm:$0xff] }
 0x414   :  { %7802 = vmatprep.subr.bf16.mxu1 %v7801_v1  ;;  %v1635_v1 = vld [vmem:[#allocation12 + $0x330] sm:$0xff]  ;;  %v7307_v23 = vpack.c.bf16 %v1633_v16, %v1629_v20  ;;  %v1665_v20 = vld [vmem:[#allocation12 + $0x420] sm:$0xff]  ;;  %v7833_v16 = vpack.c.bf16 %v1668_v59, %v1664_v54 }
 0x416   :  { %7292 = vmatpush1.bf16.msra.mxu0 %v7291_v14  ;;  %v7819_v14 = vpack.c.bf16 %v1635_v1, %v1631_v17  ;;  %v1663_v17 = vld [vmem:[#allocation12 + $0x410] sm:$0xff]  ;;  %v1670_v1 = vld [vmem:[#allocation12 + $0x448] sm:$0xff] }
 0x417   :  { %7804 = vmatpush1.bf16.msra.mxu1 %v7803_v19  ;;  %7294 = vmatprep.subr.bf16.mxu0 %v7293_v40  ;;  %v7309_v19 = vpack.c.bf16 %v1642_v5, %v1638_v8  ;;  %v1637_v40 = vld [vmem:[#allocation12 + $0x340] sm:$0xff]  ;;  %v1674_v8 = vld [vmem:[#allocation12 + $0x468] sm:$0xff] }
 0x418   :  { %7806 = vmatprep.subr.bf16.mxu1 %v7805_v3  ;;  %v1643_v3 = vld [vmem:[#allocation12 + $0x370] sm:$0xff]  ;;  %v7311_v30 = vpack.c.bf16 %v1641_v37, %v1637_v40  ;;  %v7325_v37 = vpack.c.bf16 %v1674_v8, %v1670_v1  ;;  %v1708_v1 = vld [vmem:[#allocation12 + $0x578] sm:$0xff] }
 0x419   :  { %v1671_v40 = vld [vmem:[#allocation12 + $0x450] sm:$0xff] }
 0x41a   :  { %7296 = vmatpush1.bf16.msra.mxu0 %v7295_v35  ;;  %v7823_v35 = vpack.c.bf16 %v1643_v3, %v1639_v38  ;;  %v1675_v38 = vld [vmem:[#allocation12 + $0x470] sm:$0xff]  ;;  %v1682_v3 = vld [vmem:[#allocation12 + $0x4a8] sm:$0xff] }
 0x41b   :  { %7808 = vmatpush1.bf16.msra.mxu1 %v7807_v43  ;;  %7298 = vmatprep.subr.bf16.mxu0 %v7297_v31  ;;  %v7313_v43 = vpack.c.bf16 %v1650_v28, %v1646_v34  ;;  %v1645_v31 = vld [vmem:[#allocation12 + $0x380] sm:$0xff]  ;;  %v7837_v34 = vpack.c.bf16 %v1676_v50, %v1672_v63  ;;  %v1680_v28 = vld [vmem:[#allocation12 + $0x498] sm:$0xff] }
 0x41c   :  { %7810 = vmatprep.subr.bf16.mxu1 %v7809_v36  ;;  %v1651_v36 = vld [vmem:[#allocation12 + $0x3b0] sm:$0xff]  ;;  %v7315_v56 = vpack.c.bf16 %v1649_v52, %v1645_v31  ;;  %v1681_v31 = vld [vmem:[#allocation12 + $0x4a0] sm:$0xff] }
 0x41d   :  { %v1679_v52 = vld [vmem:[#allocation12 + $0x490] sm:$0xff]  ;;  %v1701_v50 = vld [vmem:[#allocation12 + $0x540] sm:$0xff] }
 0x41e   :  { %7300 = vmatpush1.bf16.msra.mxu0 %v7299_v26  ;;  %v7827_v26 = vpack.c.bf16 %v1651_v36, %v1647_v9  ;;  %v7841_v9 = vpack.c.bf16 %v1684_v49, %v1680_v28  ;;  %v1686_v36 = vld [vmem:[#allocation12 + $0x4c8] sm:$0xff] }
 0x41f   :  { %7812 = vmatpush1.bf16.msra.mxu1 %v7811_v42  ;;  %7302 = vmatprep.subr.bf16.mxu0 %v7301_v2  ;;  %v7317_v42 = vpack.c.bf16 %v1658_v6, %v1654_v39  ;;  %v1653_v2 = vld [vmem:[#allocation12 + $0x3c0] sm:$0xff]  ;;  %v1690_v39 = vld [vmem:[#allocation12 + $0x4e8] sm:$0xff]  ;;  %v1688_v6 = vld [vmem:[#allocation12 + $0x4d8] sm:$0xff] }
 0x420   :  { %7814 = vmatprep.subr.bf16.mxu1 %v7813_v33  ;;  %v1659_v33 = vld [vmem:[#allocation12 + $0x3f0] sm:$0xff]  ;;  %v7319_v47 = vpack.c.bf16 %v1657_v45, %v1653_v2 }
 0x421   :  { %v1687_v2 = vld [vmem:[#allocation12 + $0x4d0] sm:$0xff] }
 0x422   :  { %7304 = vmatpush1.bf16.msra.mxu0 %v7303_v53  ;;  %v7831_v53 = vpack.c.bf16 %v1659_v33, %v1655_v11  ;;  %v1694_v11 = vld [vmem:[#allocation12 + $0x508] sm:$0xff]  ;;  %v1696_v33 = vld [vmem:[#allocation12 + $0x518] sm:$0xff] }
 0x423   :  { %7816 = vmatpush1.bf16.msra.mxu1 %v7815_v13  ;;  %7306 = vmatprep.subr.bf16.mxu0 %v7305_v58  ;;  %v7321_v13 = vpack.c.bf16 %v1666_v41, %v1662_v27  ;;  %v1661_v58 = vld [vmem:[#allocation12 + $0x400] sm:$0xff]  ;;  %v1700_v27 = vld [vmem:[#allocation12 + $0x538] sm:$0xff] }
 0x424   :  { %7818 = vmatprep.subr.bf16.mxu1 %v7817_v22  ;;  %v1667_v22 = vld [vmem:[#allocation12 + $0x430] sm:$0xff]  ;;  %v7323_v5 = vpack.c.bf16 %v1665_v20, %v1661_v58  ;;  %v7849_v58 = vpack.c.bf16 %v1700_v27, %v1696_v33 }
 0x425   :  { %v1699_v20 = vld [vmem:[#allocation12 + $0x530] sm:$0xff] }
 0x426   :  { %7308 = vmatpush1.bf16.msra.mxu0 %v7307_v23  ;;  %v7835_v23 = vpack.c.bf16 %v1667_v22, %v1663_v17  ;;  %v1706_v17 = vld [vmem:[#allocation12 + $0x568] sm:$0xff]  ;;  %v1704_v22 = vld [vmem:[#allocation12 + $0x558] sm:$0xff] }
 0x427   :  { %7820 = vmatpush1.bf16.msra.mxu1 %v7819_v14  ;;  %7310 = vmatprep.subr.bf16.mxu0 %v7309_v19  ;;  %v1669_v14 = vld [vmem:[#allocation12 + $0x440] sm:$0xff] }
 0x428   :  { %7822 = vmatprep.subr.bf16.mxu1 %v7821_v44  ;;  %v1673_v19 = vld [vmem:[#allocation12 + $0x460] sm:$0xff]  ;;  %v1678_v44 = vld [vmem:[#allocation12 + $0x488] sm:$0xff] }
 0x429   :  { %v7327_v29 = vpack.c.bf16 %v1673_v19, %v1669_v14  ;;  %v1703_v14 = vld [vmem:[#allocation12 + $0x550] sm:$0xff]  ;;  %v7853_v19 = vpack.c.bf16 %v1708_v1, %v1704_v22 }
 0x42a   :  { %7312 = vmatpush1.bf16.msra.mxu0 %v7311_v30  ;;  %v7839_v30 = vpack.c.bf16 %v1675_v38, %v1671_v40  ;;  %v1707_v40 = vld [vmem:[#allocation12 + $0x570] sm:$0xff]  ;;  %v1714_v38 = vld [vmem:[#allocation12 + $0x5a8] sm:$0xff] }
 0x42b   :  { %7824 = vmatpush1.bf16.msra.mxu1 %v7823_v35  ;;  %7314 = vmatprep.subr.bf16.mxu0 %v7313_v43  ;;  %v7329_v35 = vpack.c.bf16 %v1682_v3, %v1678_v44  ;;  %v1677_v43 = vld [vmem:[#allocation12 + $0x480] sm:$0xff]  ;;  %v1712_v44 = vld [vmem:[#allocation12 + $0x598] sm:$0xff]  ;;  %v7855_v28 = vpack.c.bf16 %v1707_v40, %v1703_v14  ;;  %v1742_v14 = vld [vmem:[#allocation12 + $0x688] sm:$0xff] }
 0x42c   :  { %7826 = vmatprep.subr.bf16.mxu1 %v7825_v32  ;;  %v1683_v32 = vld [vmem:[#allocation12 + $0x4b0] sm:$0xff]  ;;  %v7331_v7 = vpack.c.bf16 %v1681_v31, %v1677_v43  ;;  %v1716_v3 = vld [vmem:[#allocation12 + $0x5b8] sm:$0xff] }
 0x42d   :  { %v7843_v46 = vpack.c.bf16 %v1683_v32, %v1679_v52  ;;  %v7857_v43 = vpack.c.bf16 %v1716_v3, %v1712_v44  ;;  %v1715_v31 = vld [vmem:[#allocation12 + $0x5b0] sm:$0xff]  ;;  %v1718_v52 = vld [vmem:[#allocation12 + $0x5c8] sm:$0xff]  ;;  %v1720_v32 = vld [vmem:[#allocation12 + $0x5d8] sm:$0xff] }
 0x42e   :  { %7316 = vmatpush1.bf16.msra.mxu0 %v7315_v56  ;;  %v7333_v56 = vpack.c.bf16 %v1690_v39, %v1686_v36  ;;  %v1724_v36 = vld [vmem:[#allocation12 + $0x5f8] sm:$0xff] }
 0x42f   :  { %7828 = vmatpush1.bf16.msra.mxu1 %v7827_v26  ;;  %7318 = vmatprep.subr.bf16.mxu0 %v7317_v42  ;;  %v1685_v26 = vld [vmem:[#allocation12 + $0x4c0] sm:$0xff]  ;;  %v1744_v40 = vld [vmem:[#allocation12 + $0x698] sm:$0xff] }
 0x430   :  { %7830 = vmatprep.subr.bf16.mxu1 %v7829_v57  ;;  %v1689_v42 = vld [vmem:[#allocation12 + $0x4e0] sm:$0xff]  ;;  %v1698_v57 = vld [vmem:[#allocation12 + $0x528] sm:$0xff] }
 0x431   :  { %v7335_v41 = vpack.c.bf16 %v1689_v42, %v1685_v26  ;;  %v7337_v59 = vpack.c.bf16 %v1698_v57, %v1694_v11  ;;  %v7861_v26 = vpack.c.bf16 %v1724_v36, %v1720_v32  ;;  %v1723_v42 = vld [vmem:[#allocation12 + $0x5f0] sm:$0xff]  ;;  %v1732_v11 = vld [vmem:[#allocation12 + $0x638] sm:$0xff] }
 0x432   :  { %7320 = vmatpush1.bf16.msra.mxu0 %v7319_v47  ;;  %v1693_v47 = vld [vmem:[#allocation12 + $0x500] sm:$0xff] }
 0x433   :  { %7832 = vmatpush1.bf16.msra.mxu1 %v7831_v53  ;;  %7322 = vmatprep.subr.bf16.mxu0 %v7321_v13  ;;  %v1697_v53 = vld [vmem:[#allocation12 + $0x520] sm:$0xff]  ;;  %v1695_v13 = vld [vmem:[#allocation12 + $0x510] sm:$0xff] }
 0x434   :  { %7834 = vmatprep.subr.bf16.mxu1 %v7833_v16  ;;  %v1702_v16 = vld [vmem:[#allocation12 + $0x548] sm:$0xff]  ;;  %v7339_v8 = vpack.c.bf16 %v1697_v53, %v1693_v47  ;;  %v1731_v53 = vld [vmem:[#allocation12 + $0x630] sm:$0xff] }
 0x435   :  { %4782 = vmatmul.mubr.f32.vlgmr.msra.gmra.mrb[16].mxu0 %v9023_v48  ;;  %v7341_v63 = vpack.c.bf16 %v1706_v17, %v1702_v16  ;;  %v1740_v16 = vld [vmem:[#allocation12 + $0x678] sm:$0xff] }
 0x436   :  { %5350 = vmatmul.mubr.f32.vlgmr.msra.gmra.mrb[16].mxu1 %v9023_v48  ;;  %7324 = vmatpush1.bf16.msra.mxu0 %v7323_v5  ;;  %v1692_v48 = vld [vmem:[#allocation12 + $0x4f8] sm:$0xff]  ;;  %v7851_v5 = vpack.c.bf16 %v1699_v20, %v1695_v13  ;;  %v1734_v13 = vld [vmem:[#allocation12 + $0x648] sm:$0xff] }
 0x437   :  { %4852 = vmatprep.mubr.f32.mxu0 %v9039_v55  ;;  %7836 = vmatpush1.bf16.msra.mxu1 %v7835_v23  ;;  %v7845_v45 = vpack.c.bf16 %v1692_v48, %v1688_v6  ;;  %v1705_v23 = vld [vmem:[#allocation12 + $0x560] sm:$0xff]  ;;  %v1736_v20 = vld [vmem:[#allocation12 + $0x658] sm:$0xff] }
 0x438   :  { %5420 = vmatprep.mubr.f32.mxu1 %v9039_v55  ;;  %7326 = vmatprep.subr.bf16.mxu0 %v7325_v37  ;;  %v1691_v55 = vld [vmem:[#allocation12 + $0x4f0] sm:$0xff]  ;;  %v1710_v37 = vld [vmem:[#allocation12 + $0x588] sm:$0xff] }
 0x439   :  { %7838 = vmatprep.subr.bf16.mxu1 %v7837_v34  ;;  %v7847_v54 = vpack.c.bf16 %v1691_v55, %v1687_v2  ;;  %v7343_v34 = vpack.c.bf16 %v1705_v23, %v1701_v50  ;;  %v7345_v49 = vpack.c.bf16 %v1714_v38, %v1710_v37  ;;  %v1726_v2 = vld [vmem:[#allocation12 + $0x608] sm:$0xff]  ;;  %v1728_v55 = vld [vmem:[#allocation12 + $0x618] sm:$0xff]  ;;  %v7869_v50 = vpack.c.bf16 %v1740_v16, %v1736_v20  ;;  %v1739_v23 = vld [vmem:[#allocation12 + $0x670] sm:$0xff] }
 0x43a   :  { %7328 = vmatpush1.bf16.msra.mxu0 %v7327_v29  ;;  %v1709_v29 = vld [vmem:[#allocation12 + $0x580] sm:$0xff]  ;;  %v7865_v47 = vpack.c.bf16 %v1732_v11, %v1728_v55  ;;  %v1748_v37 = vld [vmem:[#allocation12 + $0x6b8] sm:$0xff] }
 0x43b   :  { %7840 = vmatpush1.bf16.msra.mxu1 %v7839_v30  ;;  %7330 = vmatprep.subr.bf16.mxu0 %v7329_v35  ;;  %v1713_v30 = vld [vmem:[#allocation12 + $0x5a0] sm:$0xff]  ;;  %v1711_v35 = vld [vmem:[#allocation12 + $0x590] sm:$0xff] }
 0x43c   :  { %7842 = vmatprep.subr.bf16.mxu1 %v7841_v9  ;;  %v1722_v9 = vld [vmem:[#allocation12 + $0x5e8] sm:$0xff]  ;;  %v7347_v39 = vpack.c.bf16 %v1713_v30, %v1709_v29  ;;  %v7859_v6 = vpack.c.bf16 %v1715_v31, %v1711_v35  ;;  %v7873_v29 = vpack.c.bf16 %v1748_v37, %v1744_v40  ;;  %v1747_v30 = vld [vmem:[#allocation12 + $0x6b0] sm:$0xff]  ;;  %v1752_v31 = vld [vmem:[#allocation12 + $0x6d8] sm:$0xff] }
 0x43d   :  { %v7349_v48 = vpack.c.bf16 %v1722_v9, %v1718_v52  ;;  %v1750_v35 = vld [vmem:[#allocation12 + $0x6c8] sm:$0xff]  ;;  %v1756_v52 = vld [vmem:[#allocation12 + $0x6f8] sm:$0xff] }
 0x43e   :  { %7332 = vmatpush1.bf16.msra.mxu0 %v7331_v7  ;;  %v1717_v7 = vld [vmem:[#allocation12 + $0x5c0] sm:$0xff] }
 0x43f   :  { %7844 = vmatpush1.bf16.msra.mxu1 %v7843_v46  ;;  %7334 = vmatprep.subr.bf16.mxu0 %v7333_v56  ;;  %v1721_v46 = vld [vmem:[#allocation12 + $0x5e0] sm:$0xff]  ;;  %v1719_v56 = vld [vmem:[#allocation12 + $0x5d0] sm:$0xff] }
 0x440   :  { %7846 = vmatprep.subr.bf16.mxu1 %v7845_v45  ;;  %v1730_v45 = vld [vmem:[#allocation12 + $0x628] sm:$0xff]  ;;  %v7351_v57 = vpack.c.bf16 %v1721_v46, %v1717_v7  ;;  %v7863_v33 = vpack.c.bf16 %v1723_v42, %v1719_v56  ;;  %v7877_v7 = vpack.c.bf16 %v1756_v52, %v1752_v31  ;;  %v1755_v46 = vld [vmem:[#allocation12 + $0x6f0] sm:$0xff]  ;;  %v1760_v42 = vld [vmem:[#allocation12 + $0x718] sm:$0xff] }
 0x441   :  { %v7353_v27 = vpack.c.bf16 %v1730_v45, %v1726_v2  ;;  %v1758_v56 = vld [vmem:[#allocation12 + $0x708] sm:$0xff]  ;;  %v1764_v2 = vld [vmem:[#allocation12 + $0x738] sm:$0xff] }
 0x442   :  { %7336 = vmatpush1.bf16.msra.mxu0 %v7335_v41  ;;  %v1725_v41 = vld [vmem:[#allocation12 + $0x600] sm:$0xff] }
 0x443   :  { %7848 = vmatpush1.bf16.msra.mxu1 %v7847_v54  ;;  %7338 = vmatprep.subr.bf16.mxu0 %v7337_v59  ;;  %v1729_v54 = vld [vmem:[#allocation12 + $0x620] sm:$0xff]  ;;  %v1727_v59 = vld [vmem:[#allocation12 + $0x610] sm:$0xff] }
 0x444   :  { %7850 = vmatprep.subr.bf16.mxu1 %v7849_v58  ;;  %v1738_v58 = vld [vmem:[#allocation12 + $0x668] sm:$0xff]  ;;  %v7355_v17 = vpack.c.bf16 %v1729_v54, %v1725_v41  ;;  %v7867_v22 = vpack.c.bf16 %v1731_v53, %v1727_v59  ;;  %v7881_v41 = vpack.c.bf16 %v1764_v2, %v1760_v42  ;;  %v1763_v54 = vld [vmem:[#allocation12 + $0x730] sm:$0xff]  ;;  %v1768_v53 = vld [vmem:[#allocation12 + $0x758] sm:$0xff] }
 0x445   :  { %v7357_v1 = vpack.c.bf16 %v1738_v58, %v1734_v13  ;;  %v1766_v59 = vld [vmem:[#allocation12 + $0x748] sm:$0xff]  ;;  %v1772_v13 = vld [vmem:[#allocation12 + $0x778] sm:$0xff] }
 0x446   :  { %7340 = vmatpush1.bf16.msra.mxu0 %v7339_v8  ;;  %v1733_v8 = vld [vmem:[#allocation12 + $0x640] sm:$0xff] }
 0x447   :  { %7852 = vmatpush1.bf16.msra.mxu1 %v7851_v5  ;;  %7342 = vmatprep.subr.bf16.mxu0 %v7341_v63  ;;  %v1737_v5 = vld [vmem:[#allocation12 + $0x660] sm:$0xff]  ;;  %v1735_v63 = vld [vmem:[#allocation12 + $0x650] sm:$0xff] }
 0x448   :  { %7854 = vmatprep.subr.bf16.mxu1 %v7853_v19  ;;  %v1746_v19 = vld [vmem:[#allocation12 + $0x6a8] sm:$0xff]  ;;  %v7359_v38 = vpack.c.bf16 %v1737_v5, %v1733_v8  ;;  %v7871_v44 = vpack.c.bf16 %v1739_v23, %v1735_v63  ;;  %v7885_v8 = vpack.c.bf16 %v1772_v13, %v1768_v53  ;;  %v1771_v5 = vld [vmem:[#allocation12 + $0x770] sm:$0xff]  ;;  %v1776_v23 = vld [vmem:[#allocation12 + $0x798] sm:$0xff] }
 0x449   :  { %v7361_v3 = vpack.c.bf16 %v1746_v19, %v1742_v14  ;;  %v1774_v63 = vld [vmem:[#allocation12 + $0x788] sm:$0xff]  ;;  %v1780_v14 = vld [vmem:[#allocation12 + $0x7b8] sm:$0xff]  ;;  %v1797_v13 = vld [vmem:[#allocation12 + $0x840] sm:$0xff] }
 0x44a   :  { %7344 = vmatpush1.bf16.msra.mxu0 %v7343_v34  ;;  %v1741_v34 = vld [vmem:[#allocation12 + $0x680] sm:$0xff] }
 0x44b   :  { %7856 = vmatpush1.bf16.msra.mxu1 %v7855_v28  ;;  %7346 = vmatprep.subr.bf16.mxu0 %v7345_v49  ;;  %v1745_v28 = vld [vmem:[#allocation12 + $0x6a0] sm:$0xff]  ;;  %v1743_v49 = vld [vmem:[#allocation12 + $0x690] sm:$0xff] }
 0x44c   :  { %7858 = vmatprep.subr.bf16.mxu1 %v7857_v43  ;;  %v1754_v43 = vld [vmem:[#allocation12 + $0x6e8] sm:$0xff]  ;;  %v7363_v9 = vpack.c.bf16 %v1745_v28, %v1741_v34  ;;  %v7875_v32 = vpack.c.bf16 %v1747_v30, %v1743_v49  ;;  %v7889_v34 = vpack.c.bf16 %v1780_v14, %v1776_v23  ;;  %v1779_v28 = vld [vmem:[#allocation12 + $0x7b0] sm:$0xff]  ;;  %v1784_v30 = vld [vmem:[#allocation12 + $0x7d8] sm:$0xff] }
 0x44d   :  { %v7365_v36 = vpack.c.bf16 %v1754_v43, %v1750_v35  ;;  %v1782_v49 = vld [vmem:[#allocation12 + $0x7c8] sm:$0xff]  ;;  %v1788_v35 = vld [vmem:[#allocation12 + $0x7f8] sm:$0xff] }
 0x44e   :  { %7348 = vmatpush1.bf16.msra.mxu0 %v7347_v39  ;;  %v1749_v39 = vld [vmem:[#allocation12 + $0x6c0] sm:$0xff] }
 0x44f   :  { %7860 = vmatpush1.bf16.msra.mxu1 %v7859_v6  ;;  %7350 = vmatprep.subr.bf16.mxu0 %v7349_v48  ;;  %v1753_v6 = vld [vmem:[#allocation12 + $0x6e0] sm:$0xff]  ;;  %v1751_v48 = vld [vmem:[#allocation12 + $0x6d0] sm:$0xff] }
 0x450   :  { %7862 = vmatprep.subr.bf16.mxu1 %v7861_v26  ;;  %v1762_v26 = vld [vmem:[#allocation12 + $0x728] sm:$0xff]  ;;  %v7367_v45 = vpack.c.bf16 %v1753_v6, %v1749_v39  ;;  %v7879_v55 = vpack.c.bf16 %v1755_v46, %v1751_v48  ;;  %v7893_v39 = vpack.c.bf16 %v1788_v35, %v1784_v30  ;;  %v1787_v6 = vld [vmem:[#allocation12 + $0x7f0] sm:$0xff]  ;;  %v1792_v46 = vld [vmem:[#allocation12 + $0x818] sm:$0xff] }
 0x451   :  { %v7369_v11 = vpack.c.bf16 %v1762_v26, %v1758_v56  ;;  %v1790_v48 = vld [vmem:[#allocation12 + $0x808] sm:$0xff]  ;;  %v1796_v56 = vld [vmem:[#allocation12 + $0x838] sm:$0xff]  ;;  %v1813_v35 = vld [vmem:[#allocation12 + $0x8c0] sm:$0xff] }
 0x452   :  { %7352 = vmatpush1.bf16.msra.mxu0 %v7351_v57  ;;  %v1757_v57 = vld [vmem:[#allocation12 + $0x700] sm:$0xff] }
 0x453   :  { %7864 = vmatpush1.bf16.msra.mxu1 %v7863_v33  ;;  %7354 = vmatprep.subr.bf16.mxu0 %v7353_v27  ;;  %v1761_v33 = vld [vmem:[#allocation12 + $0x720] sm:$0xff]  ;;  %v1759_v27 = vld [vmem:[#allocation12 + $0x710] sm:$0xff] }
 0x454   :  { %7866 = vmatprep.subr.bf16.mxu1 %v7865_v47  ;;  %v1770_v47 = vld [vmem:[#allocation12 + $0x768] sm:$0xff]  ;;  %v7371_v58 = vpack.c.bf16 %v1761_v33, %v1757_v57  ;;  %v7883_v20 = vpack.c.bf16 %v1763_v54, %v1759_v27  ;;  %v1791_v57 = vld [vmem:[#allocation12 + $0x810] sm:$0xff] }
 0x455   :  { %v7373_v16 = vpack.c.bf16 %v1770_v47, %v1766_v59  ;;  %v1795_v33 = vld [vmem:[#allocation12 + $0x830] sm:$0xff]  ;;  %v1798_v27 = vld [vmem:[#allocation12 + $0x848] sm:$0xff]  ;;  %v1800_v59 = vld [vmem:[#allocation12 + $0x858] sm:$0xff] }
 0x456   :  { %7356 = vmatpush1.bf16.msra.mxu0 %v7355_v17  ;;  %v1765_v17 = vld [vmem:[#allocation12 + $0x740] sm:$0xff]  ;;  %v1804_v47 = vld [vmem:[#allocation12 + $0x878] sm:$0xff]  ;;  %v7899_v53 = vpack.c.bf16 %v1795_v33, %v1791_v57 }
 0x457   :  { %7868 = vmatpush1.bf16.msra.mxu1 %v7867_v22  ;;  %7358 = vmatprep.subr.bf16.mxu0 %v7357_v1  ;;  %v1769_v22 = vld [vmem:[#allocation12 + $0x760] sm:$0xff]  ;;  %v1767_v1 = vld [vmem:[#allocation12 + $0x750] sm:$0xff]  ;;  %v1836_v57 = vld [vmem:[#allocation12 + $0x978] sm:$0xff] }
 0x458   :  { %7870 = vmatprep.subr.bf16.mxu1 %v7869_v50  ;;  %v1778_v50 = vld [vmem:[#allocation12 + $0x7a8] sm:$0xff]  ;;  %v7375_v19 = vpack.c.bf16 %v1769_v22, %v1765_v17  ;;  %v7887_v40 = vpack.c.bf16 %v1771_v5, %v1767_v1  ;;  %v1803_v17 = vld [vmem:[#allocation12 + $0x870] sm:$0xff]  ;;  %v1808_v5 = vld [vmem:[#allocation12 + $0x898] sm:$0xff] }
 0x459   :  { %v7377_v37 = vpack.c.bf16 %v1778_v50, %v1774_v63  ;;  %v1806_v22 = vld [vmem:[#allocation12 + $0x888] sm:$0xff]  ;;  %v1812_v63 = vld [vmem:[#allocation12 + $0x8b8] sm:$0xff] }
 0x45a   :  { %7360 = vmatpush1.bf16.msra.mxu0 %v7359_v38  ;;  %v1773_v38 = vld [vmem:[#allocation12 + $0x780] sm:$0xff]  ;;  %v1810_v1 = vld [vmem:[#allocation12 + $0x8a8] sm:$0xff] }
 0x45b   :  { %7872 = vmatpush1.bf16.msra.mxu1 %v7871_v44  ;;  %7362 = vmatprep.subr.bf16.mxu0 %v7361_v3  ;;  %v1777_v44 = vld [vmem:[#allocation12 + $0x7a0] sm:$0xff]  ;;  %v1775_v3 = vld [vmem:[#allocation12 + $0x790] sm:$0xff]  ;;  %v7393_v14 = vpack.c.bf16 %v1810_v1, %v1806_v22 }
 0x45c   :  { %7874 = vmatprep.subr.bf16.mxu1 %v7873_v29  ;;  %v1786_v29 = vld [vmem:[#allocation12 + $0x7e8] sm:$0xff]  ;;  %v7379_v43 = vpack.c.bf16 %v1777_v44, %v1773_v38  ;;  %v7891_v31 = vpack.c.bf16 %v1779_v28, %v1775_v3  ;;  %v7905_v38 = vpack.c.bf16 %v1812_v63, %v1808_v5  ;;  %v1811_v44 = vld [vmem:[#allocation12 + $0x8b0] sm:$0xff]  ;;  %v1816_v28 = vld [vmem:[#allocation12 + $0x8d8] sm:$0xff] }
 0x45d   :  { %v7381_v52 = vpack.c.bf16 %v1786_v29, %v1782_v49  ;;  %v1814_v3 = vld [vmem:[#allocation12 + $0x8c8] sm:$0xff]  ;;  %v1837_v5 = vld [vmem:[#allocation12 + $0x980] sm:$0xff] }
 0x45e   :  { %7364 = vmatpush1.bf16.msra.mxu0 %v7363_v9  ;;  %v1781_v9 = vld [vmem:[#allocation12 + $0x7c0] sm:$0xff] }
 0x45f   :  { %7876 = vmatpush1.bf16.msra.mxu1 %v7875_v32  ;;  %7366 = vmatprep.subr.bf16.mxu0 %v7365_v36  ;;  %v1785_v32 = vld [vmem:[#allocation12 + $0x7e0] sm:$0xff]  ;;  %v1783_v36 = vld [vmem:[#allocation12 + $0x7d0] sm:$0xff] }
 0x460   :  { %7878 = vmatprep.subr.bf16.mxu1 %v7877_v7  ;;  %v1794_v7 = vld [vmem:[#allocation12 + $0x828] sm:$0xff]  ;;  %v7383_v26 = vpack.c.bf16 %v1785_v32, %v1781_v9  ;;  %v7895_v42 = vpack.c.bf16 %v1787_v6, %v1783_v36  ;;  %v1824_v36 = vld [vmem:[#allocation12 + $0x918] sm:$0xff]  ;;  %v1841_v63 = vld [vmem:[#allocation12 + $0x9a0] sm:$0xff] }
 0x461   :  { %v7385_v2 = vpack.c.bf16 %v1794_v7, %v1790_v48  ;;  %v1822_v9 = vld [vmem:[#allocation12 + $0x908] sm:$0xff] }
 0x462   :  { %7368 = vmatpush1.bf16.msra.mxu0 %v7367_v45  ;;  %v1789_v45 = vld [vmem:[#allocation12 + $0x800] sm:$0xff]  ;;  %v1826_v32 = vld [vmem:[#allocation12 + $0x928] sm:$0xff] }
 0x463   :  { %7880 = vmatpush1.bf16.msra.mxu1 %v7879_v55  ;;  %7370 = vmatprep.subr.bf16.mxu0 %v7369_v11  ;;  %v1793_v55 = vld [vmem:[#allocation12 + $0x820] sm:$0xff]  ;;  %v7897_v11 = vpack.c.bf16 %v1796_v56, %v1792_v46  ;;  %v7401_v7 = vpack.c.bf16 %v1826_v32, %v1822_v9 }
 0x464   :  { %7882 = vmatprep.subr.bf16.mxu1 %v7881_v41  ;;  %v1802_v41 = vld [vmem:[#allocation12 + $0x868] sm:$0xff]  ;;  %v7387_v54 = vpack.c.bf16 %v1793_v55, %v1789_v45  ;;  %v1821_v46 = vld [vmem:[#allocation12 + $0x900] sm:$0xff] }
 0x465   :  { %v1825_v56 = vld [vmem:[#allocation12 + $0x920] sm:$0xff]  ;;  %v1830_v45 = vld [vmem:[#allocation12 + $0x948] sm:$0xff] }
 0x466   :  { %7372 = vmatpush1.bf16.msra.mxu0 %v7371_v58  ;;  %v1801_v58 = vld [vmem:[#allocation12 + $0x860] sm:$0xff]  ;;  %v1834_v55 = vld [vmem:[#allocation12 + $0x968] sm:$0xff]  ;;  %v7403_v33 = vpack.c.bf16 %v1825_v56, %v1821_v46 }
 0x467   :  { %7884 = vmatpush1.bf16.msra.mxu1 %v7883_v20  ;;  %7374 = vmatprep.subr.bf16.mxu0 %v7373_v16  ;;  %v1799_v20 = vld [vmem:[#allocation12 + $0x850] sm:$0xff]  ;;  %v7389_v16 = vpack.c.bf16 %v1802_v41, %v1798_v27  ;;  %v7391_v50 = vpack.c.bf16 %v1801_v58, %v1797_v13  ;;  %v7405_v41 = vpack.c.bf16 %v1834_v55, %v1830_v45  ;;  %v1838_v58 = vld [vmem:[#allocation12 + $0x988] sm:$0xff] }
 0x468   :  { %7886 = vmatprep.subr.bf16.mxu1 %v7885_v8  ;;  %v7901_v8 = vpack.c.bf16 %v1804_v47, %v1800_v59  ;;  %v7903_v23 = vpack.c.bf16 %v1803_v17, %v1799_v20  ;;  %v1833_v59 = vld [vmem:[#allocation12 + $0x960] sm:$0xff]  ;;  %v1831_v47 = vld [vmem:[#allocation12 + $0x950] sm:$0xff]  ;;  %v1842_v20 = vld [vmem:[#allocation12 + $0x9a8] sm:$0xff] }
 0x469   :  { %v1835_v13 = vld [vmem:[#allocation12 + $0x970] sm:$0xff]  ;;  %v1844_v17 = vld [vmem:[#allocation12 + $0x9b8] sm:$0xff]  ;;  %v1862_v46 = vld [vmem:[#allocation12 + $0xa48] sm:$0xff] }
 0x46a   :  { %7376 = vmatpush1.bf16.msra.mxu0 %v7375_v19  ;;  %v1805_v19 = vld [vmem:[#allocation12 + $0x880] sm:$0xff]  ;;  %v7919_v1 = vpack.c.bf16 %v1835_v13, %v1831_v47  ;;  %v1866_v56 = vld [vmem:[#allocation12 + $0xa68] sm:$0xff]  ;;  %v1872_v47 = vld [vmem:[#allocation12 + $0xa98] sm:$0xff] }
 0x46b   :  { %7888 = vmatpush1.bf16.msra.mxu1 %v7887_v40  ;;  %7378 = vmatprep.subr.bf16.mxu0 %v7377_v37  ;;  %v1809_v40 = vld [vmem:[#allocation12 + $0x8a0] sm:$0xff]  ;;  %v1807_v37 = vld [vmem:[#allocation12 + $0x890] sm:$0xff]  ;;  %v7421_v55 = vpack.c.bf16 %v1866_v56, %v1862_v46 }
 0x46c   :  { %7890 = vmatprep.subr.bf16.mxu1 %v7889_v34  ;;  %v1818_v34 = vld [vmem:[#allocation12 + $0x8e8] sm:$0xff]  ;;  %v7395_v49 = vpack.c.bf16 %v1809_v40, %v1805_v19  ;;  %v7907_v29 = vpack.c.bf16 %v1811_v44, %v1807_v37  ;;  %v1848_v37 = vld [vmem:[#allocation12 + $0x9d8] sm:$0xff]  ;;  %v7411_v44 = vpack.c.bf16 %v1841_v63, %v1837_v5 }
 0x46d   :  { %v7397_v30 = vpack.c.bf16 %v1818_v34, %v1814_v3  ;;  %v1846_v19 = vld [vmem:[#allocation12 + $0x9c8] sm:$0xff] }
 0x46e   :  { %7380 = vmatpush1.bf16.msra.mxu0 %v7379_v43  ;;  %v1817_v43 = vld [vmem:[#allocation12 + $0x8e0] sm:$0xff]  ;;  %v1850_v40 = vld [vmem:[#allocation12 + $0x9e8] sm:$0xff] }
 0x46f   :  { %7892 = vmatpush1.bf16.msra.mxu1 %v7891_v31  ;;  %7382 = vmatprep.subr.bf16.mxu0 %v7381_v52  ;;  %v1815_v31 = vld [vmem:[#allocation12 + $0x8d0] sm:$0xff]  ;;  %v7399_v6 = vpack.c.bf16 %v1817_v43, %v1813_v35  ;;  %v7413_v34 = vpack.c.bf16 %v1850_v40, %v1846_v19  ;;  %v1854_v35 = vld [vmem:[#allocation12 + $0xa08] sm:$0xff] }
 0x470   :  { %7894 = vmatprep.subr.bf16.mxu1 %v7893_v39  ;;  %v1828_v39 = vld [vmem:[#allocation12 + $0x938] sm:$0xff]  ;;  %v1858_v43 = vld [vmem:[#allocation12 + $0xa28] sm:$0xff] }
 0x471   :  { %v7417_v32 = vpack.c.bf16 %v1858_v43, %v1854_v35  ;;  %v1878_v5 = vld [vmem:[#allocation12 + $0xac8] sm:$0xff] }
 0x472   :  { %7384 = vmatpush1.bf16.msra.mxu0 %v7383_v26  ;;  %v1823_v26 = vld [vmem:[#allocation12 + $0x910] sm:$0xff]  ;;  %v1882_v63 = vld [vmem:[#allocation12 + $0xae8] sm:$0xff] }
 0x473   :  { %7896 = vmatpush1.bf16.msra.mxu1 %v7895_v42  ;;  %7386 = vmatprep.subr.bf16.mxu0 %v7385_v2  ;;  %v7913_v42 = vpack.c.bf16 %v1828_v39, %v1824_v36  ;;  %v1827_v2 = vld [vmem:[#allocation12 + $0x930] sm:$0xff]  ;;  %v1853_v36 = vld [vmem:[#allocation12 + $0xa00] sm:$0xff]  ;;  %v7429_v40 = vpack.c.bf16 %v1882_v63, %v1878_v5 }
 0x474   :  { %7898 = vmatprep.subr.bf16.mxu1 %v7897_v11  ;;  %v1832_v11 = vld [vmem:[#allocation12 + $0x958] sm:$0xff]  ;;  %v7915_v27 = vpack.c.bf16 %v1827_v2, %v1823_v26  ;;  %v1857_v39 = vld [vmem:[#allocation12 + $0xa20] sm:$0xff] }
 0x475   :  { %4853 = vmatmul.mubr.f32.vlgmr.msra.gmra.mrb[16].mxu0 %v9026_v0  ;;  %v1864_v26 = vld [vmem:[#allocation12 + $0xa58] sm:$0xff]  ;;  %v7419_v2 = vpack.c.bf16 %v1857_v39, %v1853_v36  ;;  %v1894_v36 = vld [vmem:[#allocation12 + $0xb48] sm:$0xff] }
 0x476   :  { %5421 = vmatmul.mubr.f32.vlgmr.msra.gmra.mrb[16].mxu1 %v9026_v0  ;;  %7388 = vmatpush1.bf16.msra.mxu0 %v7387_v54  ;;  %v1820_v0 = vld [vmem:[#allocation12 + $0x8f8] sm:$0xff]  ;;  %v1829_v54 = vld [vmem:[#allocation12 + $0x940] sm:$0xff]  ;;  %v1898_v39 = vld [vmem:[#allocation12 + $0xb68] sm:$0xff] }
 0x477   :  { %4923 = vmatprep.mubr.f32.mxu0 %v9064_v51  ;;  %7900 = vmatpush1.bf16.msra.mxu1 %v7899_v53  ;;  %v7909_v52 = vpack.c.bf16 %v1820_v0, %v1816_v28  ;;  %v7917_v53 = vpack.c.bf16 %v1836_v57, %v1832_v11  ;;  %v7407_v22 = vpack.c.bf16 %v1833_v59, %v1829_v54  ;;  %v1845_v28 = vld [vmem:[#allocation12 + $0x9c0] sm:$0xff]  ;;  %v1870_v54 = vld [vmem:[#allocation12 + $0xa88] sm:$0xff] }
 0x478   :  { %5491 = vmatprep.mubr.f32.mxu1 %v9064_v51  ;;  %7390 = vmatprep.subr.bf16.mxu0 %v7389_v16  ;;  %v1819_v51 = vld [vmem:[#allocation12 + $0x8f0] sm:$0xff]  ;;  %v1840_v16 = vld [vmem:[#allocation12 + $0x998] sm:$0xff]  ;;  %v1849_v0 = vld [vmem:[#allocation12 + $0x9e0] sm:$0xff]  ;;  %v7437_v56 = vpack.c.bf16 %v1898_v39, %v1894_v36 }
 0x479   :  { %7902 = vmatprep.subr.bf16.mxu1 %v7901_v8  ;;  %v7911_v48 = vpack.c.bf16 %v1819_v51, %v1815_v31  ;;  %v7409_v8 = vpack.c.bf16 %v1842_v20, %v1838_v58  ;;  %v1856_v31 = vld [vmem:[#allocation12 + $0xa18] sm:$0xff]  ;;  %v7415_v51 = vpack.c.bf16 %v1849_v0, %v1845_v28  ;;  %v1861_v11 = vld [vmem:[#allocation12 + $0xa40] sm:$0xff]  ;;  %v1874_v59 = vld [vmem:[#allocation12 + $0xaa8] sm:$0xff] }
 0x47a   :  { %7392 = vmatpush1.bf16.msra.mxu0 %v7391_v50  ;;  %v1839_v50 = vld [vmem:[#allocation12 + $0x990] sm:$0xff]  ;;  %v1865_v57 = vld [vmem:[#allocation12 + $0xa60] sm:$0xff]  ;;  %v7425_v20 = vpack.c.bf16 %v1874_v59, %v1870_v54  ;;  %v1886_v28 = vld [vmem:[#allocation12 + $0xb08] sm:$0xff] }
 0x47b   :  { %7904 = vmatpush1.bf16.msra.mxu1 %v7903_v23  ;;  %7394 = vmatprep.subr.bf16.mxu0 %v7393_v14  ;;  %v7921_v23 = vpack.c.bf16 %v1844_v17, %v1840_v16  ;;  %v1843_v14 = vld [vmem:[#allocation12 + $0x9b0] sm:$0xff]  ;;  %v7423_v13 = vpack.c.bf16 %v1865_v57, %v1861_v11  ;;  %v1869_v16 = vld [vmem:[#allocation12 + $0xa80] sm:$0xff]  ;;  %v1890_v0 = vld [vmem:[#allocation12 + $0xb28] sm:$0xff] }
 0x47c   :  { %7906 = vmatprep.subr.bf16.mxu1 %v7905_v38  ;;  %v1852_v38 = vld [vmem:[#allocation12 + $0x9f8] sm:$0xff]  ;;  %v7923_v3 = vpack.c.bf16 %v1843_v14, %v1839_v50  ;;  %v1873_v17 = vld [vmem:[#allocation12 + $0xaa0] sm:$0xff]  ;;  %v7433_v43 = vpack.c.bf16 %v1890_v0, %v1886_v28  ;;  %v1902_v11 = vld [vmem:[#allocation12 + $0xb88] sm:$0xff] }
 0x47d   :  { %v1880_v50 = vld [vmem:[#allocation12 + $0xad8] sm:$0xff]  ;;  %v7427_v14 = vpack.c.bf16 %v1873_v17, %v1869_v16  ;;  %v1906_v57 = vld [vmem:[#allocation12 + $0xba8] sm:$0xff]  ;;  %v1925_v39 = vld [vmem:[#allocation12 + $0xc40] sm:$0xff] }
 0x47e   :  { %7396 = vmatpush1.bf16.msra.mxu0 %v7395_v49  ;;  %v1847_v49 = vld [vmem:[#allocation12 + $0x9d0] sm:$0xff]  ;;  %v7441_v59 = vpack.c.bf16 %v1906_v57, %v1902_v11  ;;  %v1910_v16 = vld [vmem:[#allocation12 + $0xbc8] sm:$0xff] }
 0x47f   :  { %7908 = vmatpush1.bf16.msra.mxu1 %v7907_v29  ;;  %7398 = vmatprep.subr.bf16.mxu0 %v7397_v30  ;;  %v7925_v29 = vpack.c.bf16 %v1852_v38, %v1848_v37  ;;  %v1851_v30 = vld [vmem:[#allocation12 + $0x9f0] sm:$0xff]  ;;  %v1877_v37 = vld [vmem:[#allocation12 + $0xac0] sm:$0xff]  ;;  %v1914_v17 = vld [vmem:[#allocation12 + $0xbe8] sm:$0xff] }
 0x480   :  { %7910 = vmatprep.subr.bf16.mxu1 %v7909_v52  ;;  %v1860_v52 = vld [vmem:[#allocation12 + $0xa38] sm:$0xff]  ;;  %v7927_v9 = vpack.c.bf16 %v1851_v30, %v1847_v49  ;;  %v1881_v38 = vld [vmem:[#allocation12 + $0xae0] sm:$0xff]  ;;  %v7445_v63 = vpack.c.bf16 %v1914_v17, %v1910_v16 }
 0x481   :  { %v1888_v49 = vld [vmem:[#allocation12 + $0xb18] sm:$0xff]  ;;  %v7431_v30 = vpack.c.bf16 %v1881_v38, %v1877_v37  ;;  %v1918_v37 = vld [vmem:[#allocation12 + $0xc08] sm:$0xff]  ;;  %v1941_v17 = vld [vmem:[#allocation12 + $0xcc0] sm:$0xff] }
 0x482   :  { %7400 = vmatpush1.bf16.msra.mxu0 %v7399_v6  ;;  %v1855_v6 = vld [vmem:[#allocation12 + $0xa10] sm:$0xff]  ;;  %v1922_v38 = vld [vmem:[#allocation12 + $0xc28] sm:$0xff] }
 0x483   :  { %7912 = vmatpush1.bf16.msra.mxu1 %v7911_v48  ;;  %7402 = vmatprep.subr.bf16.mxu0 %v7401_v7  ;;  %v7929_v48 = vpack.c.bf16 %v1860_v52, %v1856_v31  ;;  %v1859_v7 = vld [vmem:[#allocation12 + $0xa30] sm:$0xff]  ;;  %v1885_v31 = vld [vmem:[#allocation12 + $0xb00] sm:$0xff]  ;;  %v7449_v0 = vpack.c.bf16 %v1922_v38, %v1918_v37 }
 0x484   :  { %7914 = vmatprep.subr.bf16.mxu1 %v7913_v42  ;;  %v1868_v42 = vld [vmem:[#allocation12 + $0xa78] sm:$0xff]  ;;  %v7931_v45 = vpack.c.bf16 %v1859_v7, %v1855_v6  ;;  %v1889_v52 = vld [vmem:[#allocation12 + $0xb20] sm:$0xff] }
 0x485   :  { %v1896_v6 = vld [vmem:[#allocation12 + $0xb58] sm:$0xff]  ;;  %v7435_v7 = vpack.c.bf16 %v1889_v52, %v1885_v31  ;;  %v1926_v31 = vld [vmem:[#allocation12 + $0xc48] sm:$0xff]  ;;  %v1949_v37 = vld [vmem:[#allocation12 + $0xd00] sm:$0xff] }
 0x486   :  { %7404 = vmatpush1.bf16.msra.mxu0 %v7403_v33  ;;  %v1863_v33 = vld [vmem:[#allocation12 + $0xa50] sm:$0xff]  ;;  %v1930_v52 = vld [vmem:[#allocation12 + $0xc68] sm:$0xff]  ;;  %v1953_v38 = vld [vmem:[#allocation12 + $0xd20] sm:$0xff] }
 0x487   :  { %7916 = vmatpush1.bf16.msra.mxu1 %v7915_v27  ;;  %7406 = vmatprep.subr.bf16.mxu0 %v7405_v41  ;;  %v7933_v27 = vpack.c.bf16 %v1868_v42, %v1864_v26  ;;  %v1867_v41 = vld [vmem:[#allocation12 + $0xa70] sm:$0xff]  ;;  %v1893_v26 = vld [vmem:[#allocation12 + $0xb40] sm:$0xff] }
 0x488   :  { %7918 = vmatprep.subr.bf16.mxu1 %v7917_v53  ;;  %v1876_v53 = vld [vmem:[#allocation12 + $0xab8] sm:$0xff]  ;;  %v7935_v58 = vpack.c.bf16 %v1867_v41, %v1863_v33  ;;  %v1897_v42 = vld [vmem:[#allocation12 + $0xb60] sm:$0xff] }
 0x489   :  { %v1904_v33 = vld [vmem:[#allocation12 + $0xb98] sm:$0xff]  ;;  %v7439_v41 = vpack.c.bf16 %v1897_v42, %v1893_v26  ;;  %v1938_v26 = vld [vmem:[#allocation12 + $0xca8] sm:$0xff] }
 0x48a   :  { %7408 = vmatpush1.bf16.msra.mxu0 %v7407_v22  ;;  %v1871_v22 = vld [vmem:[#allocation12 + $0xa90] sm:$0xff] }
 0x48b   :  { %7920 = vmatpush1.bf16.msra.mxu1 %v7919_v1  ;;  %7410 = vmatprep.subr.bf16.mxu0 %v7409_v8  ;;  %v7937_v1 = vpack.c.bf16 %v1876_v53, %v1872_v47  ;;  %v1875_v8 = vld [vmem:[#allocation12 + $0xab0] sm:$0xff]  ;;  %v1901_v47 = vld [vmem:[#allocation12 + $0xb80] sm:$0xff] }
 0x48c   :  { %7922 = vmatprep.subr.bf16.mxu1 %v7921_v23  ;;  %v1884_v23 = vld [vmem:[#allocation12 + $0xaf8] sm:$0xff]  ;;  %v7939_v19 = vpack.c.bf16 %v1875_v8, %v1871_v22  ;;  %v1905_v53 = vld [vmem:[#allocation12 + $0xba0] sm:$0xff] }
 0x48d   :  { %v1912_v22 = vld [vmem:[#allocation12 + $0xbd8] sm:$0xff]  ;;  %v7443_v8 = vpack.c.bf16 %v1905_v53, %v1901_v47  ;;  %v1942_v47 = vld [vmem:[#allocation12 + $0xcc8] sm:$0xff] }
 0x48e   :  { %7412 = vmatpush1.bf16.msra.mxu0 %v7411_v44  ;;  %v1879_v44 = vld [vmem:[#allocation12 + $0xad0] sm:$0xff]  ;;  %v1946_v53 = vld [vmem:[#allocation12 + $0xce8] sm:$0xff] }
 0x48f   :  { %7924 = vmatpush1.bf16.msra.mxu1 %v7923_v3  ;;  %7414 = vmatprep.subr.bf16.mxu0 %v7413_v34  ;;  %v7941_v3 = vpack.c.bf16 %v1884_v23, %v1880_v50  ;;  %v1883_v34 = vld [vmem:[#allocation12 + $0xaf0] sm:$0xff]  ;;  %v1909_v50 = vld [vmem:[#allocation12 + $0xbc0] sm:$0xff]  ;;  %v7461_v16 = vpack.c.bf16 %v1946_v53, %v1942_v47 }
 0x490   :  { %7926 = vmatprep.subr.bf16.mxu1 %v7925_v29  ;;  %v1892_v29 = vld [vmem:[#allocation12 + $0xb38] sm:$0xff]  ;;  %v7943_v35 = vpack.c.bf16 %v1883_v34, %v1879_v44  ;;  %v1913_v23 = vld [vmem:[#allocation12 + $0xbe0] sm:$0xff] }
 0x491   :  { %v1920_v44 = vld [vmem:[#allocation12 + $0xc18] sm:$0xff]  ;;  %v7447_v34 = vpack.c.bf16 %v1913_v23, %v1909_v50  ;;  %v1973_v47 = vld [vmem:[#allocation12 + $0xdc0] sm:$0xff] }
 0x492   :  { %7416 = vmatpush1.bf16.msra.mxu0 %v7415_v51  ;;  %v1887_v51 = vld [vmem:[#allocation12 + $0xb10] sm:$0xff]  ;;  %v1952_v50 = vld [vmem:[#allocation12 + $0xd18] sm:$0xff]  ;;  %v1977_v53 = vld [vmem:[#allocation12 + $0xde0] sm:$0xff] }
 0x493   :  { %7928 = vmatpush1.bf16.msra.mxu1 %v7927_v9  ;;  %7418 = vmatprep.subr.bf16.mxu0 %v7417_v32  ;;  %v7945_v9 = vpack.c.bf16 %v1892_v29, %v1888_v49  ;;  %v1891_v32 = vld [vmem:[#allocation12 + $0xb30] sm:$0xff]  ;;  %v1917_v49 = vld [vmem:[#allocation12 + $0xc00] sm:$0xff]  ;;  %v1956_v23 = vld [vmem:[#allocation12 + $0xd38] sm:$0xff] }
 0x494   :  { %7930 = vmatprep.subr.bf16.mxu1 %v7929_v48  ;;  %v1900_v48 = vld [vmem:[#allocation12 + $0xb78] sm:$0xff]  ;;  %v7947_v46 = vpack.c.bf16 %v1891_v32, %v1887_v51  ;;  %v1921_v29 = vld [vmem:[#allocation12 + $0xc20] sm:$0xff] }
 0x495   :  { %v7451_v51 = vpack.c.bf16 %v1921_v29, %v1917_v49  ;;  %v1932_v32 = vld [vmem:[#allocation12 + $0xc78] sm:$0xff] }
 0x496   :  { %7420 = vmatpush1.bf16.msra.mxu0 %v7419_v2  ;;  %v1895_v2 = vld [vmem:[#allocation12 + $0xb50] sm:$0xff]  ;;  %v1960_v49 = vld [vmem:[#allocation12 + $0xd58] sm:$0xff] }
 0x497   :  { %7932 = vmatpush1.bf16.msra.mxu1 %v7931_v45  ;;  %7422 = vmatprep.subr.bf16.mxu0 %v7421_v55  ;;  %v7949_v45 = vpack.c.bf16 %v1900_v48, %v1896_v6  ;;  %v1899_v55 = vld [vmem:[#allocation12 + $0xb70] sm:$0xff]  ;;  %v1929_v6 = vld [vmem:[#allocation12 + $0xc60] sm:$0xff]  ;;  %v1964_v29 = vld [vmem:[#allocation12 + $0xd78] sm:$0xff] }
 0x498   :  { %7934 = vmatprep.subr.bf16.mxu1 %v7933_v27  ;;  %v1908_v27 = vld [vmem:[#allocation12 + $0xbb8] sm:$0xff]  ;;  %v7951_v54 = vpack.c.bf16 %v1899_v55, %v1895_v2  ;;  %v1927_v48 = vld [vmem:[#allocation12 + $0xc50] sm:$0xff]  ;;  %v7455_v55 = vpack.c.bf16 %v1929_v6, %v1925_v39  ;;  %v1970_v39 = vld [vmem:[#allocation12 + $0xda8] sm:$0xff] }
 0x499   :  { %v1936_v2 = vld [vmem:[#allocation12 + $0xc98] sm:$0xff] }
 0x49a   :  { %7424 = vmatpush1.bf16.msra.mxu0 %v7423_v13  ;;  %v1903_v13 = vld [vmem:[#allocation12 + $0xb90] sm:$0xff]  ;;  %v1968_v6 = vld [vmem:[#allocation12 + $0xd98] sm:$0xff] }
 0x49b   :  { %7936 = vmatpush1.bf16.msra.mxu1 %v7935_v58  ;;  %7426 = vmatprep.subr.bf16.mxu0 %v7425_v20  ;;  %v7953_v58 = vpack.c.bf16 %v1908_v27, %v1904_v33  ;;  %v1907_v20 = vld [vmem:[#allocation12 + $0xbb0] sm:$0xff]  ;;  %v1933_v33 = vld [vmem:[#allocation12 + $0xc80] sm:$0xff] }
 0x49c   :  { %7938 = vmatprep.subr.bf16.mxu1 %v7937_v1  ;;  %v1916_v1 = vld [vmem:[#allocation12 + $0xbf8] sm:$0xff]  ;;  %v7955_v5 = vpack.c.bf16 %v1907_v20, %v1903_v13  ;;  %v1937_v27 = vld [vmem:[#allocation12 + $0xca0] sm:$0xff] }
 0x49d   :  { %v1944_v13 = vld [vmem:[#allocation12 + $0xcd8] sm:$0xff] }
 0x49e   :  { %7428 = vmatpush1.bf16.msra.mxu0 %v7427_v14  ;;  %v1911_v14 = vld [vmem:[#allocation12 + $0xbd0] sm:$0xff] }
 0x49f   :  { %7940 = vmatpush1.bf16.msra.mxu1 %v7939_v19  ;;  %7430 = vmatprep.subr.bf16.mxu0 %v7429_v40  ;;  %v7957_v19 = vpack.c.bf16 %v1916_v1, %v1912_v22  ;;  %v1915_v40 = vld [vmem:[#allocation12 + $0xbf0] sm:$0xff]  ;;  %v1945_v22 = vld [vmem:[#allocation12 + $0xce0] sm:$0xff] }
 0x4a0   :  { %7942 = vmatprep.subr.bf16.mxu1 %v7941_v3  ;;  %v1924_v3 = vld [vmem:[#allocation12 + $0xc38] sm:$0xff]  ;;  %v7959_v28 = vpack.c.bf16 %v1915_v40, %v1911_v14  ;;  %v1943_v1 = vld [vmem:[#allocation12 + $0xcd0] sm:$0xff]  ;;  %v7463_v14 = vpack.c.bf16 %v1945_v22, %v1941_v17 }
 0x4a1   :  { %v1984_v17 = vld [vmem:[#allocation12 + $0xe18] sm:$0xff] }
 0x4a2   :  { %7432 = vmatpush1.bf16.msra.mxu0 %v7431_v30  ;;  %v7961_v30 = vpack.c.bf16 %v1924_v3, %v1920_v44  ;;  %v1951_v44 = vld [vmem:[#allocation12 + $0xd10] sm:$0xff]  ;;  %v7977_v3 = vpack.c.bf16 %v1956_v23, %v1952_v50  ;;  %v1988_v22 = vld [vmem:[#allocation12 + $0xe38] sm:$0xff] }
 0x4a3   :  { %7944 = vmatpush1.bf16.msra.mxu1 %v7943_v35  ;;  %7434 = vmatprep.subr.bf16.mxu0 %v7433_v43  ;;  %v1919_v35 = vld [vmem:[#allocation12 + $0xc10] sm:$0xff]  ;;  %v7993_v23 = vpack.c.bf16 %v1988_v22, %v1984_v17 }
 0x4a4   :  { %7946 = vmatprep.subr.bf16.mxu1 %v7945_v9  ;;  %v1923_v43 = vld [vmem:[#allocation12 + $0xc30] sm:$0xff]  ;;  %v1928_v9 = vld [vmem:[#allocation12 + $0xc58] sm:$0xff] }
 0x4a5   :  { %v7963_v36 = vpack.c.bf16 %v1923_v43, %v1919_v35  ;;  %v7965_v42 = vpack.c.bf16 %v1932_v32, %v1928_v9  ;;  %v7981_v9 = vpack.c.bf16 %v1964_v29, %v1960_v49  ;;  %v1963_v32 = vld [vmem:[#allocation12 + $0xd70] sm:$0xff] }
 0x4a6   :  { %7436 = vmatpush1.bf16.msra.mxu0 %v7435_v7  ;;  %v7453_v7 = vpack.c.bf16 %v1930_v52, %v1926_v31  ;;  %v1957_v31 = vld [vmem:[#allocation12 + $0xd40] sm:$0xff]  ;;  %v1983_v50 = vld [vmem:[#allocation12 + $0xe10] sm:$0xff] }
 0x4a7   :  { %7948 = vmatpush1.bf16.msra.mxu1 %v7947_v46  ;;  %7438 = vmatprep.subr.bf16.mxu0 %v7437_v56  ;;  %v1931_v46 = vld [vmem:[#allocation12 + $0xc70] sm:$0xff]  ;;  %v1934_v56 = vld [vmem:[#allocation12 + $0xc88] sm:$0xff]  ;;  %v1961_v52 = vld [vmem:[#allocation12 + $0xd60] sm:$0xff] }
 0x4a8   :  { %7950 = vmatprep.subr.bf16.mxu1 %v7949_v45  ;;  %v1940_v45 = vld [vmem:[#allocation12 + $0xcb8] sm:$0xff]  ;;  %v7967_v11 = vpack.c.bf16 %v1931_v46, %v1927_v48  ;;  %v7457_v57 = vpack.c.bf16 %v1938_v26, %v1934_v56  ;;  %v1965_v26 = vld [vmem:[#allocation12 + $0xd80] sm:$0xff]  ;;  %v1991_v49 = vld [vmem:[#allocation12 + $0xe50] sm:$0xff] }
 0x4a9   :  { %v1972_v48 = vld [vmem:[#allocation12 + $0xdb8] sm:$0xff]  ;;  %v2015_v17 = vld [vmem:[#allocation12 + $0xf10] sm:$0xff] }
 0x4aa   :  { %7440 = vmatpush1.bf16.msra.mxu0 %v7439_v41  ;;  %v1935_v41 = vld [vmem:[#allocation12 + $0xc90] sm:$0xff] }
 0x4ab   :  { %7952 = vmatpush1.bf16.msra.mxu1 %v7951_v54  ;;  %7442 = vmatprep.subr.bf16.mxu0 %v7441_v59  ;;  %v7969_v54 = vpack.c.bf16 %v1940_v45, %v1936_v2  ;;  %v1939_v59 = vld [vmem:[#allocation12 + $0xcb0] sm:$0xff]  ;;  %v7985_v45 = vpack.c.bf16 %v1972_v48, %v1968_v6 }
 0x4ac   :  { %7954 = vmatprep.subr.bf16.mxu1 %v7953_v58  ;;  %v7459_v58 = vpack.c.bf16 %v1937_v27, %v1933_v33  ;;  %v7971_v20 = vpack.c.bf16 %v1939_v59, %v1935_v41  ;;  %v1967_v2 = vld [vmem:[#allocation12 + $0xd90] sm:$0xff]  ;;  %v1976_v33 = vld [vmem:[#allocation12 + $0xdd8] sm:$0xff] }
 0x4ad   :  { %v1980_v27 = vld [vmem:[#allocation12 + $0xdf8] sm:$0xff]  ;;  %v1999_v6 = vld [vmem:[#allocation12 + $0xe90] sm:$0xff] }
 0x4ae   :  { %7444 = vmatpush1.bf16.msra.mxu0 %v7443_v8 }
 0x4af   :  { %7956 = vmatpush1.bf16.msra.mxu1 %v7955_v5  ;;  %7446 = vmatprep.subr.bf16.mxu0 %v7445_v63  ;;  %v1950_v5 = vld [vmem:[#allocation12 + $0xd08] sm:$0xff] }
 0x4b0   :  { %7958 = vmatprep.subr.bf16.mxu1 %v7957_v19  ;;  %v1954_v63 = vld [vmem:[#allocation12 + $0xd28] sm:$0xff] }
 0x4b1   :  { %v7465_v40 = vpack.c.bf16 %v1954_v63, %v1950_v5  ;;  %v1981_v5 = vld [vmem:[#allocation12 + $0xe00] sm:$0xff] }
 0x4b2   :  { %7448 = vmatpush1.bf16.msra.mxu0 %v7447_v34  ;;  %v1955_v34 = vld [vmem:[#allocation12 + $0xd30] sm:$0xff]  ;;  %v1985_v63 = vld [vmem:[#allocation12 + $0xe20] sm:$0xff] }
 0x4b3   :  { %7960 = vmatpush1.bf16.msra.mxu1 %v7959_v28  ;;  %7450 = vmatprep.subr.bf16.mxu0 %v7449_v0  ;;  %v1958_v28 = vld [vmem:[#allocation12 + $0xd48] sm:$0xff]  ;;  %v7979_v35 = vpack.c.bf16 %v1955_v34, %v1951_v44  ;;  %v7483_v44 = vpack.c.bf16 %v1985_v63, %v1981_v5  ;;  %v2024_v5 = vld [vmem:[#allocation12 + $0xf58] sm:$0xff] }
 0x4b4   :  { %7962 = vmatprep.subr.bf16.mxu1 %v7961_v30  ;;  %v1962_v0 = vld [vmem:[#allocation12 + $0xd68] sm:$0xff]  ;;  %v7467_v30 = vpack.c.bf16 %v1953_v38, %v1949_v37  ;;  %v1992_v37 = vld [vmem:[#allocation12 + $0xe58] sm:$0xff] }
 0x4b5   :  { %4924 = vmatmul.mubr.f32.vlgmr.msra.gmra.mrb[16].mxu0 %v9050_v61  ;;  %v7469_v43 = vpack.c.bf16 %v1962_v0, %v1958_v28  ;;  %v1996_v38 = vld [vmem:[#allocation12 + $0xe78] sm:$0xff]  ;;  %v1989_v28 = vld [vmem:[#allocation12 + $0xe40] sm:$0xff] }
 0x4b6   :  { %5492 = vmatmul.mubr.f32.vlgmr.msra.gmra.mrb[16].mxu1 %v9050_v61  ;;  %7452 = vmatpush1.bf16.msra.mxu0 %v7451_v51  ;;  %v1948_v61 = vld [vmem:[#allocation12 + $0xcf8] sm:$0xff]  ;;  %v1959_v51 = vld [vmem:[#allocation12 + $0xd50] sm:$0xff]  ;;  %v1993_v0 = vld [vmem:[#allocation12 + $0xe60] sm:$0xff]  ;;  %v7997_v29 = vpack.c.bf16 %v1996_v38, %v1992_v37 }
 0x4b7   :  { %4994 = vmatprep.mubr.f32.mxu0 %v9067_v4  ;;  %7964 = vmatpush1.bf16.msra.mxu1 %v7963_v36  ;;  %v7973_v8 = vpack.c.bf16 %v1948_v61, %v1944_v13  ;;  %v1966_v36 = vld [vmem:[#allocation12 + $0xd88] sm:$0xff]  ;;  %v7983_v46 = vpack.c.bf16 %v1963_v32, %v1959_v51  ;;  %v1975_v13 = vld [vmem:[#allocation12 + $0xdd0] sm:$0xff]  ;;  %v7989_v61 = vpack.c.bf16 %v1980_v27, %v1976_v33  ;;  %v2028_v63 = vld [vmem:[#allocation12 + $0xf78] sm:$0xff] }
 0x4b8   :  { %5562 = vmatprep.mubr.f32.mxu1 %v9067_v4  ;;  %7454 = vmatprep.subr.bf16.mxu0 %v7453_v7  ;;  %v1947_v4 = vld [vmem:[#allocation12 + $0xcf0] sm:$0xff]  ;;  %v7471_v7 = vpack.c.bf16 %v1961_v52, %v1957_v31  ;;  %v7473_v56 = vpack.c.bf16 %v1970_v39, %v1966_v36  ;;  %v2000_v31 = vld [vmem:[#allocation12 + $0xe98] sm:$0xff]  ;;  %v7487_v51 = vpack.c.bf16 %v1993_v0, %v1989_v28  ;;  %v1997_v36 = vld [vmem:[#allocation12 + $0xe80] sm:$0xff] }
 0x4b9   :  { %7966 = vmatprep.subr.bf16.mxu1 %v7965_v42  ;;  %v7975_v19 = vpack.c.bf16 %v1947_v4, %v1943_v1  ;;  %v1969_v42 = vld [vmem:[#allocation12 + $0xda0] sm:$0xff]  ;;  %v7479_v1 = vpack.c.bf16 %v1977_v53, %v1973_v47  ;;  %v2004_v52 = vld [vmem:[#allocation12 + $0xeb8] sm:$0xff]  ;;  %v2007_v33 = vld [vmem:[#allocation12 + $0xed0] sm:$0xff]  ;;  %v8013_v38 = vpack.c.bf16 %v2028_v63, %v2024_v5 }
 0x4ba   :  { %7456 = vmatpush1.bf16.msra.mxu0 %v7455_v55  ;;  %v1971_v55 = vld [vmem:[#allocation12 + $0xdb0] sm:$0xff]  ;;  %v7475_v41 = vpack.c.bf16 %v1969_v42, %v1965_v26  ;;  %v2001_v39 = vld [vmem:[#allocation12 + $0xea0] sm:$0xff]  ;;  %v8001_v48 = vpack.c.bf16 %v2004_v52, %v2000_v31  ;;  %v2008_v26 = vld [vmem:[#allocation12 + $0xed8] sm:$0xff] }
 0x4bb   :  { %7968 = vmatpush1.bf16.msra.mxu1 %v7967_v11  ;;  %7458 = vmatprep.subr.bf16.mxu0 %v7457_v57  ;;  %v1974_v11 = vld [vmem:[#allocation12 + $0xdc8] sm:$0xff]  ;;  %v2012_v42 = vld [vmem:[#allocation12 + $0xef8] sm:$0xff]  ;;  %v2023_v37 = vld [vmem:[#allocation12 + $0xf50] sm:$0xff] }
 0x4bc   :  { %7970 = vmatprep.subr.bf16.mxu1 %v7969_v54  ;;  %v1978_v57 = vld [vmem:[#allocation12 + $0xde8] sm:$0xff]  ;;  %v7987_v54 = vpack.c.bf16 %v1971_v55, %v1967_v2  ;;  %v7491_v2 = vpack.c.bf16 %v2001_v39, %v1997_v36  ;;  %v8005_v27 = vpack.c.bf16 %v2012_v42, %v2008_v26  ;;  %v2016_v47 = vld [vmem:[#allocation12 + $0xf18] sm:$0xff]  ;;  %v2031_v31 = vld [vmem:[#allocation12 + $0xf90] sm:$0xff] }
 0x4bd   :  { %v7477_v59 = vpack.c.bf16 %v1978_v57, %v1974_v11  ;;  %v2005_v11 = vld [vmem:[#allocation12 + $0xec0] sm:$0xff]  ;;  %v2020_v53 = vld [vmem:[#allocation12 + $0xf38] sm:$0xff]  ;;  %v2039_v26 = vld [vmem:[#allocation12 + $0xfd0] sm:$0xff] }
 0x4be   :  { %7460 = vmatpush1.bf16.msra.mxu0 %v7459_v58  ;;  %v1979_v58 = vld [vmem:[#allocation12 + $0xdf0] sm:$0xff]  ;;  %v2009_v57 = vld [vmem:[#allocation12 + $0xee0] sm:$0xff]  ;;  %v8009_v22 = vpack.c.bf16 %v2020_v53, %v2016_v47  ;;  %v2032_v28 = vld [vmem:[#allocation12 + $0xf98] sm:$0xff] }
 0x4bf   :  { %7972 = vmatpush1.bf16.msra.mxu1 %v7971_v20  ;;  %7462 = vmatprep.subr.bf16.mxu0 %v7461_v16  ;;  %v1982_v20 = vld [vmem:[#allocation12 + $0xe08] sm:$0xff]  ;;  %v2036_v0 = vld [vmem:[#allocation12 + $0xfb8] sm:$0xff]  ;;  %v2047_v53 = vld [vmem:[#allocation12 + $0x1010] sm:$0xff] }
 0x4c0   :  { %7974 = vmatprep.subr.bf16.mxu1 %v7973_v8  ;;  %v1986_v16 = vld [vmem:[#allocation12 + $0xe28] sm:$0xff]  ;;  %v7991_v8 = vpack.c.bf16 %v1979_v58, %v1975_v13  ;;  %v7495_v13 = vpack.c.bf16 %v2009_v57, %v2005_v11  ;;  %v8017_v52 = vpack.c.bf16 %v2036_v0, %v2032_v28  ;;  %v2040_v36 = vld [vmem:[#allocation12 + $0xfd8] sm:$0xff]  ;;  %v2059_v63 = vld [vmem:[#allocation12 + $0x1070] sm:$0xff] }
 0x4c1   :  { %v7481_v4 = vpack.c.bf16 %v1986_v16, %v1982_v20  ;;  %v2013_v20 = vld [vmem:[#allocation12 + $0xf00] sm:$0xff]  ;;  %v2044_v39 = vld [vmem:[#allocation12 + $0xff8] sm:$0xff]  ;;  %v2063_v28 = vld [vmem:[#allocation12 + $0x1090] sm:$0xff] }
 0x4c2   :  { %7464 = vmatpush1.bf16.msra.mxu0 %v7463_v14  ;;  %v1987_v14 = vld [vmem:[#allocation12 + $0xe30] sm:$0xff]  ;;  %v2017_v16 = vld [vmem:[#allocation12 + $0xf20] sm:$0xff]  ;;  %v8021_v42 = vpack.c.bf16 %v2044_v39, %v2040_v36  ;;  %v2048_v11 = vld [vmem:[#allocation12 + $0x1018] sm:$0xff] }
 0x4c3   :  { %7976 = vmatpush1.bf16.msra.mxu1 %v7975_v19  ;;  %7466 = vmatprep.subr.bf16.mxu0 %v7465_v40  ;;  %v1990_v19 = vld [vmem:[#allocation12 + $0xe48] sm:$0xff]  ;;  %v2052_v57 = vld [vmem:[#allocation12 + $0x1038] sm:$0xff] }
 0x4c4   :  { %7978 = vmatprep.subr.bf16.mxu1 %v7977_v3  ;;  %v1994_v40 = vld [vmem:[#allocation12 + $0xe68] sm:$0xff]  ;;  %v7995_v3 = vpack.c.bf16 %v1987_v14, %v1983_v50  ;;  %v7499_v50 = vpack.c.bf16 %v2017_v16, %v2013_v20  ;;  %v8025_v47 = vpack.c.bf16 %v2052_v57, %v2048_v11  ;;  %v2056_v16 = vld [vmem:[#allocation12 + $0x1058] sm:$0xff]  ;;  %v2083_v11 = vld [vmem:[#allocation12 + $0x1130] sm:$0xff] }
 0x4c5   :  { %v7485_v34 = vpack.c.bf16 %v1994_v40, %v1990_v19  ;;  %v2021_v19 = vld [vmem:[#allocation12 + $0xf40] sm:$0xff]  ;;  %v2078_v39 = vld [vmem:[#allocation12 + $0x1108] sm:$0xff] }
 0x4c6   :  { %7468 = vmatpush1.bf16.msra.mxu0 %v7467_v30  ;;  %v1995_v30 = vld [vmem:[#allocation12 + $0xe70] sm:$0xff]  ;;  %v2025_v40 = vld [vmem:[#allocation12 + $0xf60] sm:$0xff]  ;;  %v2086_v57 = vld [vmem:[#allocation12 + $0x1148] sm:$0xff] }
 0x4c7   :  { %7980 = vmatpush1.bf16.msra.mxu1 %v7979_v35  ;;  %7470 = vmatprep.subr.bf16.mxu0 %v7469_v43  ;;  %v1998_v35 = vld [vmem:[#allocation12 + $0xe88] sm:$0xff] }
 0x4c8   :  { %7982 = vmatprep.subr.bf16.mxu1 %v7981_v9  ;;  %v2002_v43 = vld [vmem:[#allocation12 + $0xea8] sm:$0xff]  ;;  %v7999_v9 = vpack.c.bf16 %v1995_v30, %v1991_v49  ;;  %v7503_v49 = vpack.c.bf16 %v2025_v40, %v2021_v19  ;;  %v2064_v19 = vld [vmem:[#allocation12 + $0x1098] sm:$0xff] }
 0x4c9   :  { %v7489_v32 = vpack.c.bf16 %v2002_v43, %v1998_v35  ;;  %v2029_v35 = vld [vmem:[#allocation12 + $0xf80] sm:$0xff]  ;;  %v2068_v40 = vld [vmem:[#allocation12 + $0x10b8] sm:$0xff] }
 0x4ca   :  { %7472 = vmatpush1.bf16.msra.mxu0 %v7471_v7  ;;  %v2003_v7 = vld [vmem:[#allocation12 + $0xeb0] sm:$0xff]  ;;  %v2033_v43 = vld [vmem:[#allocation12 + $0xfa0] sm:$0xff]  ;;  %v8033_v0 = vpack.c.bf16 %v2068_v40, %v2064_v19  ;;  %v2102_v40 = vld [vmem:[#allocation12 + $0x11c8] sm:$0xff] }
 0x4cb   :  { %7984 = vmatpush1.bf16.msra.mxu1 %v7983_v46  ;;  %7474 = vmatprep.subr.bf16.mxu0 %v7473_v56  ;;  %v2006_v46 = vld [vmem:[#allocation12 + $0xec8] sm:$0xff]  ;;  %v2099_v19 = vld [vmem:[#allocation12 + $0x11b0] sm:$0xff] }
 0x4cc   :  { %7986 = vmatprep.subr.bf16.mxu1 %v7985_v45  ;;  %v2010_v56 = vld [vmem:[#allocation12 + $0xee8] sm:$0xff]  ;;  %v8003_v45 = vpack.c.bf16 %v2003_v7, %v1999_v6  ;;  %v7507_v6 = vpack.c.bf16 %v2033_v43, %v2029_v35  ;;  %v2072_v35 = vld [vmem:[#allocation12 + $0x10d8] sm:$0xff] }
 0x4cd   :  { %v7493_v55 = vpack.c.bf16 %v2010_v56, %v2006_v46  ;;  %v2037_v46 = vld [vmem:[#allocation12 + $0xfc0] sm:$0xff] }
 0x4ce   :  { %7476 = vmatpush1.bf16.msra.mxu0 %v7475_v41  ;;  %v2011_v41 = vld [vmem:[#allocation12 + $0xef0] sm:$0xff]  ;;  %v2041_v56 = vld [vmem:[#allocation12 + $0xfe0] sm:$0xff] }
 0x4cf   :  { %7988 = vmatpush1.bf16.msra.mxu1 %v7987_v54  ;;  %7478 = vmatprep.subr.bf16.mxu0 %v7477_v59  ;;  %v2014_v54 = vld [vmem:[#allocation12 + $0xf08] sm:$0xff] }
 0x4d0   :  { %7990 = vmatprep.subr.bf16.mxu1 %v7989_v61  ;;  %v2018_v59 = vld [vmem:[#allocation12 + $0xf28] sm:$0xff]  ;;  %v8007_v61 = vpack.c.bf16 %v2011_v41, %v2007_v33  ;;  %v7511_v33 = vpack.c.bf16 %v2041_v56, %v2037_v46 }
 0x4d1   :  { %v7497_v58 = vpack.c.bf16 %v2018_v59, %v2014_v54  ;;  %v2045_v54 = vld [vmem:[#allocation12 + $0x1000] sm:$0xff] }
 0x4d2   :  { %7480 = vmatpush1.bf16.msra.mxu0 %v7479_v1  ;;  %v2019_v1 = vld [vmem:[#allocation12 + $0xf30] sm:$0xff]  ;;  %v2049_v59 = vld [vmem:[#allocation12 + $0x1020] sm:$0xff] }
 0x4d3   :  { %7992 = vmatpush1.bf16.msra.mxu1 %v7991_v8  ;;  %7482 = vmatprep.subr.bf16.mxu0 %v7481_v4  ;;  %v2022_v8 = vld [vmem:[#allocation12 + $0xf48] sm:$0xff]  ;;  %v7515_v20 = vpack.c.bf16 %v2049_v59, %v2045_v54 }
 0x4d4   :  { %7994 = vmatprep.subr.bf16.mxu1 %v7993_v23  ;;  %v2026_v4 = vld [vmem:[#allocation12 + $0xf68] sm:$0xff]  ;;  %v8011_v23 = vpack.c.bf16 %v2019_v1, %v2015_v17  ;;  %v2060_v17 = vld [vmem:[#allocation12 + $0x1078] sm:$0xff]  ;;  %v2053_v1 = vld [vmem:[#allocation12 + $0x1040] sm:$0xff] }
 0x4d5   :  { %v7501_v14 = vpack.c.bf16 %v2026_v4, %v2022_v8  ;;  %v2057_v8 = vld [vmem:[#allocation12 + $0x1060] sm:$0xff]  ;;  %v2055_v4 = vld [vmem:[#allocation12 + $0x1050] sm:$0xff] }
 0x4d6   :  { %7484 = vmatpush1.bf16.msra.mxu0 %v7483_v44  ;;  %v2027_v44 = vld [vmem:[#allocation12 + $0xf70] sm:$0xff] }
 0x4d7   :  { %7996 = vmatpush1.bf16.msra.mxu1 %v7995_v3  ;;  %7486 = vmatprep.subr.bf16.mxu0 %v7485_v34  ;;  %v2030_v3 = vld [vmem:[#allocation12 + $0xf88] sm:$0xff] }
 0x4d8   :  { %7998 = vmatprep.subr.bf16.mxu1 %v7997_v29  ;;  %v2034_v34 = vld [vmem:[#allocation12 + $0xfa8] sm:$0xff]  ;;  %v8015_v29 = vpack.c.bf16 %v2027_v44, %v2023_v37  ;;  %v7519_v37 = vpack.c.bf16 %v2057_v8, %v2053_v1  ;;  %v2100_v1 = vld [vmem:[#allocation12 + $0x11b8] sm:$0xff] }
 0x4d9   :  { %v7505_v30 = vpack.c.bf16 %v2034_v34, %v2030_v3  ;;  %v2061_v3 = vld [vmem:[#allocation12 + $0x1080] sm:$0xff] }
 0x4da   :  { %7488 = vmatpush1.bf16.msra.mxu0 %v7487_v51  ;;  %v2035_v51 = vld [vmem:[#allocation12 + $0xfb0] sm:$0xff]  ;;  %v2065_v34 = vld [vmem:[#allocation12 + $0x10a0] sm:$0xff] }
 0x4db   :  { %8000 = vmatpush1.bf16.msra.mxu1 %v7999_v9  ;;  %7490 = vmatprep.subr.bf16.mxu0 %v7489_v32  ;;  %v2038_v9 = vld [vmem:[#allocation12 + $0xfc8] sm:$0xff]  ;;  %v7523_v43 = vpack.c.bf16 %v2065_v34, %v2061_v3 }
 0x4dc   :  { %8002 = vmatprep.subr.bf16.mxu1 %v8001_v48  ;;  %v2042_v32 = vld [vmem:[#allocation12 + $0xfe8] sm:$0xff]  ;;  %v8019_v48 = vpack.c.bf16 %v2035_v51, %v2031_v31  ;;  %v2069_v51 = vld [vmem:[#allocation12 + $0x10c0] sm:$0xff] }
 0x4dd   :  { %v7509_v7 = vpack.c.bf16 %v2042_v32, %v2038_v9  ;;  %v2073_v9 = vld [vmem:[#allocation12 + $0x10e0] sm:$0xff]  ;;  %v2071_v32 = vld [vmem:[#allocation12 + $0x10d0] sm:$0xff] }
 0x4de   :  { %7492 = vmatpush1.bf16.msra.mxu0 %v7491_v2  ;;  %v2043_v2 = vld [vmem:[#allocation12 + $0xff0] sm:$0xff]  ;;  %v7527_v46 = vpack.c.bf16 %v2073_v9, %v2069_v51 }
 0x4df   :  { %8004 = vmatpush1.bf16.msra.mxu1 %v8003_v45  ;;  %7494 = vmatprep.subr.bf16.mxu0 %v7493_v55  ;;  %v2046_v45 = vld [vmem:[#allocation12 + $0x1008] sm:$0xff] }
 0x4e0   :  { %8006 = vmatprep.subr.bf16.mxu1 %v8005_v27  ;;  %v2050_v55 = vld [vmem:[#allocation12 + $0x1028] sm:$0xff]  ;;  %v8023_v27 = vpack.c.bf16 %v2043_v2, %v2039_v26  ;;  %v2081_v2 = vld [vmem:[#allocation12 + $0x1120] sm:$0xff] }
 0x4e1   :  { %v7513_v41 = vpack.c.bf16 %v2050_v55, %v2046_v45  ;;  %v2079_v45 = vld [vmem:[#allocation12 + $0x1110] sm:$0xff] }
 0x4e2   :  { %7496 = vmatpush1.bf16.msra.mxu0 %v7495_v13  ;;  %v2051_v13 = vld [vmem:[#allocation12 + $0x1030] sm:$0xff]  ;;  %v8043_v59 = vpack.c.bf16 %v2083_v11, %v2079_v45  ;;  %v2121_v11 = vld [vmem:[#allocation12 + $0x1260] sm:$0xff] }
 0x4e3   :  { %8008 = vmatpush1.bf16.msra.mxu1 %v8007_v61  ;;  %7498 = vmatprep.subr.bf16.mxu0 %v7497_v58  ;;  %v2054_v61 = vld [vmem:[#allocation12 + $0x1048] sm:$0xff] }
 0x4e4   :  { %8010 = vmatprep.subr.bf16.mxu1 %v8009_v22  ;;  %v2058_v58 = vld [vmem:[#allocation12 + $0x1068] sm:$0xff]  ;;  %v8027_v22 = vpack.c.bf16 %v2051_v13, %v2047_v53  ;;  %v2085_v53 = vld [vmem:[#allocation12 + $0x1140] sm:$0xff] }
 0x4e5   :  { %v7517_v5 = vpack.c.bf16 %v2058_v58, %v2054_v61  ;;  %v2089_v13 = vld [vmem:[#allocation12 + $0x1160] sm:$0xff]  ;;  %v2087_v61 = vld [vmem:[#allocation12 + $0x1150] sm:$0xff] }
 0x4e6   :  { %7500 = vmatpush1.bf16.msra.mxu0 %v7499_v50  ;;  %v2062_v50 = vld [vmem:[#allocation12 + $0x1088] sm:$0xff]  ;;  %v7535_v8 = vpack.c.bf16 %v2089_v13, %v2085_v53 }
 0x4e7   :  { %8012 = vmatpush1.bf16.msra.mxu1 %v8011_v23  ;;  %7502 = vmatprep.subr.bf16.mxu0 %v7501_v14  ;;  %v2066_v23 = vld [vmem:[#allocation12 + $0x10a8] sm:$0xff]  ;;  %v8029_v14 = vpack.c.bf16 %v2060_v17, %v2056_v16 }
 0x4e8   :  { %8014 = vmatprep.subr.bf16.mxu1 %v8013_v38  ;;  %v8031_v38 = vpack.c.bf16 %v2059_v63, %v2055_v4  ;;  %v7521_v44 = vpack.c.bf16 %v2066_v23, %v2062_v50  ;;  %v2094_v16 = vld [vmem:[#allocation12 + $0x1188] sm:$0xff]  ;;  %v2093_v63 = vld [vmem:[#allocation12 + $0x1180] sm:$0xff]  ;;  %v2095_v23 = vld [vmem:[#allocation12 + $0x1190] sm:$0xff] }
 0x4e9   :  { %v2098_v17 = vld [vmem:[#allocation12 + $0x11a8] sm:$0xff]  ;;  %v2097_v50 = vld [vmem:[#allocation12 + $0x11a0] sm:$0xff]  ;;  %v8051_v34 = vpack.c.bf16 %v2099_v19, %v2095_v23 }
 0x4ea   :  { %7504 = vmatpush1.bf16.msra.mxu0 %v7503_v49  ;;  %v2067_v49 = vld [vmem:[#allocation12 + $0x10b0] sm:$0xff]  ;;  %v7539_v3 = vpack.c.bf16 %v2097_v50, %v2093_v63  ;;  %v2137_v19 = vld [vmem:[#allocation12 + $0x12e0] sm:$0xff] }
 0x4eb   :  { %8016 = vmatpush1.bf16.msra.mxu1 %v8015_v29  ;;  %7506 = vmatprep.subr.bf16.mxu0 %v7505_v30  ;;  %v2070_v29 = vld [vmem:[#allocation12 + $0x10c8] sm:$0xff]  ;;  %v8035_v31 = vpack.c.bf16 %v2067_v49, %v2063_v28  ;;  %v2105_v49 = vld [vmem:[#allocation12 + $0x11e0] sm:$0xff] }
 0x4ec   :  { %8018 = vmatprep.subr.bf16.mxu1 %v8017_v52  ;;  %v2074_v30 = vld [vmem:[#allocation12 + $0x10e8] sm:$0xff] }
 0x4ed   :  { %v7525_v52 = vpack.c.bf16 %v2074_v30, %v2070_v29  ;;  %v2103_v29 = vld [vmem:[#allocation12 + $0x11d0] sm:$0xff] }
 0x4ee   :  { %7508 = vmatpush1.bf16.msra.mxu0 %v7507_v6  ;;  %v2082_v6 = vld [vmem:[#allocation12 + $0x1128] sm:$0xff] }
 0x4ef   :  { %8020 = vmatpush1.bf16.msra.mxu1 %v8019_v48  ;;  %7510 = vmatprep.subr.bf16.mxu0 %v7509_v7  ;;  %v2080_v48 = vld [vmem:[#allocation12 + $0x1118] sm:$0xff]  ;;  %v7529_v26 = vpack.c.bf16 %v2082_v6, %v2078_v39  ;;  %v2111_v39 = vld [vmem:[#allocation12 + $0x1210] sm:$0xff] }
 0x4f0   :  { %8022 = vmatprep.subr.bf16.mxu1 %v8021_v42  ;;  %v2084_v7 = vld [vmem:[#allocation12 + $0x1138] sm:$0xff]  ;;  %v2077_v42 = vld [vmem:[#allocation12 + $0x1100] sm:$0xff] }
 0x4f1   :  { %v8041_v55 = vpack.c.bf16 %v2084_v7, %v2080_v48  ;;  %v7531_v54 = vpack.c.bf16 %v2081_v2, %v2077_v42  ;;  %v2115_v48 = vld [vmem:[#allocation12 + $0x1230] sm:$0xff]  ;;  %v2118_v7 = vld [vmem:[#allocation12 + $0x1248] sm:$0xff] }
 0x4f2   :  { %7512 = vmatpush1.bf16.msra.mxu0 %v7511_v33  ;;  %v2090_v33 = vld [vmem:[#allocation12 + $0x1168] sm:$0xff]  ;;  %v8059_v2 = vpack.c.bf16 %v2115_v48, %v2111_v39  ;;  %v2153_v48 = vld [vmem:[#allocation12 + $0x1360] sm:$0xff] }
 0x4f3   :  { %8024 = vmatpush1.bf16.msra.mxu1 %v8023_v27  ;;  %7514 = vmatprep.subr.bf16.mxu0 %v7513_v41  ;;  %v2088_v27 = vld [vmem:[#allocation12 + $0x1158] sm:$0xff] }
 0x4f4   :  { %8026 = vmatprep.subr.bf16.mxu1 %v8025_v47  ;;  %v2092_v41 = vld [vmem:[#allocation12 + $0x1178] sm:$0xff]  ;;  %v7533_v47 = vpack.c.bf16 %v2090_v33, %v2086_v57  ;;  %v2119_v57 = vld [vmem:[#allocation12 + $0x1250] sm:$0xff] }
 0x4f5   :  { %4995 = vmatmul.mubr.f32.vlgmr.msra.gmra.mrb[16].mxu0 %v9053_v62  ;;  %v8045_v58 = vpack.c.bf16 %v2092_v41, %v2088_v27  ;;  %v2123_v27 = vld [vmem:[#allocation12 + $0x1270] sm:$0xff]  ;;  %v2126_v41 = vld [vmem:[#allocation12 + $0x1288] sm:$0xff] }
 0x4f6   :  { %5563 = vmatmul.mubr.f32.vlgmr.msra.gmra.mrb[16].mxu1 %v9053_v62  ;;  %7516 = vmatpush1.bf16.msra.mxu0 %v7515_v20  ;;  %v2076_v62 = vld [vmem:[#allocation12 + $0x10f8] sm:$0xff]  ;;  %v2091_v20 = vld [vmem:[#allocation12 + $0x1170] sm:$0xff]  ;;  %v8063_v13 = vpack.c.bf16 %v2123_v27, %v2119_v57  ;;  %v2161_v27 = vld [vmem:[#allocation12 + $0x13a0] sm:$0xff] }
 0x4f7   :  { %5065 = vmatprep.mubr.f32.mxu0 %v9084_v15  ;;  %8028 = vmatpush1.bf16.msra.mxu1 %v8027_v22  ;;  %v8037_v36 = vpack.c.bf16 %v2076_v62, %v2072_v35  ;;  %v2096_v22 = vld [vmem:[#allocation12 + $0x1198] sm:$0xff]  ;;  %v8047_v4 = vpack.c.bf16 %v2091_v20, %v2087_v61  ;;  %v2107_v35 = vld [vmem:[#allocation12 + $0x11f0] sm:$0xff]  ;;  %v2110_v62 = vld [vmem:[#allocation12 + $0x1208] sm:$0xff] }
 0x4f8   :  { %5633 = vmatprep.mubr.f32.mxu1 %v9084_v15  ;;  %7518 = vmatprep.subr.bf16.mxu0 %v7517_v5  ;;  %v2075_v15 = vld [vmem:[#allocation12 + $0x10f0] sm:$0xff]  ;;  %v7537_v5 = vpack.c.bf16 %v2098_v17, %v2094_v16  ;;  %v8055_v9 = vpack.c.bf16 %v2107_v35, %v2103_v29  ;;  %v2129_v20 = vld [vmem:[#allocation12 + $0x12a0] sm:$0xff] }
 0x4f9   :  { %8030 = vmatprep.subr.bf16.mxu1 %v8029_v14  ;;  %v8039_v56 = vpack.c.bf16 %v2075_v15, %v2071_v32  ;;  %v8049_v14 = vpack.c.bf16 %v2100_v1, %v2096_v22  ;;  %v2113_v15 = vld [vmem:[#allocation12 + $0x1220] sm:$0xff]  ;;  %v2127_v16 = vld [vmem:[#allocation12 + $0x1290] sm:$0xff]  ;;  %v2134_v1 = vld [vmem:[#allocation12 + $0x12c8] sm:$0xff] }
 0x4fa   :  { %7520 = vmatpush1.bf16.msra.mxu0 %v7519_v37  ;;  %v2106_v37 = vld [vmem:[#allocation12 + $0x11e8] sm:$0xff]  ;;  %v2131_v22 = vld [vmem:[#allocation12 + $0x12b0] sm:$0xff]  ;;  %v2145_v35 = vld [vmem:[#allocation12 + $0x1320] sm:$0xff] }
 0x4fb   :  { %8032 = vmatpush1.bf16.msra.mxu1 %v8031_v38  ;;  %7522 = vmatprep.subr.bf16.mxu0 %v7521_v44  ;;  %v2104_v38 = vld [vmem:[#allocation12 + $0x11d8] sm:$0xff]  ;;  %v7541_v28 = vpack.c.bf16 %v2106_v37, %v2102_v40  ;;  %v8067_v50 = vpack.c.bf16 %v2131_v22, %v2127_v16  ;;  %v2135_v40 = vld [vmem:[#allocation12 + $0x12d0] sm:$0xff]  ;;  %v2169_v22 = vld [vmem:[#allocation12 + $0x13e0] sm:$0xff] }
 0x4fc   :  { %8034 = vmatprep.subr.bf16.mxu1 %v8033_v0  ;;  %v2108_v44 = vld [vmem:[#allocation12 + $0x11f8] sm:$0xff]  ;;  %v2101_v0 = vld [vmem:[#allocation12 + $0x11c0] sm:$0xff] }
 0x4fd   :  { %v8053_v30 = vpack.c.bf16 %v2108_v44, %v2104_v38  ;;  %v7543_v51 = vpack.c.bf16 %v2105_v49, %v2101_v0  ;;  %v2139_v38 = vld [vmem:[#allocation12 + $0x12f0] sm:$0xff]  ;;  %v2142_v44 = vld [vmem:[#allocation12 + $0x1308] sm:$0xff] }
 0x4fe   :  { %7524 = vmatpush1.bf16.msra.mxu0 %v7523_v43  ;;  %v2114_v43 = vld [vmem:[#allocation12 + $0x1228] sm:$0xff]  ;;  %v8071_v49 = vpack.c.bf16 %v2139_v38, %v2135_v40  ;;  %v2177_v38 = vld [vmem:[#allocation12 + $0x1420] sm:$0xff] }
 0x4ff   :  { %8036 = vmatpush1.bf16.msra.mxu1 %v8035_v31  ;;  %7526 = vmatprep.subr.bf16.mxu0 %v7525_v52  ;;  %v2112_v31 = vld [vmem:[#allocation12 + $0x1218] sm:$0xff]  ;;  %v7545_v32 = vpack.c.bf16 %v2114_v43, %v2110_v62  ;;  %v2143_v62 = vld [vmem:[#allocation12 + $0x1310] sm:$0xff] }
 0x500   :  { %8038 = vmatprep.subr.bf16.mxu1 %v8037_v36  ;;  %v2116_v52 = vld [vmem:[#allocation12 + $0x1238] sm:$0xff]  ;;  %v2109_v36 = vld [vmem:[#allocation12 + $0x1200] sm:$0xff] }
 0x501   :  { %v8057_v6 = vpack.c.bf16 %v2116_v52, %v2112_v31  ;;  %v7547_v42 = vpack.c.bf16 %v2113_v15, %v2109_v36  ;;  %v2147_v31 = vld [vmem:[#allocation12 + $0x1330] sm:$0xff]  ;;  %v2150_v52 = vld [vmem:[#allocation12 + $0x1348] sm:$0xff] }
 0x502   :  { %7528 = vmatpush1.bf16.msra.mxu0 %v7527_v46  ;;  %v2122_v46 = vld [vmem:[#allocation12 + $0x1268] sm:$0xff]  ;;  %v8075_v15 = vpack.c.bf16 %v2147_v31, %v2143_v62  ;;  %v2181_v62 = vld [vmem:[#allocation12 + $0x1440] sm:$0xff]  ;;  %v2183_v31 = vld [vmem:[#allocation12 + $0x1450] sm:$0xff] }
 0x503   :  { %8040 = vmatpush1.bf16.msra.mxu1 %v8039_v56  ;;  %7530 = vmatprep.subr.bf16.mxu0 %v7529_v26  ;;  %v2120_v56 = vld [vmem:[#allocation12 + $0x1258] sm:$0xff]  ;;  %v7549_v45 = vpack.c.bf16 %v2122_v46, %v2118_v7  ;;  %v2151_v7 = vld [vmem:[#allocation12 + $0x1350] sm:$0xff] }
 0x504   :  { %8042 = vmatprep.subr.bf16.mxu1 %v8041_v55  ;;  %v2124_v26 = vld [vmem:[#allocation12 + $0x1278] sm:$0xff]  ;;  %v2117_v55 = vld [vmem:[#allocation12 + $0x1240] sm:$0xff] }
 0x505   :  { %v8061_v33 = vpack.c.bf16 %v2124_v26, %v2120_v56  ;;  %v7551_v53 = vpack.c.bf16 %v2121_v11, %v2117_v55  ;;  %v2155_v56 = vld [vmem:[#allocation12 + $0x1370] sm:$0xff]  ;;  %v2158_v26 = vld [vmem:[#allocation12 + $0x1388] sm:$0xff] }
 0x506   :  { %7532 = vmatpush1.bf16.msra.mxu0 %v7531_v54  ;;  %v2130_v54 = vld [vmem:[#allocation12 + $0x12a8] sm:$0xff]  ;;  %v8079_v11 = vpack.c.bf16 %v2155_v56, %v2151_v7  ;;  %v2193_v56 = vld [vmem:[#allocation12 + $0x14a0] sm:$0xff] }
 0x507   :  { %8044 = vmatpush1.bf16.msra.mxu1 %v8043_v59  ;;  %7534 = vmatprep.subr.bf16.mxu0 %v7533_v47  ;;  %v2128_v59 = vld [vmem:[#allocation12 + $0x1298] sm:$0xff]  ;;  %v7553_v61 = vpack.c.bf16 %v2130_v54, %v2126_v41  ;;  %v2159_v41 = vld [vmem:[#allocation12 + $0x1390] sm:$0xff] }
 0x508   :  { %8046 = vmatprep.subr.bf16.mxu1 %v8045_v58  ;;  %v2132_v47 = vld [vmem:[#allocation12 + $0x12b8] sm:$0xff]  ;;  %v2125_v58 = vld [vmem:[#allocation12 + $0x1280] sm:$0xff] }
 0x509   :  { %v8065_v17 = vpack.c.bf16 %v2132_v47, %v2128_v59  ;;  %v7555_v63 = vpack.c.bf16 %v2129_v20, %v2125_v58  ;;  %v2163_v59 = vld [vmem:[#allocation12 + $0x13b0] sm:$0xff]  ;;  %v2166_v47 = vld [vmem:[#allocation12 + $0x13c8] sm:$0xff] }
 0x50a   :  { %7536 = vmatpush1.bf16.msra.mxu0 %v7535_v8  ;;  %v2138_v8 = vld [vmem:[#allocation12 + $0x12e8] sm:$0xff]  ;;  %v8083_v20 = vpack.c.bf16 %v2163_v59, %v2159_v41  ;;  %v2197_v41 = vld [vmem:[#allocation12 + $0x14c0] sm:$0xff]  ;;  %v2199_v59 = vld [vmem:[#allocation12 + $0x14d0] sm:$0xff] }
 0x50b   :  { %8048 = vmatpush1.bf16.msra.mxu1 %v8047_v4  ;;  %7538 = vmatprep.subr.bf16.mxu0 %v7537_v5  ;;  %v2136_v4 = vld [vmem:[#allocation12 + $0x12d8] sm:$0xff]  ;;  %v7557_v23 = vpack.c.bf16 %v2138_v8, %v2134_v1  ;;  %v2167_v1 = vld [vmem:[#allocation12 + $0x13d0] sm:$0xff] }
 0x50c   :  { %8050 = vmatprep.subr.bf16.mxu1 %v8049_v14  ;;  %v2140_v5 = vld [vmem:[#allocation12 + $0x12f8] sm:$0xff]  ;;  %v2133_v14 = vld [vmem:[#allocation12 + $0x12c0] sm:$0xff] }
 0x50d   :  { %v8069_v37 = vpack.c.bf16 %v2140_v5, %v2136_v4  ;;  %v7559_v0 = vpack.c.bf16 %v2137_v19, %v2133_v14  ;;  %v2171_v4 = vld [vmem:[#allocation12 + $0x13f0] sm:$0xff]  ;;  %v2174_v5 = vld [vmem:[#allocation12 + $0x1408] sm:$0xff] }
 0x50e   :  { %7540 = vmatpush1.bf16.msra.mxu0 %v7539_v3  ;;  %v2146_v3 = vld [vmem:[#allocation12 + $0x1328] sm:$0xff]  ;;  %v8087_v19 = vpack.c.bf16 %v2171_v4, %v2167_v1  ;;  %v2209_v1 = vld [vmem:[#allocation12 + $0x1520] sm:$0xff] }
 0x50f   :  { %8052 = vmatpush1.bf16.msra.mxu1 %v8051_v34  ;;  %7542 = vmatprep.subr.bf16.mxu0 %v7541_v28  ;;  %v2144_v34 = vld [vmem:[#allocation12 + $0x1318] sm:$0xff]  ;;  %v7561_v29 = vpack.c.bf16 %v2146_v3, %v2142_v44  ;;  %v2175_v3 = vld [vmem:[#allocation12 + $0x1410] sm:$0xff] }
 0x510   :  { %8054 = vmatprep.subr.bf16.mxu1 %v8053_v30  ;;  %v2148_v28 = vld [vmem:[#allocation12 + $0x1338] sm:$0xff]  ;;  %v2141_v30 = vld [vmem:[#allocation12 + $0x1300] sm:$0xff] }
 0x511   :  { %v8073_v43 = vpack.c.bf16 %v2148_v28, %v2144_v34  ;;  %v7563_v36 = vpack.c.bf16 %v2145_v35, %v2141_v30  ;;  %v2179_v34 = vld [vmem:[#allocation12 + $0x1430] sm:$0xff]  ;;  %v2182_v28 = vld [vmem:[#allocation12 + $0x1448] sm:$0xff]  ;;  %v2188_v30 = vld [vmem:[#allocation12 + $0x1478] sm:$0xff] }
 0x512   :  { %7544 = vmatpush1.bf16.msra.mxu0 %v7543_v51  ;;  %v2154_v51 = vld [vmem:[#allocation12 + $0x1368] sm:$0xff]  ;;  %v8091_v35 = vpack.c.bf16 %v2179_v34, %v2175_v3  ;;  %v2215_v3 = vld [vmem:[#allocation12 + $0x1550] sm:$0xff] }
 0x513   :  { %8056 = vmatpush1.bf16.msra.mxu1 %v8055_v9  ;;  %7546 = vmatprep.subr.bf16.mxu0 %v7545_v32  ;;  %v2152_v9 = vld [vmem:[#allocation12 + $0x1358] sm:$0xff]  ;;  %v7565_v39 = vpack.c.bf16 %v2154_v51, %v2150_v52  ;;  %v2187_v51 = vld [vmem:[#allocation12 + $0x1470] sm:$0xff] }
 0x514   :  { %8058 = vmatprep.subr.bf16.mxu1 %v8057_v6  ;;  %v2156_v32 = vld [vmem:[#allocation12 + $0x1378] sm:$0xff]  ;;  %v2149_v6 = vld [vmem:[#allocation12 + $0x1340] sm:$0xff] }
 0x515   :  { %v8077_v46 = vpack.c.bf16 %v2156_v32, %v2152_v9  ;;  %v7567_v55 = vpack.c.bf16 %v2153_v48, %v2149_v6  ;;  %v2190_v9 = vld [vmem:[#allocation12 + $0x1488] sm:$0xff]  ;;  %v8095_v48 = vpack.c.bf16 %v2187_v51, %v2183_v31  ;;  %v2221_v31 = vld [vmem:[#allocation12 + $0x1580] sm:$0xff]  ;;  %v2223_v51 = vld [vmem:[#allocation12 + $0x1590] sm:$0xff] }
 0x516   :  { %7548 = vmatpush1.bf16.msra.mxu0 %v7547_v42  ;;  %v2162_v42 = vld [vmem:[#allocation12 + $0x13a8] sm:$0xff] }
 0x517   :  { %8060 = vmatpush1.bf16.msra.mxu1 %v8059_v2  ;;  %7550 = vmatprep.subr.bf16.mxu0 %v7549_v45  ;;  %v2160_v2 = vld [vmem:[#allocation12 + $0x1398] sm:$0xff]  ;;  %v7569_v57 = vpack.c.bf16 %v2162_v42, %v2158_v26  ;;  %v2194_v32 = vld [vmem:[#allocation12 + $0x14a8] sm:$0xff]  ;;  %v2191_v26 = vld [vmem:[#allocation12 + $0x1490] sm:$0xff] }
 0x518   :  { %8062 = vmatprep.subr.bf16.mxu1 %v8061_v33  ;;  %v2164_v45 = vld [vmem:[#allocation12 + $0x13b8] sm:$0xff]  ;;  %v2157_v33 = vld [vmem:[#allocation12 + $0x1380] sm:$0xff]  ;;  %v7585_v7 = vpack.c.bf16 %v2194_v32, %v2190_v9  ;;  %v2227_v32 = vld [vmem:[#allocation12 + $0x15b0] sm:$0xff] }
 0x519   :  { %v8081_v54 = vpack.c.bf16 %v2164_v45, %v2160_v2  ;;  %v7571_v58 = vpack.c.bf16 %v2161_v27, %v2157_v33  ;;  %v2195_v2 = vld [vmem:[#allocation12 + $0x14b0] sm:$0xff]  ;;  %v2198_v45 = vld [vmem:[#allocation12 + $0x14c8] sm:$0xff] }
 0x51a   :  { %7552 = vmatpush1.bf16.msra.mxu0 %v7551_v53  ;;  %v2170_v53 = vld [vmem:[#allocation12 + $0x13e8] sm:$0xff]  ;;  %v8099_v33 = vpack.c.bf16 %v2195_v2, %v2191_v26  ;;  %v2233_v26 = vld [vmem:[#allocation12 + $0x15e0] sm:$0xff] }
 0x51b   :  { %8064 = vmatpush1.bf16.msra.mxu1 %v8063_v13  ;;  %7554 = vmatprep.subr.bf16.mxu0 %v7553_v61  ;;  %v2168_v13 = vld [vmem:[#allocation12 + $0x13d8] sm:$0xff]  ;;  %v7573_v16 = vpack.c.bf16 %v2170_v53, %v2166_v47  ;;  %v2206_v53 = vld [vmem:[#allocation12 + $0x1508] sm:$0xff] }
 0x51c   :  { %8066 = vmatprep.subr.bf16.mxu1 %v8065_v17  ;;  %v2172_v61 = vld [vmem:[#allocation12 + $0x13f8] sm:$0xff]  ;;  %v2165_v17 = vld [vmem:[#allocation12 + $0x13c0] sm:$0xff] }
 0x51d   :  { %v8085_v8 = vpack.c.bf16 %v2172_v61, %v2168_v13  ;;  %v7575_v14 = vpack.c.bf16 %v2169_v22, %v2165_v17  ;;  %v2210_v13 = vld [vmem:[#allocation12 + $0x1528] sm:$0xff]  ;;  %v2208_v61 = vld [vmem:[#allocation12 + $0x1518] sm:$0xff]  ;;  %v2205_v22 = vld [vmem:[#allocation12 + $0x1500] sm:$0xff] }
 0x51e   :  { %7556 = vmatpush1.bf16.msra.mxu0 %v7555_v63  ;;  %v2178_v63 = vld [vmem:[#allocation12 + $0x1428] sm:$0xff]  ;;  %v7593_v17 = vpack.c.bf16 %v2210_v13, %v2206_v53  ;;  %v2243_v53 = vld [vmem:[#allocation12 + $0x1630] sm:$0xff] }
 0x51f   :  { %8068 = vmatpush1.bf16.msra.mxu1 %v8067_v50  ;;  %7558 = vmatprep.subr.bf16.mxu0 %v7557_v23  ;;  %v2176_v50 = vld [vmem:[#allocation12 + $0x1418] sm:$0xff]  ;;  %v7577_v40 = vpack.c.bf16 %v2178_v63, %v2174_v5  ;;  %v2211_v5 = vld [vmem:[#allocation12 + $0x1530] sm:$0xff]  ;;  %v2214_v63 = vld [vmem:[#allocation12 + $0x1548] sm:$0xff] }
 0x520   :  { %8070 = vmatprep.subr.bf16.mxu1 %v8069_v37  ;;  %v2180_v23 = vld [vmem:[#allocation12 + $0x1438] sm:$0xff]  ;;  %v2173_v37 = vld [vmem:[#allocation12 + $0x1400] sm:$0xff]  ;;  %v2246_v13 = vld [vmem:[#allocation12 + $0x1648] sm:$0xff] }
 0x521   :  { %v8089_v44 = vpack.c.bf16 %v2180_v23, %v2176_v50  ;;  %v2218_v50 = vld [vmem:[#allocation12 + $0x1568] sm:$0xff]  ;;  %v2216_v23 = vld [vmem:[#allocation12 + $0x1558] sm:$0xff] }
 0x522   :  { %7560 = vmatpush1.bf16.msra.mxu0 %v7559_v0  ;;  %v2186_v0 = vld [vmem:[#allocation12 + $0x1468] sm:$0xff] }
 0x523   :  { %8072 = vmatpush1.bf16.msra.mxu1 %v8071_v49  ;;  %7562 = vmatprep.subr.bf16.mxu0 %v7561_v29  ;;  %v7579_v49 = vpack.c.bf16 %v2177_v38, %v2173_v37  ;;  %v2184_v29 = vld [vmem:[#allocation12 + $0x1458] sm:$0xff]  ;;  %v7581_v52 = vpack.c.bf16 %v2186_v0, %v2182_v28  ;;  %v7597_v37 = vpack.c.bf16 %v2218_v50, %v2214_v63  ;;  %v2213_v38 = vld [vmem:[#allocation12 + $0x1540] sm:$0xff]  ;;  %v2219_v28 = vld [vmem:[#allocation12 + $0x1570] sm:$0xff] }
 0x524   :  { %8074 = vmatprep.subr.bf16.mxu1 %v8073_v43  ;;  %v2185_v43 = vld [vmem:[#allocation12 + $0x1460] sm:$0xff]  ;;  %v2222_v0 = vld [vmem:[#allocation12 + $0x1588] sm:$0xff]  ;;  %v2251_v63 = vld [vmem:[#allocation12 + $0x1670] sm:$0xff] }
 0x525   :  { %v7583_v6 = vpack.c.bf16 %v2185_v43, %v2181_v62  ;;  %v8111_v62 = vpack.c.bf16 %v2219_v28, %v2215_v3  ;;  %v2254_v50 = vld [vmem:[#allocation12 + $0x1688] sm:$0xff]  ;;  %v2257_v3 = vld [vmem:[#allocation12 + $0x16a0] sm:$0xff] }
 0x526   :  { %7564 = vmatpush1.bf16.msra.mxu0 %v7563_v36  ;;  %v8093_v36 = vpack.c.bf16 %v2188_v30, %v2184_v29  ;;  %v2224_v29 = vld [vmem:[#allocation12 + $0x1598] sm:$0xff] }
 0x527   :  { %8076 = vmatpush1.bf16.msra.mxu1 %v8075_v15  ;;  %7566 = vmatprep.subr.bf16.mxu0 %v7565_v39  ;;  %v2192_v15 = vld [vmem:[#allocation12 + $0x1498] sm:$0xff] }
 0x528   :  { %8078 = vmatprep.subr.bf16.mxu1 %v8077_v46  ;;  %v2196_v39 = vld [vmem:[#allocation12 + $0x14b8] sm:$0xff]  ;;  %v2189_v46 = vld [vmem:[#allocation12 + $0x1480] sm:$0xff] }
 0x529   :  { %v8097_v42 = vpack.c.bf16 %v2196_v39, %v2192_v15  ;;  %v2228_v30 = vld [vmem:[#allocation12 + $0x15b8] sm:$0xff]  ;;  %v2234_v15 = vld [vmem:[#allocation12 + $0x15e8] sm:$0xff] }
 0x52a   :  { %7568 = vmatpush1.bf16.msra.mxu0 %v7567_v55  ;;  %v2202_v55 = vld [vmem:[#allocation12 + $0x14e8] sm:$0xff]  ;;  %v8113_v9 = vpack.c.bf16 %v2228_v30, %v2224_v29  ;;  %v2232_v39 = vld [vmem:[#allocation12 + $0x15d8] sm:$0xff] }
 0x52b   :  { %8080 = vmatpush1.bf16.msra.mxu1 %v8079_v11  ;;  %7570 = vmatprep.subr.bf16.mxu0 %v7569_v57  ;;  %v2200_v11 = vld [vmem:[#allocation12 + $0x14d8] sm:$0xff]  ;;  %v7587_v57 = vpack.c.bf16 %v2193_v56, %v2189_v46  ;;  %v7589_v27 = vpack.c.bf16 %v2202_v55, %v2198_v45  ;;  %v2229_v56 = vld [vmem:[#allocation12 + $0x15c0] sm:$0xff]  ;;  %v2235_v45 = vld [vmem:[#allocation12 + $0x15f0] sm:$0xff] }
 0x52c   :  { %8082 = vmatprep.subr.bf16.mxu1 %v8081_v54  ;;  %v2201_v54 = vld [vmem:[#allocation12 + $0x14e0] sm:$0xff]  ;;  %v2238_v55 = vld [vmem:[#allocation12 + $0x1608] sm:$0xff]  ;;  %v2264_v30 = vld [vmem:[#allocation12 + $0x16d8] sm:$0xff] }
 0x52d   :  { %v2266_v29 = vld [vmem:[#allocation12 + $0x16e8] sm:$0xff] }
 0x52e   :  { %7572 = vmatpush1.bf16.msra.mxu0 %v7571_v58  ;;  %v2212_v58 = vld [vmem:[#allocation12 + $0x1538] sm:$0xff] }
 0x52f   :  { %8084 = vmatpush1.bf16.msra.mxu1 %v8083_v20  ;;  %7574 = vmatprep.subr.bf16.mxu0 %v7573_v16  ;;  %v7591_v20 = vpack.c.bf16 %v2201_v54, %v2197_v41  ;;  %v8105_v4 = vpack.c.bf16 %v2212_v58, %v2208_v61  ;;  %v2237_v54 = vld [vmem:[#allocation12 + $0x1600] sm:$0xff]  ;;  %v2250_v61 = vld [vmem:[#allocation12 + $0x1668] sm:$0xff]  ;;  %v2248_v58 = vld [vmem:[#allocation12 + $0x1658] sm:$0xff] }
 0x530   :  { %8086 = vmatprep.subr.bf16.mxu1 %v8085_v8  ;;  %v2207_v8 = vld [vmem:[#allocation12 + $0x1510] sm:$0xff] }
 0x532   :  { %7576 = vmatpush1.bf16.msra.mxu0 %v7575_v14  ;;  %v2220_v14 = vld [vmem:[#allocation12 + $0x1578] sm:$0xff] }
 0x533   :  { %8088 = vmatpush1.bf16.msra.mxu1 %v8087_v19  ;;  %7578 = vmatprep.subr.bf16.mxu0 %v7577_v40  ;;  %v7595_v19 = vpack.c.bf16 %v2209_v1, %v2205_v22  ;;  %v8107_v40 = vpack.c.bf16 %v2211_v5, %v2207_v8  ;;  %v8109_v34 = vpack.c.bf16 %v2220_v14, %v2216_v23  ;;  %v2245_v1 = vld [vmem:[#allocation12 + $0x1640] sm:$0xff]  ;;  %v2258_v23 = vld [vmem:[#allocation12 + $0x16a8] sm:$0xff]  ;;  %v2256_v14 = vld [vmem:[#allocation12 + $0x1698] sm:$0xff] }
 0x534   :  { %8090 = vmatprep.subr.bf16.mxu1 %v8089_v44  ;;  %v2217_v44 = vld [vmem:[#allocation12 + $0x1560] sm:$0xff]  ;;  %v7613_v22 = vpack.c.bf16 %v2250_v61, %v2246_v13  ;;  %v2283_v13 = vld [vmem:[#allocation12 + $0x1770] sm:$0xff]  ;;  %v2286_v61 = vld [vmem:[#allocation12 + $0x1788] sm:$0xff] }
 0x535   :  { %5066 = vmatmul.mubr.f32.vlgmr.msra.gmra.mrb[16].mxu0 %v9078_v10  ;;  %v2249_v8 = vld [vmem:[#allocation12 + $0x1660] sm:$0xff] }
 0x536   :  { %5634 = vmatmul.mubr.f32.vlgmr.msra.gmra.mrb[16].mxu1 %v9078_v10  ;;  %7580 = vmatpush1.bf16.msra.mxu0 %v7579_v49  ;;  %v2204_v10 = vld [vmem:[#allocation12 + $0x14f8] sm:$0xff]  ;;  %v2226_v49 = vld [vmem:[#allocation12 + $0x15a8] sm:$0xff] }
 0x537   :  { %5136 = vmatprep.mubr.f32.mxu0 %v9087_v18  ;;  %8092 = vmatpush1.bf16.msra.mxu1 %v8091_v35  ;;  %v8101_v47 = vpack.c.bf16 %v2204_v10, %v2200_v11  ;;  %v7599_v35 = vpack.c.bf16 %v2217_v44, %v2213_v38  ;;  %v7601_v43 = vpack.c.bf16 %v2226_v49, %v2222_v0  ;;  %v2242_v11 = vld [vmem:[#allocation12 + $0x1628] sm:$0xff]  ;;  %v2240_v10 = vld [vmem:[#allocation12 + $0x1618] sm:$0xff]  ;;  %v2253_v44 = vld [vmem:[#allocation12 + $0x1680] sm:$0xff] }
 0x538   :  { %5704 = vmatprep.mubr.f32.mxu1 %v9087_v18  ;;  %7582 = vmatprep.subr.bf16.mxu0 %v7581_v52  ;;  %v2203_v18 = vld [vmem:[#allocation12 + $0x14f0] sm:$0xff]  ;;  %v2225_v52 = vld [vmem:[#allocation12 + $0x15a0] sm:$0xff]  ;;  %v7609_v41 = vpack.c.bf16 %v2242_v11, %v2238_v55  ;;  %v7617_v38 = vpack.c.bf16 %v2258_v23, %v2254_v50  ;;  %v2262_v49 = vld [vmem:[#allocation12 + $0x16c8] sm:$0xff] }
 0x539   :  { %8094 = vmatprep.subr.bf16.mxu1 %v8093_v36  ;;  %v8103_v16 = vpack.c.bf16 %v2203_v18, %v2199_v59  ;;  %v2230_v36 = vld [vmem:[#allocation12 + $0x15c8] sm:$0xff]  ;;  %v2241_v59 = vld [vmem:[#allocation12 + $0x1620] sm:$0xff]  ;;  %v2259_v0 = vld [vmem:[#allocation12 + $0x16b0] sm:$0xff] }
 0x53a   :  { %7584 = vmatpush1.bf16.msra.mxu0 %v7583_v6  ;;  %v2236_v6 = vld [vmem:[#allocation12 + $0x15f8] sm:$0xff]  ;;  %v7605_v46 = vpack.c.bf16 %v2234_v15, %v2230_v36  ;;  %v2267_v36 = vld [vmem:[#allocation12 + $0x16f0] sm:$0xff]  ;;  %v2270_v15 = vld [vmem:[#allocation12 + $0x1708] sm:$0xff] }
 0x53b   :  { %8096 = vmatpush1.bf16.msra.mxu1 %v8095_v48  ;;  %7586 = vmatprep.subr.bf16.mxu0 %v7585_v7  ;;  %v7603_v48 = vpack.c.bf16 %v2225_v52, %v2221_v31  ;;  %v8115_v7 = vpack.c.bf16 %v2227_v32, %v2223_v51  ;;  %v8117_v2 = vpack.c.bf16 %v2236_v6, %v2232_v39  ;;  %v2261_v52 = vld [vmem:[#allocation12 + $0x16c0] sm:$0xff]  ;;  %v2274_v39 = vld [vmem:[#allocation12 + $0x1728] sm:$0xff]  ;;  %v2272_v6 = vld [vmem:[#allocation12 + $0x1718] sm:$0xff] }
 0x53c   :  { %8098 = vmatprep.subr.bf16.mxu1 %v8097_v42  ;;  %v2231_v42 = vld [vmem:[#allocation12 + $0x15d0] sm:$0xff]  ;;  %v7621_v31 = vpack.c.bf16 %v2266_v29, %v2262_v49  ;;  %v2265_v51 = vld [vmem:[#allocation12 + $0x16e0] sm:$0xff]  ;;  %v2278_v11 = vld [vmem:[#allocation12 + $0x1748] sm:$0xff] }
 0x53d   :  { %v2275_v55 = vld [vmem:[#allocation12 + $0x1730] sm:$0xff]  ;;  %v2294_v23 = vld [vmem:[#allocation12 + $0x17c8] sm:$0xff] }
 0x53e   :  { %7588 = vmatpush1.bf16.msra.mxu0 %v7587_v57  ;;  %v2244_v57 = vld [vmem:[#allocation12 + $0x1638] sm:$0xff]  ;;  %v2291_v50 = vld [vmem:[#allocation12 + $0x17b0] sm:$0xff]  ;;  %v2302_v29 = vld [vmem:[#allocation12 + $0x1808] sm:$0xff] }
 0x53f   :  { %8100 = vmatpush1.bf16.msra.mxu1 %v8099_v33  ;;  %7590 = vmatprep.subr.bf16.mxu0 %v7589_v27  ;;  %v7607_v33 = vpack.c.bf16 %v2233_v26, %v2229_v56  ;;  %v8119_v27 = vpack.c.bf16 %v2235_v45, %v2231_v42  ;;  %v8121_v18 = vpack.c.bf16 %v2244_v57, %v2240_v10  ;;  %v2269_v26 = vld [vmem:[#allocation12 + $0x1700] sm:$0xff]  ;;  %v2282_v10 = vld [vmem:[#allocation12 + $0x1768] sm:$0xff]  ;;  %v2280_v57 = vld [vmem:[#allocation12 + $0x1758] sm:$0xff] }
 0x540   :  { %8102 = vmatprep.subr.bf16.mxu1 %v8101_v47  ;;  %v2239_v47 = vld [vmem:[#allocation12 + $0x1610] sm:$0xff]  ;;  %v7625_v56 = vpack.c.bf16 %v2274_v39, %v2270_v15  ;;  %v2273_v42 = vld [vmem:[#allocation12 + $0x1720] sm:$0xff]  ;;  %v2310_v39 = vld [vmem:[#allocation12 + $0x1848] sm:$0xff] }
 0x541   :  { %v2299_v49 = vld [vmem:[#allocation12 + $0x17f0] sm:$0xff] }
 0x542   :  { %7592 = vmatpush1.bf16.msra.mxu0 %v7591_v20  ;;  %v2252_v20 = vld [vmem:[#allocation12 + $0x1678] sm:$0xff]  ;;  %v2307_v15 = vld [vmem:[#allocation12 + $0x1830] sm:$0xff] }
 0x543   :  { %8104 = vmatpush1.bf16.msra.mxu1 %v8103_v16  ;;  %7594 = vmatprep.subr.bf16.mxu0 %v7593_v17  ;;  %v7611_v16 = vpack.c.bf16 %v2241_v59, %v2237_v54  ;;  %v8123_v17 = vpack.c.bf16 %v2243_v53, %v2239_v47  ;;  %v8125_v5 = vpack.c.bf16 %v2252_v20, %v2248_v58  ;;  %v2277_v59 = vld [vmem:[#allocation12 + $0x1740] sm:$0xff]  ;;  %v2290_v58 = vld [vmem:[#allocation12 + $0x17a8] sm:$0xff]  ;;  %v2288_v20 = vld [vmem:[#allocation12 + $0x1798] sm:$0xff] }
 0x544   :  { %8106 = vmatprep.subr.bf16.mxu1 %v8105_v4  ;;  %v2247_v4 = vld [vmem:[#allocation12 + $0x1650] sm:$0xff]  ;;  %v7629_v54 = vpack.c.bf16 %v2282_v10, %v2278_v11  ;;  %v2281_v47 = vld [vmem:[#allocation12 + $0x1760] sm:$0xff]  ;;  %v2318_v11 = vld [vmem:[#allocation12 + $0x1888] sm:$0xff] }
 0x545   :  { %v2322_v10 = vld [vmem:[#allocation12 + $0x18a8] sm:$0xff] }
 0x546   :  { %7596 = vmatpush1.bf16.msra.mxu0 %v7595_v19  ;;  %v2260_v19 = vld [vmem:[#allocation12 + $0x16b8] sm:$0xff] }
 0x547   :  { %8108 = vmatpush1.bf16.msra.mxu1 %v8107_v40  ;;  %7598 = vmatprep.subr.bf16.mxu0 %v7597_v37  ;;  %v7615_v40 = vpack.c.bf16 %v2249_v8, %v2245_v1  ;;  %v8127_v37 = vpack.c.bf16 %v2251_v63, %v2247_v4  ;;  %v8129_v28 = vpack.c.bf16 %v2260_v19, %v2256_v14  ;;  %v2285_v8 = vld [vmem:[#allocation12 + $0x1780] sm:$0xff]  ;;  %v2298_v14 = vld [vmem:[#allocation12 + $0x17e8] sm:$0xff]  ;;  %v2296_v19 = vld [vmem:[#allocation12 + $0x17d8] sm:$0xff] }
 0x548   :  { %8110 = vmatprep.subr.bf16.mxu1 %v8109_v34  ;;  %v2255_v34 = vld [vmem:[#allocation12 + $0x1690] sm:$0xff]  ;;  %v7633_v1 = vpack.c.bf16 %v2290_v58, %v2286_v61  ;;  %v2289_v4 = vld [vmem:[#allocation12 + $0x17a0] sm:$0xff]  ;;  %v2326_v58 = vld [vmem:[#allocation12 + $0x18c8] sm:$0xff] }
 0x549   :  { %v2323_v61 = vld [vmem:[#allocation12 + $0x18b0] sm:$0xff] }
 0x54a   :  { %7600 = vmatpush1.bf16.msra.mxu0 %v7599_v35  ;;  %v2268_v35 = vld [vmem:[#allocation12 + $0x16f8] sm:$0xff] }
 0x54b   :  { %8112 = vmatpush1.bf16.msra.mxu1 %v8111_v62  ;;  %7602 = vmatprep.subr.bf16.mxu0 %v7601_v43  ;;  %v7619_v62 = vpack.c.bf16 %v2257_v3, %v2253_v44  ;;  %v8131_v43 = vpack.c.bf16 %v2259_v0, %v2255_v34  ;;  %v8133_v32 = vpack.c.bf16 %v2268_v35, %v2264_v30  ;;  %v2293_v3 = vld [vmem:[#allocation12 + $0x17c0] sm:$0xff]  ;;  %v2306_v30 = vld [vmem:[#allocation12 + $0x1828] sm:$0xff]  ;;  %v2304_v35 = vld [vmem:[#allocation12 + $0x1818] sm:$0xff] }
 0x54c   :  { %8114 = vmatprep.subr.bf16.mxu1 %v8113_v9  ;;  %v2263_v9 = vld [vmem:[#allocation12 + $0x16d0] sm:$0xff]  ;;  %v7637_v44 = vpack.c.bf16 %v2298_v14, %v2294_v23  ;;  %v2297_v34 = vld [vmem:[#allocation12 + $0x17e0] sm:$0xff]  ;;  %v2338_v23 = vld [vmem:[#allocation12 + $0x1928] sm:$0xff] }
 0x54d   :  { %v2336_v14 = vld [vmem:[#allocation12 + $0x1918] sm:$0xff] }
 0x54e   :  { %7604 = vmatpush1.bf16.msra.mxu0 %v7603_v48  ;;  %v2276_v48 = vld [vmem:[#allocation12 + $0x1738] sm:$0xff] }
 0x54f   :  { %8116 = vmatpush1.bf16.msra.mxu1 %v8115_v7  ;;  %7606 = vmatprep.subr.bf16.mxu0 %v7605_v46  ;;  %v7623_v7 = vpack.c.bf16 %v2265_v51, %v2261_v52  ;;  %v8135_v46 = vpack.c.bf16 %v2267_v36, %v2263_v9  ;;  %v8137_v45 = vpack.c.bf16 %v2276_v48, %v2272_v6  ;;  %v2301_v51 = vld [vmem:[#allocation12 + $0x1800] sm:$0xff]  ;;  %v2303_v36 = vld [vmem:[#allocation12 + $0x1810] sm:$0xff]  ;;  %v2314_v6 = vld [vmem:[#allocation12 + $0x1868] sm:$0xff] }
 0x550   :  { %8118 = vmatprep.subr.bf16.mxu1 %v8117_v2  ;;  %v2271_v2 = vld [vmem:[#allocation12 + $0x1710] sm:$0xff]  ;;  %v7641_v52 = vpack.c.bf16 %v2306_v30, %v2302_v29  ;;  %v2305_v9 = vld [vmem:[#allocation12 + $0x1820] sm:$0xff]  ;;  %v2346_v29 = vld [vmem:[#allocation12 + $0x1968] sm:$0xff] }
 0x551   :  { %v7643_v48 = vpack.c.bf16 %v2305_v9, %v2301_v51  ;;  %v2344_v30 = vld [vmem:[#allocation12 + $0x1958] sm:$0xff]  ;;  %v2345_v51 = vld [vmem:[#allocation12 + $0x1960] sm:$0xff]  ;;  %v2343_v9 = vld [vmem:[#allocation12 + $0x1950] sm:$0xff] }
 0x552   :  { %7608 = vmatpush1.bf16.msra.mxu0 %v7607_v33  ;;  %v2284_v33 = vld [vmem:[#allocation12 + $0x1778] sm:$0xff] }
 0x553   :  { %8120 = vmatpush1.bf16.msra.mxu1 %v8119_v27  ;;  %7610 = vmatprep.subr.bf16.mxu0 %v7609_v41  ;;  %v7627_v27 = vpack.c.bf16 %v2273_v42, %v2269_v26  ;;  %v8139_v41 = vpack.c.bf16 %v2275_v55, %v2271_v2  ;;  %v8141_v53 = vpack.c.bf16 %v2284_v33, %v2280_v57  ;;  %v2309_v26 = vld [vmem:[#allocation12 + $0x1840] sm:$0xff]  ;;  %v2311_v2 = vld [vmem:[#allocation12 + $0x1850] sm:$0xff]  ;;  %v2320_v33 = vld [vmem:[#allocation12 + $0x1898] sm:$0xff] }
 0x554   :  { %8122 = vmatprep.subr.bf16.mxu1 %v8121_v18  ;;  %v2279_v18 = vld [vmem:[#allocation12 + $0x1750] sm:$0xff]  ;;  %v2313_v42 = vld [vmem:[#allocation12 + $0x1860] sm:$0xff] }
 0x555   :  { %v2315_v55 = vld [vmem:[#allocation12 + $0x1870] sm:$0xff] }
 0x556   :  { %7612 = vmatpush1.bf16.msra.mxu0 %v7611_v16  ;;  %v2292_v16 = vld [vmem:[#allocation12 + $0x17b8] sm:$0xff] }
 0x557   :  { %8124 = vmatpush1.bf16.msra.mxu1 %v8123_v17  ;;  %7614 = vmatprep.subr.bf16.mxu0 %v7613_v22  ;;  %v7631_v17 = vpack.c.bf16 %v2281_v47, %v2277_v59  ;;  %v8143_v22 = vpack.c.bf16 %v2283_v13, %v2279_v18  ;;  %v8145_v63 = vpack.c.bf16 %v2292_v16, %v2288_v20  ;;  %v2317_v47 = vld [vmem:[#allocation12 + $0x1880] sm:$0xff]  ;;  %v2330_v20 = vld [vmem:[#allocation12 + $0x18e8] sm:$0xff]  ;;  %v2328_v16 = vld [vmem:[#allocation12 + $0x18d8] sm:$0xff] }
 0x558   :  { %8126 = vmatprep.subr.bf16.mxu1 %v8125_v5  ;;  %v2287_v5 = vld [vmem:[#allocation12 + $0x1790] sm:$0xff]  ;;  %v7649_v59 = vpack.c.bf16 %v2322_v10, %v2318_v11  ;;  %v2321_v18 = vld [vmem:[#allocation12 + $0x18a0] sm:$0xff]  ;;  %v2358_v11 = vld [vmem:[#allocation12 + $0x19c8] sm:$0xff] }
 0x559   :  { %v2362_v10 = vld [vmem:[#allocation12 + $0x19e8] sm:$0xff] }
 0x55a   :  { %7616 = vmatpush1.bf16.msra.mxu0 %v7615_v40  ;;  %v2300_v40 = vld [vmem:[#allocation12 + $0x17f8] sm:$0xff] }
 0x55b   :  { %8128 = vmatpush1.bf16.msra.mxu1 %v8127_v37  ;;  %7618 = vmatprep.subr.bf16.mxu0 %v7617_v38  ;;  %v7635_v37 = vpack.c.bf16 %v2289_v4, %v2285_v8  ;;  %v8147_v38 = vpack.c.bf16 %v2291_v50, %v2287_v5  ;;  %v8149_v0 = vpack.c.bf16 %v2300_v40, %v2296_v19  ;;  %v2325_v8 = vld [vmem:[#allocation12 + $0x18c0] sm:$0xff]  ;;  %v2327_v5 = vld [vmem:[#allocation12 + $0x18d0] sm:$0xff]  ;;  %v2334_v50 = vld [vmem:[#allocation12 + $0x1908] sm:$0xff] }
 0x55c   :  { %8130 = vmatprep.subr.bf16.mxu1 %v8129_v28  ;;  %v2295_v28 = vld [vmem:[#allocation12 + $0x17d0] sm:$0xff]  ;;  %v2329_v4 = vld [vmem:[#allocation12 + $0x18e0] sm:$0xff]  ;;  %v2340_v19 = vld [vmem:[#allocation12 + $0x1938] sm:$0xff] }
 0x55d   :  { %v7655_v40 = vpack.c.bf16 %v2329_v4, %v2325_v8  ;;  %v2369_v8 = vld [vmem:[#allocation12 + $0x1a20] sm:$0xff]  ;;  %v2367_v4 = vld [vmem:[#allocation12 + $0x1a10] sm:$0xff] }
 0x55e   :  { %7620 = vmatpush1.bf16.msra.mxu0 %v7619_v62  ;;  %v2308_v62 = vld [vmem:[#allocation12 + $0x1838] sm:$0xff] }
 0x55f   :  { %8132 = vmatpush1.bf16.msra.mxu1 %v8131_v43  ;;  %7622 = vmatprep.subr.bf16.mxu0 %v7621_v31  ;;  %v7639_v43 = vpack.c.bf16 %v2297_v34, %v2293_v3  ;;  %v8151_v31 = vpack.c.bf16 %v2299_v49, %v2295_v28  ;;  %v2337_v3 = vld [vmem:[#allocation12 + $0x1920] sm:$0xff]  ;;  %v2335_v34 = vld [vmem:[#allocation12 + $0x1910] sm:$0xff]  ;;  %v8169_v28 = vpack.c.bf16 %v2340_v19, %v2336_v14  ;;  %v2342_v49 = vld [vmem:[#allocation12 + $0x1948] sm:$0xff] }
 0x560   :  { %8134 = vmatprep.subr.bf16.mxu1 %v8133_v32  ;;  %v8153_v32 = vpack.c.bf16 %v2308_v62, %v2304_v35  ;;  %v2348_v35 = vld [vmem:[#allocation12 + $0x1978] sm:$0xff] }
 0x561   :  { %v2380_v14 = vld [vmem:[#allocation12 + $0x1a78] sm:$0xff] }
 0x562   :  { %7624 = vmatpush1.bf16.msra.mxu0 %v7623_v7  ;;  %v2312_v7 = vld [vmem:[#allocation12 + $0x1858] sm:$0xff] }
 0x563   :  { %8136 = vmatpush1.bf16.msra.mxu1 %v8135_v46  ;;  %7626 = vmatprep.subr.bf16.mxu0 %v7625_v56  ;;  %v2316_v46 = vld [vmem:[#allocation12 + $0x1878] sm:$0xff]  ;;  %v8155_v56 = vpack.c.bf16 %v2307_v15, %v2303_v36  ;;  %v2347_v36 = vld [vmem:[#allocation12 + $0x1970] sm:$0xff]  ;;  %v2350_v15 = vld [vmem:[#allocation12 + $0x1988] sm:$0xff] }
 0x564   :  { %8138 = vmatprep.subr.bf16.mxu1 %v8137_v45  ;;  %v7645_v45 = vpack.c.bf16 %v2314_v6, %v2310_v39  ;;  %v8157_v57 = vpack.c.bf16 %v2316_v46, %v2312_v7  ;;  %v2354_v39 = vld [vmem:[#allocation12 + $0x19a8] sm:$0xff]  ;;  %v2352_v6 = vld [vmem:[#allocation12 + $0x1998] sm:$0xff]  ;;  %v8175_v46 = vpack.c.bf16 %v2347_v36, %v2343_v9 }
 0x565   :  { %v2390_v36 = vld [vmem:[#allocation12 + $0x1ac8] sm:$0xff] }
 0x566   :  { %7628 = vmatpush1.bf16.msra.mxu0 %v7627_v27  ;;  %v2324_v27 = vld [vmem:[#allocation12 + $0x18b8] sm:$0xff] }
 0x567   :  { %8140 = vmatpush1.bf16.msra.mxu1 %v8139_v41  ;;  %7630 = vmatprep.subr.bf16.mxu0 %v7629_v54  ;;  %v7647_v41 = vpack.c.bf16 %v2313_v42, %v2309_v26  ;;  %v8159_v54 = vpack.c.bf16 %v2315_v55, %v2311_v2  ;;  %v8161_v13 = vpack.c.bf16 %v2324_v27, %v2320_v33  ;;  %v2349_v26 = vld [vmem:[#allocation12 + $0x1980] sm:$0xff]  ;;  %v2351_v2 = vld [vmem:[#allocation12 + $0x1990] sm:$0xff]  ;;  %v2364_v33 = vld [vmem:[#allocation12 + $0x19f8] sm:$0xff] }
 0x568   :  { %8142 = vmatprep.subr.bf16.mxu1 %v8141_v53  ;;  %v2319_v53 = vld [vmem:[#allocation12 + $0x1890] sm:$0xff]  ;;  %v2353_v42 = vld [vmem:[#allocation12 + $0x19a0] sm:$0xff] }
 0x569   :  { %v2355_v55 = vld [vmem:[#allocation12 + $0x19b0] sm:$0xff]  ;;  %v7667_v27 = vpack.c.bf16 %v2353_v42, %v2349_v26  ;;  %v2393_v26 = vld [vmem:[#allocation12 + $0x1ae0] sm:$0xff] }
 0x56a   :  { %7632 = vmatpush1.bf16.msra.mxu0 %v7631_v17  ;;  %v7651_v17 = vpack.c.bf16 %v2321_v18, %v2317_v47  ;;  %v2361_v47 = vld [vmem:[#allocation12 + $0x19e0] sm:$0xff]  ;;  %v2359_v18 = vld [vmem:[#allocation12 + $0x19d0] sm:$0xff] }
 0x56b   :  { %8144 = vmatpush1.bf16.msra.mxu1 %v8143_v22  ;;  %7634 = vmatprep.subr.bf16.mxu0 %v7633_v1  ;;  %v8163_v22 = vpack.c.bf16 %v2323_v61, %v2319_v53  ;;  %v7653_v1 = vpack.c.bf16 %v2330_v20, %v2326_v58  ;;  %v2366_v61 = vld [vmem:[#allocation12 + $0x1a08] sm:$0xff]  ;;  %v2368_v20 = vld [vmem:[#allocation12 + $0x1a18] sm:$0xff]  ;;  %v2391_v42 = vld [vmem:[#allocation12 + $0x1ad0] sm:$0xff] }
 0x56c   :  { %8146 = vmatprep.subr.bf16.mxu1 %v8145_v63  ;;  %v2370_v58 = vld [vmem:[#allocation12 + $0x1a28] sm:$0xff] }
 0x56e   :  { %7636 = vmatpush1.bf16.msra.mxu0 %v7635_v37 }
 0x56f   :  { %8148 = vmatpush1.bf16.msra.mxu1 %v8147_v38  ;;  %7638 = vmatprep.subr.bf16.mxu0 %v7637_v44  ;;  %v7657_v38 = vpack.c.bf16 %v2338_v23, %v2334_v50  ;;  %v2333_v44 = vld [vmem:[#allocation12 + $0x1900] sm:$0xff]  ;;  %v2378_v50 = vld [vmem:[#allocation12 + $0x1a68] sm:$0xff]  ;;  %v2376_v23 = vld [vmem:[#allocation12 + $0x1a58] sm:$0xff] }
 0x570   :  { %8150 = vmatprep.subr.bf16.mxu1 %v8149_v0  ;;  %v2339_v0 = vld [vmem:[#allocation12 + $0x1930] sm:$0xff]  ;;  %v7659_v62 = vpack.c.bf16 %v2337_v3, %v2333_v44  ;;  %v2377_v44 = vld [vmem:[#allocation12 + $0x1a60] sm:$0xff] }
 0x571   :  { %v2375_v3 = vld [vmem:[#allocation12 + $0x1a50] sm:$0xff] }
 0x572   :  { %7640 = vmatpush1.bf16.msra.mxu0 %v7639_v43  ;;  %v8171_v43 = vpack.c.bf16 %v2339_v0, %v2335_v34  ;;  %v8189_v34 = vpack.c.bf16 %v2380_v14, %v2376_v23  ;;  %v2382_v0 = vld [vmem:[#allocation12 + $0x1a88] sm:$0xff]  ;;  %v2420_v23 = vld [vmem:[#allocation12 + $0x1bb8] sm:$0xff] }
 0x573   :  { %8152 = vmatpush1.bf16.msra.mxu1 %v8151_v31  ;;  %7642 = vmatprep.subr.bf16.mxu0 %v7641_v52  ;;  %v7661_v31 = vpack.c.bf16 %v2346_v29, %v2342_v49  ;;  %v2341_v52 = vld [vmem:[#allocation12 + $0x1940] sm:$0xff]  ;;  %v2386_v49 = vld [vmem:[#allocation12 + $0x1aa8] sm:$0xff]  ;;  %v2384_v29 = vld [vmem:[#allocation12 + $0x1a98] sm:$0xff] }
 0x574   :  { %8154 = vmatprep.subr.bf16.mxu1 %v8153_v32  ;;  %v8173_v32 = vpack.c.bf16 %v2348_v35, %v2344_v30  ;;  %v7663_v7 = vpack.c.bf16 %v2345_v51, %v2341_v52  ;;  %v2388_v30 = vld [vmem:[#allocation12 + $0x1ab8] sm:$0xff]  ;;  %v2385_v52 = vld [vmem:[#allocation12 + $0x1aa0] sm:$0xff]  ;;  %v2383_v51 = vld [vmem:[#allocation12 + $0x1a90] sm:$0xff] }
 0x575   :  { %5137 = vmatmul.mubr.f32.vlgmr.msra.gmra.mrb[16].mxu0 %v9081_v12  ;;  %v8193_v9 = vpack.c.bf16 %v2388_v30, %v2384_v29  ;;  %v2428_v29 = vld [vmem:[#allocation12 + $0x1bf8] sm:$0xff] }
 0x576   :  { %5705 = vmatmul.mubr.f32.vlgmr.msra.gmra.mrb[16].mxu1 %v9081_v12  ;;  %7644 = vmatpush1.bf16.msra.mxu0 %v7643_v48  ;;  %v2332_v12 = vld [vmem:[#allocation12 + $0x18f8] sm:$0xff] }
 0x577   :  { %5207 = vmatprep.mubr.f32.mxu0 %v9096_v24  ;;  %8156 = vmatpush1.bf16.msra.mxu1 %v8155_v56  ;;  %v8165_v63 = vpack.c.bf16 %v2332_v12, %v2328_v16  ;;  %v2356_v48 = vld [vmem:[#allocation12 + $0x19b8] sm:$0xff]  ;;  %v7665_v56 = vpack.c.bf16 %v2354_v39, %v2350_v15  ;;  %v2394_v15 = vld [vmem:[#allocation12 + $0x1ae8] sm:$0xff] }
 0x578   :  { %5775 = vmatprep.mubr.f32.mxu1 %v9096_v24  ;;  %7646 = vmatprep.subr.bf16.mxu0 %v7645_v45  ;;  %v2331_v24 = vld [vmem:[#allocation12 + $0x18f0] sm:$0xff]  ;;  %v8177_v45 = vpack.c.bf16 %v2356_v48, %v2352_v6  ;;  %v2372_v16 = vld [vmem:[#allocation12 + $0x1a38] sm:$0xff] }
 0x579   :  { %8158 = vmatprep.subr.bf16.mxu1 %v8157_v57  ;;  %v8167_v37 = vpack.c.bf16 %v2331_v24, %v2327_v5  ;;  %v2360_v57 = vld [vmem:[#allocation12 + $0x19d8] sm:$0xff]  ;;  %v8185_v5 = vpack.c.bf16 %v2372_v16, %v2368_v20  ;;  %v2374_v24 = vld [vmem:[#allocation12 + $0x1a48] sm:$0xff] }
 0x57a   :  { %7648 = vmatpush1.bf16.msra.mxu0 %v7647_v41  ;;  %v8179_v41 = vpack.c.bf16 %v2355_v55, %v2351_v2  ;;  %v8181_v53 = vpack.c.bf16 %v2364_v33, %v2360_v57  ;;  %v2392_v39 = vld [vmem:[#allocation12 + $0x1ad8] sm:$0xff]  ;;  %v2398_v55 = vld [vmem:[#allocation12 + $0x1b08] sm:$0xff] }
 0x57b   :  { %8160 = vmatpush1.bf16.msra.mxu1 %v8159_v54  ;;  %7650 = vmatprep.subr.bf16.mxu0 %v7649_v59  ;;  %v7669_v54 = vpack.c.bf16 %v2362_v10, %v2358_v11  ;;  %v2357_v59 = vld [vmem:[#allocation12 + $0x19c0] sm:$0xff]  ;;  %v2396_v6 = vld [vmem:[#allocation12 + $0x1af8] sm:$0xff]  ;;  %v2402_v11 = vld [vmem:[#allocation12 + $0x1b28] sm:$0xff] }
 0x57c   :  { %8162 = vmatprep.subr.bf16.mxu1 %v8161_v13  ;;  %v2363_v13 = vld [vmem:[#allocation12 + $0x19f0] sm:$0xff]  ;;  %v7671_v12 = vpack.c.bf16 %v2361_v47, %v2357_v59  ;;  %v8197_v2 = vpack.c.bf16 %v2396_v6, %v2392_v39  ;;  %v2400_v10 = vld [vmem:[#allocation12 + $0x1b18] sm:$0xff]  ;;  %v2401_v59 = vld [vmem:[#allocation12 + $0x1b20] sm:$0xff] }
 0x57d   :  { %v2404_v57 = vld [vmem:[#allocation12 + $0x1b38] sm:$0xff]  ;;  %v2399_v47 = vld [vmem:[#allocation12 + $0x1b10] sm:$0xff] }
 0x57e   :  { %7652 = vmatpush1.bf16.msra.mxu0 %v7651_v17  ;;  %v8183_v17 = vpack.c.bf16 %v2363_v13, %v2359_v18  ;;  %v8201_v18 = vpack.c.bf16 %v2404_v57, %v2400_v10  ;;  %v2406_v13 = vld [vmem:[#allocation12 + $0x1b48] sm:$0xff]  ;;  %v2412_v20 = vld [vmem:[#allocation12 + $0x1b78] sm:$0xff] }
 0x57f   :  { %8164 = vmatpush1.bf16.msra.mxu1 %v8163_v22  ;;  %7654 = vmatprep.subr.bf16.mxu0 %v7653_v1  ;;  %v7673_v22 = vpack.c.bf16 %v2370_v58, %v2366_v61  ;;  %v2365_v1 = vld [vmem:[#allocation12 + $0x1a00] sm:$0xff]  ;;  %v2410_v61 = vld [vmem:[#allocation12 + $0x1b68] sm:$0xff]  ;;  %v2408_v58 = vld [vmem:[#allocation12 + $0x1b58] sm:$0xff] }
 0x580   :  { %8166 = vmatprep.subr.bf16.mxu1 %v8165_v63  ;;  %v2371_v63 = vld [vmem:[#allocation12 + $0x1a30] sm:$0xff]  ;;  %v7675_v19 = vpack.c.bf16 %v2369_v8, %v2365_v1  ;;  %v2409_v1 = vld [vmem:[#allocation12 + $0x1b60] sm:$0xff]  ;;  %v2436_v39 = vld [vmem:[#allocation12 + $0x1c38] sm:$0xff] }
 0x581   :  { %v2407_v8 = vld [vmem:[#allocation12 + $0x1b50] sm:$0xff]  ;;  %v2440_v10 = vld [vmem:[#allocation12 + $0x1c58] sm:$0xff] }
 0x582   :  { %7656 = vmatpush1.bf16.msra.mxu0 %v7655_v40  ;;  %v8187_v40 = vpack.c.bf16 %v2371_v63, %v2367_v4  ;;  %v8205_v4 = vpack.c.bf16 %v2412_v20, %v2408_v58  ;;  %v2414_v63 = vld [vmem:[#allocation12 + $0x1b88] sm:$0xff]  ;;  %v2444_v57 = vld [vmem:[#allocation12 + $0x1c78] sm:$0xff] }
 0x583   :  { %8168 = vmatpush1.bf16.msra.mxu1 %v8167_v37  ;;  %7658 = vmatprep.subr.bf16.mxu0 %v7657_v38  ;;  %v7677_v37 = vpack.c.bf16 %v2378_v50, %v2374_v24  ;;  %v2373_v38 = vld [vmem:[#allocation12 + $0x1a40] sm:$0xff]  ;;  %v2418_v24 = vld [vmem:[#allocation12 + $0x1ba8] sm:$0xff]  ;;  %v2416_v50 = vld [vmem:[#allocation12 + $0x1b98] sm:$0xff] }
 0x584   :  { %8170 = vmatprep.subr.bf16.mxu1 %v8169_v28  ;;  %v2379_v28 = vld [vmem:[#allocation12 + $0x1a70] sm:$0xff]  ;;  %v7679_v35 = vpack.c.bf16 %v2377_v44, %v2373_v38  ;;  %v2417_v38 = vld [vmem:[#allocation12 + $0x1ba0] sm:$0xff]  ;;  %v2452_v58 = vld [vmem:[#allocation12 + $0x1cb8] sm:$0xff] }
 0x585   :  { %v2415_v44 = vld [vmem:[#allocation12 + $0x1b90] sm:$0xff] }
 0x586   :  { %7660 = vmatpush1.bf16.msra.mxu0 %v7659_v62  ;;  %v8191_v62 = vpack.c.bf16 %v2379_v28, %v2375_v3  ;;  %v8209_v3 = vpack.c.bf16 %v2420_v23, %v2416_v50  ;;  %v2422_v28 = vld [vmem:[#allocation12 + $0x1bc8] sm:$0xff] }
 0x587   :  { %8172 = vmatpush1.bf16.msra.mxu1 %v8171_v43  ;;  %7662 = vmatprep.subr.bf16.mxu0 %v7661_v31  ;;  %v7681_v43 = vpack.c.bf16 %v2386_v49, %v2382_v0  ;;  %v2381_v31 = vld [vmem:[#allocation12 + $0x1a80] sm:$0xff]  ;;  %v2426_v0 = vld [vmem:[#allocation12 + $0x1be8] sm:$0xff]  ;;  %v2424_v49 = vld [vmem:[#allocation12 + $0x1bd8] sm:$0xff] }
 0x588   :  { %8174 = vmatprep.subr.bf16.mxu1 %v8173_v32  ;;  %v2387_v32 = vld [vmem:[#allocation12 + $0x1ab0] sm:$0xff]  ;;  %v7683_v48 = vpack.c.bf16 %v2385_v52, %v2381_v31  ;;  %v2425_v31 = vld [vmem:[#allocation12 + $0x1be0] sm:$0xff] }
 0x589   :  { %v2423_v52 = vld [vmem:[#allocation12 + $0x1bd0] sm:$0xff] }
 0x58a   :  { %7664 = vmatpush1.bf16.msra.mxu0 %v7663_v7  ;;  %v8195_v7 = vpack.c.bf16 %v2387_v32, %v2383_v51  ;;  %v8213_v51 = vpack.c.bf16 %v2428_v29, %v2424_v49  ;;  %v2430_v32 = vld [vmem:[#allocation12 + $0x1c08] sm:$0xff] }
 0x58b   :  { %8176 = vmatpush1.bf16.msra.mxu1 %v8175_v46  ;;  %7666 = vmatprep.subr.bf16.mxu0 %v7665_v56  ;;  %v7685_v46 = vpack.c.bf16 %v2394_v15, %v2390_v36  ;;  %v2389_v56 = vld [vmem:[#allocation12 + $0x1ac0] sm:$0xff]  ;;  %v2434_v36 = vld [vmem:[#allocation12 + $0x1c28] sm:$0xff]  ;;  %v2432_v15 = vld [vmem:[#allocation12 + $0x1c18] sm:$0xff] }
 0x58c   :  { %8178 = vmatprep.subr.bf16.mxu1 %v8177_v45  ;;  %v2395_v45 = vld [vmem:[#allocation12 + $0x1af0] sm:$0xff]  ;;  %v7687_v33 = vpack.c.bf16 %v2393_v26, %v2389_v56  ;;  %v2433_v56 = vld [vmem:[#allocation12 + $0x1c20] sm:$0xff]  ;;  %v8217_v26 = vpack.c.bf16 %v2436_v39, %v2432_v15 }
 0x58e   :  { %7668 = vmatpush1.bf16.msra.mxu0 %v7667_v27  ;;  %v8199_v27 = vpack.c.bf16 %v2395_v45, %v2391_v42  ;;  %v2431_v42 = vld [vmem:[#allocation12 + $0x1c10] sm:$0xff]  ;;  %v2438_v45 = vld [vmem:[#allocation12 + $0x1c48] sm:$0xff] }
 0x58f   :  { %8180 = vmatpush1.bf16.msra.mxu1 %v8179_v41  ;;  %7670 = vmatprep.subr.bf16.mxu0 %v7669_v54  ;;  %v7689_v41 = vpack.c.bf16 %v2402_v11, %v2398_v55  ;;  %v2397_v54 = vld [vmem:[#allocation12 + $0x1b00] sm:$0xff]  ;;  %v2442_v55 = vld [vmem:[#allocation12 + $0x1c68] sm:$0xff] }
 0x590   :  { %8182 = vmatprep.subr.bf16.mxu1 %v8181_v53  ;;  %v2403_v53 = vld [vmem:[#allocation12 + $0x1b30] sm:$0xff]  ;;  %v7691_v16 = vpack.c.bf16 %v2401_v59, %v2397_v54  ;;  %v7709_v59 = vpack.c.bf16 %v2442_v55, %v2438_v45  ;;  %v2484_v45 = vld [vmem:[#allocation12 + $0x1db8] sm:$0xff] }
 0x591   :  { %v2439_v54 = vld [vmem:[#allocation12 + $0x1c50] sm:$0xff] }
 0x592   :  { %7672 = vmatpush1.bf16.msra.mxu0 %v7671_v12  ;;  %v8203_v12 = vpack.c.bf16 %v2403_v53, %v2399_v47  ;;  %v2443_v47 = vld [vmem:[#allocation12 + $0x1c70] sm:$0xff]  ;;  %v2450_v53 = vld [vmem:[#allocation12 + $0x1ca8] sm:$0xff] }
 0x593   :  { %8184 = vmatpush1.bf16.msra.mxu1 %v8183_v17  ;;  %7674 = vmatprep.subr.bf16.mxu0 %v7673_v22  ;;  %v7693_v17 = vpack.c.bf16 %v2410_v61, %v2406_v13  ;;  %v2405_v22 = vld [vmem:[#allocation12 + $0x1b40] sm:$0xff]  ;;  %v8221_v13 = vpack.c.bf16 %v2444_v57, %v2440_v10  ;;  %v2448_v61 = vld [vmem:[#allocation12 + $0x1c98] sm:$0xff] }
 0x594   :  { %8186 = vmatprep.subr.bf16.mxu1 %v8185_v5  ;;  %v2411_v5 = vld [vmem:[#allocation12 + $0x1b70] sm:$0xff]  ;;  %v7695_v14 = vpack.c.bf16 %v2409_v1, %v2405_v22  ;;  %v2449_v22 = vld [vmem:[#allocation12 + $0x1ca0] sm:$0xff] }
 0x595   :  { %v2447_v1 = vld [vmem:[#allocation12 + $0x1c90] sm:$0xff]  ;;  %v2477_v57 = vld [vmem:[#allocation12 + $0x1d80] sm:$0xff] }
 0x596   :  { %7676 = vmatpush1.bf16.msra.mxu0 %v7675_v19  ;;  %v8207_v19 = vpack.c.bf16 %v2411_v5, %v2407_v8  ;;  %v8225_v8 = vpack.c.bf16 %v2452_v58, %v2448_v61  ;;  %v2454_v5 = vld [vmem:[#allocation12 + $0x1cc8] sm:$0xff] }
 0x597   :  { %8188 = vmatpush1.bf16.msra.mxu1 %v8187_v40  ;;  %7678 = vmatprep.subr.bf16.mxu0 %v7677_v37  ;;  %v7697_v40 = vpack.c.bf16 %v2418_v24, %v2414_v63  ;;  %v2413_v37 = vld [vmem:[#allocation12 + $0x1b80] sm:$0xff]  ;;  %v2458_v63 = vld [vmem:[#allocation12 + $0x1ce8] sm:$0xff]  ;;  %v2456_v24 = vld [vmem:[#allocation12 + $0x1cd8] sm:$0xff] }
 0x598   :  { %8190 = vmatprep.subr.bf16.mxu1 %v8189_v34  ;;  %v2419_v34 = vld [vmem:[#allocation12 + $0x1bb0] sm:$0xff]  ;;  %v7699_v30 = vpack.c.bf16 %v2417_v38, %v2413_v37 }
 0x599   :  { %v2455_v37 = vld [vmem:[#allocation12 + $0x1cd0] sm:$0xff] }
 0x59a   :  { %7680 = vmatpush1.bf16.msra.mxu0 %v7679_v35  ;;  %v8211_v35 = vpack.c.bf16 %v2419_v34, %v2415_v44  ;;  %v2462_v44 = vld [vmem:[#allocation12 + $0x1d08] sm:$0xff]  ;;  %v2464_v34 = vld [vmem:[#allocation12 + $0x1d18] sm:$0xff] }
 0x59b   :  { %8192 = vmatpush1.bf16.msra.mxu1 %v8191_v62  ;;  %7682 = vmatprep.subr.bf16.mxu0 %v7681_v43  ;;  %v7701_v62 = vpack.c.bf16 %v2426_v0, %v2422_v28  ;;  %v2421_v43 = vld [vmem:[#allocation12 + $0x1bc0] sm:$0xff]  ;;  %v2468_v28 = vld [vmem:[#allocation12 + $0x1d38] sm:$0xff] }
 0x59c   :  { %8194 = vmatprep.subr.bf16.mxu1 %v8193_v9  ;;  %v2427_v9 = vld [vmem:[#allocation12 + $0x1bf0] sm:$0xff]  ;;  %v7703_v6 = vpack.c.bf16 %v2425_v31, %v2421_v43  ;;  %v8233_v43 = vpack.c.bf16 %v2468_v28, %v2464_v34 }
 0x59d   :  { %v2467_v31 = vld [vmem:[#allocation12 + $0x1d30] sm:$0xff] }
 0x59e   :  { %7684 = vmatpush1.bf16.msra.mxu0 %v7683_v48  ;;  %v8215_v48 = vpack.c.bf16 %v2427_v9, %v2423_v52  ;;  %v2470_v52 = vld [vmem:[#allocation12 + $0x1d48] sm:$0xff]  ;;  %v2472_v9 = vld [vmem:[#allocation12 + $0x1d58] sm:$0xff] }
 0x59f   :  { %8196 = vmatpush1.bf16.msra.mxu1 %v8195_v7  ;;  %7686 = vmatprep.subr.bf16.mxu0 %v7685_v46  ;;  %v7705_v7 = vpack.c.bf16 %v2434_v36, %v2430_v32  ;;  %v2429_v46 = vld [vmem:[#allocation12 + $0x1c00] sm:$0xff]  ;;  %v2476_v32 = vld [vmem:[#allocation12 + $0x1d78] sm:$0xff] }
 0x5a0   :  { %8198 = vmatprep.subr.bf16.mxu1 %v8197_v2  ;;  %v2435_v2 = vld [vmem:[#allocation12 + $0x1c30] sm:$0xff]  ;;  %v7707_v11 = vpack.c.bf16 %v2433_v56, %v2429_v46  ;;  %v8237_v46 = vpack.c.bf16 %v2476_v32, %v2472_v9 }
 0x5a1   :  { %v2475_v56 = vld [vmem:[#allocation12 + $0x1d70] sm:$0xff] }
 0x5a2   :  { %7688 = vmatpush1.bf16.msra.mxu0 %v7687_v33  ;;  %v8219_v33 = vpack.c.bf16 %v2435_v2, %v2431_v42  ;;  %v2482_v42 = vld [vmem:[#allocation12 + $0x1da8] sm:$0xff]  ;;  %v2480_v2 = vld [vmem:[#allocation12 + $0x1d98] sm:$0xff] }
 0x5a3   :  { %8200 = vmatpush1.bf16.msra.mxu1 %v8199_v27  ;;  %7690 = vmatprep.subr.bf16.mxu0 %v7689_v41  ;;  %v2437_v27 = vld [vmem:[#allocation12 + $0x1c40] sm:$0xff] }
 0x5a4   :  { %8202 = vmatprep.subr.bf16.mxu1 %v8201_v18  ;;  %v2441_v41 = vld [vmem:[#allocation12 + $0x1c60] sm:$0xff]  ;;  %v2446_v18 = vld [vmem:[#allocation12 + $0x1c88] sm:$0xff] }
 0x5a5   :  { %v7711_v20 = vpack.c.bf16 %v2441_v41, %v2437_v27  ;;  %v2479_v27 = vld [vmem:[#allocation12 + $0x1d90] sm:$0xff]  ;;  %v8241_v41 = vpack.c.bf16 %v2484_v45, %v2480_v2 }
 0x5a6   :  { %7692 = vmatpush1.bf16.msra.mxu0 %v7691_v16  ;;  %v8223_v16 = vpack.c.bf16 %v2443_v47, %v2439_v54  ;;  %v2483_v54 = vld [vmem:[#allocation12 + $0x1db0] sm:$0xff]  ;;  %v2490_v47 = vld [vmem:[#allocation12 + $0x1de8] sm:$0xff] }
 0x5a7   :  { %8204 = vmatpush1.bf16.msra.mxu1 %v8203_v12  ;;  %7694 = vmatprep.subr.bf16.mxu0 %v7693_v17  ;;  %v7713_v12 = vpack.c.bf16 %v2450_v53, %v2446_v18  ;;  %v2445_v17 = vld [vmem:[#allocation12 + $0x1c80] sm:$0xff]  ;;  %v2488_v18 = vld [vmem:[#allocation12 + $0x1dd8] sm:$0xff]  ;;  %v8243_v61 = vpack.c.bf16 %v2483_v54, %v2479_v27  ;;  %v2526_v27 = vld [vmem:[#allocation12 + $0x1f08] sm:$0xff] }
 0x5a8   :  { %8206 = vmatprep.subr.bf16.mxu1 %v8205_v4  ;;  %v2451_v4 = vld [vmem:[#allocation12 + $0x1cb0] sm:$0xff]  ;;  %v7715_v50 = vpack.c.bf16 %v2449_v22, %v2445_v17  ;;  %v2492_v53 = vld [vmem:[#allocation12 + $0x1df8] sm:$0xff] }
 0x5a9   :  { %v8227_v23 = vpack.c.bf16 %v2451_v4, %v2447_v1  ;;  %v8245_v17 = vpack.c.bf16 %v2492_v53, %v2488_v18  ;;  %v2491_v22 = vld [vmem:[#allocation12 + $0x1df0] sm:$0xff]  ;;  %v2494_v1 = vld [vmem:[#allocation12 + $0x1e08] sm:$0xff]  ;;  %v2496_v4 = vld [vmem:[#allocation12 + $0x1e18] sm:$0xff] }
 0x5aa   :  { %7696 = vmatpush1.bf16.msra.mxu0 %v7695_v14  ;;  %v7717_v14 = vpack.c.bf16 %v2458_v63, %v2454_v5  ;;  %v2500_v5 = vld [vmem:[#allocation12 + $0x1e38] sm:$0xff] }
 0x5ab   :  { %8208 = vmatpush1.bf16.msra.mxu1 %v8207_v19  ;;  %7698 = vmatprep.subr.bf16.mxu0 %v7697_v40  ;;  %v2453_v19 = vld [vmem:[#allocation12 + $0x1cc0] sm:$0xff]  ;;  %v2528_v54 = vld [vmem:[#allocation12 + $0x1f18] sm:$0xff] }
 0x5ac   :  { %8210 = vmatprep.subr.bf16.mxu1 %v8209_v3  ;;  %v2457_v40 = vld [vmem:[#allocation12 + $0x1ce0] sm:$0xff]  ;;  %v2466_v3 = vld [vmem:[#allocation12 + $0x1d28] sm:$0xff] }
 0x5ad   :  { %v7719_v0 = vpack.c.bf16 %v2457_v40, %v2453_v19  ;;  %v7721_v29 = vpack.c.bf16 %v2466_v3, %v2462_v44  ;;  %v8249_v19 = vpack.c.bf16 %v2500_v5, %v2496_v4  ;;  %v2499_v40 = vld [vmem:[#allocation12 + $0x1e30] sm:$0xff]  ;;  %v2508_v44 = vld [vmem:[#allocation12 + $0x1e78] sm:$0xff] }
 0x5ae   :  { %7700 = vmatpush1.bf16.msra.mxu0 %v7699_v30  ;;  %v2461_v30 = vld [vmem:[#allocation12 + $0x1d00] sm:$0xff] }
 0x5af   :  { %8212 = vmatpush1.bf16.msra.mxu1 %v8211_v35  ;;  %7702 = vmatprep.subr.bf16.mxu0 %v7701_v62  ;;  %v2465_v35 = vld [vmem:[#allocation12 + $0x1d20] sm:$0xff]  ;;  %v2463_v62 = vld [vmem:[#allocation12 + $0x1d10] sm:$0xff] }
 0x5b0   :  { %8214 = vmatprep.subr.bf16.mxu1 %v8213_v51  ;;  %v2474_v51 = vld [vmem:[#allocation12 + $0x1d68] sm:$0xff]  ;;  %v7723_v36 = vpack.c.bf16 %v2465_v35, %v2461_v30  ;;  %v8235_v15 = vpack.c.bf16 %v2467_v31, %v2463_v62  ;;  %v2507_v35 = vld [vmem:[#allocation12 + $0x1e70] sm:$0xff]  ;;  %v2512_v31 = vld [vmem:[#allocation12 + $0x1e98] sm:$0xff] }
 0x5b1   :  { %v7725_v39 = vpack.c.bf16 %v2474_v51, %v2470_v52  ;;  %v2510_v62 = vld [vmem:[#allocation12 + $0x1e88] sm:$0xff]  ;;  %v2516_v52 = vld [vmem:[#allocation12 + $0x1eb8] sm:$0xff] }
 0x5b2   :  { %7704 = vmatpush1.bf16.msra.mxu0 %v7703_v6  ;;  %v2469_v6 = vld [vmem:[#allocation12 + $0x1d40] sm:$0xff] }
 0x5b3   :  { %8216 = vmatpush1.bf16.msra.mxu1 %v8215_v48  ;;  %7706 = vmatprep.subr.bf16.mxu0 %v7705_v7  ;;  %v2473_v48 = vld [vmem:[#allocation12 + $0x1d60] sm:$0xff]  ;;  %v2471_v7 = vld [vmem:[#allocation12 + $0x1d50] sm:$0xff] }
 0x5b4   :  { %8218 = vmatprep.subr.bf16.mxu1 %v8217_v26  ;;  %v2478_v26 = vld [vmem:[#allocation12 + $0x1d88] sm:$0xff]  ;;  %v7727_v55 = vpack.c.bf16 %v2473_v48, %v2469_v6  ;;  %v8257_v6 = vpack.c.bf16 %v2516_v52, %v2512_v31  ;;  %v2515_v48 = vld [vmem:[#allocation12 + $0x1eb0] sm:$0xff] }
 0x5b5   :  { %5208 = vmatmul.mubr.f32.vlgmr.msra.gmra.mrb[16].mxu0 %v9090_v60  ;;  %v7729_v10 = vpack.c.bf16 %v2482_v42, %v2478_v26  ;;  %v2524_v26 = vld [vmem:[#allocation12 + $0x1ef8] sm:$0xff] }
 0x5b6   :  { %5776 = vmatmul.mubr.f32.vlgmr.msra.gmra.mrb[16].mxu1 %v9090_v60  ;;  %7708 = vmatpush1.bf16.msra.mxu0 %v7707_v11  ;;  %v2460_v60 = vld [vmem:[#allocation12 + $0x1cf8] sm:$0xff]  ;;  %v8239_v11 = vpack.c.bf16 %v2475_v56, %v2471_v7  ;;  %v2518_v7 = vld [vmem:[#allocation12 + $0x1ec8] sm:$0xff] }
 0x5b7   :  { %5278 = vmatprep.mubr.f32.mxu0 %v9099_v25  ;;  %8220 = vmatpush1.bf16.msra.mxu1 %v8219_v33  ;;  %v8229_v38 = vpack.c.bf16 %v2460_v60, %v2456_v24  ;;  %v2481_v33 = vld [vmem:[#allocation12 + $0x1da0] sm:$0xff]  ;;  %v2520_v56 = vld [vmem:[#allocation12 + $0x1ed8] sm:$0xff] }
 0x5b8   :  { %5846 = vmatprep.mubr.f32.mxu1 %v9099_v25  ;;  %7710 = vmatprep.subr.bf16.mxu0 %v7709_v59  ;;  %v2459_v25 = vld [vmem:[#allocation12 + $0x1cf0] sm:$0xff]  ;;  %v2486_v59 = vld [vmem:[#allocation12 + $0x1dc8] sm:$0xff] }
 0x5b9   :  { %8222 = vmatprep.subr.bf16.mxu1 %v8221_v13  ;;  %v8231_v49 = vpack.c.bf16 %v2459_v25, %v2455_v37  ;;  %v7731_v13 = vpack.c.bf16 %v2481_v33, %v2477_v57  ;;  %v7733_v58 = vpack.c.bf16 %v2490_v47, %v2486_v59  ;;  %v2502_v37 = vld [vmem:[#allocation12 + $0x1e48] sm:$0xff]  ;;  %v2504_v25 = vld [vmem:[#allocation12 + $0x1e58] sm:$0xff]  ;;  %v8261_v57 = vpack.c.bf16 %v2524_v26, %v2520_v56  ;;  %v2523_v33 = vld [vmem:[#allocation12 + $0x1ef0] sm:$0xff] }
 0x5ba   :  { %7712 = vmatpush1.bf16.msra.mxu0 %v7711_v20  ;;  %v2485_v20 = vld [vmem:[#allocation12 + $0x1dc0] sm:$0xff]  ;;  %v8253_v30 = vpack.c.bf16 %v2508_v44, %v2504_v25  ;;  %v2532_v59 = vld [vmem:[#allocation12 + $0x1f38] sm:$0xff] }
 0x5bb   :  { %8224 = vmatpush1.bf16.msra.mxu1 %v8223_v16  ;;  %7714 = vmatprep.subr.bf16.mxu0 %v7713_v12  ;;  %v2489_v16 = vld [vmem:[#allocation12 + $0x1de0] sm:$0xff]  ;;  %v2487_v12 = vld [vmem:[#allocation12 + $0x1dd0] sm:$0xff] }
 0x5bc   :  { %8226 = vmatprep.subr.bf16.mxu1 %v8225_v8  ;;  %v2498_v8 = vld [vmem:[#allocation12 + $0x1e28] sm:$0xff]  ;;  %v7735_v63 = vpack.c.bf16 %v2489_v16, %v2485_v20  ;;  %v8247_v24 = vpack.c.bf16 %v2491_v22, %v2487_v12  ;;  %v8265_v20 = vpack.c.bf16 %v2532_v59, %v2528_v54  ;;  %v2531_v16 = vld [vmem:[#allocation12 + $0x1f30] sm:$0xff]  ;;  %v2536_v22 = vld [vmem:[#allocation12 + $0x1f58] sm:$0xff] }
 0x5bd   :  { %v7737_v60 = vpack.c.bf16 %v2498_v8, %v2494_v1  ;;  %v2534_v12 = vld [vmem:[#allocation12 + $0x1f48] sm:$0xff]  ;;  %v2540_v1 = vld [vmem:[#allocation12 + $0x1f78] sm:$0xff] }
 0x5be   :  { %7716 = vmatpush1.bf16.msra.mxu0 %v7715_v50  ;;  %v2493_v50 = vld [vmem:[#allocation12 + $0x1e00] sm:$0xff] }
 0x5bf   :  { %8228 = vmatpush1.bf16.msra.mxu1 %v8227_v23  ;;  %7718 = vmatprep.subr.bf16.mxu0 %v7717_v14  ;;  %v2497_v23 = vld [vmem:[#allocation12 + $0x1e20] sm:$0xff]  ;;  %v2495_v14 = vld [vmem:[#allocation12 + $0x1e10] sm:$0xff] }
 0x5c0   :  { %8230 = vmatprep.subr.bf16.mxu1 %v8229_v38  ;;  %v2506_v38 = vld [vmem:[#allocation12 + $0x1e68] sm:$0xff]  ;;  %v7739_v3 = vpack.c.bf16 %v2497_v23, %v2493_v50  ;;  %v8251_v34 = vpack.c.bf16 %v2499_v40, %v2495_v14  ;;  %v8269_v50 = vpack.c.bf16 %v2540_v1, %v2536_v22  ;;  %v2539_v23 = vld [vmem:[#allocation12 + $0x1f70] sm:$0xff]  ;;  %v2544_v40 = vld [vmem:[#allocation12 + $0x1f98] sm:$0xff] }
 0x5c1   :  { %v7741_v28 = vpack.c.bf16 %v2506_v38, %v2502_v37  ;;  %v2542_v14 = vld [vmem:[#allocation12 + $0x1f88] sm:$0xff]  ;;  %v2548_v37 = vld [vmem:[#allocation12 + $0x1fb8] sm:$0xff] }
 0x5c2   :  { %7720 = vmatpush1.bf16.msra.mxu0 %v7719_v0  ;;  %v2501_v0 = vld [vmem:[#allocation12 + $0x1e40] sm:$0xff] }
 0x5c3   :  { %8232 = vmatpush1.bf16.msra.mxu1 %v8231_v49  ;;  %7722 = vmatprep.subr.bf16.mxu0 %v7721_v29  ;;  %v2505_v49 = vld [vmem:[#allocation12 + $0x1e60] sm:$0xff]  ;;  %v2503_v29 = vld [vmem:[#allocation12 + $0x1e50] sm:$0xff] }
 0x5c4   :  { %8234 = vmatprep.subr.bf16.mxu1 %v8233_v43  ;;  %v2514_v43 = vld [vmem:[#allocation12 + $0x1ea8] sm:$0xff]  ;;  %v7743_v51 = vpack.c.bf16 %v2505_v49, %v2501_v0  ;;  %v8255_v9 = vpack.c.bf16 %v2507_v35, %v2503_v29  ;;  %v8273_v0 = vpack.c.bf16 %v2548_v37, %v2544_v40  ;;  %v2547_v49 = vld [vmem:[#allocation12 + $0x1fb0] sm:$0xff]  ;;  %v2552_v35 = vld [vmem:[#allocation12 + $0x1fd8] sm:$0xff] }
 0x5c5   :  { %v7745_v32 = vpack.c.bf16 %v2514_v43, %v2510_v62  ;;  %v2550_v29 = vld [vmem:[#allocation12 + $0x1fc8] sm:$0xff]  ;;  %v2556_v62 = vld [vmem:[#allocation12 + $0x1ff8] sm:$0xff] }
 0x5c6   :  { %7724 = vmatpush1.bf16.msra.mxu0 %v7723_v36  ;;  %v2509_v36 = vld [vmem:[#allocation12 + $0x1e80] sm:$0xff]  ;;  %v5889_v37 = vld [vmem:[#allocation16 + $0x30] sm:$0xff] }
 0x5c7   :  { %8236 = vmatpush1.bf16.msra.mxu1 %v8235_v15  ;;  %7726 = vmatprep.subr.bf16.mxu0 %v7725_v39  ;;  %v2513_v15 = vld [vmem:[#allocation12 + $0x1ea0] sm:$0xff]  ;;  %v2511_v39 = vld [vmem:[#allocation12 + $0x1e90] sm:$0xff] }
 0x5c8   :  { %8238 = vmatprep.subr.bf16.mxu1 %v8237_v46  ;;  %v2522_v46 = vld [vmem:[#allocation12 + $0x1ee8] sm:$0xff]  ;;  %v7747_v42 = vpack.c.bf16 %v2513_v15, %v2509_v36  ;;  %v8259_v2 = vpack.c.bf16 %v2515_v48, %v2511_v39  ;;  %v8277_v36 = vpack.c.bf16 %v2556_v62, %v2552_v35  ;;  %v2555_v15 = vld [vmem:[#allocation12 + $0x1ff0] sm:$0xff] }
 0x5c9   :  { %v7749_v45 = vpack.c.bf16 %v2522_v46, %v2518_v7  ;;  %v5899_v39 = vld [vmem:[#allocation16 + $0x80] sm:$0xff]  ;;  %v5932_v7 = vld [vmem:[#allocation16 + $0x188] sm:$0xff] }
 0x5ca   :  { %7728 = vmatpush1.bf16.msra.mxu0 %v7727_v55  ;;  %v2517_v55 = vld [vmem:[#allocation12 + $0x1ec0] sm:$0xff] }
 0x5cb   :  { %8240 = vmatpush1.bf16.msra.mxu1 %v8239_v11  ;;  %7730 = vmatprep.subr.bf16.mxu0 %v7729_v10  ;;  %v2521_v11 = vld [vmem:[#allocation12 + $0x1ee0] sm:$0xff]  ;;  %v2519_v10 = vld [vmem:[#allocation12 + $0x1ed0] sm:$0xff] }
 0x5cc   :  { %8242 = vmatprep.subr.bf16.mxu1 %v8241_v41  ;;  %v2530_v41 = vld [vmem:[#allocation12 + $0x1f28] sm:$0xff]  ;;  %v7751_v47 = vpack.c.bf16 %v2521_v11, %v2517_v55  ;;  %v8263_v18 = vpack.c.bf16 %v2523_v33, %v2519_v10  ;;  %v5901_v10 = vld [vmem:[#allocation16 + $0x90] sm:$0xff] }
 0x5cd   :  { %v7753_v53 = vpack.c.bf16 %v2530_v41, %v2526_v27  ;;  %v5931_v48 = vld [vmem:[#allocation16 + $0x180] sm:$0xff]  ;;  %v5916_v11 = vld [vmem:[#allocation16 + $0x108] sm:$0xff]  ;;  %v5933_v33 = vld [vmem:[#allocation16 + $0x190] sm:$0xff] }
 0x5ce   :  { %7732 = vmatpush1.bf16.msra.mxu0 %v7731_v13  ;;  %v2525_v13 = vld [vmem:[#allocation12 + $0x1f00] sm:$0xff]  ;;  %v8313_v55 = vpack.c.bf16 %v5932_v7, %v5931_v48  ;;  %v5893_v7 = vld [vmem:[#allocation16 + $0x50] sm:$0xff] }
 0x5cf   :  { %8244 = vmatpush1.bf16.msra.mxu1 %v8243_v61  ;;  %7734 = vmatprep.subr.bf16.mxu0 %v7733_v58  ;;  %v2529_v61 = vld [vmem:[#allocation12 + $0x1f20] sm:$0xff]  ;;  %v2527_v58 = vld [vmem:[#allocation12 + $0x1f10] sm:$0xff] }
 0x5d0   :  { %8246 = vmatprep.subr.bf16.mxu1 %v8245_v17  ;;  %v2538_v17 = vld [vmem:[#allocation12 + $0x1f68] sm:$0xff]  ;;  %v7755_v8 = vpack.c.bf16 %v2529_v61, %v2525_v13  ;;  %v8267_v4 = vpack.c.bf16 %v2531_v16, %v2527_v58  ;;  %v5934_v27 = vld [vmem:[#allocation16 + $0x198] sm:$0xff] }
 0x5d1   :  { %v7757_v5 = vpack.c.bf16 %v2538_v17, %v2534_v12  ;;  %v8317_v13 = vpack.c.bf16 %v5934_v27, %v5933_v33  ;;  %v5918_v61 = vld [vmem:[#allocation16 + $0x118] sm:$0xff]  ;;  %v5903_v58 = vld [vmem:[#allocation16 + $0xa0] sm:$0xff]  ;;  %v5936_v12 = vld [vmem:[#allocation16 + $0x1a8] sm:$0xff] }
 0x5d2   :  { %7736 = vmatpush1.bf16.msra.mxu0 %v7735_v63  ;;  %v2533_v63 = vld [vmem:[#allocation12 + $0x1f40] sm:$0xff] }
 0x5d3   :  { %8248 = vmatpush1.bf16.msra.mxu1 %v8247_v24  ;;  %7738 = vmatprep.subr.bf16.mxu0 %v7737_v60  ;;  %v2537_v24 = vld [vmem:[#allocation12 + $0x1f60] sm:$0xff]  ;;  %v2535_v60 = vld [vmem:[#allocation12 + $0x1f50] sm:$0xff] }
 0x5d4   :  { %8250 = vmatprep.subr.bf16.mxu1 %v8249_v19  ;;  %v2546_v19 = vld [vmem:[#allocation12 + $0x1fa8] sm:$0xff]  ;;  %v7759_v38 = vpack.c.bf16 %v2537_v24, %v2533_v63  ;;  %v8271_v25 = vpack.c.bf16 %v2539_v23, %v2535_v60  ;;  %v5905_v60 = vld [vmem:[#allocation16 + $0xb0] sm:$0xff] }
 0x5d5   :  { %v7761_v44 = vpack.c.bf16 %v2546_v19, %v2542_v14  ;;  %v5935_v16 = vld [vmem:[#allocation16 + $0x1a0] sm:$0xff]  ;;  %v5920_v24 = vld [vmem:[#allocation16 + $0x128] sm:$0xff]  ;;  %v5937_v23 = vld [vmem:[#allocation16 + $0x1b0] sm:$0xff] }
 0x5d6   :  { %7740 = vmatpush1.bf16.msra.mxu0 %v7739_v3  ;;  %v2541_v3 = vld [vmem:[#allocation12 + $0x1f80] sm:$0xff]  ;;  %v8321_v63 = vpack.c.bf16 %v5936_v12, %v5935_v16  ;;  %v5897_v12 = vld [vmem:[#allocation16 + $0x70] sm:$0xff] }
 0x5d7   :  { %8252 = vmatpush1.bf16.msra.mxu1 %v8251_v34  ;;  %7742 = vmatprep.subr.bf16.mxu0 %v7741_v28  ;;  %v2545_v34 = vld [vmem:[#allocation12 + $0x1fa0] sm:$0xff]  ;;  %v2543_v28 = vld [vmem:[#allocation12 + $0x1f90] sm:$0xff] }
 0x5d8   :  { %8254 = vmatprep.subr.bf16.mxu1 %v8253_v30  ;;  %v2554_v30 = vld [vmem:[#allocation12 + $0x1fe8] sm:$0xff]  ;;  %v7763_v43 = vpack.c.bf16 %v2545_v34, %v2541_v3  ;;  %v8275_v31 = vpack.c.bf16 %v2547_v49, %v2543_v28  ;;  %v5938_v14 = vld [vmem:[#allocation16 + $0x1b8] sm:$0xff] }
 0x5d9   :  { %v7765_v52 = vpack.c.bf16 %v2554_v30, %v2550_v29  ;;  %v5922_v3 = vld [vmem:[#allocation16 + $0x138] sm:$0xff]  ;;  %v5907_v34 = vld [vmem:[#allocation16 + $0xc0] sm:$0xff]  ;;  %v5908_v28 = vld [vmem:[#allocation16 + $0xc8] sm:$0xff] }
 0x5da   :  { %7744 = vmatpush1.bf16.msra.mxu0 %v7743_v51  ;;  %v2549_v51 = vld [vmem:[#allocation12 + $0x1fc0] sm:$0xff]  ;;  %v5940_v49 = vld [vmem:[#allocation16 + $0x1c8] sm:$0xff]  ;;  %v8297_v35 = vpack.c.bf16 %v5908_v28, %v5907_v34 }
 0x5db   :  { %8256 = vmatpush1.bf16.msra.mxu1 %v8255_v9  ;;  %7746 = vmatprep.subr.bf16.mxu0 %v7745_v32  ;;  %v2553_v9 = vld [vmem:[#allocation12 + $0x1fe0] sm:$0xff]  ;;  %v2551_v32 = vld [vmem:[#allocation12 + $0x1fd0] sm:$0xff] }
 0x5dc   :  { %8258 = vmatprep.subr.bf16.mxu1 %v8257_v6  ;;  %v5900_v6 = vld [vmem:[#allocation16 + $0x88] sm:$0xff]  ;;  %v7767_v46 = vpack.c.bf16 %v2553_v9, %v2549_v51  ;;  %v8279_v56 = vpack.c.bf16 %v2555_v15, %v2551_v32  ;;  %v5891_v62 = vld [vmem:[#allocation16 + $0x40] sm:$0xff]  ;;  %v5909_v9 = vld [vmem:[#allocation16 + $0xd0] sm:$0xff] }
 0x5dd   :  { %v8281_v26 = vpack.c.bf16 %v5900_v6, %v5899_v39  ;;  %v5924_v51 = vld [vmem:[#allocation16 + $0x148] sm:$0xff]  ;;  %v5910_v32 = vld [vmem:[#allocation16 + $0xd8] sm:$0xff] }
 0x5de   :  { %7748 = vmatpush1.bf16.msra.mxu0 %v7747_v42  ;;  %v5883_v42 = vld [vmem:[#allocation16] sm:$0xff]  ;;  %v5942_v15 = vld [vmem:[#allocation16 + $0x1d8] sm:$0xff]  ;;  %v8301_v48 = vpack.c.bf16 %v5910_v32, %v5909_v9 }
 0x5df   :  { %8260 = vmatpush1.bf16.msra.mxu1 %v8259_v2  ;;  %7750 = vmatprep.subr.bf16.mxu0 %v7749_v45  ;;  %v5884_v2 = vld [vmem:[#allocation16 + $0x8] sm:$0xff]  ;;  %v5915_v45 = vld [vmem:[#allocation16 + $0x100] sm:$0xff]  ;;  %v5946_v16 = vld [vmem:[#allocation16 + $0x1f8] sm:$0xff] }
 0x5e0   :  { %8262 = vmatprep.subr.bf16.mxu1 %v8261_v57  ;;  %v5902_v57 = vld [vmem:[#allocation16 + $0x98] sm:$0xff]  ;;  %v8283_v41 = vpack.c.bf16 %v5884_v2, %v5883_v42  ;;  %v8315_v54 = vpack.c.bf16 %v5916_v11, %v5915_v45  ;;  %v5911_v2 = vld [vmem:[#allocation16 + $0xe0] sm:$0xff]  ;;  %v5912_v45 = vld [vmem:[#allocation16 + $0xe8] sm:$0xff] }
 0x5e1   :  { %v8285_v59 = vpack.c.bf16 %v5902_v57, %v5901_v10  ;;  %v5926_v42 = vld [vmem:[#allocation16 + $0x158] sm:$0xff]  ;;  %v5944_v11 = vld [vmem:[#allocation16 + $0x1e8] sm:$0xff]  ;;  %v8305_v33 = vpack.c.bf16 %v5912_v45, %v5911_v2 }
 0x5e2   :  { %7752 = vmatpush1.bf16.msra.mxu0 %v7751_v47  ;;  %v5885_v47 = vld [vmem:[#allocation16 + $0x10] sm:$0xff] }
 0x5e3   :  { %8264 = vmatpush1.bf16.msra.mxu1 %v8263_v18  ;;  %7754 = vmatprep.subr.bf16.mxu0 %v7753_v53  ;;  %v5886_v18 = vld [vmem:[#allocation16 + $0x18] sm:$0xff]  ;;  %v5917_v53 = vld [vmem:[#allocation16 + $0x110] sm:$0xff] }
 0x5e4   :  { %8266 = vmatprep.subr.bf16.mxu1 %v8265_v20  ;;  %v5904_v20 = vld [vmem:[#allocation16 + $0xa8] sm:$0xff]  ;;  %v8287_v17 = vpack.c.bf16 %v5886_v18, %v5885_v47  ;;  %v8319_v22 = vpack.c.bf16 %v5918_v61, %v5917_v53  ;;  %v5914_v61 = vld [vmem:[#allocation16 + $0xf8] sm:$0xff] }
 0x5e5   :  { %v8289_v1 = vpack.c.bf16 %v5904_v20, %v5903_v58  ;;  %v5928_v18 = vld [vmem:[#allocation16 + $0x168] sm:$0xff]  ;;  %v5945_v58 = vld [vmem:[#allocation16 + $0x1f0] sm:$0xff] }
 0x5e6   :  { %7756 = vmatpush1.bf16.msra.mxu0 %v7755_v8  ;;  %v5887_v8 = vld [vmem:[#allocation16 + $0x20] sm:$0xff] }
 0x5e7   :  { %8268 = vmatpush1.bf16.msra.mxu1 %v8267_v4  ;;  %7758 = vmatprep.subr.bf16.mxu0 %v7757_v5  ;;  %v5888_v4 = vld [vmem:[#allocation16 + $0x28] sm:$0xff]  ;;  %v5919_v5 = vld [vmem:[#allocation16 + $0x120] sm:$0xff] }
 0x5e8   :  { %8270 = vmatprep.subr.bf16.mxu1 %v8269_v50  ;;  %v5906_v50 = vld [vmem:[#allocation16 + $0xb8] sm:$0xff]  ;;  %v8291_v19 = vpack.c.bf16 %v5888_v4, %v5887_v8  ;;  %v5929_v8 = vld [vmem:[#allocation16 + $0x170] sm:$0xff] }
 0x5e9   :  { %v8293_v40 = vpack.c.bf16 %v5906_v50, %v5905_v60  ;;  %v5930_v4 = vld [vmem:[#allocation16 + $0x178] sm:$0xff]  ;;  %v9227_v50 = vld [vmem:[#allocation27_spill] sm:$0xff] }
 0x5ea   :  { %7760 = vmatpush1.bf16.msra.mxu0 %v7759_v38  ;;  %v5890_v38 = vld [vmem:[#allocation16 + $0x38] sm:$0xff] }
 0x5eb   :  { %8272 = vmatpush1.bf16.msra.mxu1 %v8271_v25  ;;  %7762 = vmatprep.subr.bf16.mxu0 %v7761_v44  ;;  %v5921_v25 = vld [vmem:[#allocation16 + $0x130] sm:$0xff]  ;;  %v8325_v44 = vpack.c.bf16 %v5938_v14, %v5937_v23  ;;  %v8295_v29 = vpack.c.bf16 %v5890_v38, %v5889_v37 }
 0x5ec   :  { %8274 = vmatprep.subr.bf16.mxu1 %v8273_v0  ;;  %v5939_v0 = vld [vmem:[#allocation16 + $0x1c0] sm:$0xff]  ;;  %v8327_v30 = vpack.c.bf16 %v5922_v3, %v5921_v25  ;;  %v9228_v14 = vld [vmem:[#allocation28_spill] sm:$0xff] }
 0x5ee   :  { %7764 = vmatpush1.bf16.msra.mxu0 %v7763_v43  ;;  %v5892_v43 = vld [vmem:[#allocation16 + $0x48] sm:$0xff] }
 0x5ef   :  { %8276 = vmatpush1.bf16.msra.mxu1 %v8275_v31  ;;  %7766 = vmatprep.subr.bf16.mxu0 %v7765_v52  ;;  %v5923_v31 = vld [vmem:[#allocation16 + $0x140] sm:$0xff]  ;;  %v8329_v52 = vpack.c.bf16 %v5940_v49, %v5939_v0  ;;  %v8299_v39 = vpack.c.bf16 %v5892_v43, %v5891_v62 }
 0x5f0   :  { %8278 = vmatprep.subr.bf16.mxu1 %v8277_v36  ;;  %v5941_v36 = vld [vmem:[#allocation16 + $0x1d0] sm:$0xff]  ;;  %v8331_v6 = vpack.c.bf16 %v5924_v51, %v5923_v31  ;;  %v6162_v31 = vld [vmem:[#allocation18] ss:$0 sm:$0xff] }
 0x5f2   :  { %7768 = vmatpush1.bf16.msra.mxu0 %v7767_v46  ;;  %v5894_v46 = vld [vmem:[#allocation16 + $0x58] sm:$0xff] }
 0x5f3   :  { %8280 = vmatpush1.bf16.msra.mxu1 %v8279_v56  ;;  %8282 = vmatprep.subr.bf16.mxu0 %v8281_v26  ;;  %v5925_v56 = vld [vmem:[#allocation16 + $0x150] sm:$0xff]  ;;  %v8333_v26 = vpack.c.bf16 %v5942_v15, %v5941_v36  ;;  %v8303_v10 = vpack.c.bf16 %v5894_v46, %v5893_v7 }
 0x5f4   :  { %8314 = vmatprep.subr.bf16.mxu1 %v8313_v55  ;;  %v5943_v55 = vld [vmem:[#allocation16 + $0x1e0] sm:$0xff]  ;;  %v8335_v57 = vpack.c.bf16 %v5926_v42, %v5925_v56 }
 0x5f5   :  { %5279 = vmatmul.mubr.f32.vlgmr.msra.gmra.mrb[16].mxu0 %v9093_v21  ;;  %v8337_v27 = vpack.c.bf16 %v5944_v11, %v5943_v55 }
 0x5f6   :  { %5847 = vmatmul.mubr.f32.vlgmr.msra.gmra.mrb[16].mxu1 %v9093_v21  ;;  %8284 = vmatpush3.bf16.msra.mxu0 %v8283_v41  ;;  %v8323_v21 = vpack.c.bf16 %v5920_v24, %v5919_v5  ;;  %v5895_v41 = vld [vmem:[#allocation16 + $0x60] sm:$0xff]  ;;  %v8343_v5 = vpack.c.bf16 %v5930_v4, %v5929_v8 }
 0x5f7   :  { %8316 = vmatpush3.bf16.msra.mxu1 %v8315_v54  ;;  %8286 = vmatprep.subr.bf16.mxu0 %v8285_v59  ;;  %v5896_v54 = vld [vmem:[#allocation16 + $0x68] sm:$0xff]  ;;  %v5927_v59 = vld [vmem:[#allocation16 + $0x160] sm:$0xff] }
 0x5f8   :  { %8318 = vmatprep.subr.bf16.mxu1 %v8317_v13  ;;  %v8307_v47 = vpack.c.bf16 %v5896_v54, %v5895_v41  ;;  %v8339_v53 = vpack.c.bf16 %v5928_v18, %v5927_v59  ;;  %v5913_v13 = vld [vmem:[#allocation16 + $0xf0] sm:$0xff]  ;;  %v9226_v24 = vld [vmem:[#allocation26_spill] sm:$0xff] }
 0x5f9   :  { %v8309_v20 = vpack.c.bf16 %v5914_v61, %v5913_v13 }
 0x5fa   :  { %8288 = vmatpush3.bf16.msra.mxu0 %v8287_v17  ;;  %v5898_v17 = vld [vmem:[#allocation16 + $0x78] sm:$0xff] }
 0x5fb   :  { %8320 = vmatpush3.bf16.msra.mxu1 %v8319_v22  ;;  %8290 = vmatprep.subr.bf16.mxu0 %v8289_v1  ;;  %v8341_v22 = vpack.c.bf16 %v5946_v16, %v5945_v58  ;;  %v8311_v1 = vpack.c.bf16 %v5898_v17, %v5897_v12 }
 0x5fc   :  { %8322 = vmatprep.subr.bf16.mxu1 %v8321_v63  ;;  %v5853_v63 = vld [vmem:[#allocation15] sm:$0xf] }
 0x5fd   :  { %v5858_v60 = vrot.slane %v5853_v63, %v9226_v24  ;;  %v5866_v23 = vrot.slane %v5853_v63, %v9227_v50 }
 0x5fe   :  { %8292 = vmatpush3.bf16.msra.mxu0 %v8291_v19  ;;  %v5862_v19 = vrot.slane %v5853_v63, %v9228_v14 }
 0x5ff   :  { %8324 = vmatpush3.bf16.msra.mxu1 %v8323_v21  ;;  %8294 = vmatprep.subr.bf16.mxu0 %v8293_v40  ;;  %v9229_v21 = vld [vmem:[#allocation29_spill] sm:$0xff] }
 0x600   :  { %8326 = vmatprep.subr.bf16.mxu1 %v8325_v44  ;;  %v5870_v40 = vrot.slane %v5853_v63, %v9229_v21 }
 0x602   :  { %8296 = vmatpush3.bf16.msra.mxu0 %v8295_v29 }
 0x603   :  { %8328 = vmatpush3.bf16.msra.mxu1 %v8327_v30  ;;  %8298 = vmatprep.subr.bf16.mxu0 %v8297_v35 }
 0x604   :  { %8330 = vmatprep.subr.bf16.mxu1 %v8329_v52 }
 0x606   :  { %8300 = vmatpush3.bf16.msra.mxu0 %v8299_v39 }
 0x607   :  { %8332 = vmatpush3.bf16.msra.mxu1 %v8331_v6  ;;  %8302 = vmatprep.subr.bf16.mxu0 %v8301_v48 }
 0x608   :  { %8334 = vmatprep.subr.bf16.mxu1 %v8333_v26 }
 0x60a   :  { %8304 = vmatpush3.bf16.msra.mxu0 %v8303_v10 }
 0x60b   :  { %8336 = vmatpush3.bf16.msra.mxu1 %v8335_v57  ;;  %8306 = vmatprep.subr.bf16.mxu0 %v8305_v33 }
 0x60c   :  { %8338 = vmatprep.subr.bf16.mxu1 %v8337_v27 }
 0x60e   :  { %8308 = vmatpush3.bf16.msra.mxu0 %v8307_v47 }
 0x60f   :  { %8340 = vmatpush3.bf16.msra.mxu1 %v8339_v53  ;;  %8310 = vmatprep.subr.bf16.mxu0 %v8309_v20 }
 0x610   :  { %8342 = vmatprep.subr.bf16.mxu1 %v8341_v22 }
 0x612   :  { %8312 = vmatpush3.bf16.msra.mxu0 %v8311_v1 }
 0x613   :  { %8344 = vmatpush3.bf16.msra.mxu1 %v8343_v5 }
 0x6c8   :  { %v5280_v37 = vpop.f32.mrb[16].mxu0 }
 0x6c9   :  { %v5875_v38 = vadd.f32 %v5858_v60, %v5280_v37  ;;  %v5848_v25 = vpop.f32.mrb[16].mxu1  ;;  %v5282_v44 = vpop.f32.mrb[17].mxu0 }
 0x6ca   :  { %v5877_v3 = vadd.f32 %v5866_v23, %v5848_v25  ;;  %v5876_v34 = vadd.f32 %v5862_v19, %v5282_v44  ;;  %v5850_v28 = vpop.f32.mrb[17].mxu1 }
 0x6cb   :  { %v5878_v0 = vadd.f32 %v5870_v40, %v5850_v28  ;;  %v5879_v29 = vmax.f32 %v5875_v38, 0.0 }
 0x6cc   :  { %v5880_v49 = vmax.f32 %v5876_v34, 0.0  ;;  %v5881_v35 = vmax.f32 %v5877_v3, 0.0 }
 0x6cd   :  { %v5882_v30 = vmax.f32 %v5878_v0, 0.0 }
 0x6ce   :  { %6018 = vmatprep.mubr.f32.mxu0 %v5880_v49 }
 0x6cf   :  { %6088 = vmatprep.mubr.f32.mxu1 %v5882_v30  ;;  %6019 = vmatmul.mubr.f32.vlgmr.msra.gmra.mrb[18].mxu0 %v5879_v29 }
 0x6d0   :  { %6089 = vmatmul.mubr.f32.vlgmr.msra.gmra.mrb[18].mxu1 %v5881_v35 }
 0x7a2   :  { %v6195_v62 = vpop.f32.mrb[18].mxu0 }
 0x7a3   :  { %v6230_v43 = vpop.f32.mrb[18].mxu1  ;;  %v6196_v52 = vpop.f32.mrb[19].mxu0 }
 0x7a4   :  { %v6197_v51 = vadd.f32 %v6196_v52, %v6195_v62  ;;  %v6231_v9 = vpop.f32.mrb[19].mxu1 }
 0x7a5   :  { %v6232_v32 = vadd.f32 %v6231_v9, %v6230_v43 }
 0x7a6   :  { %v6021_v36 = vadd.f32 %v6197_v51, %v6162_v31 }
 0x7a8   :  { %v6091_v15 = vadd.f32 %v6232_v32, %v6021_v36 }
 0x7aa   :  { %6094 = vst [vmem:[#allocation19] sm:$0x3] %v6091_v15 }
 0x7ab   :  { %8638 = shalt.err (!%p8635_p6)
}
 0x7ac   :  { %s8639_s25 = scalar_lea.hbm %s9217_s9, 32 }
 0x7ad   :  { %p8640_p7 = scmp.ne.s32.totalorder %s9217_s9, %s8639_s25  ;;  %p8643_p8 = scmp.lt.u32.totalorder %s8639_s25, %s9217_s9 }
 0x7af   :  { %p8645_p9 = pnand %p8643_p8, %p8640_p7 }
 0x7b1   :  { %8648 = shalt.err (!%p8645_p9)
}
 0x7b2   :  { %6104 = dma.vmem_to_hbm [thread:$0]  %s6102_s30, 32, %s9217_s9, [#allocation6]  }
 0x7b3   :  { %8659 = dma.done.wait [#allocation6], 32  }
 0x7b4   :  { %8660 = vsyncadd [#allocation6], 4294967264 }
 0x7b5   :  { %6108 = vsyncpa [#allocation5], 1 }
 0x7b6   :  { %6109 = vsyncpa [#allocation8], 1 }
 0x7b7   :  { %6110 = vsyncpa [#allocation11], 1 }
 0x7b8   :  { %6111 = vsyncpa [#allocation14], 1 }
 0x7b9   :  { %6112 = vsyncpa [#allocation17], 1 }
 0x7ba   :  { %6113 = vsyncpa [#allocation6], 1 }

</bundles_post_ra>
